<compile_context>
chip_gen: v6e
topology: v6e:2x2x1
jax: 0.10.0
libtpu: 0.0.40
codegen_flags: <defaults>
</compile_context>

<pallas_src>
import math

import jax
import jax.numpy as jnp
from jax.experimental import pallas as pl
from jax.experimental.pallas import tpu as pltpu

NUM_CHANNELS = 5   # `Num_channels` in the reference
SEQUENCE_SIZE = 1  # `Sequence_size` in the reference

_FRONT_DIMS = [(NUM_CHANNELS, 64), (64, 64), (64, 64),        # cnn1
               (64, 128), (128, 128), (128, 128),             # cnn2
               (128, 1024), (1024, 1024), (1024, 1024)]       # cnn3
_BACK_DIMS = [(1024, 512), (512, 512), (512, 512),            # cnn4
              (512, 256), (256, 256), (256, 256),             # cnn5
              (256, NUM_CHANNELS ** 2)]                       # fc (no ReLU)

_VMEM = pl.BlockSpec(memory_space=pltpu.MemorySpace.VMEM)
_ANY = pl.BlockSpec(memory_space=pl.ANY)
_COMPILER_PARAMS = pltpu.CompilerParams(vmem_limit_bytes=32 * 1024 * 1024)


def _round_up(n, m):
    return (n + m - 1) // m * m


# 128-aligned lane offsets of every bias inside the single packed bias input.
_BIAS_OFFSETS = []
_off = 0
for _, _dout in _FRONT_DIMS + _BACK_DIMS:
    _BIAS_OFFSETS.append(_off)
    _off = _round_up(_off + _dout, 128)
_BIAS_TOTAL = _off


# ------------------------------- Pallas kernel --------------------------------

def _tnet_kernel(x_ref,
                 wf1, wf2, wf3, wf4, wf5, wf6, wf7,    # cnn1-3 layers 1..7 (bf16)
                 wb2, wb3, wb4, wb5, wb6,              # cnn4-5 layers 2..6 (bf16)
                 wfc, bias_ref,                        # fc weight (f32), packed biases (f32)
                 wf8_hbm, wf9_hbm, wb1_hbm,            # big weights left in HBM (bf16)
                 o_ref,
                 wf8_v, wf9_v, wb1_v, mat_v, sem):
    p, c = x_ref.shape
    n9 = wf9_v.shape[-1]                               # 1024
    g_per_pt = n9 // p

    # Start streaming the three big weight matrices so they overlap the compute
    # below (BlockSpec'd inputs are already resident before the body runs).
    cp8 = pltpu.make_async_copy(wf8_hbm, wf8_v, sem.at[0])
    cp9 = pltpu.make_async_copy(wf9_hbm, wf9_v, sem.at[1])
    cpb = pltpu.make_async_copy(wb1_hbm, wb1_v, sem.at[2])
    cp8.start()
    cp9.start()
    cpb.start()

    def layer(h, w, bias_idx):
        off = _BIAS_OFFSETS[bias_idx]
        b = bias_ref[:, off:off + w.shape[-1]]
        y = jnp.dot(h.astype(jnp.bfloat16), w,
                    preferred_element_type=jnp.float32) + b
        return jnp.maximum(y, 0.0)

    # cnn1 + cnn2 + first cnn3 layer (per point).
    h = x_ref[...].astype(jnp.float32)
    for i, w in enumerate((wf1, wf2, wf3, wf4, wf5, wf6, wf7)):
        h = layer(h, w[...], i)
    cp8.wait()
    h = layer(h, wf8_v[...], 7)
    cp9.wait()
    h = layer(h, wf9_v[...], 8)                        # (p, 1024), columns permuted

    # torch MaxPool: out.view(-1, 1024, P) + MaxPool1d(P).  The host
    # pre-permuted the columns of the previous layer so pooled group (pt, g)
    # occupies lanes {j*G + g, j < P}: the pool is P-1 elementwise maxima of
    # contiguous (P, G) lane blocks -- no reshape / transpose / relayout.
    pooled = h[:, 0:g_per_pt]
    for j in range(1, p):
        pooled = jnp.maximum(pooled, h[:, j * g_per_pt:(j + 1) * g_per_pt])

    # First cnn4 layer:  g(1,1024) @ W  with g[pt*G + g'] = pooled[pt, g'],
    # decomposed into P small (1, G) x (G, 512) dots so the (P, G) -> (1, 1024)
    # flatten never materialises.
    cpb.wait()
    nb1 = wb1_v.shape[-1]
    off = _BIAS_OFFSETS[9]
    acc = bias_ref[:, off:off + nb1]
    for pt in range(p):
        acc = acc + jnp.dot(pooled[pt:pt + 1, :].astype(jnp.bfloat16),
                            wb1_v[pt * g_per_pt:(pt + 1) * g_per_pt, :],
                            preferred_element_type=jnp.float32)
    h = jnp.maximum(acc, 0.0)                          # (1, 512)

    # Rest of cnn4 + cnn5.
    for i, w in enumerate((wb2, wb3, wb4, wb5, wb6)):
        h = layer(h, w[...], 10 + i)

    # fc head (kept f32, no ReLU); result stays in VMEM.
    off = _BIAS_OFFSETS[15]
    v = (jnp.dot(h, wfc[...], preferred_element_type=jnp.float32)
         + bias_ref[:, off:off + c * c])               # (1, c*c)
    mat_v[...] = v

    # out = x @ matrix, matrix = v.view(c, c): c broadcast multiply-adds.
    out = jnp.zeros(o_ref.shape, jnp.float32)
    for ch in range(c):
        out = out + (x_ref[:, ch:ch + 1].astype(jnp.float32)
                     * mat_v[:, ch * c:(ch + 1) * c])
    o_ref[...] = out.astype(o_ref.dtype)


# ---------------------------------- wrapper -----------------------------------

def input_tnet_forward(packed, x):
    """x: (num_points, NUM_CHANNELS) == torch input_data.view(-1, Num_channels)."""
    p, c = x.shape
    fw, bw = packed["front_w"], packed["back_w"]
    n9 = fw[-1].shape[-1]
    if n9 % p != 0:
        raise ValueError("num_points must divide 1024 (torch view regrouping)")

    operands = (x,
                fw[0], fw[1], fw[2], fw[3], fw[4], fw[5], fw[6],
                bw[1], bw[2], bw[3], bw[4], bw[5],
                packed["fc_w"], packed["bias"],
                fw[7], fw[8], bw[0])

    return pl.pallas_call(
        _tnet_kernel,
        out_shape=jax.ShapeDtypeStruct((p, c), jnp.float32),
        in_specs=[_VMEM] * 15 + [_ANY] * 3,
        out_specs=_VMEM,
        scratch_shapes=[
            pltpu.VMEM(fw[7].shape, jnp.bfloat16),
            pltpu.VMEM(fw[8].shape, jnp.bfloat16),
            pltpu.VMEM(bw[0].shape, jnp.bfloat16),
            pltpu.VMEM((1, c * c), jnp.float32),
            pltpu.SemaphoreType.DMA((3,)),
        ],
        compiler_params=_COMPILER_PARAMS,
    )(*operands)


# ------------------------------ params / packing ------------------------------

def init_params(key):
    """PyTorch-default U(-1/sqrt(fan_in), 1/sqrt(fan_in)) for Conv1d(k=1)/Linear."""
    def make(k, dims):
        layers = []
        for i, (din, dout) in enumerate(dims):
            kw, kb = jax.random.split(jax.random.fold_in(k, i))
            bound = 1.0 / math.sqrt(din)
            w = jax.random.uniform(kw, (din, dout), jnp.float32, -bound, bound)
            b = jax.random.uniform(kb, (1, dout), jnp.float32, -bound, bound)
            layers.append((w, b))
        return layers

    kf, kb = jax.random.split(key)
    return {"front": make(kf, _FRONT_DIMS), "back": make(kb, _BACK_DIMS)}


def pack_params(params, num_points):
    """Kernel-ready operands: bf16 weights (fc stays f32), the last cnn3 layer
    column-permuted so the torch mixed-axis max-pool is lane-block contiguous,
    and all 16 biases packed into one lane-padded f32 vector."""
    p = num_points
    front, back = params["front"], params["back"]
    n9 = front[-1][0].shape[-1]
    assert n9 % p == 0, "num_points must divide 1024"
    g_per_pt = n9 // p

    cols = jnp.arange(n9)
    perm = (cols % g_per_pt) * p + (cols // g_per_pt)   # new column -> old column

    front_w = [w.astype(jnp.bfloat16) for w, _ in front]
    front_b = [b for _, b in front]
    front_w[-1] = front_w[-1][:, perm]
    front_b[-1] = front_b[-1][:, perm]

    back_w = [w.astype(jnp.bfloat16) for w, _ in back[:-1]]
    back_b = [b for _, b in back[:-1]]
    fc_w, fc_b = back[-1]                               # fc kept in f32

    biases = front_b + back_b + [fc_b]
    packed_bias = jnp.zeros((1, _BIAS_TOTAL), jnp.float32)
    for b, off in zip(biases, _BIAS_OFFSETS):
        packed_bias = packed_bias.at[:, off:off + b.shape[-1]].set(b)

    return {"front_w": front_w, "back_w": back_w, "fc_w": fc_w,
            "bias": packed_bias}


def reference_forward(params, x):
    """Pure-jnp reference with the kernel's numerics (bf16 weights, bf16-cast
    activations at every matmul input, f32 accumulation, f32 fc head) and the
    literal torch pooling semantics."""
    p, c = x.shape

    def lin(h, w, b):
        return jnp.dot(h.astype(jnp.bfloat16), w.astype(jnp.bfloat16),
                       preferred_element_type=jnp.float32) + b

    h = x
    for w, b in params["front"]:
        h = jnp.maximum(lin(h, w, b), 0.0)
    n9 = params["front"][-1][0].shape[-1]
    g = jnp.max(h.reshape(n9, p), axis=-1)[None, :]     # .view(-1,1024,P)+MaxPool1d(P)
    h = g
    for w, b in params["back"][:-1]:
        h = jnp.maximum(lin(h, w, b), 0.0)
    wf, bf = params["back"][-1]
    v = jnp.dot(h, wf, preferred_element_type=jnp.float32) + bf
    mat = v.reshape(c, c)
    return jnp.dot(x, mat, preferred_element_type=jnp.float32)


if __name__ == "__main__":
    num_points = 16

    key = jax.random.PRNGKey(0)
    pkey, xkey = jax.random.split(key)
    params = init_params(pkey)
    packed = pack_params(params, num_points)
    x = jax.random.normal(xkey, (num_points, NUM_CHANNELS), dtype=jnp.float32)

    fwd = jax.jit(input_tnet_forward)
    out = jax.block_until_ready(fwd(packed, x))

    assert out.shape == (num_points, NUM_CHANNELS), out.shape
    assert bool(jnp.all(jnp.isfinite(out)))

    ref = reference_forward(params, x)
    err = float(jnp.max(jnp.abs(out - ref)))
    assert bool(jnp.allclose(out, ref, rtol=5e-3, atol=5e-3)), err

    print("KERNEL_OK")
</pallas_src>

<mosaic_0001>
module attributes {stable_mosaic.version = 11 : i64} {
  func.func @_tnet_kernel(%arg0: memref<16x5xf32, #tpu.memory_space<vmem>>, %arg1: memref<5x64xbf16, #tpu.memory_space<vmem>>, %arg2: memref<64x64xbf16, #tpu.memory_space<vmem>>, %arg3: memref<64x64xbf16, #tpu.memory_space<vmem>>, %arg4: memref<64x128xbf16, #tpu.memory_space<vmem>>, %arg5: memref<128x128xbf16, #tpu.memory_space<vmem>>, %arg6: memref<128x128xbf16, #tpu.memory_space<vmem>>, %arg7: memref<128x1024xbf16, #tpu.memory_space<vmem>>, %arg8: memref<512x512xbf16, #tpu.memory_space<vmem>>, %arg9: memref<512x512xbf16, #tpu.memory_space<vmem>>, %arg10: memref<512x256xbf16, #tpu.memory_space<vmem>>, %arg11: memref<256x256xbf16, #tpu.memory_space<vmem>>, %arg12: memref<256x256xbf16, #tpu.memory_space<vmem>>, %arg13: memref<256x25xf32, #tpu.memory_space<vmem>>, %arg14: memref<1x6272xf32, #tpu.memory_space<vmem>>, %arg15: memref<1024x1024xbf16, #tpu.memory_space<any>>, %arg16: memref<1024x1024xbf16, #tpu.memory_space<any>>, %arg17: memref<1024x512xbf16, #tpu.memory_space<any>>, %arg18: memref<16x5xf32, #tpu.memory_space<vmem>>, %arg19: memref<1024x1024xbf16, #tpu.memory_space<vmem>>, %arg20: memref<1024x1024xbf16, #tpu.memory_space<vmem>>, %arg21: memref<1024x512xbf16, #tpu.memory_space<vmem>>, %arg22: memref<1x25xf32, #tpu.memory_space<vmem>>, %arg23: memref<3x!tpu.dma_semaphore, #tpu.memory_space<semaphore_mem>>) attributes {dimension_semantics = [], scalar_prefetch = 0 : i64, scratch_operands = 5 : i64, tpu.core_type = #tpu.core_type<tc>} {
    %c0_i32 = arith.constant 0 : i32
    %0 = tpu.memref_slice %arg23[%c0_i32] : memref<3x!tpu.dma_semaphore, #tpu.memory_space<semaphore_mem>> -> memref<1x!tpu.dma_semaphore, #tpu.memory_space<semaphore_mem>>
    %1 = tpu.memref_squeeze %0 : memref<1x!tpu.dma_semaphore, #tpu.memory_space<semaphore_mem>> -> memref<!tpu.dma_semaphore, #tpu.memory_space<semaphore_mem>>
    tpu.enqueue_dma source(%arg15 : memref<1024x1024xbf16, #tpu.memory_space<any>>) target(%arg19 : memref<1024x1024xbf16, #tpu.memory_space<vmem>>) target_semaphore(%1 : memref<!tpu.dma_semaphore, #tpu.memory_space<semaphore_mem>>)
    %c1_i32 = arith.constant 1 : i32
    %2 = tpu.memref_slice %arg23[%c1_i32] : memref<3x!tpu.dma_semaphore, #tpu.memory_space<semaphore_mem>> -> memref<1x!tpu.dma_semaphore, #tpu.memory_space<semaphore_mem>>
    %3 = tpu.memref_squeeze %2 : memref<1x!tpu.dma_semaphore, #tpu.memory_space<semaphore_mem>> -> memref<!tpu.dma_semaphore, #tpu.memory_space<semaphore_mem>>
    tpu.enqueue_dma source(%arg16 : memref<1024x1024xbf16, #tpu.memory_space<any>>) target(%arg20 : memref<1024x1024xbf16, #tpu.memory_space<vmem>>) target_semaphore(%3 : memref<!tpu.dma_semaphore, #tpu.memory_space<semaphore_mem>>)
    %c2_i32 = arith.constant 2 : i32
    %4 = tpu.memref_slice %arg23[%c2_i32] : memref<3x!tpu.dma_semaphore, #tpu.memory_space<semaphore_mem>> -> memref<1x!tpu.dma_semaphore, #tpu.memory_space<semaphore_mem>>
    %5 = tpu.memref_squeeze %4 : memref<1x!tpu.dma_semaphore, #tpu.memory_space<semaphore_mem>> -> memref<!tpu.dma_semaphore, #tpu.memory_space<semaphore_mem>>
    tpu.enqueue_dma source(%arg17 : memref<1024x512xbf16, #tpu.memory_space<any>>) target(%arg21 : memref<1024x512xbf16, #tpu.memory_space<vmem>>) target_semaphore(%5 : memref<!tpu.dma_semaphore, #tpu.memory_space<semaphore_mem>>)
    %c0 = arith.constant 0 : index
    %c0_0 = arith.constant 0 : index
    %6 = vector.load %arg0[%c0, %c0_0] : memref<16x5xf32, #tpu.memory_space<vmem>>, vector<16x5xf32>
    %c0_1 = arith.constant 0 : index
    %c0_2 = arith.constant 0 : index
    %7 = vector.load %arg1[%c0_1, %c0_2] : memref<5x64xbf16, #tpu.memory_space<vmem>>, vector<5x64xbf16>
    %c0_3 = arith.constant 0 : index
    %c0_4 = arith.constant 0 : index
    %8 = vector.load %arg14[%c0_3, %c0_4] : memref<1x6272xf32, #tpu.memory_space<vmem>>, vector<1x64xf32>
    %9 = arith.truncf %6 : vector<16x5xf32> to vector<16x5xbf16>
    %cst = arith.constant dense<0.000000e+00> : vector<16x64xf32>
    %10 = tpu.matmul %9, %7, %cst {dimension_numbers = #tpu.dot_dimension_numbers<[1], [0], [0], [1], [0, 0, 1, 1], [], []>} : vector<16x5xbf16>, vector<5x64xbf16>, vector<16x64xf32> -> vector<16x64xf32>
    %11 = vector.broadcast %8 : vector<1x64xf32> to vector<16x64xf32>
    %12 = arith.addf %10, %11 : vector<16x64xf32>
    %cst_5 = arith.constant 0.000000e+00 : f32
    %13 = vector.broadcast %cst_5 : f32 to vector<16x64xf32>
    %14 = arith.maximumf %12, %13 : vector<16x64xf32>
    %c0_6 = arith.constant 0 : index
    %c0_7 = arith.constant 0 : index
    %15 = vector.load %arg2[%c0_6, %c0_7] : memref<64x64xbf16, #tpu.memory_space<vmem>>, vector<64x64xbf16>
    %c0_8 = arith.constant 0 : index
    %c128 = arith.constant 128 : index
    %16 = vector.load %arg14[%c0_8, %c128] : memref<1x6272xf32, #tpu.memory_space<vmem>>, vector<1x64xf32>
    %17 = arith.truncf %14 : vector<16x64xf32> to vector<16x64xbf16>
    %cst_9 = arith.constant dense<0.000000e+00> : vector<16x64xf32>
    %18 = tpu.matmul %17, %15, %cst_9 {dimension_numbers = #tpu.dot_dimension_numbers<[1], [0], [0], [1], [0, 0, 1, 1], [], []>} : vector<16x64xbf16>, vector<64x64xbf16>, vector<16x64xf32> -> vector<16x64xf32>
    %19 = vector.broadcast %16 : vector<1x64xf32> to vector<16x64xf32>
    %20 = arith.addf %18, %19 : vector<16x64xf32>
    %cst_10 = arith.constant 0.000000e+00 : f32
    %21 = vector.broadcast %cst_10 : f32 to vector<16x64xf32>
    %22 = arith.maximumf %20, %21 : vector<16x64xf32>
    %c0_11 = arith.constant 0 : index
    %c0_12 = arith.constant 0 : index
    %23 = vector.load %arg3[%c0_11, %c0_12] : memref<64x64xbf16, #tpu.memory_space<vmem>>, vector<64x64xbf16>
    %c0_13 = arith.constant 0 : index
    %c256 = arith.constant 256 : index
    %24 = vector.load %arg14[%c0_13, %c256] : memref<1x6272xf32, #tpu.memory_space<vmem>>, vector<1x64xf32>
    %25 = arith.truncf %22 : vector<16x64xf32> to vector<16x64xbf16>
    %cst_14 = arith.constant dense<0.000000e+00> : vector<16x64xf32>
    %26 = tpu.matmul %25, %23, %cst_14 {dimension_numbers = #tpu.dot_dimension_numbers<[1], [0], [0], [1], [0, 0, 1, 1], [], []>} : vector<16x64xbf16>, vector<64x64xbf16>, vector<16x64xf32> -> vector<16x64xf32>
    %27 = vector.broadcast %24 : vector<1x64xf32> to vector<16x64xf32>
    %28 = arith.addf %26, %27 : vector<16x64xf32>
    %cst_15 = arith.constant 0.000000e+00 : f32
    %29 = vector.broadcast %cst_15 : f32 to vector<16x64xf32>
    %30 = arith.maximumf %28, %29 : vector<16x64xf32>
    %c0_16 = arith.constant 0 : index
    %c0_17 = arith.constant 0 : index
    %31 = vector.load %arg4[%c0_16, %c0_17] : memref<64x128xbf16, #tpu.memory_space<vmem>>, vector<64x128xbf16>
    %c0_18 = arith.constant 0 : index
    %c384 = arith.constant 384 : index
    %32 = vector.load %arg14[%c0_18, %c384] : memref<1x6272xf32, #tpu.memory_space<vmem>>, vector<1x128xf32>
    %33 = arith.truncf %30 : vector<16x64xf32> to vector<16x64xbf16>
    %cst_19 = arith.constant dense<0.000000e+00> : vector<16x128xf32>
    %34 = tpu.matmul %33, %31, %cst_19 {dimension_numbers = #tpu.dot_dimension_numbers<[1], [0], [0], [1], [0, 0, 1, 1], [], []>} : vector<16x64xbf16>, vector<64x128xbf16>, vector<16x128xf32> -> vector<16x128xf32>
    %35 = vector.broadcast %32 : vector<1x128xf32> to vector<16x128xf32>
    %36 = arith.addf %34, %35 : vector<16x128xf32>
    %cst_20 = arith.constant 0.000000e+00 : f32
    %37 = vector.broadcast %cst_20 : f32 to vector<16x128xf32>
    %38 = arith.maximumf %36, %37 : vector<16x128xf32>
    %c0_21 = arith.constant 0 : index
    %c0_22 = arith.constant 0 : index
    %39 = vector.load %arg5[%c0_21, %c0_22] : memref<128x128xbf16, #tpu.memory_space<vmem>>, vector<128x128xbf16>
    %c0_23 = arith.constant 0 : index
    %c512 = arith.constant 512 : index
    %40 = vector.load %arg14[%c0_23, %c512] : memref<1x6272xf32, #tpu.memory_space<vmem>>, vector<1x128xf32>
    %41 = arith.truncf %38 : vector<16x128xf32> to vector<16x128xbf16>
    %cst_24 = arith.constant dense<0.000000e+00> : vector<16x128xf32>
    %42 = tpu.matmul %41, %39, %cst_24 {dimension_numbers = #tpu.dot_dimension_numbers<[1], [0], [0], [1], [0, 0, 1, 1], [], []>} : vector<16x128xbf16>, vector<128x128xbf16>, vector<16x128xf32> -> vector<16x128xf32>
    %43 = vector.broadcast %40 : vector<1x128xf32> to vector<16x128xf32>
    %44 = arith.addf %42, %43 : vector<16x128xf32>
    %cst_25 = arith.constant 0.000000e+00 : f32
    %45 = vector.broadcast %cst_25 : f32 to vector<16x128xf32>
    %46 = arith.maximumf %44, %45 : vector<16x128xf32>
    %c0_26 = arith.constant 0 : index
    %c0_27 = arith.constant 0 : index
    %47 = vector.load %arg6[%c0_26, %c0_27] : memref<128x128xbf16, #tpu.memory_space<vmem>>, vector<128x128xbf16>
    %c0_28 = arith.constant 0 : index
    %c640 = arith.constant 640 : index
    %48 = vector.load %arg14[%c0_28, %c640] : memref<1x6272xf32, #tpu.memory_space<vmem>>, vector<1x128xf32>
    %49 = arith.truncf %46 : vector<16x128xf32> to vector<16x128xbf16>
    %cst_29 = arith.constant dense<0.000000e+00> : vector<16x128xf32>
    %50 = tpu.matmul %49, %47, %cst_29 {dimension_numbers = #tpu.dot_dimension_numbers<[1], [0], [0], [1], [0, 0, 1, 1], [], []>} : vector<16x128xbf16>, vector<128x128xbf16>, vector<16x128xf32> -> vector<16x128xf32>
    %51 = vector.broadcast %48 : vector<1x128xf32> to vector<16x128xf32>
    %52 = arith.addf %50, %51 : vector<16x128xf32>
    %cst_30 = arith.constant 0.000000e+00 : f32
    %53 = vector.broadcast %cst_30 : f32 to vector<16x128xf32>
    %54 = arith.maximumf %52, %53 : vector<16x128xf32>
    %c0_31 = arith.constant 0 : index
    %c0_32 = arith.constant 0 : index
    %55 = vector.load %arg7[%c0_31, %c0_32] : memref<128x1024xbf16, #tpu.memory_space<vmem>>, vector<128x1024xbf16>
    %c0_33 = arith.constant 0 : index
    %c768 = arith.constant 768 : index
    %56 = vector.load %arg14[%c0_33, %c768] : memref<1x6272xf32, #tpu.memory_space<vmem>>, vector<1x1024xf32>
    %57 = arith.truncf %54 : vector<16x128xf32> to vector<16x128xbf16>
    %cst_34 = arith.constant dense<0.000000e+00> : vector<16x1024xf32>
    %58 = tpu.matmul %57, %55, %cst_34 {dimension_numbers = #tpu.dot_dimension_numbers<[1], [0], [0], [1], [0, 0, 1, 1], [], []>} : vector<16x128xbf16>, vector<128x1024xbf16>, vector<16x1024xf32> -> vector<16x1024xf32>
    %59 = vector.broadcast %56 : vector<1x1024xf32> to vector<16x1024xf32>
    %60 = arith.addf %58, %59 : vector<16x1024xf32>
    %cst_35 = arith.constant 0.000000e+00 : f32
    %61 = vector.broadcast %cst_35 : f32 to vector<16x1024xf32>
    %62 = arith.maximumf %60, %61 : vector<16x1024xf32>
    %c0_i32_36 = arith.constant 0 : i32
    %63 = tpu.memref_slice %arg23[%c0_i32_36] : memref<3x!tpu.dma_semaphore, #tpu.memory_space<semaphore_mem>> -> memref<1x!tpu.dma_semaphore, #tpu.memory_space<semaphore_mem>>
    %64 = tpu.memref_squeeze %63 : memref<1x!tpu.dma_semaphore, #tpu.memory_space<semaphore_mem>> -> memref<!tpu.dma_semaphore, #tpu.memory_space<semaphore_mem>>
    tpu.wait_dma2 semaphore(%64 : memref<!tpu.dma_semaphore, #tpu.memory_space<semaphore_mem>>) src(%arg15 : memref<1024x1024xbf16, #tpu.memory_space<any>>) dst(%arg19 : memref<1024x1024xbf16, #tpu.memory_space<vmem>>)
    %c0_37 = arith.constant 0 : index
    %c0_38 = arith.constant 0 : index
    %65 = vector.load %arg19[%c0_37, %c0_38] : memref<1024x1024xbf16, #tpu.memory_space<vmem>>, vector<1024x1024xbf16>
    %c0_39 = arith.constant 0 : index
    %c1792 = arith.constant 1792 : index
    %66 = vector.load %arg14[%c0_39, %c1792] : memref<1x6272xf32, #tpu.memory_space<vmem>>, vector<1x1024xf32>
    %67 = arith.truncf %62 : vector<16x1024xf32> to vector<16x1024xbf16>
    %cst_40 = arith.constant dense<0.000000e+00> : vector<16x1024xf32>
    %68 = tpu.matmul %67, %65, %cst_40 {dimension_numbers = #tpu.dot_dimension_numbers<[1], [0], [0], [1], [0, 0, 1, 1], [], []>} : vector<16x1024xbf16>, vector<1024x1024xbf16>, vector<16x1024xf32> -> vector<16x1024xf32>
    %69 = vector.broadcast %66 : vector<1x1024xf32> to vector<16x1024xf32>
    %70 = arith.addf %68, %69 : vector<16x1024xf32>
    %cst_41 = arith.constant 0.000000e+00 : f32
    %71 = vector.broadcast %cst_41 : f32 to vector<16x1024xf32>
    %72 = arith.maximumf %70, %71 : vector<16x1024xf32>
    %c1_i32_42 = arith.constant 1 : i32
    %73 = tpu.memref_slice %arg23[%c1_i32_42] : memref<3x!tpu.dma_semaphore, #tpu.memory_space<semaphore_mem>> -> memref<1x!tpu.dma_semaphore, #tpu.memory_space<semaphore_mem>>
    %74 = tpu.memref_squeeze %73 : memref<1x!tpu.dma_semaphore, #tpu.memory_space<semaphore_mem>> -> memref<!tpu.dma_semaphore, #tpu.memory_space<semaphore_mem>>
    tpu.wait_dma2 semaphore(%74 : memref<!tpu.dma_semaphore, #tpu.memory_space<semaphore_mem>>) src(%arg16 : memref<1024x1024xbf16, #tpu.memory_space<any>>) dst(%arg20 : memref<1024x1024xbf16, #tpu.memory_space<vmem>>)
    %c0_43 = arith.constant 0 : index
    %c0_44 = arith.constant 0 : index
    %75 = vector.load %arg20[%c0_43, %c0_44] : memref<1024x1024xbf16, #tpu.memory_space<vmem>>, vector<1024x1024xbf16>
    %c0_45 = arith.constant 0 : index
    %c2816 = arith.constant 2816 : index
    %76 = vector.load %arg14[%c0_45, %c2816] : memref<1x6272xf32, #tpu.memory_space<vmem>>, vector<1x1024xf32>
    %77 = arith.truncf %72 : vector<16x1024xf32> to vector<16x1024xbf16>
    %cst_46 = arith.constant dense<0.000000e+00> : vector<16x1024xf32>
    %78 = tpu.matmul %77, %75, %cst_46 {dimension_numbers = #tpu.dot_dimension_numbers<[1], [0], [0], [1], [0, 0, 1, 1], [], []>} : vector<16x1024xbf16>, vector<1024x1024xbf16>, vector<16x1024xf32> -> vector<16x1024xf32>
    %79 = vector.broadcast %76 : vector<1x1024xf32> to vector<16x1024xf32>
    %80 = arith.addf %78, %79 : vector<16x1024xf32>
    %cst_47 = arith.constant 0.000000e+00 : f32
    %81 = vector.broadcast %cst_47 : f32 to vector<16x1024xf32>
    %82 = arith.maximumf %80, %81 : vector<16x1024xf32>
    %83 = vector.extract_strided_slice %82 {offsets = [0, 0], sizes = [16, 64], strides = [1, 1]} : vector<16x1024xf32> to vector<16x64xf32>
    %84 = vector.extract_strided_slice %82 {offsets = [0, 64], sizes = [16, 64], strides = [1, 1]} : vector<16x1024xf32> to vector<16x64xf32>
    %85 = arith.maximumf %83, %84 : vector<16x64xf32>
    %86 = vector.extract_strided_slice %82 {offsets = [0, 128], sizes = [16, 64], strides = [1, 1]} : vector<16x1024xf32> to vector<16x64xf32>
    %87 = arith.maximumf %85, %86 : vector<16x64xf32>
    %88 = vector.extract_strided_slice %82 {offsets = [0, 192], sizes = [16, 64], strides = [1, 1]} : vector<16x1024xf32> to vector<16x64xf32>
    %89 = arith.maximumf %87, %88 : vector<16x64xf32>
    %90 = vector.extract_strided_slice %82 {offsets = [0, 256], sizes = [16, 64], strides = [1, 1]} : vector<16x1024xf32> to vector<16x64xf32>
    %91 = arith.maximumf %89, %90 : vector<16x64xf32>
    %92 = vector.extract_strided_slice %82 {offsets = [0, 320], sizes = [16, 64], strides = [1, 1]} : vector<16x1024xf32> to vector<16x64xf32>
    %93 = arith.maximumf %91, %92 : vector<16x64xf32>
    %94 = vector.extract_strided_slice %82 {offsets = [0, 384], sizes = [16, 64], strides = [1, 1]} : vector<16x1024xf32> to vector<16x64xf32>
    %95 = arith.maximumf %93, %94 : vector<16x64xf32>
    %96 = vector.extract_strided_slice %82 {offsets = [0, 448], sizes = [16, 64], strides = [1, 1]} : vector<16x1024xf32> to vector<16x64xf32>
    %97 = arith.maximumf %95, %96 : vector<16x64xf32>
    %98 = vector.extract_strided_slice %82 {offsets = [0, 512], sizes = [16, 64], strides = [1, 1]} : vector<16x1024xf32> to vector<16x64xf32>
    %99 = arith.maximumf %97, %98 : vector<16x64xf32>
    %100 = vector.extract_strided_slice %82 {offsets = [0, 576], sizes = [16, 64], strides = [1, 1]} : vector<16x1024xf32> to vector<16x64xf32>
    %101 = arith.maximumf %99, %100 : vector<16x64xf32>
    %102 = vector.extract_strided_slice %82 {offsets = [0, 640], sizes = [16, 64], strides = [1, 1]} : vector<16x1024xf32> to vector<16x64xf32>
    %103 = arith.maximumf %101, %102 : vector<16x64xf32>
    %104 = vector.extract_strided_slice %82 {offsets = [0, 704], sizes = [16, 64], strides = [1, 1]} : vector<16x1024xf32> to vector<16x64xf32>
    %105 = arith.maximumf %103, %104 : vector<16x64xf32>
    %106 = vector.extract_strided_slice %82 {offsets = [0, 768], sizes = [16, 64], strides = [1, 1]} : vector<16x1024xf32> to vector<16x64xf32>
    %107 = arith.maximumf %105, %106 : vector<16x64xf32>
    %108 = vector.extract_strided_slice %82 {offsets = [0, 832], sizes = [16, 64], strides = [1, 1]} : vector<16x1024xf32> to vector<16x64xf32>
    %109 = arith.maximumf %107, %108 : vector<16x64xf32>
    %110 = vector.extract_strided_slice %82 {offsets = [0, 896], sizes = [16, 64], strides = [1, 1]} : vector<16x1024xf32> to vector<16x64xf32>
    %111 = arith.maximumf %109, %110 : vector<16x64xf32>
    %112 = vector.extract_strided_slice %82 {offsets = [0, 960], sizes = [16, 64], strides = [1, 1]} : vector<16x1024xf32> to vector<16x64xf32>
    %113 = arith.maximumf %111, %112 : vector<16x64xf32>
    %c2_i32_48 = arith.constant 2 : i32
    %114 = tpu.memref_slice %arg23[%c2_i32_48] : memref<3x!tpu.dma_semaphore, #tpu.memory_space<semaphore_mem>> -> memref<1x!tpu.dma_semaphore, #tpu.memory_space<semaphore_mem>>
    %115 = tpu.memref_squeeze %114 : memref<1x!tpu.dma_semaphore, #tpu.memory_space<semaphore_mem>> -> memref<!tpu.dma_semaphore, #tpu.memory_space<semaphore_mem>>
    tpu.wait_dma2 semaphore(%115 : memref<!tpu.dma_semaphore, #tpu.memory_space<semaphore_mem>>) src(%arg17 : memref<1024x512xbf16, #tpu.memory_space<any>>) dst(%arg21 : memref<1024x512xbf16, #tpu.memory_space<vmem>>)
    %c0_49 = arith.constant 0 : index
    %c3840 = arith.constant 3840 : index
    %116 = vector.load %arg14[%c0_49, %c3840] : memref<1x6272xf32, #tpu.memory_space<vmem>>, vector<1x512xf32>
    %117 = vector.extract_strided_slice %113 {offsets = [0, 0], sizes = [1, 64], strides = [1, 1]} : vector<16x64xf32> to vector<1x64xf32>
    %118 = arith.truncf %117 : vector<1x64xf32> to vector<1x64xbf16>
    %c0_50 = arith.constant 0 : index
    %c0_51 = arith.constant 0 : index
    %119 = vector.load %arg21[%c0_50, %c0_51] : memref<1024x512xbf16, #tpu.memory_space<vmem>>, vector<64x512xbf16>
    %cst_52 = arith.constant dense<0.000000e+00> : vector<1x512xf32>
    %120 = tpu.matmul %118, %119, %cst_52 {dimension_numbers = #tpu.dot_dimension_numbers<[1], [0], [0], [1], [0, 0, 1, 1], [], []>} : vector<1x64xbf16>, vector<64x512xbf16>, vector<1x512xf32> -> vector<1x512xf32>
    %121 = arith.addf %116, %120 : vector<1x512xf32>
    %122 = vector.extract_strided_slice %113 {offsets = [1, 0], sizes = [1, 64], strides = [1, 1]} : vector<16x64xf32> to vector<1x64xf32>
    %123 = arith.truncf %122 : vector<1x64xf32> to vector<1x64xbf16>
    %c64 = arith.constant 64 : index
    %c0_53 = arith.constant 0 : index
    %124 = vector.load %arg21[%c64, %c0_53] : memref<1024x512xbf16, #tpu.memory_space<vmem>>, vector<64x512xbf16>
    %cst_54 = arith.constant dense<0.000000e+00> : vector<1x512xf32>
    %125 = tpu.matmul %123, %124, %cst_54 {dimension_numbers = #tpu.dot_dimension_numbers<[1], [0], [0], [1], [0, 0, 1, 1], [], []>} : vector<1x64xbf16>, vector<64x512xbf16>, vector<1x512xf32> -> vector<1x512xf32>
    %126 = arith.addf %121, %125 : vector<1x512xf32>
    %127 = vector.extract_strided_slice %113 {offsets = [2, 0], sizes = [1, 64], strides = [1, 1]} : vector<16x64xf32> to vector<1x64xf32>
    %128 = arith.truncf %127 : vector<1x64xf32> to vector<1x64xbf16>
    %c128_55 = arith.constant 128 : index
    %c0_56 = arith.constant 0 : index
    %129 = vector.load %arg21[%c128_55, %c0_56] : memref<1024x512xbf16, #tpu.memory_space<vmem>>, vector<64x512xbf16>
    %cst_57 = arith.constant dense<0.000000e+00> : vector<1x512xf32>
    %130 = tpu.matmul %128, %129, %cst_57 {dimension_numbers = #tpu.dot_dimension_numbers<[1], [0], [0], [1], [0, 0, 1, 1], [], []>} : vector<1x64xbf16>, vector<64x512xbf16>, vector<1x512xf32> -> vector<1x512xf32>
    %131 = arith.addf %126, %130 : vector<1x512xf32>
    %132 = vector.extract_strided_slice %113 {offsets = [3, 0], sizes = [1, 64], strides = [1, 1]} : vector<16x64xf32> to vector<1x64xf32>
    %133 = arith.truncf %132 : vector<1x64xf32> to vector<1x64xbf16>
    %c192 = arith.constant 192 : index
    %c0_58 = arith.constant 0 : index
    %134 = vector.load %arg21[%c192, %c0_58] : memref<1024x512xbf16, #tpu.memory_space<vmem>>, vector<64x512xbf16>
    %cst_59 = arith.constant dense<0.000000e+00> : vector<1x512xf32>
    %135 = tpu.matmul %133, %134, %cst_59 {dimension_numbers = #tpu.dot_dimension_numbers<[1], [0], [0], [1], [0, 0, 1, 1], [], []>} : vector<1x64xbf16>, vector<64x512xbf16>, vector<1x512xf32> -> vector<1x512xf32>
    %136 = arith.addf %131, %135 : vector<1x512xf32>
    %137 = vector.extract_strided_slice %113 {offsets = [4, 0], sizes = [1, 64], strides = [1, 1]} : vector<16x64xf32> to vector<1x64xf32>
    %138 = arith.truncf %137 : vector<1x64xf32> to vector<1x64xbf16>
    %c256_60 = arith.constant 256 : index
    %c0_61 = arith.constant 0 : index
    %139 = vector.load %arg21[%c256_60, %c0_61] : memref<1024x512xbf16, #tpu.memory_space<vmem>>, vector<64x512xbf16>
    %cst_62 = arith.constant dense<0.000000e+00> : vector<1x512xf32>
    %140 = tpu.matmul %138, %139, %cst_62 {dimension_numbers = #tpu.dot_dimension_numbers<[1], [0], [0], [1], [0, 0, 1, 1], [], []>} : vector<1x64xbf16>, vector<64x512xbf16>, vector<1x512xf32> -> vector<1x512xf32>
    %141 = arith.addf %136, %140 : vector<1x512xf32>
    %142 = vector.extract_strided_slice %113 {offsets = [5, 0], sizes = [1, 64], strides = [1, 1]} : vector<16x64xf32> to vector<1x64xf32>
    %143 = arith.truncf %142 : vector<1x64xf32> to vector<1x64xbf16>
    %c320 = arith.constant 320 : index
    %c0_63 = arith.constant 0 : index
    %144 = vector.load %arg21[%c320, %c0_63] : memref<1024x512xbf16, #tpu.memory_space<vmem>>, vector<64x512xbf16>
    %cst_64 = arith.constant dense<0.000000e+00> : vector<1x512xf32>
    %145 = tpu.matmul %143, %144, %cst_64 {dimension_numbers = #tpu.dot_dimension_numbers<[1], [0], [0], [1], [0, 0, 1, 1], [], []>} : vector<1x64xbf16>, vector<64x512xbf16>, vector<1x512xf32> -> vector<1x512xf32>
    %146 = arith.addf %141, %145 : vector<1x512xf32>
    %147 = vector.extract_strided_slice %113 {offsets = [6, 0], sizes = [1, 64], strides = [1, 1]} : vector<16x64xf32> to vector<1x64xf32>
    %148 = arith.truncf %147 : vector<1x64xf32> to vector<1x64xbf16>
    %c384_65 = arith.constant 384 : index
    %c0_66 = arith.constant 0 : index
    %149 = vector.load %arg21[%c384_65, %c0_66] : memref<1024x512xbf16, #tpu.memory_space<vmem>>, vector<64x512xbf16>
    %cst_67 = arith.constant dense<0.000000e+00> : vector<1x512xf32>
    %150 = tpu.matmul %148, %149, %cst_67 {dimension_numbers = #tpu.dot_dimension_numbers<[1], [0], [0], [1], [0, 0, 1, 1], [], []>} : vector<1x64xbf16>, vector<64x512xbf16>, vector<1x512xf32> -> vector<1x512xf32>
    %151 = arith.addf %146, %150 : vector<1x512xf32>
    %152 = vector.extract_strided_slice %113 {offsets = [7, 0], sizes = [1, 64], strides = [1, 1]} : vector<16x64xf32> to vector<1x64xf32>
    %153 = arith.truncf %152 : vector<1x64xf32> to vector<1x64xbf16>
    %c448 = arith.constant 448 : index
    %c0_68 = arith.constant 0 : index
    %154 = vector.load %arg21[%c448, %c0_68] : memref<1024x512xbf16, #tpu.memory_space<vmem>>, vector<64x512xbf16>
    %cst_69 = arith.constant dense<0.000000e+00> : vector<1x512xf32>
    %155 = tpu.matmul %153, %154, %cst_69 {dimension_numbers = #tpu.dot_dimension_numbers<[1], [0], [0], [1], [0, 0, 1, 1], [], []>} : vector<1x64xbf16>, vector<64x512xbf16>, vector<1x512xf32> -> vector<1x512xf32>
    %156 = arith.addf %151, %155 : vector<1x512xf32>
    %157 = vector.extract_strided_slice %113 {offsets = [8, 0], sizes = [1, 64], strides = [1, 1]} : vector<16x64xf32> to vector<1x64xf32>
    %158 = arith.truncf %157 : vector<1x64xf32> to vector<1x64xbf16>
    %c512_70 = arith.constant 512 : index
    %c0_71 = arith.constant 0 : index
    %159 = vector.load %arg21[%c512_70, %c0_71] : memref<1024x512xbf16, #tpu.memory_space<vmem>>, vector<64x512xbf16>
    %cst_72 = arith.constant dense<0.000000e+00> : vector<1x512xf32>
    %160 = tpu.matmul %158, %159, %cst_72 {dimension_numbers = #tpu.dot_dimension_numbers<[1], [0], [0], [1], [0, 0, 1, 1], [], []>} : vector<1x64xbf16>, vector<64x512xbf16>, vector<1x512xf32> -> vector<1x512xf32>
    %161 = arith.addf %156, %160 : vector<1x512xf32>
    %162 = vector.extract_strided_slice %113 {offsets = [9, 0], sizes = [1, 64], strides = [1, 1]} : vector<16x64xf32> to vector<1x64xf32>
    %163 = arith.truncf %162 : vector<1x64xf32> to vector<1x64xbf16>
    %c576 = arith.constant 576 : index
    %c0_73 = arith.constant 0 : index
    %164 = vector.load %arg21[%c576, %c0_73] : memref<1024x512xbf16, #tpu.memory_space<vmem>>, vector<64x512xbf16>
    %cst_74 = arith.constant dense<0.000000e+00> : vector<1x512xf32>
    %165 = tpu.matmul %163, %164, %cst_74 {dimension_numbers = #tpu.dot_dimension_numbers<[1], [0], [0], [1], [0, 0, 1, 1], [], []>} : vector<1x64xbf16>, vector<64x512xbf16>, vector<1x512xf32> -> vector<1x512xf32>
    %166 = arith.addf %161, %165 : vector<1x512xf32>
    %167 = vector.extract_strided_slice %113 {offsets = [10, 0], sizes = [1, 64], strides = [1, 1]} : vector<16x64xf32> to vector<1x64xf32>
    %168 = arith.truncf %167 : vector<1x64xf32> to vector<1x64xbf16>
    %c640_75 = arith.constant 640 : index
    %c0_76 = arith.constant 0 : index
    %169 = vector.load %arg21[%c640_75, %c0_76] : memref<1024x512xbf16, #tpu.memory_space<vmem>>, vector<64x512xbf16>
    %cst_77 = arith.constant dense<0.000000e+00> : vector<1x512xf32>
    %170 = tpu.matmul %168, %169, %cst_77 {dimension_numbers = #tpu.dot_dimension_numbers<[1], [0], [0], [1], [0, 0, 1, 1], [], []>} : vector<1x64xbf16>, vector<64x512xbf16>, vector<1x512xf32> -> vector<1x512xf32>
    %171 = arith.addf %166, %170 : vector<1x512xf32>
    %172 = vector.extract_strided_slice %113 {offsets = [11, 0], sizes = [1, 64], strides = [1, 1]} : vector<16x64xf32> to vector<1x64xf32>
    %173 = arith.truncf %172 : vector<1x64xf32> to vector<1x64xbf16>
    %c704 = arith.constant 704 : index
    %c0_78 = arith.constant 0 : index
    %174 = vector.load %arg21[%c704, %c0_78] : memref<1024x512xbf16, #tpu.memory_space<vmem>>, vector<64x512xbf16>
    %cst_79 = arith.constant dense<0.000000e+00> : vector<1x512xf32>
    %175 = tpu.matmul %173, %174, %cst_79 {dimension_numbers = #tpu.dot_dimension_numbers<[1], [0], [0], [1], [0, 0, 1, 1], [], []>} : vector<1x64xbf16>, vector<64x512xbf16>, vector<1x512xf32> -> vector<1x512xf32>
    %176 = arith.addf %171, %175 : vector<1x512xf32>
    %177 = vector.extract_strided_slice %113 {offsets = [12, 0], sizes = [1, 64], strides = [1, 1]} : vector<16x64xf32> to vector<1x64xf32>
    %178 = arith.truncf %177 : vector<1x64xf32> to vector<1x64xbf16>
    %c768_80 = arith.constant 768 : index
    %c0_81 = arith.constant 0 : index
    %179 = vector.load %arg21[%c768_80, %c0_81] : memref<1024x512xbf16, #tpu.memory_space<vmem>>, vector<64x512xbf16>
    %cst_82 = arith.constant dense<0.000000e+00> : vector<1x512xf32>
    %180 = tpu.matmul %178, %179, %cst_82 {dimension_numbers = #tpu.dot_dimension_numbers<[1], [0], [0], [1], [0, 0, 1, 1], [], []>} : vector<1x64xbf16>, vector<64x512xbf16>, vector<1x512xf32> -> vector<1x512xf32>
    %181 = arith.addf %176, %180 : vector<1x512xf32>
    %182 = vector.extract_strided_slice %113 {offsets = [13, 0], sizes = [1, 64], strides = [1, 1]} : vector<16x64xf32> to vector<1x64xf32>
    %183 = arith.truncf %182 : vector<1x64xf32> to vector<1x64xbf16>
    %c832 = arith.constant 832 : index
    %c0_83 = arith.constant 0 : index
    %184 = vector.load %arg21[%c832, %c0_83] : memref<1024x512xbf16, #tpu.memory_space<vmem>>, vector<64x512xbf16>
    %cst_84 = arith.constant dense<0.000000e+00> : vector<1x512xf32>
    %185 = tpu.matmul %183, %184, %cst_84 {dimension_numbers = #tpu.dot_dimension_numbers<[1], [0], [0], [1], [0, 0, 1, 1], [], []>} : vector<1x64xbf16>, vector<64x512xbf16>, vector<1x512xf32> -> vector<1x512xf32>
    %186 = arith.addf %181, %185 : vector<1x512xf32>
    %187 = vector.extract_strided_slice %113 {offsets = [14, 0], sizes = [1, 64], strides = [1, 1]} : vector<16x64xf32> to vector<1x64xf32>
    %188 = arith.truncf %187 : vector<1x64xf32> to vector<1x64xbf16>
    %c896 = arith.constant 896 : index
    %c0_85 = arith.constant 0 : index
    %189 = vector.load %arg21[%c896, %c0_85] : memref<1024x512xbf16, #tpu.memory_space<vmem>>, vector<64x512xbf16>
    %cst_86 = arith.constant dense<0.000000e+00> : vector<1x512xf32>
    %190 = tpu.matmul %188, %189, %cst_86 {dimension_numbers = #tpu.dot_dimension_numbers<[1], [0], [0], [1], [0, 0, 1, 1], [], []>} : vector<1x64xbf16>, vector<64x512xbf16>, vector<1x512xf32> -> vector<1x512xf32>
    %191 = arith.addf %186, %190 : vector<1x512xf32>
    %192 = vector.extract_strided_slice %113 {offsets = [15, 0], sizes = [1, 64], strides = [1, 1]} : vector<16x64xf32> to vector<1x64xf32>
    %193 = arith.truncf %192 : vector<1x64xf32> to vector<1x64xbf16>
    %c960 = arith.constant 960 : index
    %c0_87 = arith.constant 0 : index
    %194 = vector.load %arg21[%c960, %c0_87] : memref<1024x512xbf16, #tpu.memory_space<vmem>>, vector<64x512xbf16>
    %cst_88 = arith.constant dense<0.000000e+00> : vector<1x512xf32>
    %195 = tpu.matmul %193, %194, %cst_88 {dimension_numbers = #tpu.dot_dimension_numbers<[1], [0], [0], [1], [0, 0, 1, 1], [], []>} : vector<1x64xbf16>, vector<64x512xbf16>, vector<1x512xf32> -> vector<1x512xf32>
    %196 = arith.addf %191, %195 : vector<1x512xf32>
    %cst_89 = arith.constant 0.000000e+00 : f32
    %197 = vector.broadcast %cst_89 : f32 to vector<1x512xf32>
    %198 = arith.maximumf %196, %197 : vector<1x512xf32>
    %c0_90 = arith.constant 0 : index
    %c0_91 = arith.constant 0 : index
    %199 = vector.load %arg8[%c0_90, %c0_91] : memref<512x512xbf16, #tpu.memory_space<vmem>>, vector<512x512xbf16>
    %c0_92 = arith.constant 0 : index
    %c4352 = arith.constant 4352 : index
    %200 = vector.load %arg14[%c0_92, %c4352] : memref<1x6272xf32, #tpu.memory_space<vmem>>, vector<1x512xf32>
    %201 = arith.truncf %198 : vector<1x512xf32> to vector<1x512xbf16>
    %cst_93 = arith.constant dense<0.000000e+00> : vector<1x512xf32>
    %202 = tpu.matmul %201, %199, %cst_93 {dimension_numbers = #tpu.dot_dimension_numbers<[1], [0], [0], [1], [0, 0, 1, 1], [], []>} : vector<1x512xbf16>, vector<512x512xbf16>, vector<1x512xf32> -> vector<1x512xf32>
    %203 = arith.addf %202, %200 : vector<1x512xf32>
    %cst_94 = arith.constant 0.000000e+00 : f32
    %204 = vector.broadcast %cst_94 : f32 to vector<1x512xf32>
    %205 = arith.maximumf %203, %204 : vector<1x512xf32>
    %c0_95 = arith.constant 0 : index
    %c0_96 = arith.constant 0 : index
    %206 = vector.load %arg9[%c0_95, %c0_96] : memref<512x512xbf16, #tpu.memory_space<vmem>>, vector<512x512xbf16>
    %c0_97 = arith.constant 0 : index
    %c4864 = arith.constant 4864 : index
    %207 = vector.load %arg14[%c0_97, %c4864] : memref<1x6272xf32, #tpu.memory_space<vmem>>, vector<1x512xf32>
    %208 = arith.truncf %205 : vector<1x512xf32> to vector<1x512xbf16>
    %cst_98 = arith.constant dense<0.000000e+00> : vector<1x512xf32>
    %209 = tpu.matmul %208, %206, %cst_98 {dimension_numbers = #tpu.dot_dimension_numbers<[1], [0], [0], [1], [0, 0, 1, 1], [], []>} : vector<1x512xbf16>, vector<512x512xbf16>, vector<1x512xf32> -> vector<1x512xf32>
    %210 = arith.addf %209, %207 : vector<1x512xf32>
    %cst_99 = arith.constant 0.000000e+00 : f32
    %211 = vector.broadcast %cst_99 : f32 to vector<1x512xf32>
    %212 = arith.maximumf %210, %211 : vector<1x512xf32>
    %c0_100 = arith.constant 0 : index
    %c0_101 = arith.constant 0 : index
    %213 = vector.load %arg10[%c0_100, %c0_101] : memref<512x256xbf16, #tpu.memory_space<vmem>>, vector<512x256xbf16>
    %c0_102 = arith.constant 0 : index
    %c5376 = arith.constant 5376 : index
    %214 = vector.load %arg14[%c0_102, %c5376] : memref<1x6272xf32, #tpu.memory_space<vmem>>, vector<1x256xf32>
    %215 = arith.truncf %212 : vector<1x512xf32> to vector<1x512xbf16>
    %cst_103 = arith.constant dense<0.000000e+00> : vector<1x256xf32>
    %216 = tpu.matmul %215, %213, %cst_103 {dimension_numbers = #tpu.dot_dimension_numbers<[1], [0], [0], [1], [0, 0, 1, 1], [], []>} : vector<1x512xbf16>, vector<512x256xbf16>, vector<1x256xf32> -> vector<1x256xf32>
    %217 = arith.addf %216, %214 : vector<1x256xf32>
    %cst_104 = arith.constant 0.000000e+00 : f32
    %218 = vector.broadcast %cst_104 : f32 to vector<1x256xf32>
    %219 = arith.maximumf %217, %218 : vector<1x256xf32>
    %c0_105 = arith.constant 0 : index
    %c0_106 = arith.constant 0 : index
    %220 = vector.load %arg11[%c0_105, %c0_106] : memref<256x256xbf16, #tpu.memory_space<vmem>>, vector<256x256xbf16>
    %c0_107 = arith.constant 0 : index
    %c5632 = arith.constant 5632 : index
    %221 = vector.load %arg14[%c0_107, %c5632] : memref<1x6272xf32, #tpu.memory_space<vmem>>, vector<1x256xf32>
    %222 = arith.truncf %219 : vector<1x256xf32> to vector<1x256xbf16>
    %cst_108 = arith.constant dense<0.000000e+00> : vector<1x256xf32>
    %223 = tpu.matmul %222, %220, %cst_108 {dimension_numbers = #tpu.dot_dimension_numbers<[1], [0], [0], [1], [0, 0, 1, 1], [], []>} : vector<1x256xbf16>, vector<256x256xbf16>, vector<1x256xf32> -> vector<1x256xf32>
    %224 = arith.addf %223, %221 : vector<1x256xf32>
    %cst_109 = arith.constant 0.000000e+00 : f32
    %225 = vector.broadcast %cst_109 : f32 to vector<1x256xf32>
    %226 = arith.maximumf %224, %225 : vector<1x256xf32>
    %c0_110 = arith.constant 0 : index
    %c0_111 = arith.constant 0 : index
    %227 = vector.load %arg12[%c0_110, %c0_111] : memref<256x256xbf16, #tpu.memory_space<vmem>>, vector<256x256xbf16>
    %c0_112 = arith.constant 0 : index
    %c5888 = arith.constant 5888 : index
    %228 = vector.load %arg14[%c0_112, %c5888] : memref<1x6272xf32, #tpu.memory_space<vmem>>, vector<1x256xf32>
    %229 = arith.truncf %226 : vector<1x256xf32> to vector<1x256xbf16>
    %cst_113 = arith.constant dense<0.000000e+00> : vector<1x256xf32>
    %230 = tpu.matmul %229, %227, %cst_113 {dimension_numbers = #tpu.dot_dimension_numbers<[1], [0], [0], [1], [0, 0, 1, 1], [], []>} : vector<1x256xbf16>, vector<256x256xbf16>, vector<1x256xf32> -> vector<1x256xf32>
    %231 = arith.addf %230, %228 : vector<1x256xf32>
    %cst_114 = arith.constant 0.000000e+00 : f32
    %232 = vector.broadcast %cst_114 : f32 to vector<1x256xf32>
    %233 = arith.maximumf %231, %232 : vector<1x256xf32>
    %c0_115 = arith.constant 0 : index
    %c0_116 = arith.constant 0 : index
    %234 = vector.load %arg13[%c0_115, %c0_116] : memref<256x25xf32, #tpu.memory_space<vmem>>, vector<256x25xf32>
    %cst_117 = arith.constant dense<0.000000e+00> : vector<1x25xf32>
    %235 = tpu.matmul %233, %234, %cst_117 {dimension_numbers = #tpu.dot_dimension_numbers<[1], [0], [0], [1], [0, 0, 1, 1], [], []>} : vector<1x256xf32>, vector<256x25xf32>, vector<1x25xf32> -> vector<1x25xf32>
    %c0_118 = arith.constant 0 : index
    %c6144 = arith.constant 6144 : index
    %236 = vector.load %arg14[%c0_118, %c6144] : memref<1x6272xf32, #tpu.memory_space<vmem>>, vector<1x25xf32>
    %237 = arith.addf %235, %236 : vector<1x25xf32>
    %c0_119 = arith.constant 0 : index
    %c0_120 = arith.constant 0 : index
    %238 = vector.load %arg22[%c0_119, %c0_120] : memref<1x25xf32, #tpu.memory_space<vmem>>, vector<1x25xf32>
    tpu.vector_store %arg22[%c0_119, %c0_120], %237 {strides = array<i32>} : memref<1x25xf32, #tpu.memory_space<vmem>>, vector<1x25xf32>,
    %cst_121 = arith.constant 0.000000e+00 : f32
    %239 = vector.broadcast %cst_121 : f32 to vector<16x5xf32>
    %c0_122 = arith.constant 0 : index
    %c0_123 = arith.constant 0 : index
    %240 = vector.load %arg0[%c0_122, %c0_123] : memref<16x5xf32, #tpu.memory_space<vmem>>, vector<16x1xf32>
    %c0_124 = arith.constant 0 : index
    %c0_125 = arith.constant 0 : index
    %241 = vector.load %arg22[%c0_124, %c0_125] : memref<1x25xf32, #tpu.memory_space<vmem>>, vector<1x5xf32>
    %242 = vector.broadcast %240 : vector<16x1xf32> to vector<16x5xf32>
    %243 = vector.broadcast %241 : vector<1x5xf32> to vector<16x5xf32>
    %244 = arith.mulf %242, %243 : vector<16x5xf32>
    %245 = arith.addf %239, %244 : vector<16x5xf32>
    %c0_126 = arith.constant 0 : index
    %c1 = arith.constant 1 : index
    %246 = vector.load %arg0[%c0_126, %c1] : memref<16x5xf32, #tpu.memory_space<vmem>>, vector<16x1xf32>
    %c0_127 = arith.constant 0 : index
    %c5 = arith.constant 5 : index
    %247 = vector.load %arg22[%c0_127, %c5] : memref<1x25xf32, #tpu.memory_space<vmem>>, vector<1x5xf32>
    %248 = vector.broadcast %246 : vector<16x1xf32> to vector<16x5xf32>
    %249 = vector.broadcast %247 : vector<1x5xf32> to vector<16x5xf32>
    %250 = arith.mulf %248, %249 : vector<16x5xf32>
    %251 = arith.addf %245, %250 : vector<16x5xf32>
    %c0_128 = arith.constant 0 : index
    %c2 = arith.constant 2 : index
    %252 = vector.load %arg0[%c0_128, %c2] : memref<16x5xf32, #tpu.memory_space<vmem>>, vector<16x1xf32>
    %c0_129 = arith.constant 0 : index
    %c10 = arith.constant 10 : index
    %253 = vector.load %arg22[%c0_129, %c10] : memref<1x25xf32, #tpu.memory_space<vmem>>, vector<1x5xf32>
    %254 = vector.broadcast %252 : vector<16x1xf32> to vector<16x5xf32>
    %255 = vector.broadcast %253 : vector<1x5xf32> to vector<16x5xf32>
    %256 = arith.mulf %254, %255 : vector<16x5xf32>
    %257 = arith.addf %251, %256 : vector<16x5xf32>
    %c0_130 = arith.constant 0 : index
    %c3 = arith.constant 3 : index
    %258 = vector.load %arg0[%c0_130, %c3] : memref<16x5xf32, #tpu.memory_space<vmem>>, vector<16x1xf32>
    %c0_131 = arith.constant 0 : index
    %c15 = arith.constant 15 : index
    %259 = vector.load %arg22[%c0_131, %c15] : memref<1x25xf32, #tpu.memory_space<vmem>>, vector<1x5xf32>
    %260 = vector.broadcast %258 : vector<16x1xf32> to vector<16x5xf32>
    %261 = vector.broadcast %259 : vector<1x5xf32> to vector<16x5xf32>
    %262 = arith.mulf %260, %261 : vector<16x5xf32>
    %263 = arith.addf %257, %262 : vector<16x5xf32>
    %c0_132 = arith.constant 0 : index
    %c4 = arith.constant 4 : index
    %264 = vector.load %arg0[%c0_132, %c4] : memref<16x5xf32, #tpu.memory_space<vmem>>, vector<16x1xf32>
    %c0_133 = arith.constant 0 : index
    %c20 = arith.constant 20 : index
    %265 = vector.load %arg22[%c0_133, %c20] : memref<1x25xf32, #tpu.memory_space<vmem>>, vector<1x5xf32>
    %266 = vector.broadcast %264 : vector<16x1xf32> to vector<16x5xf32>
    %267 = vector.broadcast %265 : vector<1x5xf32> to vector<16x5xf32>
    %268 = arith.mulf %266, %267 : vector<16x5xf32>
    %269 = arith.addf %263, %268 : vector<16x5xf32>
    %c0_134 = arith.constant 0 : index
    %c0_135 = arith.constant 0 : index
    %270 = vector.load %arg18[%c0_134, %c0_135] : memref<16x5xf32, #tpu.memory_space<vmem>>, vector<16x5xf32>
    tpu.vector_store %arg18[%c0_134, %c0_135], %269 {strides = array<i32>} : memref<16x5xf32, #tpu.memory_space<vmem>>, vector<16x5xf32>,
    return
  }
}

</mosaic_0001>

<bundles_post_ra>
// kernel: input_tnet_forward.1
= control target key start
LH: loop header
LB: loop body
LE: loop exit
PB: predicated region body
PF: predicated region fallthrough
CT: control target
= control target key end

     0   :  { %s20058_s0 = inlined_call_operand.vmem [shape: f32[16,5], index: 0, kind: input, shape index: {}]   ;;  %s20059_s1 = inlined_call_operand.hbm [shape: bf16[5,64], index: 1, kind: input, shape index: {}]   ;;  %s20060_s2 = inlined_call_operand.hbm [shape: bf16[64,64], index: 2, kind: input, shape index: {}]   ;;  %s20061_s3 = inlined_call_operand.hbm [shape: bf16[64,64], index: 3, kind: input, shape index: {}]   ;;  %s20062_s4 = inlined_call_operand.hbm [shape: bf16[64,128], index: 4, kind: input, shape index: {}]   ;;  %s20063_s5 = inlined_call_operand.hbm [shape: bf16[128,128], index: 5, kind: input, shape index: {}]   ;;  %s20064_s6 = inlined_call_operand.hbm [shape: bf16[128,128], index: 6, kind: input, shape index: {}]   ;;  %s20065_s7 = inlined_call_operand.hbm [shape: bf16[128,1024], index: 7, kind: input, shape index: {}]   ;;  %s20066_s8 = inlined_call_operand.hbm [shape: bf16[512,512], index: 8, kind: input, shape index: {}]   ;;  %s20067_s9 = inlined_call_operand.hbm [shape: bf16[512,512], index: 9, kind: input, shape index: {}]   ;;  %s20068_s10 = inlined_call_operand.hbm [shape: bf16[512,256], index: 10, kind: input, shape index: {}]   ;;  %s20069_s11 = inlined_call_operand.hbm [shape: bf16[256,256], index: 11, kind: input, shape index: {}]   ;;  %s20070_s12 = inlined_call_operand.hbm [shape: bf16[256,256], index: 12, kind: input, shape index: {}]   ;;  %s20071_s13 = inlined_call_operand.vmem [shape: f32[256,25], index: 13, kind: input, shape index: {}]   ;;  %s20072_s14 = inlined_call_operand.hbm [shape: f32[1,6272], index: 14, kind: input, shape index: {}]   ;;  %s20073_s15 = inlined_call_operand.hbm [shape: bf16[1024,1024], index: 15, kind: input, shape index: {}]   ;;  %s20074_s16 = inlined_call_operand.hbm [shape: bf16[1024,1024], index: 16, kind: input, shape index: {}]   ;;  %s20075_s17 = inlined_call_operand.hbm [shape: bf16[1024,512], index: 17, kind: input, shape index: {}]   ;;  %s20076_s18 = inlined_call_operand.vmem [shape: f32[16,5], index: 18, kind: output, shape index: {}]  }
   0x1   :  { %20078 = sst [smem:[#allocation45_spill]] %s20058_s0 }
   0x2   :  { %20079 = sst [smem:[#allocation46_spill]] %s20059_s1 }
   0x3   :  { %20080 = sst [smem:[#allocation47_spill]] %s20060_s2 }
   0x4   :  { %23 = vsyncpa [#allocation8], 0 }
   0x5   :  { %24 = vsyncpa [#allocation10], 0 }
   0x6   :  { %25 = vsyncpa [#allocation13], 0 }
   0x7   :  { %26 = vsyncpa [#allocation16], 0 }
   0x8   :  { %27 = vsyncpa [#allocation19], 0 }
   0x9   :  { %28 = vsyncpa [#allocation22], 0 }
   0xa   :  { %29 = vsyncpa [#allocation25], 0  ;;  %s19119_s27 = smov [#allocation9]  }
   0xb   :  { %s47_s28 = sshll.u32 %s19119_s27, 4  ;;  %s48_s28 = int_to_ptr.vmem [resolvable:$true] %s47_s28 }
   0xc   :  { %s18787_s29 = scalar_lea.vmem %s48_s28, 512  ;;  %p18792_p1 = scmp.lt.s32.totalorder %s48_s28, %s48_s28 }
   0xd   :  { %p18788_p0 = scmp.ne.s32.totalorder %s48_s28, %s18787_s29  ;;  %p18793_p2 = scmp.lt.s32.totalorder %s18787_s29, %s18787_s29 }
   0xf   :  { %p18794_p3 = por %p18793_p2, %p18792_p1 }
  0x11   :  { %p18795_p4 = pnand %p18794_p3, %p18788_p0 }
  0x13   :  { %18798 = shalt.err (!%p18795_p4)
}
  0x14   :  { %s19120_s30 = smov 64   ;;  %s19121_s0 = smov 4  }
  0x15   :  { %s20081_s20 = sld [smem:[#allocation47_spill]]  ;;  %s19122_s21 = smov [#allocation12]  }
  0x16   :  { %s71_s22 = sshll.u32 %s19122_s21, 4  ;;  %s19123_s2 = smov [#allocation15]   ;;  %s72_s22 = int_to_ptr.vmem [resolvable:$true] %s71_s22 }
  0x17   :  { %s95_s23 = sshll.u32 %s19123_s2, 4  ;;  %s18807_s24 = scalar_lea.vmem %s72_s22, 512  ;;  %s96_s23 = int_to_ptr.vmem [resolvable:$true] %s95_s23 }
  0x18   :  { %p18808_p5 = scmp.ne.s32.totalorder %s72_s22, %s18807_s24  ;;  %p18812_p6 = scmp.lt.s32.totalorder %s72_s22, %s72_s22 }
  0x19   :  { %p18813_p7 = scmp.lt.s32.totalorder %s18807_s24, %s18807_s24 }
  0x1b   :  { %53 = dma.hbm_to_vmem [thread:$0]  %s20081_s20, 512, %s48_s28, [#allocation10], %s19120_s30, %s19120_s30, %s19121_s0  }
  0x1c   :  { %p18814_p8 = por %p18813_p7, %p18812_p6 }
  0x1e   :  { %p18815_p9 = pnand %p18814_p8, %p18808_p5 }
  0x20   :  { %18818 = shalt.err (!%p18815_p9)
}
  0x21   :  { %77 = dma.hbm_to_vmem [thread:$0]  %s20062_s4, 512, %s72_s22, [#allocation13], %s19120_s30, %s19120_s30, %s19121_s0  }
  0x22   :  { %s18827_s27 = scalar_lea.vmem %s96_s23, 1024  ;;  %p18832_p11 = scmp.lt.s32.totalorder %s96_s23, %s96_s23 }
  0x23   :  { %p18828_p10 = scmp.ne.s32.totalorder %s96_s23, %s18827_s27  ;;  %p18833_p12 = scmp.lt.s32.totalorder %s18827_s27, %s18827_s27 }
  0x25   :  { %p18834_p13 = por %p18833_p12, %p18832_p11 }
  0x27   :  { %p18835_p0 = pnand %p18834_p13, %p18828_p10 }
  0x29   :  { %18838 = shalt.err (!%p18835_p0)
}
  0x2a   :  { %101 = dma.hbm_to_vmem [thread:$0]  %s20064_s6, 1024, %s96_s23, [#allocation16], %s19120_s30, %s19120_s30, %s19121_s0  }
  0x2b   :  { %s19124_s19 = smov [#allocation18]  }
  0x2c   :  { %s119_s1 = sshll.u32 %s19124_s19, 4  ;;  %s120_s1 = int_to_ptr.vmem [resolvable:$true] %s119_s1 }
  0x2d   :  { %s18847_s20 = scalar_lea.vmem %s120_s1, 16384  ;;  %p18852_p2 = scmp.lt.s32.totalorder %s120_s1, %s120_s1 }
  0x2e   :  { %p18848_p1 = scmp.ne.s32.totalorder %s120_s1, %s18847_s20  ;;  %p18853_p3 = scmp.lt.s32.totalorder %s18847_s20, %s18847_s20 }
  0x30   :  { %p18854_p4 = por %p18853_p3, %p18852_p2 }
  0x32   :  { %p18855_p5 = pnand %p18854_p4, %p18848_p1 }
  0x34   :  { %18858 = shalt.err (!%p18855_p5)
}
  0x35   :  { %s19125_s4 = smov 256   ;;  %s19126_s21 = smov 16  }
  0x36   :  { %125 = dma.hbm_to_vmem [thread:$0]  %s20066_s8, 16384, %s120_s1, [#allocation19], %s19125_s4, %s19125_s4, %s19126_s21  }
  0x37   :  { %s19127_s6 = smov [#allocation21]  }
  0x38   :  { %s143_s23 = sshll.u32 %s19127_s6, 4  ;;  %s144_s23 = int_to_ptr.vmem [resolvable:$true] %s143_s23 }
  0x39   :  { %s18867_s24 = scalar_lea.vmem %s144_s23, 8192  ;;  %p18872_p7 = scmp.lt.s32.totalorder %s144_s23, %s144_s23 }
  0x3a   :  { %p18868_p6 = scmp.ne.s32.totalorder %s144_s23, %s18867_s24  ;;  %p18873_p8 = scmp.lt.s32.totalorder %s18867_s24, %s18867_s24 }
  0x3c   :  { %p18874_p9 = por %p18873_p8, %p18872_p7 }
  0x3e   :  { %p18875_p10 = pnand %p18874_p9, %p18868_p6 }
  0x40   :  { %18878 = shalt.err (!%p18875_p10)
}
  0x41   :  { %s19128_s25 = smov 128   ;;  %s19129_s26 = smov 8  }
  0x42   :  { %149 = dma.hbm_to_vmem [thread:$0]  %s20068_s10, 8192, %s144_s23, [#allocation22], %s19128_s25, %s19128_s25, %s19129_s26  }
  0x43   :  { %s19130_s8 = smov [#allocation24]   ;;  %s19131_s19 = smov [#allocation7]  }
  0x44   :  { %s167_s29 = sshll.u32 %s19130_s8, 4  ;;  %s38_s1 = sshll.u32 %s19131_s19, 4  ;;  %s168_s29 = int_to_ptr.vmem [resolvable:$true] %s167_s29  ;;  %s39_s1 = int_to_ptr.vmem [resolvable:$true] %s38_s1 }
  0x45   :  { %s18887_s20 = scalar_lea.vmem %s168_s29, 4096  ;;  %p18892_p12 = scmp.lt.s32.totalorder %s168_s29, %s168_s29 }
  0x46   :  { %p18888_p11 = scmp.ne.s32.totalorder %s168_s29, %s18887_s20  ;;  %p18893_p13 = scmp.lt.s32.totalorder %s18887_s20, %s18887_s20 }
  0x48   :  { %p18894_p0 = por %p18893_p13, %p18892_p12 }
  0x4a   :  { %p18895_p1 = pnand %p18894_p0, %p18888_p11 }
  0x4c   :  { %18898 = shalt.err (!%p18895_p1)
}
  0x4d   :  { %173 = dma.hbm_to_vmem [thread:$0]  %s20070_s12, 4096, %s168_s29, [#allocation25], %s19128_s25, %s19128_s25, %s19129_s26  }
  0x4e   :  { %s18907_s10 = scalar_lea.vmem %s39_s1, 64  ;;  %p18912_p3 = scmp.lt.s32.totalorder %s39_s1, %s39_s1 }
  0x4f   :  { %p18908_p2 = scmp.ne.s32.totalorder %s39_s1, %s18907_s10  ;;  %p18913_p4 = scmp.lt.s32.totalorder %s18907_s10, %s18907_s10 }
  0x51   :  { %p18914_p5 = por %p18913_p4, %p18912_p3 }
  0x53   :  { %p18915_p6 = pnand %p18914_p5, %p18908_p2 }
  0x55   :  { %18918 = shalt.err (!%p18915_p6)
}
  0x56   :  { %s20082_s24 = sld [smem:[#allocation46_spill]]  ;;  %s19132_s27 = smov [#allocation11]  }
  0x57   :  { %s59_s28 = sshll.u32 %s19132_s27, 4  ;;  %s19133_s8 = smov [#allocation14]   ;;  %s60_s28 = int_to_ptr.vmem [resolvable:$true] %s59_s28 }
  0x58   :  { %s83_s19 = sshll.u32 %s19133_s8, 4  ;;  %s18927_s20 = scalar_lea.vmem %s60_s28, 512  ;;  %s84_s19 = int_to_ptr.vmem [resolvable:$true] %s83_s19 }
  0x59   :  { %p18928_p7 = scmp.ne.s32.totalorder %s60_s28, %s18927_s20  ;;  %p18932_p8 = scmp.lt.s32.totalorder %s60_s28, %s60_s28 }
  0x5a   :  { %p18933_p9 = scmp.lt.s32.totalorder %s18927_s20, %s18927_s20 }
  0x5c   :  { %41 = dma.hbm_to_vmem [thread:$0]  %s20082_s24, 64, %s39_s1, [#allocation8]  }
  0x5d   :  { %p18934_p10 = por %p18933_p9, %p18932_p8 }
  0x5f   :  { %p18935_p11 = pnand %p18934_p10, %p18928_p7 }
  0x61   :  { %18938 = shalt.err (!%p18935_p11)
}
  0x62   :  { %65 = dma.hbm_to_vmem [thread:$0]  %s20061_s3, 512, %s60_s28, [#allocation10], %s19120_s30, %s19120_s30, %s19121_s0  }
  0x63   :  { %s18947_s1 = scalar_lea.vmem %s84_s19, 1024  ;;  %p18952_p13 = scmp.lt.s32.totalorder %s84_s19, %s84_s19 }
  0x64   :  { %p18948_p12 = scmp.ne.s32.totalorder %s84_s19, %s18947_s1  ;;  %p18953_p0 = scmp.lt.s32.totalorder %s18947_s1, %s18947_s1 }
  0x66   :  { %p18954_p1 = por %p18953_p0, %p18952_p13 }
  0x68   :  { %p18955_p2 = pnand %p18954_p1, %p18948_p12 }
  0x6a   :  { %18958 = shalt.err (!%p18955_p2)
}
  0x6b   :  { %89 = dma.hbm_to_vmem [thread:$0]  %s20063_s5, 1024, %s84_s19, [#allocation13], %s19120_s30, %s19120_s30, %s19121_s0  }
  0x6c   :  { %s19134_s10 = smov [#allocation17]  }
  0x6d   :  { %s107_s6 = sshll.u32 %s19134_s10, 4  ;;  %s108_s6 = int_to_ptr.vmem [resolvable:$true] %s107_s6 }
  0x6e   :  { %s18967_s23 = scalar_lea.vmem %s108_s6, 8192  ;;  %p18972_p4 = scmp.lt.s32.totalorder %s108_s6, %s108_s6 }
  0x6f   :  { %p18968_p3 = scmp.ne.s32.totalorder %s108_s6, %s18967_s23  ;;  %p18973_p5 = scmp.lt.s32.totalorder %s18967_s23, %s18967_s23 }
  0x71   :  { %p18974_p6 = por %p18973_p5, %p18972_p4 }
  0x73   :  { %p18975_p7 = pnand %p18974_p6, %p18968_p3 }
  0x75   :  { %18978 = shalt.err (!%p18975_p7)
}
  0x76   :  { %s19135_s3 = smov 512   ;;  %s19136_s24 = smov 32  }
  0x77   :  { %113 = dma.hbm_to_vmem [thread:$0]  %s20065_s7, 8192, %s108_s6, [#allocation16], %s19135_s3, %s19135_s3, %s19136_s24  }
  0x78   :  { %s19137_s8 = smov [#allocation20]   ;;  %s19138_s12 = smov [#allocation23]  }
  0x79   :  { %s131_s20 = sshll.u32 %s19137_s8, 4  ;;  %s155_s5 = sshll.u32 %s19138_s12, 4  ;;  %s132_s20 = int_to_ptr.vmem [resolvable:$true] %s131_s20  ;;  %s156_s5 = int_to_ptr.vmem [resolvable:$true] %s155_s5 }
  0x7a   :  { %s18987_s0 = scalar_lea.vmem %s132_s20, 16384  ;;  %p18992_p9 = scmp.lt.s32.totalorder %s132_s20, %s132_s20 }
  0x7b   :  { %p18988_p8 = scmp.ne.s32.totalorder %s132_s20, %s18987_s0  ;;  %p18993_p10 = scmp.lt.s32.totalorder %s18987_s0, %s18987_s0 }
  0x7d   :  { %p18994_p11 = por %p18993_p10, %p18992_p9 }
  0x7f   :  { %p18995_p12 = pnand %p18994_p11, %p18988_p8 }
  0x81   :  { %18998 = shalt.err (!%p18995_p12)
}
  0x82   :  { %137 = dma.hbm_to_vmem [thread:$0]  %s20067_s9, 16384, %s132_s20, [#allocation19], %s19125_s4, %s19125_s4, %s19126_s21  }
  0x83   :  { %s19007_s7 = scalar_lea.vmem %s156_s5, 4096  ;;  %p19012_p0 = scmp.lt.s32.totalorder %s156_s5, %s156_s5 }
  0x84   :  { %p19008_p13 = scmp.ne.s32.totalorder %s156_s5, %s19007_s7  ;;  %p19013_p1 = scmp.lt.s32.totalorder %s19007_s7, %s19007_s7 }
  0x86   :  { %p19014_p2 = por %p19013_p1, %p19012_p0 }
  0x88   :  { %p19015_p3 = pnand %p19014_p2, %p19008_p13 }
  0x8a   :  { %19018 = shalt.err (!%p19015_p3)
}
  0x8b   :  { %161 = dma.hbm_to_vmem [thread:$0]  %s20069_s11, 4096, %s156_s5, [#allocation22], %s19128_s25, %s19128_s25, %s19129_s26  }
  0x8c   :  { %s19139_s2 = smov [#allocation26]  }
  0x8d   :  { %s182_s10 = sshll.u32 %s19139_s2, 4  ;;  %s183_s10 = int_to_ptr.vmem [resolvable:$true] %s182_s10 }
  0x8e   :  { %s19027_s6 = scalar_lea.vmem %s183_s10, 784  ;;  %s19031_s9 = scalar_lea.vmem %s183_s10, 800 }
  0x8f   :  { %p19028_p4 = scmp.ne.s32.totalorder %s183_s10, %s19027_s6  ;;  %p19032_p5 = scmp.lt.s32.totalorder %s183_s10, %s183_s10 }
  0x90   :  { %p19033_p6 = scmp.lt.s32.totalorder %s19031_s9, %s19027_s6 }
  0x92   :  { %p19034_p7 = por %p19033_p6, %p19032_p5 }
  0x94   :  { %p19035_p8 = pnand %p19034_p7, %p19028_p4 }
  0x96   :  { %19038 = shalt.err (!%p19035_p8)
}
  0x97   :  { %185 = dma.hbm_to_vmem [thread:$0]  %s20072_s14, 784, %s183_s10, [#allocation25]  }
  0x98   :  { %19099 = dma.done.wait [#allocation8], 64  }
  0x99   :  { %19100 = vsyncadd [#allocation8], 4294967232 }
  0x9a   :  { %19101 = dma.done.wait [#allocation10], 1024  }
  0x9b   :  { %19102 = vsyncadd [#allocation10], 4294966272 }
  0x9c   :  { %19103 = dma.done.wait [#allocation13], 1536  }
  0x9d   :  { %19104 = vsyncadd [#allocation13], 4294965760 }
  0x9e   :  { %19105 = dma.done.wait [#allocation16], 9216  }
  0x9f   :  { %19106 = vsyncadd [#allocation16], 4294958080 }
  0xa0   :  { %19107 = dma.done.wait [#allocation19], 32768  }
  0xa1   :  { %19108 = vsyncadd [#allocation19], 4294934528 }
  0xa2   :  { %19109 = dma.done.wait [#allocation22], 12288  }
  0xa3   :  { %19110 = vsyncadd [#allocation22], 4294955008 }
  0xa4   :  { %19111 = dma.done.wait [#allocation25], 4880  }
  0xa5   :  { %19112 = vsyncadd [#allocation25], 4294962416  ;;  %vm276_vm0 = vcmask 1041408   ;;  %v19140_v0 = vmov 0.0   ;;  %vm277_vm1 = vcmask 1042432   ;;  %v19141_v1 = vmov 65535  }
  0xa6   :  { %17623 = vmatprep.subr.bf16.mxu1 %v19140_v0  ;;  %17641 = vmatprep.subr.bf16.mxu0 %v19140_v0  ;;  %v278_v2 = vsel %vm276_vm0, 4294967295, %v19141_v1  ;;  %vm19142_vm2 = vmmov 0   ;;  %v263_v4 = vld [vmem:[#allocation7] sm:$0x7]  ;;  %s20083_s25 = sld [smem:[#allocation45_spill]]  ;;  %vm272_vm3 = vcmask 39936  }
  0xa7   :  { %17625 = vmatprep.mubr.msk.bf16.mxu1 %vm19142_vm2, %v19140_v0  ;;  %17649 = vmatprep.mubr.msk.bf16.mxu0 %vm19142_vm2, %v19140_v0  ;;  %v279_v3 = vsel %vm277_vm1, %v278_v2, 0  ;;  %v17742_v9 = vld [vmem:[#allocation9 + $0x18] sm:$0xff]   ;;  %v17743_v10 = vld [vmem:[#allocation9 + $0x10] sm:$0xff]   ;;  %v17744_v11 = vld [vmem:[#allocation9 + $0x8] sm:$0xff]   ;;  %vm366_vm4 = vcmask 523264   ;;  %s19144_s3 = smov [#allocation2]  }
  0xa8   :  { %v281_v7 = vand.u32 %v279_v3, %v263_v4  ;;  %v17745_v12 = vld [vmem:[#allocation9] sm:$0xff]   ;;  %v17746_v13 = vld [vmem:[#allocation11 + $0x18] sm:$0xff]   ;;  %v17747_v24 = vld [vmem:[#allocation11 + $0x10] sm:$0xff]   ;;  %s233_s24 = sshll.u32 %s19144_s3, 4  ;;  %s19145_s27 = smov [#allocation3]   ;;  %s234_s24 = int_to_ptr.vmem [resolvable:$true] %s233_s24 }
  0xa9   :  { %17642 = vmatpush3.bf16.msra.mxu0 %v17746_v13  ;;  %v15751_v14 = vld [vmem:[#allocation26] ss:$0 sm:$0xff]  ;;  %v17748_v25 = vld [vmem:[#allocation11 + $0x8] sm:$0xff]   ;;  %v17750_v27 = vld [vmem:[#allocation12 + $0x18] sm:$0xff]   ;;  %s245_s28 = sshll.u32 %s19145_s27, 4  ;;  %s19047_s8 = scalar_lea.vmem %s234_s24, 65536  ;;  %s246_s28 = int_to_ptr.vmem [resolvable:$true] %s245_s28 }
  0xaa   :  { %17624 = vmatpush3.bf16.msra.mxu1 %v281_v7  ;;  %17643 = vmatprep.subr.bf16.mxu0 %v19140_v0  ;;  %v17749_v26 = vld [vmem:[#allocation11] sm:$0xff]   ;;  %v17751_v38 = vld [vmem:[#allocation12 + $0x10] sm:$0xff]   ;;  %v17752_v39 = vld [vmem:[#allocation12 + $0x8] sm:$0xff]   ;;  %p19048_p9 = scmp.ne.s32.totalorder %s234_s24, %s19047_s8  ;;  %p19052_p10 = scmp.lt.s32.totalorder %s234_s24, %s234_s24 }
  0xab   :  { %17629 = vmatprep.subr.bf16.mxu1 %v19140_v0  ;;  %v15753_v28 = vld [vmem:[#allocation26 + $0x1] ss:$0 sm:$0xff]  ;;  %v17754_v41 = vld [vmem:[#allocation14 + $0x38] sm:$0xff]   ;;  %v17755_v42 = vld [vmem:[#allocation14 + $0x30] sm:$0xff]   ;;  %p19053_p11 = scmp.lt.s32.totalorder %s19047_s8, %s19047_s8 }
  0xac   :  { %v261_v5 = vld [vmem:[%s20083_s25] sm:$0xff]  ;;  %v262_v6 = vld [vmem:[%s20083_s25 + $0x8] sm:$0xff]  ;;  %v17759_v56 = vld [vmem:[#allocation14 + $0x10] sm:$0xff]  }
  0xad   :  { %v265_v8 = vpack.c.bf16 %v262_v6, %v261_v5  ;;  %17644 = vmatpush3.bf16.msra.mxu0 %v17747_v24  ;;  %v17753_v40 = vld [vmem:[#allocation12] sm:$0xff]   ;;  %v17756_v43 = vld [vmem:[#allocation14 + $0x28] sm:$0xff]   ;;  %v17758_v45 = vld [vmem:[#allocation14 + $0x18] sm:$0xff]   ;;  %p19054_p12 = por %p19053_p11, %p19052_p10 }
  0xae   :  { %17645 = vmatprep.subr.bf16.mxu0 %v19140_v0  ;;  %v17757_v44 = vld [vmem:[#allocation14 + $0x20] sm:$0xff]   ;;  %v17760_v57 = vld [vmem:[#allocation14 + $0x8] sm:$0xff]   ;;  %v17762_v59 = vld [vmem:[#allocation15 + $0x38] sm:$0xff]  }
  0xaf   :  { %17626 = vmatmul.mubr.msk.bf16.vlgmr.msra.gmra.mxu1 %vm272_vm3, %v265_v8  ;;  %v15759_v46 = vld [vmem:[#allocation26 + $0x2] ss:$0 sm:$0xff]  ;;  %v17763_v60 = vld [vmem:[#allocation15 + $0x30] sm:$0xff]   ;;  %v17764_v61 = vld [vmem:[#allocation15 + $0x28] sm:$0xff]   ;;  %p19055_p13 = pnand %p19054_p12, %p19048_p9 }
  0xb0   :  { %17630 = vmatpush3.bf16.msra.mxu1 %v17742_v9  ;;  %17637 = vmatprep.mubr.msk.bf16.mxu1 %vm19142_vm2, %v19140_v0  ;;  %v17761_v58 = vld [vmem:[#allocation14] sm:$0xff]   ;;  %v17766_v63 = vld [vmem:[#allocation15 + $0x18] sm:$0xff]  }
  0xb1   :  { %17631 = vmatprep.subr.bf16.mxu1 %v19140_v0  ;;  %17646 = vmatpush3.bf16.msra.mxu0 %v17748_v25  ;;  %v17765_v62 = vld [vmem:[#allocation15 + $0x20] sm:$0xff]  }
  0xb2   :  { %17647 = vmatprep.subr.bf16.mxu0 %v19140_v0  ;;  %v15765_v1 = vld [vmem:[#allocation26 + $0x3] ss:$0 sm:$0xff] }
  0xb3   :  { %v17769_v13 = vld [vmem:[#allocation15] sm:$0xff]  }
  0xb4   :  { %17632 = vmatpush3.bf16.msra.mxu1 %v17743_v10 }
  0xb5   :  { %17633 = vmatprep.subr.bf16.mxu1 %v19140_v0  ;;  %17648 = vmatpush3.bf16.msra.mxu0 %v17749_v26  ;;  %v855_v26 = vld [vmem:[#allocation17 + $0x140] sm:$0xff] }
  0xb6   :  { %17665 = vmatprep.subr.bf16.mxu0 %v19140_v0 }
  0xb8   :  { %17634 = vmatpush3.bf16.msra.mxu1 %v17744_v11  ;;  %v17767_v11 = vld [vmem:[#allocation15 + $0x10] sm:$0xff]  }
  0xb9   :  { %17635 = vmatprep.subr.bf16.mxu1 %v19140_v0 }
  0xbc   :  { %17636 = vmatpush3.bf16.msra.mxu1 %v17745_v12  ;;  %v17768_v12 = vld [vmem:[#allocation15 + $0x8] sm:$0xff]  }
  0xbd   :  { %17653 = vmatprep.subr.bf16.mxu1 %v19140_v0 }
 0x16f   :  { %v317_v15 = vpop.f32.mrf.mxu1 }
 0x170   :  { %v318_v17 = vadd.f32 %v15751_v14, %v317_v15  ;;  %v875_v15 = vld [vmem:[#allocation17 + $0x1e0] sm:$0xff] }
 0x171   :  { %v17627_v16 = vpop.f32.mrf.mxu1 }
 0x172   :  { %v324_v21 = vmax.f32 %v318_v17, 0.0  ;;  %v872_v16 = vld [vmem:[#allocation17 + $0x1c8] sm:$0xff] }
 0x173   :  { %v320_v18 = vpop.f32.mrf.mxu1 }
 0x174   :  { %v321_v19 = vadd.f32 %v15751_v14, %v320_v18  ;;  %v871_v14 = vld [vmem:[#allocation17 + $0x1c0] sm:$0xff] }
 0x175   :  { %v17628_v20 = vpop.f32.mrf.mxu1  ;;  %v15845_v17 = vcombine.low %v871_v14, %v875_v15  ;;  %v15846_v18 = vcombine.high %v871_v14, %v875_v15 }
 0x176   :  { %v325_v22 = vmax.f32 %v321_v19, 0.0  ;;  %v876_v19 = vld [vmem:[#allocation17 + $0x1e8] sm:$0xff]  ;;  %v863_v20 = vld [vmem:[#allocation17 + $0x180] sm:$0xff] }
 0x178   :  { %v335_v23 = vpack.c.bf16 %v325_v22, %v324_v21  ;;  %v867_v21 = vld [vmem:[#allocation17 + $0x1a0] sm:$0xff]  ;;  %v15847_v22 = vcombine.low %v872_v16, %v876_v19 }
 0x179   :  { %v15838_v24 = vcombine.high %v863_v20, %v867_v21  ;;  %v15837_v25 = vcombine.low %v863_v20, %v867_v21  ;;  %v820_v20 = vld [vmem:[#allocation17 + $0x28] sm:$0xff] }
 0x17a   :  { %17638 = vmatmul.mubr.msk.bf16.vlgmr.msra.gmra.mxu1 %vm366_vm4, %v335_v23  ;;  %v15848_v23 = vcombine.high %v872_v16, %v876_v19  ;;  %v815_v16 = vld [vmem:[#allocation17] sm:$0xff] }
 0x17b   :  { %17661 = vmatprep.mubr.msk.bf16.mxu1 %vm19142_vm2, %v19140_v0  ;;  %17654 = vmatpush3.bf16.msra.mxu1 %v17750_v27 }
 0x17c   :  { %17655 = vmatprep.subr.bf16.mxu1 %v19140_v0 }
 0x17f   :  { %17656 = vmatpush3.bf16.msra.mxu1 %v17751_v38  ;;  %v835_v38 = vld [vmem:[#allocation17 + $0xa0] sm:$0xff] }
 0x180   :  { %17657 = vmatprep.subr.bf16.mxu1 %v19140_v0 }
 0x183   :  { %17658 = vmatpush3.bf16.msra.mxu1 %v17752_v39 }
 0x184   :  { %17659 = vmatprep.subr.bf16.mxu1 %v19140_v0 }
 0x187   :  { %17660 = vmatpush3.bf16.msra.mxu1 %v17753_v40 }
 0x188   :  { %17685 = vmatprep.subr.bf16.mxu1 %v19140_v0 }
 0x23a   :  { %v404_v29 = vpop.f32.mrf.mxu1 }
 0x23b   :  { %v405_v31 = vadd.f32 %v15753_v28, %v404_v29  ;;  %v847_v29 = vld [vmem:[#allocation17 + $0x100] sm:$0xff] }
 0x23c   :  { %v17639_v30 = vpop.f32.mrf.mxu1 }
 0x23d   :  { %v411_v35 = vmax.f32 %v405_v31, 0.0  ;;  %v851_v30 = vld [vmem:[#allocation17 + $0x120] sm:$0xff] }
 0x23e   :  { %v407_v32 = vpop.f32.mrf.mxu1  ;;  %v15822_v31 = vcombine.high %v847_v29, %v851_v30 }
 0x23f   :  { %v408_v33 = vadd.f32 %v15753_v28, %v407_v32  ;;  %v15821_v32 = vcombine.low %v847_v29, %v851_v30 }
 0x240   :  { %v17640_v34 = vpop.f32.mrf.mxu1 }
 0x241   :  { %v412_v36 = vmax.f32 %v408_v33, 0.0  ;;  %v839_v33 = vld [vmem:[#allocation17 + $0xc0] sm:$0xff] }
 0x242   :  { %v843_v34 = vld [vmem:[#allocation17 + $0xe0] sm:$0xff] }
 0x243   :  { %v422_v37 = vpack.c.bf16 %v412_v36, %v411_v35  ;;  %v15814_v35 = vcombine.high %v839_v33, %v843_v34  ;;  %v15813_v36 = vcombine.low %v839_v33, %v843_v34 }
 0x245   :  { %17650 = vmatmul.mubr.msk.bf16.vlgmr.msra.gmra.mxu0 %vm366_vm4, %v422_v37  ;;  %v831_v37 = vld [vmem:[#allocation17 + $0x80] sm:$0xff] }
 0x246   :  { %17681 = vmatprep.mubr.msk.bf16.mxu0 %vm19142_vm2, %v19140_v0  ;;  %17666 = vmatpush3.bf16.msra.mxu0 %v17754_v41  ;;  %v15806_v39 = vcombine.high %v831_v37, %v835_v38  ;;  %v15805_v40 = vcombine.low %v831_v37, %v835_v38  ;;  %v15771_v41 = vld [vmem:[#allocation26 + $0x4] ss:$0 sm:$0xff]  ;;  %v865_v38 = vld [vmem:[#allocation17 + $0x190] sm:$0xff] }
 0x247   :  { %17667 = vmatprep.subr.bf16.mxu0 %v19140_v0 }
 0x24a   :  { %17668 = vmatpush3.bf16.msra.mxu0 %v17755_v42 }
 0x24b   :  { %17669 = vmatprep.subr.bf16.mxu0 %v19140_v0 }
 0x24e   :  { %17670 = vmatpush3.bf16.msra.mxu0 %v17756_v43 }
 0x24f   :  { %17671 = vmatprep.subr.bf16.mxu0 %v19140_v0 }
 0x252   :  { %17672 = vmatpush3.bf16.msra.mxu0 %v17757_v44 }
 0x253   :  { %17673 = vmatprep.subr.bf16.mxu0 %v19140_v0 }
 0x256   :  { %17674 = vmatpush3.bf16.msra.mxu0 %v17758_v45 }
 0x257   :  { %17675 = vmatprep.subr.bf16.mxu0 %v19140_v0 }
 0x25a   :  { %17676 = vmatpush3.bf16.msra.mxu0 %v17759_v56 }
 0x25b   :  { %17677 = vmatprep.subr.bf16.mxu0 %v19140_v0 }
 0x25e   :  { %17678 = vmatpush3.bf16.msra.mxu0 %v17760_v57 }
 0x25f   :  { %17679 = vmatprep.subr.bf16.mxu0 %v19140_v0 }
 0x262   :  { %17680 = vmatpush3.bf16.msra.mxu0 %v17761_v58  ;;  %v848_v58 = vld [vmem:[#allocation17 + $0x108] sm:$0xff] }
 0x263   :  { %1242 = vmatprep.subr.bf16.mxu0 %v15846_v18  ;;  %v816_v18 = vld [vmem:[#allocation17 + $0x8] sm:$0xff] }
 0x305   :  { %v490_v47 = vpop.f32.mrf.mxu0 }
 0x306   :  { %v491_v49 = vadd.f32 %v15759_v46, %v490_v47 }
 0x307   :  { %v17651_v48 = vpop.f32.mrf.mxu0 }
 0x308   :  { %v497_v53 = vmax.f32 %v491_v49, 0.0  ;;  %v864_v48 = vld [vmem:[#allocation17 + $0x188] sm:$0xff] }
 0x309   :  { %v493_v50 = vpop.f32.mrf.mxu0  ;;  %v868_v49 = vld [vmem:[#allocation17 + $0x1a8] sm:$0xff] }
 0x30a   :  { %v494_v51 = vadd.f32 %v15759_v46, %v493_v50  ;;  %v15839_v56 = vcombine.low %v864_v48, %v868_v49 }
 0x30b   :  { %v17652_v52 = vpop.f32.mrf.mxu0 }
 0x30c   :  { %v498_v54 = vmax.f32 %v494_v51, 0.0 }
 0x30e   :  { %v508_v55 = vpack.c.bf16 %v498_v54, %v497_v53  ;;  %v15840_v53 = vcombine.high %v864_v48, %v868_v49  ;;  %v856_v54 = vld [vmem:[#allocation17 + $0x148] sm:$0xff]  ;;  %v857_v48 = vld [vmem:[#allocation17 + $0x150] sm:$0xff] }
 0x30f   :  { %v861_v49 = vld [vmem:[#allocation17 + $0x170] sm:$0xff] }
 0x310   :  { %17662 = vmatmul.mubr.msk.bf16.vlgmr.msra.gmra.mxu1 %vm366_vm4, %v508_v55  ;;  %v860_v55 = vld [vmem:[#allocation17 + $0x168] sm:$0xff] }
 0x311   :  { %17701 = vmatprep.mubr.msk.bf16.mxu1 %vm19142_vm2, %v19140_v0  ;;  %17686 = vmatpush3.bf16.msra.mxu1 %v17762_v59  ;;  %v15832_v57 = vcombine.high %v856_v54, %v860_v55  ;;  %v852_v59 = vld [vmem:[#allocation17 + $0x128] sm:$0xff] }
 0x312   :  { %17687 = vmatprep.subr.bf16.mxu1 %v19140_v0 }
 0x315   :  { %17688 = vmatpush3.bf16.msra.mxu1 %v17763_v60  ;;  %v15831_v60 = vcombine.low %v856_v54, %v860_v55  ;;  %v15834_v54 = vcombine.high %v857_v48, %v861_v49 }
 0x316   :  { %17689 = vmatprep.subr.bf16.mxu1 %v19140_v0 }
 0x319   :  { %17690 = vmatpush3.bf16.msra.mxu1 %v17764_v61  ;;  %v15824_v61 = vcombine.high %v848_v58, %v852_v59 }
 0x31a   :  { %17691 = vmatprep.subr.bf16.mxu1 %v19140_v0 }
 0x31d   :  { %17692 = vmatpush3.bf16.msra.mxu1 %v17765_v62  ;;  %v840_v62 = vld [vmem:[#allocation17 + $0xc8] sm:$0xff] }
 0x31e   :  { %17693 = vmatprep.subr.bf16.mxu1 %v19140_v0 }
 0x321   :  { %17694 = vmatpush3.bf16.msra.mxu1 %v17766_v63  ;;  %v844_v63 = vld [vmem:[#allocation17 + $0xe8] sm:$0xff] }
 0x322   :  { %17695 = vmatprep.subr.bf16.mxu1 %v19140_v0 }
 0x325   :  { %17696 = vmatpush3.bf16.msra.mxu1 %v17767_v11 }
 0x326   :  { %17697 = vmatprep.subr.bf16.mxu1 %v19140_v0 }
 0x329   :  { %17698 = vmatpush3.bf16.msra.mxu1 %v17768_v12  ;;  %v828_v12 = vld [vmem:[#allocation17 + $0x68] sm:$0xff] }
 0x32a   :  { %17699 = vmatprep.subr.bf16.mxu1 %v19140_v0  ;;  %v859_v0 = vld [vmem:[#allocation17 + $0x160] sm:$0xff] }
 0x32b   :  { %v15830_v27 = vcombine.high %v855_v26, %v859_v0  ;;  %v15829_v28 = vcombine.low %v855_v26, %v859_v0  ;;  %v874_v26 = vld [vmem:[#allocation17 + $0x1d8] sm:$0xff] }
 0x32d   :  { %17700 = vmatpush3.bf16.msra.mxu1 %v17769_v13 }
 0x32e   :  { %1285 = vmatprep.subr.bf16.mxu1 %v15848_v23  ;;  %v15792_v23 = vcombine.high %v816_v18, %v820_v20 }
 0x3d0   :  { %v576_v2 = vpop.f32.mrf.mxu1 }
 0x3d1   :  { %v577_v4 = vadd.f32 %v15765_v1, %v576_v2  ;;  %v15816_v2 = vcombine.high %v840_v62, %v844_v63 }
 0x3d2   :  { %v17663_v3 = vpop.f32.mrf.mxu1 }
 0x3d3   :  { %v583_v8 = vmax.f32 %v577_v4, 0.0  ;;  %v832_v3 = vld [vmem:[#allocation17 + $0x88] sm:$0xff] }
 0x3d4   :  { %v579_v5 = vpop.f32.mrf.mxu1  ;;  %v836_v4 = vld [vmem:[#allocation17 + $0xa8] sm:$0xff] }
 0x3d5   :  { %v580_v6 = vadd.f32 %v15765_v1, %v579_v5  ;;  %v15823_v1 = vcombine.low %v848_v58, %v852_v59  ;;  %v15815_v5 = vcombine.low %v840_v62, %v844_v63  ;;  %v850_v58 = vld [vmem:[#allocation17 + $0x118] sm:$0xff] }
 0x3d6   :  { %v17664_v7 = vpop.f32.mrf.mxu1  ;;  %v854_v59 = vld [vmem:[#allocation17 + $0x138] sm:$0xff] }
 0x3d7   :  { %v584_v9 = vmax.f32 %v580_v6, 0.0  ;;  %v15808_v6 = vcombine.high %v832_v3, %v836_v4  ;;  %v15807_v7 = vcombine.low %v832_v3, %v836_v4  ;;  %v15828_v63 = vcombine.high %v850_v58, %v854_v59  ;;  %v842_v3 = vld [vmem:[#allocation17 + $0xd8] sm:$0xff] }
 0x3d8   :  { %v846_v4 = vld [vmem:[#allocation17 + $0xf8] sm:$0xff] }
 0x3d9   :  { %v602_v10 = vpack.c.bf16 %v584_v9, %v583_v8  ;;  %v823_v8 = vld [vmem:[#allocation17 + $0x40] sm:$0xff] }
 0x3da   :  { %v827_v9 = vld [vmem:[#allocation17 + $0x60] sm:$0xff] }
 0x3db   :  { %17682 = vmatmul.mubr.bf16.vlgmr.msra.gmra.mxu0 %v602_v10  ;;  %v824_v10 = vld [vmem:[#allocation17 + $0x48] sm:$0xff]  ;;  %v15798_v11 = vcombine.high %v823_v8, %v827_v9  ;;  %v15797_v13 = vcombine.low %v823_v8, %v827_v9  ;;  %v15820_v8 = vcombine.high %v842_v3, %v846_v4  ;;  %v833_v9 = vld [vmem:[#allocation17 + $0x90] sm:$0xff] }
 0x3dc   :  { %1243 = vmatpush1.bf16.msra.mxu0 %v15845_v17  ;;  %v15799_v14 = vcombine.low %v824_v10, %v828_v12  ;;  %v15800_v15 = vcombine.high %v824_v10, %v828_v12  ;;  %v819_v17 = vld [vmem:[#allocation17 + $0x20] sm:$0xff]  ;;  %v837_v10 = vld [vmem:[#allocation17 + $0xb0] sm:$0xff]  ;;  %v838_v12 = vld [vmem:[#allocation17 + $0xb8] sm:$0xff] }
 0x3dd   :  { %1244 = vmatprep.subr.bf16.mxu0 %v15838_v24  ;;  %v15790_v19 = vcombine.high %v815_v16, %v819_v17  ;;  %v15789_v21 = vcombine.low %v815_v16, %v819_v17  ;;  %v873_v24 = vld [vmem:[#allocation17 + $0x1d0] sm:$0xff] }
 0x3de   :  { %v825_v17 = vld [vmem:[#allocation17 + $0x50] sm:$0xff] }
 0x3e0   :  { %1245 = vmatpush1.bf16.msra.mxu0 %v15837_v25  ;;  %v877_v25 = vld [vmem:[#allocation17 + $0x1f0] sm:$0xff] }
 0x3e1   :  { %1246 = vmatprep.subr.bf16.mxu0 %v15830_v27  ;;  %v15850_v0 = vcombine.high %v873_v24, %v877_v25  ;;  %v878_v27 = vld [vmem:[#allocation17 + $0x1f8] sm:$0xff] }
 0x3e2   :  { %v15851_v29 = vcombine.low %v874_v26, %v878_v27  ;;  %v15852_v30 = vcombine.high %v874_v26, %v878_v27  ;;  %v821_v26 = vld [vmem:[#allocation17 + $0x30] sm:$0xff]  ;;  %v822_v27 = vld [vmem:[#allocation17 + $0x38] sm:$0xff] }
 0x3e4   :  { %1247 = vmatpush1.bf16.msra.mxu0 %v15829_v28  ;;  %v15849_v28 = vcombine.low %v873_v24, %v877_v25  ;;  %v817_v25 = vld [vmem:[#allocation17 + $0x10] sm:$0xff] }
 0x3e5   :  { %1248 = vmatprep.subr.bf16.mxu0 %v15822_v31  ;;  %v19143_v31 = vmov 0  }
 0x3e6   :  { %1274 = vmatprep.mubr.bf16.mxu0 %v19143_v31 }
 0x3e8   :  { %1249 = vmatpush1.bf16.msra.mxu0 %v15821_v32  ;;  %v15780_v32 = vld [vmem:[#allocation26 + $0x5] ss:$0 sm:$0xff] }
 0x3e9   :  { %1250 = vmatprep.subr.bf16.mxu0 %v15814_v35 }
 0x3ec   :  { %1251 = vmatpush1.bf16.msra.mxu0 %v15813_v36 }
 0x3ed   :  { %1252 = vmatprep.subr.bf16.mxu0 %v15806_v39 }
 0x3f0   :  { %1253 = vmatpush1.bf16.msra.mxu0 %v15805_v40  ;;  %v869_v40 = vld [vmem:[#allocation17 + $0x1b0] sm:$0xff] }
 0x3f1   :  { %1254 = vmatprep.subr.bf16.mxu0 %v15798_v11  ;;  %v834_v11 = vld [vmem:[#allocation17 + $0x98] sm:$0xff] }
 0x3f2   :  { %v15812_v16 = vcombine.high %v834_v11, %v838_v12 }
 0x3f4   :  { %1255 = vmatpush1.bf16.msra.mxu0 %v15797_v13 }
 0x3f5   :  { %1256 = vmatprep.subr.bf16.mxu0 %v15790_v19  ;;  %v826_v19 = vld [vmem:[#allocation17 + $0x58] sm:$0xff] }
 0x3f8   :  { %1257 = vmatpush1.bf16.msra.mxu0 %v15789_v21  ;;  %v15809_v21 = vcombine.low %v833_v9, %v837_v10 }
 0x3f9   :  { %1328 = vmatprep.subr.bf16.mxu0 %v15850_v0  ;;  %v818_v0 = vld [vmem:[#allocation17 + $0x18] sm:$0xff] }
 0x49b   :  { %v691_v42 = vpop.f32.mrf.mxu0 }
 0x49c   :  { %v692_v44 = vadd.f32 %v15771_v41, %v691_v42  ;;  %v870_v42 = vld [vmem:[#allocation17 + $0x1b8] sm:$0xff] }
 0x49d   :  { %v17683_v43 = vpop.f32.mrf.mxu0 }
 0x49e   :  { %v698_v50 = vmax.f32 %v692_v44, 0.0 }
 0x49f   :  { %v694_v45 = vpop.f32.mrf.mxu0 }
 0x4a0   :  { %v695_v46 = vadd.f32 %v15771_v41, %v694_v45  ;;  %v866_v41 = vld [vmem:[#allocation17 + $0x198] sm:$0xff] }
 0x4a1   :  { %v17684_v47 = vpop.f32.mrf.mxu0 }
 0x4a2   :  { %v699_v51 = vmax.f32 %v695_v46, 0.0  ;;  %v15842_v46 = vcombine.high %v865_v38, %v869_v40  ;;  %v15844_v47 = vcombine.high %v866_v41, %v870_v42 }
 0x4a4   :  { %v717_v52 = vpack.c.bf16 %v699_v51, %v698_v50  ;;  %v858_v50 = vld [vmem:[#allocation17 + $0x158] sm:$0xff] }
 0x4a5   :  { %v862_v51 = vld [vmem:[#allocation17 + $0x178] sm:$0xff] }
 0x4a6   :  { %17702 = vmatmul.mubr.bf16.vlgmr.msra.gmra.mxu1 %v717_v52  ;;  %v15841_v52 = vcombine.low %v865_v38, %v869_v40  ;;  %v15836_v55 = vcombine.high %v858_v50, %v862_v51 }
 0x4a7   :  { %1286 = vmatpush1.bf16.msra.mxu1 %v15847_v22  ;;  %v15791_v22 = vcombine.low %v816_v18, %v820_v20  ;;  %1317 = vmatprep.mubr.bf16.mxu1 %v19143_v31  ;;  %v829_v18 = vld [vmem:[#allocation17 + $0x70] sm:$0xff]  ;;  %v830_v20 = vld [vmem:[#allocation17 + $0x78] sm:$0xff] }
 0x4a8   :  { %1287 = vmatprep.subr.bf16.mxu1 %v15840_v53  ;;  %v15843_v53 = vcombine.low %v866_v41, %v870_v42  ;;  %v15804_v24 = vcombine.high %v826_v19, %v830_v20 }
 0x4ab   :  { %1288 = vmatpush1.bf16.msra.mxu1 %v15839_v56  ;;  %v849_v56 = vld [vmem:[#allocation17 + $0x110] sm:$0xff] }
 0x4ac   :  { %1289 = vmatprep.subr.bf16.mxu1 %v15832_v57  ;;  %v853_v57 = vld [vmem:[#allocation17 + $0x130] sm:$0xff] }
 0x4ad   :  { %v15826_v62 = vcombine.high %v849_v56, %v853_v57 }
 0x4af   :  { %1290 = vmatpush1.bf16.msra.mxu1 %v15831_v60  ;;  %v15833_v60 = vcombine.low %v857_v48, %v861_v49 }
 0x4b0   :  { %1291 = vmatprep.subr.bf16.mxu1 %v15824_v61  ;;  %v15835_v61 = vcombine.low %v858_v50, %v862_v51 }
 0x4b3   :  { %1292 = vmatpush1.bf16.msra.mxu1 %v15823_v1  ;;  %v841_v1 = vld [vmem:[#allocation17 + $0xd0] sm:$0xff] }
 0x4b4   :  { %1293 = vmatprep.subr.bf16.mxu1 %v15816_v2  ;;  %v845_v2 = vld [vmem:[#allocation17 + $0xf0] sm:$0xff] }
 0x4b5   :  { %v15817_v13 = vcombine.low %v841_v1, %v845_v2 }
 0x4b7   :  { %1294 = vmatpush1.bf16.msra.mxu1 %v15815_v5  ;;  %v15825_v5 = vcombine.low %v849_v56, %v853_v57 }
 0x4b8   :  { %1295 = vmatprep.subr.bf16.mxu1 %v15808_v6  ;;  %v15827_v6 = vcombine.low %v850_v58, %v854_v59 }
 0x4bb   :  { %1296 = vmatpush1.bf16.msra.mxu1 %v15807_v7  ;;  %v15818_v7 = vcombine.high %v841_v1, %v845_v2 }
 0x4bc   :  { %1297 = vmatprep.subr.bf16.mxu1 %v15800_v15  ;;  %v15810_v15 = vcombine.high %v833_v9, %v837_v10 }
 0x4bf   :  { %1298 = vmatpush1.bf16.msra.mxu1 %v15799_v14  ;;  %v15819_v14 = vcombine.low %v842_v3, %v846_v4 }
 0x4c0   :  { %1299 = vmatprep.subr.bf16.mxu1 %v15792_v23  ;;  %v15802_v23 = vcombine.high %v825_v17, %v829_v18 }
 0x4c3   :  { %1300 = vmatpush1.bf16.msra.mxu1 %v15791_v22  ;;  %v15811_v22 = vcombine.low %v834_v11, %v838_v12 }
 0x4c4   :  { %1371 = vmatprep.subr.bf16.mxu1 %v15852_v30  ;;  %v15794_v30 = vcombine.high %v817_v25, %v821_v26 }
 0x566   :  { %v806_v33 = vpop.f32.mrf.mxu1 }
 0x567   :  { %v807_v35 = vadd.f32 %v15780_v32, %v806_v33  ;;  %v15793_v33 = vcombine.low %v817_v25, %v821_v26 }
 0x568   :  { %v17703_v34 = vpop.f32.mrf.mxu1 }
 0x569   :  { %v813_v43 = vmax.f32 %v807_v35, 0.0  ;;  %v15795_v34 = vcombine.low %v818_v0, %v822_v27 }
 0x56a   :  { %v809_v36 = vpop.f32.mrf.mxu1 }
 0x56b   :  { %v810_v37 = vadd.f32 %v15780_v32, %v809_v36  ;;  %v15796_v32 = vcombine.high %v818_v0, %v822_v27 }
 0x56c   :  { %v17704_v39 = vpop.f32.mrf.mxu1 }
 0x56d   :  { %v814_v44 = vmax.f32 %v810_v37, 0.0 }
 0x56f   :  { %v19373_v45 = vpack.c.bf16 %v814_v44, %v813_v43 }
 0x571   :  { %1275 = vmatmul.mubr.bf16.vlgmr.msra.gmra.mxu0 %v19373_v45  ;;  %1318 = vmatmul.mubr.bf16.vlgmr.msra.gmra.mxu1 %v19373_v45 }
 0x572   :  { %1329 = vmatpush1.bf16.msra.mxu0 %v15849_v28  ;;  %1372 = vmatpush1.bf16.msra.mxu1 %v15851_v29  ;;  %v15801_v28 = vcombine.low %v825_v17, %v829_v18  ;;  %v15803_v29 = vcombine.low %v826_v19, %v830_v20 }
 0x573   :  { %1330 = vmatprep.subr.bf16.mxu0 %v15842_v46  ;;  %1373 = vmatprep.subr.bf16.mxu1 %v15844_v47 }
 0x574   :  { %1360 = vmatprep.mubr.bf16.mxu0 %v19143_v31  ;;  %1403 = vmatprep.mubr.bf16.mxu1 %v19143_v31 }
 0x576   :  { %1331 = vmatpush1.bf16.msra.mxu0 %v15841_v52  ;;  %1374 = vmatpush1.bf16.msra.mxu1 %v15843_v53 }
 0x577   :  { %1332 = vmatprep.subr.bf16.mxu0 %v15834_v54  ;;  %1375 = vmatprep.subr.bf16.mxu1 %v15836_v55 }
 0x57a   :  { %1333 = vmatpush1.bf16.msra.mxu0 %v15833_v60  ;;  %1376 = vmatpush1.bf16.msra.mxu1 %v15835_v61 }
 0x57b   :  { %1334 = vmatprep.subr.bf16.mxu0 %v15826_v62  ;;  %1377 = vmatprep.subr.bf16.mxu1 %v15828_v63 }
 0x57e   :  { %1335 = vmatpush1.bf16.msra.mxu0 %v15825_v5  ;;  %1378 = vmatpush1.bf16.msra.mxu1 %v15827_v6 }
 0x57f   :  { %1336 = vmatprep.subr.bf16.mxu0 %v15818_v7  ;;  %1379 = vmatprep.subr.bf16.mxu1 %v15820_v8 }
 0x582   :  { %1337 = vmatpush1.bf16.msra.mxu0 %v15817_v13  ;;  %1380 = vmatpush1.bf16.msra.mxu1 %v15819_v14 }
 0x583   :  { %1338 = vmatprep.subr.bf16.mxu0 %v15810_v15  ;;  %1381 = vmatprep.subr.bf16.mxu1 %v15812_v16 }
 0x586   :  { %1339 = vmatpush1.bf16.msra.mxu0 %v15809_v21  ;;  %1382 = vmatpush1.bf16.msra.mxu1 %v15811_v22 }
 0x587   :  { %1340 = vmatprep.subr.bf16.mxu0 %v15802_v23  ;;  %1383 = vmatprep.subr.bf16.mxu1 %v15804_v24 }
 0x58a   :  { %1341 = vmatpush1.bf16.msra.mxu0 %v15801_v28  ;;  %1384 = vmatpush1.bf16.msra.mxu1 %v15803_v29 }
 0x58b   :  { %1342 = vmatprep.subr.bf16.mxu0 %v15794_v30  ;;  %1385 = vmatprep.subr.bf16.mxu1 %v15796_v32 }
 0x58e   :  { %1343 = vmatpush1.bf16.msra.mxu0 %v15793_v33  ;;  %1386 = vmatpush1.bf16.msra.mxu1 %v15795_v34 }
 0x591   :  { %1361 = vmatmul.mubr.bf16.vlgmr.msra.gmra.mxu0 %v19373_v45  ;;  %1404 = vmatmul.mubr.bf16.vlgmr.msra.gmra.mxu1 %v19373_v45 }
 0x592   :  { %19058 = shalt.err (!%p19055_p13)  }
 0x593   :  { %236 = dma.hbm_to_vmem [thread:$0]  %s20073_s15, 65536, %s234_s24, [#allocation6] }
 0x594   :  { %s19067_s5 = scalar_lea.vmem %s246_s28, 65536  ;;  %p19072_p1 = scmp.lt.s32.totalorder %s246_s28, %s246_s28 }
 0x595   :  { %p19068_p0 = scmp.ne.s32.totalorder %s246_s28, %s19067_s5  ;;  %p19073_p2 = scmp.lt.s32.totalorder %s19067_s5, %s19067_s5 }
 0x597   :  { %p19074_p3 = por %p19073_p2, %p19072_p1 }
 0x599   :  { %p19075_p4 = pnand %p19074_p3, %p19068_p0 }
 0x59b   :  { %19078 = shalt.err (!%p19075_p4)  }
 0x59c   :  { %248 = dma.hbm_to_vmem [thread:$0]  %s20074_s16, 65536, %s246_s28, [#allocation6 + $0x1] }
 0x59d   :  { %s19146_s29 = smov [#allocation4]  }
 0x59e   :  { %s257_s7 = sshll.u32 %s19146_s29, 4  ;;  %s258_s7 = int_to_ptr.vmem [resolvable:$true] %s257_s7 }
 0x59f   :  { %s19087_s1 = scalar_lea.vmem %s258_s7, 32768  ;;  %p19092_p6 = scmp.lt.s32.totalorder %s258_s7, %s258_s7 }
 0x5a0   :  { %p19088_p5 = scmp.ne.s32.totalorder %s258_s7, %s19087_s1  ;;  %p19093_p7 = scmp.lt.s32.totalorder %s19087_s1, %s19087_s1 }
 0x5a2   :  { %p19094_p8 = por %p19093_p7, %p19092_p6 }
 0x5a4   :  { %p19095_p9 = pnand %p19094_p8, %p19088_p5 }
 0x5a6   :  { %19098 = shalt.err (!%p19095_p9)  }
 0x5a7   :  { %260 = dma.hbm_to_vmem [thread:$0]  %s20075_s17, 32768, %s258_s7, [#allocation6 + $0x2]  ;;  %v882_v35 = vlaneseq  ;;  %v879_v39 = vld [vmem:[#allocation26 + $0x6] sm:$0xff] }
 0x5a9   :  { %v19390_v36 = vshrl.u32 %v882_v35, 7 }
 0x5ab   :  { %v19393_v37 = vsub.s32 0, %v19390_v36  ;;  %v19396_v38 = vsub.s32 2, %v19390_v36  ;;  %v19399_v40 = vsub.s32 1, %v19390_v36  ;;  %v19402_v41 = vsub.s32 3, %v19390_v36 }
 0x5ac   :  { %v19421_v7 = vsub.s32 4, %v19390_v36  ;;  %v19424_v8 = vsub.s32 6, %v19390_v36  ;;  %v19427_v9 = vsub.s32 5, %v19390_v36  ;;  %v19430_v10 = vsub.s32 7, %v19390_v36 }
 0x5ad   :  { %v885_v42 = vrot.slane %v879_v39, %v19393_v37  ;;  %v893_v43 = vrot.slane %v879_v39, %v19396_v38  ;;  %v889_v44 = vrot.slane %v879_v39, %v19399_v40  ;;  %v897_v45 = vrot.slane %v879_v39, %v19402_v41 }
 0x5ae   :  { %v901_v11 = vrot.slane %v879_v39, %v19421_v7  ;;  %v909_v12 = vrot.slane %v879_v39, %v19424_v8  ;;  %v905_v13 = vrot.slane %v879_v39, %v19427_v9  ;;  %v913_v14 = vrot.slane %v879_v39, %v19430_v10 }
 0x631   :  { %v1276_v46 = vpop.f32.mrf.mxu0  ;;  %v1319_v47 = vpop.f32.mrf.mxu1 }
 0x632   :  { %v19408_v48 = vadd.f32 %v1276_v46, %v885_v42  ;;  %v19410_v49 = vadd.f32 %v1319_v47, %v893_v43 }
 0x633   :  { %v1278_v50 = vpop.f32.mrf.mxu0  ;;  %v1321_v51 = vpop.f32.mrf.mxu1 }
 0x634   :  { %v1414_v52 = vmax.f32 %v19408_v48, 0.0  ;;  %v1416_v53 = vmax.f32 %v19410_v49, 0.0  ;;  %v1279_v54 = vadd.f32 %v1278_v50, %v889_v44  ;;  %v1322_v55 = vadd.f32 %v1321_v51, %v897_v45 }
 0x635   :  { %v1280_v56 = vpop.f32.mrf.mxu0  ;;  %v1323_v57 = vpop.f32.mrf.mxu1 }
 0x636   :  { %v1415_v58 = vmax.f32 %v1279_v54, 0.0  ;;  %v1417_v59 = vmax.f32 %v1322_v55, 0.0  ;;  %v19414_v60 = vadd.f32 %v1280_v56, %v885_v42  ;;  %v19416_v61 = vadd.f32 %v1323_v57, %v893_v43 }
 0x637   :  { %v1282_v62 = vpop.f32.mrf.mxu0  ;;  %v1325_v63 = vpop.f32.mrf.mxu1 }
 0x638   :  { %v1422_v1 = vmax.f32 %v19414_v60, 0.0  ;;  %v1424_v2 = vmax.f32 %v19416_v61, 0.0  ;;  %v1283_v3 = vadd.f32 %v1282_v62, %v889_v44  ;;  %v1326_v4 = vadd.f32 %v1325_v63, %v897_v45 }
 0x63a   :  { %v1423_v5 = vmax.f32 %v1283_v3, 0.0  ;;  %v1425_v6 = vmax.f32 %v1326_v4, 0.0 }
 0x651   :  { %v1362_v15 = vpop.f32.mrf.mxu0  ;;  %v1405_v16 = vpop.f32.mrf.mxu1 }
 0x652   :  { %v19436_v17 = vadd.f32 %v1362_v15, %v901_v11  ;;  %v19438_v18 = vadd.f32 %v1405_v16, %v909_v12 }
 0x653   :  { %v1364_v19 = vpop.f32.mrf.mxu0  ;;  %v1407_v20 = vpop.f32.mrf.mxu1 }
 0x654   :  { %v1418_v21 = vmax.f32 %v19436_v17, 0.0  ;;  %v1420_v22 = vmax.f32 %v19438_v18, 0.0  ;;  %v19442_v23 = vadd.f32 %v1364_v19, %v905_v13  ;;  %v19444_v24 = vadd.f32 %v1407_v20, %v913_v14 }
 0x655   :  { %v1366_v25 = vpop.f32.mrf.mxu0  ;;  %v1409_v26 = vpop.f32.mrf.mxu1 }
 0x656   :  { %v1419_v0 = vmax.f32 %v19442_v23, 0.0  ;;  %v1421_v27 = vmax.f32 %v19444_v24, 0.0  ;;  %v19448_v28 = vadd.f32 %v1366_v25, %v901_v11  ;;  %v19450_v29 = vadd.f32 %v1409_v26, %v909_v12 }
 0x657   :  { %v1368_v30 = vpop.f32.mrf.mxu0  ;;  %v1411_v32 = vpop.f32.mrf.mxu1 }
 0x658   :  { %v1426_v33 = vmax.f32 %v19448_v28, 0.0  ;;  %v1428_v34 = vmax.f32 %v19450_v29, 0.0  ;;  %v19454_v35 = vadd.f32 %v1368_v30, %v905_v13  ;;  %v19456_v39 = vadd.f32 %v1411_v32, %v913_v14 }
 0x65a   :  { %v1427_v42 = vmax.f32 %v19454_v35, 0.0  ;;  %v1429_v43 = vmax.f32 %v19456_v39, 0.0 }
 0x65b   :  { %19113 = dma.done.wait [#allocation6], 65536 }
 0x65c   :  { %19114 = vsyncadd [#allocation6], 4294901760  ;;  %v19460_v44 = vpack.c.bf16 %v1423_v5, %v1415_v58  ;;  %v19462_v45 = vpack.c.bf16 %v1425_v6, %v1417_v59  ;;  %v1490_v46 = vld [vmem:[#allocation2 + $0x1c0] sm:$0xff]  ;;  %v19489_v61 = vpack.c.bf16 %v1429_v43, %v1421_v27  ;;  %v1479_v28 = vld [vmem:[#allocation2 + $0x168] sm:$0xff] }
 0x65d   :  { %v1494_v47 = vld [vmem:[#allocation2 + $0x1e0] sm:$0xff] }
 0x65e   :  { %4588 = vmatprep.mubr.bf16.mxu0 %v19460_v44  ;;  %4631 = vmatprep.mubr.bf16.mxu1 %v19462_v45  ;;  %v1618_v50 = vld [vmem:[#allocation2 + $0x5c0] sm:$0xff]  ;;  %v15910_v51 = vcombine.high %v1490_v46, %v1494_v47  ;;  %v15909_v55 = vcombine.low %v1490_v46, %v1494_v47 }
 0x65f   :  { %v1622_v54 = vld [vmem:[#allocation2 + $0x5e0] sm:$0xff] }
 0x660   :  { %v1482_v56 = vld [vmem:[#allocation2 + $0x180] sm:$0xff]  ;;  %v16038_v62 = vcombine.high %v1618_v50, %v1622_v54  ;;  %v16037_v63 = vcombine.low %v1618_v50, %v1622_v54  ;;  %4556 = vmatprep.subr.bf16.mxu0 %v15910_v51 }
 0x661   :  { %v1486_v57 = vld [vmem:[#allocation2 + $0x1a0] sm:$0xff]  ;;  %4557 = vmatpush1.bf16.msra.mxu0 %v15909_v55 }
 0x662   :  { %v15902_v3 = vcombine.high %v1482_v56, %v1486_v57  ;;  %v1610_v4 = vld [vmem:[#allocation2 + $0x580] sm:$0xff]  ;;  %4599 = vmatprep.subr.bf16.mxu1 %v16038_v62  ;;  %v15901_v13 = vcombine.low %v1482_v56, %v1486_v57 }
 0x663   :  { %v1614_v58 = vld [vmem:[#allocation2 + $0x5a0] sm:$0xff]  ;;  %4600 = vmatpush1.bf16.msra.mxu1 %v16037_v63 }
 0x664   :  { %v1474_v5 = vld [vmem:[#allocation2 + $0x140] sm:$0xff]  ;;  %v16030_v59 = vcombine.high %v1610_v4, %v1614_v58  ;;  %4558 = vmatprep.subr.bf16.mxu0 %v15902_v3  ;;  %v16029_v14 = vcombine.low %v1610_v4, %v1614_v58 }
 0x665   :  { %v1478_v6 = vld [vmem:[#allocation2 + $0x160] sm:$0xff]  ;;  %4559 = vmatpush1.bf16.msra.mxu0 %v15901_v13 }
 0x666   :  { %v1602_v11 = vld [vmem:[#allocation2 + $0x540] sm:$0xff]  ;;  %v15894_v15 = vcombine.high %v1474_v5, %v1478_v6  ;;  %4601 = vmatprep.subr.bf16.mxu1 %v16030_v59  ;;  %v15893_v30 = vcombine.low %v1474_v5, %v1478_v6 }
 0x667   :  { %v1606_v12 = vld [vmem:[#allocation2 + $0x560] sm:$0xff]  ;;  %4602 = vmatpush1.bf16.msra.mxu1 %v16029_v14 }
 0x668   :  { %v16022_v16 = vcombine.high %v1602_v11, %v1606_v12  ;;  %v1466_v19 = vld [vmem:[#allocation2 + $0x100] sm:$0xff]  ;;  %4560 = vmatprep.subr.bf16.mxu0 %v15894_v15  ;;  %v16021_v32 = vcombine.low %v1602_v11, %v1606_v12 }
 0x669   :  { %v1470_v20 = vld [vmem:[#allocation2 + $0x120] sm:$0xff]  ;;  %4561 = vmatpush1.bf16.msra.mxu0 %v15893_v30 }
 0x66a   :  { %v1594_v25 = vld [vmem:[#allocation2 + $0x500] sm:$0xff]  ;;  %v15886_v46 = vcombine.high %v1466_v19, %v1470_v20  ;;  %4603 = vmatprep.subr.bf16.mxu1 %v16022_v16  ;;  %v15885_v56 = vcombine.low %v1466_v19, %v1470_v20 }
 0x66b   :  { %v1598_v26 = vld [vmem:[#allocation2 + $0x520] sm:$0xff]  ;;  %4604 = vmatpush1.bf16.msra.mxu1 %v16021_v32 }
 0x66c   :  { %v16014_v47 = vcombine.high %v1594_v25, %v1598_v26  ;;  %v1458_v50 = vld [vmem:[#allocation2 + $0xc0] sm:$0xff]  ;;  %4562 = vmatprep.subr.bf16.mxu0 %v15886_v46  ;;  %v16013_v57 = vcombine.low %v1594_v25, %v1598_v26 }
 0x66d   :  { %v1462_v51 = vld [vmem:[#allocation2 + $0xe0] sm:$0xff]  ;;  %4563 = vmatpush1.bf16.msra.mxu0 %v15885_v56 }
 0x66e   :  { %v1586_v54 = vld [vmem:[#allocation2 + $0x4c0] sm:$0xff]  ;;  %v15878_v62 = vcombine.high %v1458_v50, %v1462_v51  ;;  %4605 = vmatprep.subr.bf16.mxu1 %v16014_v47  ;;  %v15877_v59 = vcombine.low %v1458_v50, %v1462_v51 }
 0x66f   :  { %v1590_v55 = vld [vmem:[#allocation2 + $0x4e0] sm:$0xff]  ;;  %4606 = vmatpush1.bf16.msra.mxu1 %v16013_v57 }
 0x670   :  { %v16006_v63 = vcombine.high %v1586_v54, %v1590_v55  ;;  %v1450_v3 = vld [vmem:[#allocation2 + $0x80] sm:$0xff]  ;;  %4564 = vmatprep.subr.bf16.mxu0 %v15878_v62  ;;  %v16005_v6 = vcombine.low %v1586_v54, %v1590_v55 }
 0x671   :  { %v1454_v4 = vld [vmem:[#allocation2 + $0xa0] sm:$0xff]  ;;  %4565 = vmatpush1.bf16.msra.mxu0 %v15877_v59 }
 0x672   :  { %v1578_v58 = vld [vmem:[#allocation2 + $0x480] sm:$0xff]  ;;  %v15870_v11 = vcombine.high %v1450_v3, %v1454_v4  ;;  %4607 = vmatprep.subr.bf16.mxu1 %v16006_v63  ;;  %v15869_v19 = vcombine.low %v1450_v3, %v1454_v4 }
 0x673   :  { %v1582_v5 = vld [vmem:[#allocation2 + $0x4a0] sm:$0xff]  ;;  %4608 = vmatpush1.bf16.msra.mxu1 %v16005_v6 }
 0x674   :  { %v15998_v12 = vcombine.high %v1578_v58, %v1582_v5  ;;  %v1442_v13 = vld [vmem:[#allocation2 + $0x40] sm:$0xff]  ;;  %4566 = vmatprep.subr.bf16.mxu0 %v15870_v11  ;;  %v15997_v20 = vcombine.low %v1578_v58, %v1582_v5 }
 0x675   :  { %v1446_v14 = vld [vmem:[#allocation2 + $0x60] sm:$0xff]  ;;  %4567 = vmatpush1.bf16.msra.mxu0 %v15869_v19 }
 0x676   :  { %v1570_v15 = vld [vmem:[#allocation2 + $0x440] sm:$0xff]  ;;  %v15862_v25 = vcombine.high %v1442_v13, %v1446_v14  ;;  %4609 = vmatprep.subr.bf16.mxu1 %v15998_v12  ;;  %v15861_v50 = vcombine.low %v1442_v13, %v1446_v14 }
 0x677   :  { %v1574_v16 = vld [vmem:[#allocation2 + $0x460] sm:$0xff]  ;;  %4610 = vmatpush1.bf16.msra.mxu1 %v15997_v20 }
 0x678   :  { %v15990_v26 = vcombine.high %v1570_v15, %v1574_v16  ;;  %v1434_v30 = vld [vmem:[#allocation2] sm:$0xff]  ;;  %4568 = vmatprep.subr.bf16.mxu0 %v15862_v25  ;;  %v15989_v51 = vcombine.low %v1570_v15, %v1574_v16 }
 0x679   :  { %v1438_v32 = vld [vmem:[#allocation2 + $0x20] sm:$0xff]  ;;  %4569 = vmatpush1.bf16.msra.mxu0 %v15861_v50 }
 0x67a   :  { %v1562_v46 = vld [vmem:[#allocation2 + $0x400] sm:$0xff]  ;;  %v15854_v54 = vcombine.high %v1434_v30, %v1438_v32  ;;  %4611 = vmatprep.subr.bf16.mxu1 %v15990_v26  ;;  %v15853_v3 = vcombine.low %v1434_v30, %v1438_v32 }
 0x67b   :  { %v1566_v47 = vld [vmem:[#allocation2 + $0x420] sm:$0xff]  ;;  %4612 = vmatpush1.bf16.msra.mxu1 %v15989_v51 }
 0x67c   :  { %v15982_v55 = vcombine.high %v1562_v46, %v1566_v47  ;;  %v1554_v56 = vld [vmem:[#allocation2 + $0x3c0] sm:$0xff]  ;;  %4570 = vmatprep.subr.bf16.mxu0 %v15854_v54  ;;  %v15981_v4 = vcombine.low %v1562_v46, %v1566_v47 }
 0x67d   :  { %v1558_v57 = vld [vmem:[#allocation2 + $0x3e0] sm:$0xff]  ;;  %4571 = vmatpush1.bf16.msra.mxu0 %v15853_v3 }
 0x67e   :  { %v1682_v62 = vld [vmem:[#allocation2 + $0x7c0] sm:$0xff]  ;;  %v15974_v58 = vcombine.high %v1554_v56, %v1558_v57  ;;  %4613 = vmatprep.subr.bf16.mxu1 %v15982_v55  ;;  %v15973_v13 = vcombine.low %v1554_v56, %v1558_v57 }
 0x67f   :  { %v1686_v63 = vld [vmem:[#allocation2 + $0x7e0] sm:$0xff]  ;;  %4614 = vmatpush1.bf16.msra.mxu1 %v15981_v4 }
 0x680   :  { %v16102_v5 = vcombine.high %v1682_v62, %v1686_v63  ;;  %v1546_v59 = vld [vmem:[#allocation2 + $0x380] sm:$0xff]  ;;  %4572 = vmatprep.subr.bf16.mxu0 %v15974_v58  ;;  %v16101_v14 = vcombine.low %v1682_v62, %v1686_v63 }
 0x681   :  { %v1550_v6 = vld [vmem:[#allocation2 + $0x3a0] sm:$0xff]  ;;  %4573 = vmatpush2.bf16.msra.mxu0 %v15973_v13 }
 0x682   :  { %v1674_v11 = vld [vmem:[#allocation2 + $0x780] sm:$0xff]  ;;  %v15966_v15 = vcombine.high %v1546_v59, %v1550_v6  ;;  %4615 = vmatprep.subr.bf16.mxu1 %v16102_v5  ;;  %v15965_v30 = vcombine.low %v1546_v59, %v1550_v6 }
 0x683   :  { %v1678_v12 = vld [vmem:[#allocation2 + $0x7a0] sm:$0xff]  ;;  %4616 = vmatpush2.bf16.msra.mxu1 %v16101_v14 }
 0x684   :  { %v16094_v16 = vcombine.high %v1674_v11, %v1678_v12  ;;  %v1538_v19 = vld [vmem:[#allocation2 + $0x340] sm:$0xff]  ;;  %4574 = vmatprep.subr.bf16.mxu0 %v15966_v15  ;;  %v16093_v32 = vcombine.low %v1674_v11, %v1678_v12 }
 0x685   :  { %v1542_v20 = vld [vmem:[#allocation2 + $0x360] sm:$0xff]  ;;  %4575 = vmatpush2.bf16.msra.mxu0 %v15965_v30 }
 0x686   :  { %v1666_v25 = vld [vmem:[#allocation2 + $0x740] sm:$0xff]  ;;  %v15958_v46 = vcombine.high %v1538_v19, %v1542_v20  ;;  %4617 = vmatprep.subr.bf16.mxu1 %v16094_v16  ;;  %v15957_v56 = vcombine.low %v1538_v19, %v1542_v20 }
 0x687   :  { %v1670_v26 = vld [vmem:[#allocation2 + $0x760] sm:$0xff]  ;;  %4618 = vmatpush2.bf16.msra.mxu1 %v16093_v32 }
 0x688   :  { %v16086_v47 = vcombine.high %v1666_v25, %v1670_v26  ;;  %v1530_v50 = vld [vmem:[#allocation2 + $0x300] sm:$0xff]  ;;  %4576 = vmatprep.subr.bf16.mxu0 %v15958_v46  ;;  %v16085_v57 = vcombine.low %v1666_v25, %v1670_v26 }
 0x689   :  { %v1534_v51 = vld [vmem:[#allocation2 + $0x320] sm:$0xff]  ;;  %4577 = vmatpush2.bf16.msra.mxu0 %v15957_v56 }
 0x68a   :  { %v1658_v54 = vld [vmem:[#allocation2 + $0x700] sm:$0xff]  ;;  %v15950_v62 = vcombine.high %v1530_v50, %v1534_v51  ;;  %4619 = vmatprep.subr.bf16.mxu1 %v16086_v47  ;;  %v15949_v59 = vcombine.low %v1530_v50, %v1534_v51 }
 0x68b   :  { %v1662_v55 = vld [vmem:[#allocation2 + $0x720] sm:$0xff]  ;;  %4620 = vmatpush2.bf16.msra.mxu1 %v16085_v57 }
 0x68c   :  { %v16078_v63 = vcombine.high %v1658_v54, %v1662_v55  ;;  %v1522_v3 = vld [vmem:[#allocation2 + $0x2c0] sm:$0xff]  ;;  %4578 = vmatprep.subr.bf16.mxu0 %v15950_v62  ;;  %v16077_v6 = vcombine.low %v1658_v54, %v1662_v55 }
 0x68d   :  { %v1526_v4 = vld [vmem:[#allocation2 + $0x2e0] sm:$0xff]  ;;  %4579 = vmatpush2.bf16.msra.mxu0 %v15949_v59 }
 0x68e   :  { %v1650_v58 = vld [vmem:[#allocation2 + $0x6c0] sm:$0xff]  ;;  %v15942_v11 = vcombine.high %v1522_v3, %v1526_v4  ;;  %4621 = vmatprep.subr.bf16.mxu1 %v16078_v63  ;;  %v15941_v19 = vcombine.low %v1522_v3, %v1526_v4 }
 0x68f   :  { %v1654_v5 = vld [vmem:[#allocation2 + $0x6e0] sm:$0xff]  ;;  %4622 = vmatpush2.bf16.msra.mxu1 %v16077_v6 }
 0x690   :  { %v16070_v12 = vcombine.high %v1650_v58, %v1654_v5  ;;  %v1514_v13 = vld [vmem:[#allocation2 + $0x280] sm:$0xff]  ;;  %4580 = vmatprep.subr.bf16.mxu0 %v15942_v11  ;;  %v16069_v20 = vcombine.low %v1650_v58, %v1654_v5 }
 0x691   :  { %v1518_v14 = vld [vmem:[#allocation2 + $0x2a0] sm:$0xff]  ;;  %4581 = vmatpush2.bf16.msra.mxu0 %v15941_v19 }
 0x692   :  { %v1642_v15 = vld [vmem:[#allocation2 + $0x680] sm:$0xff]  ;;  %v15934_v25 = vcombine.high %v1514_v13, %v1518_v14  ;;  %4623 = vmatprep.subr.bf16.mxu1 %v16070_v12  ;;  %v15933_v50 = vcombine.low %v1514_v13, %v1518_v14 }
 0x693   :  { %v1646_v16 = vld [vmem:[#allocation2 + $0x6a0] sm:$0xff]  ;;  %4624 = vmatpush2.bf16.msra.mxu1 %v16069_v20 }
 0x694   :  { %v16062_v26 = vcombine.high %v1642_v15, %v1646_v16  ;;  %v1506_v30 = vld [vmem:[#allocation2 + $0x240] sm:$0xff]  ;;  %4582 = vmatprep.subr.bf16.mxu0 %v15934_v25  ;;  %v16061_v51 = vcombine.low %v1642_v15, %v1646_v16  ;;  %v19470_v25 = vpack.c.bf16 %v1422_v1, %v1414_v52  ;;  %v19482_v52 = vpack.c.bf16 %v1427_v42, %v1419_v0 }
 0x695   :  { %v1510_v32 = vld [vmem:[#allocation2 + $0x260] sm:$0xff]  ;;  %4583 = vmatpush2.bf16.msra.mxu0 %v15933_v50 }
 0x696   :  { %v1634_v46 = vld [vmem:[#allocation2 + $0x640] sm:$0xff]  ;;  %v15926_v54 = vcombine.high %v1506_v30, %v1510_v32  ;;  %4625 = vmatprep.subr.bf16.mxu1 %v16062_v26  ;;  %v15925_v3 = vcombine.low %v1506_v30, %v1510_v32  ;;  %v19476_v32 = vpack.c.bf16 %v1424_v2, %v1416_v53 }
 0x697   :  { %v1638_v47 = vld [vmem:[#allocation2 + $0x660] sm:$0xff]  ;;  %4626 = vmatpush2.bf16.msra.mxu1 %v16061_v51 }
 0x698   :  { %v16054_v55 = vcombine.high %v1634_v46, %v1638_v47  ;;  %v1498_v56 = vld [vmem:[#allocation2 + $0x200] sm:$0xff]  ;;  %4584 = vmatprep.subr.bf16.mxu0 %v15926_v54  ;;  %v16053_v4 = vcombine.low %v1634_v46, %v1638_v47 }
 0x699   :  { %v1502_v57 = vld [vmem:[#allocation2 + $0x220] sm:$0xff]  ;;  %4585 = vmatpush2.bf16.msra.mxu0 %v15925_v3 }
 0x69a   :  { %v1626_v62 = vld [vmem:[#allocation2 + $0x600] sm:$0xff]  ;;  %v15918_v58 = vcombine.high %v1498_v56, %v1502_v57  ;;  %4627 = vmatprep.subr.bf16.mxu1 %v16054_v55  ;;  %v15917_v13 = vcombine.low %v1498_v56, %v1502_v57 }
 0x69b   :  { %v1630_v63 = vld [vmem:[#allocation2 + $0x620] sm:$0xff]  ;;  %4628 = vmatpush2.bf16.msra.mxu1 %v16053_v4 }
 0x69c   :  { %v16046_v5 = vcombine.high %v1626_v62, %v1630_v63  ;;  %v1746_v59 = vld [vmem:[#allocation2 + $0x9c0] sm:$0xff]  ;;  %4586 = vmatprep.subr.bf16.mxu0 %v15918_v58  ;;  %v16045_v14 = vcombine.low %v1626_v62, %v1630_v63 }
 0x69d   :  { %v1750_v6 = vld [vmem:[#allocation2 + $0x9e0] sm:$0xff]  ;;  %4587 = vmatpush2.bf16.msra.mxu0 %v15917_v13 }
 0x69e   :  { %v1874_v11 = vld [vmem:[#allocation2 + $0xdc0] sm:$0xff]  ;;  %v16166_v15 = vcombine.high %v1746_v59, %v1750_v6  ;;  %4629 = vmatprep.subr.bf16.mxu1 %v16046_v5  ;;  %v16165_v46 = vcombine.low %v1746_v59, %v1750_v6 }
 0x69f   :  { %v1878_v12 = vld [vmem:[#allocation2 + $0xde0] sm:$0xff]  ;;  %4630 = vmatpush2.bf16.msra.mxu1 %v16045_v14 }
 0x6a0   :  { %v16294_v16 = vcombine.high %v1874_v11, %v1878_v12  ;;  %v1738_v19 = vld [vmem:[#allocation2 + $0x980] sm:$0xff]  ;;  %4642 = vmatprep.subr.bf16.mxu0 %v16166_v15  ;;  %v16293_v47 = vcombine.low %v1874_v11, %v1878_v12  ;;  %4589 = vmatmul.mubr.bf16.vlgmr.msra.gmra.mxu0 %v19470_v25 }
 0x6a1   :  { %v1742_v20 = vld [vmem:[#allocation2 + $0x9a0] sm:$0xff]  ;;  %4643 = vmatpush1.bf16.msra.mxu0 %v16165_v46  ;;  %4674 = vmatprep.mubr.bf16.mxu0 %v19482_v52 }
 0x6a2   :  { %v1866_v26 = vld [vmem:[#allocation2 + $0xd80] sm:$0xff]  ;;  %v16158_v50 = vcombine.high %v1738_v19, %v1742_v20  ;;  %4685 = vmatprep.subr.bf16.mxu1 %v16294_v16  ;;  %4632 = vmatmul.mubr.bf16.vlgmr.msra.gmra.mxu1 %v19476_v32  ;;  %v16157_v1 = vcombine.low %v1738_v19, %v1742_v20 }
 0x6a3   :  { %v1870_v30 = vld [vmem:[#allocation2 + $0xda0] sm:$0xff]  ;;  %4686 = vmatpush1.bf16.msra.mxu1 %v16293_v47  ;;  %4717 = vmatprep.mubr.bf16.mxu1 %v19489_v61 }
 0x6a4   :  { %v16286_v48 = vcombine.high %v1866_v26, %v1870_v30  ;;  %v1730_v51 = vld [vmem:[#allocation2 + $0x940] sm:$0xff]  ;;  %4644 = vmatprep.subr.bf16.mxu0 %v16158_v50  ;;  %v16285_v2 = vcombine.low %v1866_v26, %v1870_v30 }
 0x6a5   :  { %v1734_v60 = vld [vmem:[#allocation2 + $0x960] sm:$0xff]  ;;  %4645 = vmatpush1.bf16.msra.mxu0 %v16157_v1 }
 0x6a6   :  { %v1858_v49 = vld [vmem:[#allocation2 + $0xd40] sm:$0xff]  ;;  %v16150_v23 = vcombine.high %v1730_v51, %v1734_v60  ;;  %4687 = vmatprep.subr.bf16.mxu1 %v16286_v48  ;;  %v16149_v27 = vcombine.low %v1730_v51, %v1734_v60 }
 0x6a7   :  { %v1862_v53 = vld [vmem:[#allocation2 + $0xd60] sm:$0xff]  ;;  %4688 = vmatpush1.bf16.msra.mxu1 %v16285_v2 }
 0x6a8   :  { %v16278_v0 = vcombine.high %v1858_v49, %v1862_v53  ;;  %v1722_v35 = vld [vmem:[#allocation2 + $0x900] sm:$0xff]  ;;  %4646 = vmatprep.subr.bf16.mxu0 %v16150_v23  ;;  %v16277_v39 = vcombine.low %v1858_v49, %v1862_v53 }
 0x6a9   :  { %v1726_v42 = vld [vmem:[#allocation2 + $0x920] sm:$0xff]  ;;  %4647 = vmatpush1.bf16.msra.mxu0 %v16149_v27 }
 0x6aa   :  { %v1850_v54 = vld [vmem:[#allocation2 + $0xd00] sm:$0xff]  ;;  %v16142_v43 = vcombine.high %v1722_v35, %v1726_v42  ;;  %4689 = vmatprep.subr.bf16.mxu1 %v16278_v0  ;;  %v16141_v3 = vcombine.low %v1722_v35, %v1726_v42 }
 0x6ab   :  { %v1854_v24 = vld [vmem:[#allocation2 + $0xd20] sm:$0xff]  ;;  %4690 = vmatpush1.bf16.msra.mxu1 %v16277_v39 }
 0x6ac   :  { %v16270_v55 = vcombine.high %v1850_v54, %v1854_v24  ;;  %v1714_v56 = vld [vmem:[#allocation2 + $0x8c0] sm:$0xff]  ;;  %4648 = vmatprep.subr.bf16.mxu0 %v16142_v43  ;;  %v16269_v4 = vcombine.low %v1850_v54, %v1854_v24 }
 0x6ad   :  { %v1718_v57 = vld [vmem:[#allocation2 + $0x8e0] sm:$0xff]  ;;  %4649 = vmatpush1.bf16.msra.mxu0 %v16141_v3 }
 0x6ae   :  { %v1842_v62 = vld [vmem:[#allocation2 + $0xcc0] sm:$0xff]  ;;  %v16134_v58 = vcombine.high %v1714_v56, %v1718_v57  ;;  %4691 = vmatprep.subr.bf16.mxu1 %v16270_v55  ;;  %v16133_v13 = vcombine.low %v1714_v56, %v1718_v57 }
 0x6af   :  { %v1846_v63 = vld [vmem:[#allocation2 + $0xce0] sm:$0xff]  ;;  %4692 = vmatpush1.bf16.msra.mxu1 %v16269_v4 }
 0x6b0   :  { %v16262_v5 = vcombine.high %v1842_v62, %v1846_v63  ;;  %v1706_v59 = vld [vmem:[#allocation2 + $0x880] sm:$0xff]  ;;  %4650 = vmatprep.subr.bf16.mxu0 %v16134_v58  ;;  %v16261_v14 = vcombine.low %v1842_v62, %v1846_v63 }
 0x6b1   :  { %v1710_v6 = vld [vmem:[#allocation2 + $0x8a0] sm:$0xff]  ;;  %4651 = vmatpush1.bf16.msra.mxu0 %v16133_v13 }
 0x6b2   :  { %v1834_v11 = vld [vmem:[#allocation2 + $0xc80] sm:$0xff]  ;;  %v16126_v15 = vcombine.high %v1706_v59, %v1710_v6  ;;  %4693 = vmatprep.subr.bf16.mxu1 %v16262_v5  ;;  %v16125_v46 = vcombine.low %v1706_v59, %v1710_v6 }
 0x6b3   :  { %v1838_v12 = vld [vmem:[#allocation2 + $0xca0] sm:$0xff]  ;;  %4694 = vmatpush1.bf16.msra.mxu1 %v16261_v14 }
 0x6b4   :  { %v16254_v16 = vcombine.high %v1834_v11, %v1838_v12  ;;  %v1698_v19 = vld [vmem:[#allocation2 + $0x840] sm:$0xff]  ;;  %4652 = vmatprep.subr.bf16.mxu0 %v16126_v15  ;;  %v16253_v47 = vcombine.low %v1834_v11, %v1838_v12 }
 0x6b5   :  { %v1702_v20 = vld [vmem:[#allocation2 + $0x860] sm:$0xff]  ;;  %4653 = vmatpush1.bf16.msra.mxu0 %v16125_v46 }
 0x6b6   :  { %v1826_v26 = vld [vmem:[#allocation2 + $0xc40] sm:$0xff]  ;;  %v16118_v50 = vcombine.high %v1698_v19, %v1702_v20  ;;  %4695 = vmatprep.subr.bf16.mxu1 %v16254_v16  ;;  %v16117_v1 = vcombine.low %v1698_v19, %v1702_v20 }
 0x6b7   :  { %v1830_v30 = vld [vmem:[#allocation2 + $0xc60] sm:$0xff]  ;;  %4696 = vmatpush1.bf16.msra.mxu1 %v16253_v47 }
 0x6b8   :  { %v16246_v48 = vcombine.high %v1826_v26, %v1830_v30  ;;  %v1690_v51 = vld [vmem:[#allocation2 + $0x800] sm:$0xff]  ;;  %4654 = vmatprep.subr.bf16.mxu0 %v16118_v50  ;;  %v16245_v2 = vcombine.low %v1826_v26, %v1830_v30 }
 0x6b9   :  { %v1694_v60 = vld [vmem:[#allocation2 + $0x820] sm:$0xff]  ;;  %4655 = vmatpush1.bf16.msra.mxu0 %v16117_v1 }
 0x6ba   :  { %v1818_v49 = vld [vmem:[#allocation2 + $0xc00] sm:$0xff]  ;;  %v16110_v23 = vcombine.high %v1690_v51, %v1694_v60  ;;  %4697 = vmatprep.subr.bf16.mxu1 %v16246_v48  ;;  %v16109_v27 = vcombine.low %v1690_v51, %v1694_v60 }
 0x6bb   :  { %v1822_v53 = vld [vmem:[#allocation2 + $0xc20] sm:$0xff]  ;;  %4698 = vmatpush1.bf16.msra.mxu1 %v16245_v2 }
 0x6bc   :  { %v16238_v0 = vcombine.high %v1818_v49, %v1822_v53  ;;  %v1810_v35 = vld [vmem:[#allocation2 + $0xbc0] sm:$0xff]  ;;  %4656 = vmatprep.subr.bf16.mxu0 %v16110_v23  ;;  %v16237_v39 = vcombine.low %v1818_v49, %v1822_v53 }
 0x6bd   :  { %v1814_v42 = vld [vmem:[#allocation2 + $0xbe0] sm:$0xff]  ;;  %4657 = vmatpush1.bf16.msra.mxu0 %v16109_v27 }
 0x6be   :  { %v1938_v54 = vld [vmem:[#allocation2 + $0xfc0] sm:$0xff]  ;;  %v16230_v43 = vcombine.high %v1810_v35, %v1814_v42  ;;  %4699 = vmatprep.subr.bf16.mxu1 %v16238_v0  ;;  %v16229_v3 = vcombine.low %v1810_v35, %v1814_v42 }
 0x6bf   :  { %v1942_v24 = vld [vmem:[#allocation2 + $0xfe0] sm:$0xff]  ;;  %4700 = vmatpush1.bf16.msra.mxu1 %v16237_v39 }
 0x6c0   :  { %v16358_v55 = vcombine.high %v1938_v54, %v1942_v24  ;;  %v1802_v56 = vld [vmem:[#allocation2 + $0xb80] sm:$0xff]  ;;  %4658 = vmatprep.subr.bf16.mxu0 %v16230_v43  ;;  %v16357_v4 = vcombine.low %v1938_v54, %v1942_v24 }
 0x6c1   :  { %v1806_v57 = vld [vmem:[#allocation2 + $0xba0] sm:$0xff]  ;;  %4659 = vmatpush2.bf16.msra.mxu0 %v16229_v3 }
 0x6c2   :  { %v1930_v62 = vld [vmem:[#allocation2 + $0xf80] sm:$0xff]  ;;  %v16222_v58 = vcombine.high %v1802_v56, %v1806_v57  ;;  %4701 = vmatprep.subr.bf16.mxu1 %v16358_v55  ;;  %v16221_v13 = vcombine.low %v1802_v56, %v1806_v57 }
 0x6c3   :  { %v1934_v63 = vld [vmem:[#allocation2 + $0xfa0] sm:$0xff]  ;;  %4702 = vmatpush2.bf16.msra.mxu1 %v16357_v4 }
 0x6c4   :  { %v16350_v5 = vcombine.high %v1930_v62, %v1934_v63  ;;  %v1794_v59 = vld [vmem:[#allocation2 + $0xb40] sm:$0xff]  ;;  %4660 = vmatprep.subr.bf16.mxu0 %v16222_v58  ;;  %v16349_v14 = vcombine.low %v1930_v62, %v1934_v63 }
 0x6c5   :  { %v1798_v6 = vld [vmem:[#allocation2 + $0xb60] sm:$0xff]  ;;  %4661 = vmatpush2.bf16.msra.mxu0 %v16221_v13 }
 0x6c6   :  { %v1922_v11 = vld [vmem:[#allocation2 + $0xf40] sm:$0xff]  ;;  %v16214_v15 = vcombine.high %v1794_v59, %v1798_v6  ;;  %4703 = vmatprep.subr.bf16.mxu1 %v16350_v5  ;;  %v16213_v46 = vcombine.low %v1794_v59, %v1798_v6 }
 0x6c7   :  { %v1926_v12 = vld [vmem:[#allocation2 + $0xf60] sm:$0xff]  ;;  %4704 = vmatpush2.bf16.msra.mxu1 %v16349_v14 }
 0x6c8   :  { %v16342_v16 = vcombine.high %v1922_v11, %v1926_v12  ;;  %v1786_v19 = vld [vmem:[#allocation2 + $0xb00] sm:$0xff]  ;;  %4662 = vmatprep.subr.bf16.mxu0 %v16214_v15  ;;  %v16341_v47 = vcombine.low %v1922_v11, %v1926_v12 }
 0x6c9   :  { %v1790_v20 = vld [vmem:[#allocation2 + $0xb20] sm:$0xff]  ;;  %4663 = vmatpush2.bf16.msra.mxu0 %v16213_v46 }
 0x6ca   :  { %v1914_v26 = vld [vmem:[#allocation2 + $0xf00] sm:$0xff]  ;;  %v16206_v50 = vcombine.high %v1786_v19, %v1790_v20  ;;  %4705 = vmatprep.subr.bf16.mxu1 %v16342_v16  ;;  %v16205_v1 = vcombine.low %v1786_v19, %v1790_v20  ;;  %v1491_v19 = vld [vmem:[#allocation2 + $0x1c8] sm:$0xff] }
 0x6cb   :  { %v1918_v30 = vld [vmem:[#allocation2 + $0xf20] sm:$0xff]  ;;  %4706 = vmatpush2.bf16.msra.mxu1 %v16341_v47  ;;  %v1495_v20 = vld [vmem:[#allocation2 + $0x1e8] sm:$0xff] }
 0x6cc   :  { %v16334_v48 = vcombine.high %v1914_v26, %v1918_v30  ;;  %v1778_v51 = vld [vmem:[#allocation2 + $0xac0] sm:$0xff]  ;;  %4664 = vmatprep.subr.bf16.mxu0 %v16206_v50  ;;  %v16333_v2 = vcombine.low %v1914_v26, %v1918_v30  ;;  %v1619_v26 = vld [vmem:[#allocation2 + $0x5c8] sm:$0xff]  ;;  %v15912_v50 = vcombine.high %v1491_v19, %v1495_v20 }
 0x6cd   :  { %v1782_v60 = vld [vmem:[#allocation2 + $0xae0] sm:$0xff]  ;;  %4665 = vmatpush2.bf16.msra.mxu0 %v16205_v1  ;;  %v1623_v30 = vld [vmem:[#allocation2 + $0x5e8] sm:$0xff] }
 0x6ce   :  { %v1906_v49 = vld [vmem:[#allocation2 + $0xec0] sm:$0xff]  ;;  %v16198_v23 = vcombine.high %v1778_v51, %v1782_v60  ;;  %4707 = vmatprep.subr.bf16.mxu1 %v16334_v48  ;;  %v16197_v27 = vcombine.low %v1778_v51, %v1782_v60  ;;  %v16040_v48 = vcombine.high %v1619_v26, %v1623_v30  ;;  %v1483_v51 = vld [vmem:[#allocation2 + $0x188] sm:$0xff] }
 0x6cf   :  { %v1910_v53 = vld [vmem:[#allocation2 + $0xee0] sm:$0xff]  ;;  %4708 = vmatpush2.bf16.msra.mxu1 %v16333_v2  ;;  %v1487_v60 = vld [vmem:[#allocation2 + $0x1a8] sm:$0xff]  ;;  %v19504_v2 = vpack.c.bf16 %v1428_v34, %v1420_v22 }
 0x6d0   :  { %v16326_v0 = vcombine.high %v1906_v49, %v1910_v53  ;;  %v1770_v35 = vld [vmem:[#allocation2 + $0xa80] sm:$0xff]  ;;  %4666 = vmatprep.subr.bf16.mxu0 %v16198_v23  ;;  %v16325_v39 = vcombine.low %v1906_v49, %v1910_v53  ;;  %v19498_v49 = vpack.c.bf16 %v1426_v33, %v1418_v21  ;;  %v1611_v53 = vld [vmem:[#allocation2 + $0x588] sm:$0xff]  ;;  %v15911_v23 = vcombine.low %v1491_v19, %v1495_v20 }
 0x6d1   :  { %v1774_v42 = vld [vmem:[#allocation2 + $0xaa0] sm:$0xff]  ;;  %4667 = vmatpush2.bf16.msra.mxu0 %v16197_v27  ;;  %v1615_v1 = vld [vmem:[#allocation2 + $0x5a8] sm:$0xff]  ;;  %v15903_v18 = vcombine.low %v1483_v51, %v1487_v60 }
 0x6d2   :  { %v1898_v54 = vld [vmem:[#allocation2 + $0xe80] sm:$0xff]  ;;  %v16190_v43 = vcombine.high %v1770_v35, %v1774_v42  ;;  %4709 = vmatprep.subr.bf16.mxu1 %v16326_v0  ;;  %v16189_v3 = vcombine.low %v1770_v35, %v1774_v42  ;;  %v16039_v0 = vcombine.low %v1619_v26, %v1623_v30  ;;  %v15904_v35 = vcombine.high %v1483_v51, %v1487_v60  ;;  %v1475_v42 = vld [vmem:[#allocation2 + $0x148] sm:$0xff] }
 0x6d3   :  { %v1902_v24 = vld [vmem:[#allocation2 + $0xea0] sm:$0xff]  ;;  %4710 = vmatpush2.bf16.msra.mxu1 %v16325_v39  ;;  %v16032_v17 = vcombine.high %v1611_v53, %v1615_v1  ;;  %v1603_v21 = vld [vmem:[#allocation2 + $0x548] sm:$0xff]  ;;  %v16031_v22 = vcombine.low %v1611_v53, %v1615_v1  ;;  %v15896_v29 = vcombine.high %v1475_v42, %v1479_v28 }
 0x6d4   :  { %v16318_v55 = vcombine.high %v1898_v54, %v1902_v24  ;;  %v1762_v56 = vld [vmem:[#allocation2 + $0xa40] sm:$0xff]  ;;  %4668 = vmatprep.subr.bf16.mxu0 %v16190_v43  ;;  %v16317_v4 = vcombine.low %v1898_v54, %v1902_v24  ;;  %v1607_v33 = vld [vmem:[#allocation2 + $0x568] sm:$0xff]  ;;  %v15895_v43 = vcombine.low %v1475_v42, %v1479_v28 }
 0x6d5   :  { %v1766_v57 = vld [vmem:[#allocation2 + $0xa60] sm:$0xff]  ;;  %4669 = vmatpush2.bf16.msra.mxu0 %v16189_v3  ;;  %v16024_v34 = vcombine.high %v1603_v21, %v1607_v33  ;;  %v1467_v54 = vld [vmem:[#allocation2 + $0x108] sm:$0xff] }
 0x6d6   :  { %v1890_v62 = vld [vmem:[#allocation2 + $0xe40] sm:$0xff]  ;;  %v16182_v58 = vcombine.high %v1762_v56, %v1766_v57  ;;  %4711 = vmatprep.subr.bf16.mxu1 %v16318_v55  ;;  %v16181_v13 = vcombine.low %v1762_v56, %v1766_v57  ;;  %v1471_v24 = vld [vmem:[#allocation2 + $0x128] sm:$0xff]  ;;  %v16023_v55 = vcombine.low %v1603_v21, %v1607_v33 }
 0x6d7   :  { %v1894_v63 = vld [vmem:[#allocation2 + $0xe60] sm:$0xff]  ;;  %4712 = vmatpush2.bf16.msra.mxu1 %v16317_v4  ;;  %v1595_v27 = vld [vmem:[#allocation2 + $0x508] sm:$0xff]  ;;  %v15888_v56 = vcombine.high %v1467_v54, %v1471_v24 }
 0x6d8   :  { %v16310_v5 = vcombine.high %v1890_v62, %v1894_v63  ;;  %v1754_v59 = vld [vmem:[#allocation2 + $0xa00] sm:$0xff]  ;;  %4670 = vmatprep.subr.bf16.mxu0 %v16182_v58  ;;  %v16309_v14 = vcombine.low %v1890_v62, %v1894_v63  ;;  %v1599_v39 = vld [vmem:[#allocation2 + $0x528] sm:$0xff]  ;;  %v15887_v58 = vcombine.low %v1467_v54, %v1471_v24 }
 0x6d9   :  { %v1758_v6 = vld [vmem:[#allocation2 + $0xa20] sm:$0xff]  ;;  %4671 = vmatpush2.bf16.msra.mxu0 %v16181_v13  ;;  %v16016_v57 = vcombine.high %v1595_v27, %v1599_v39  ;;  %v1459_v62 = vld [vmem:[#allocation2 + $0xc8] sm:$0xff] }
 0x6da   :  { %v1882_v11 = vld [vmem:[#allocation2 + $0xe00] sm:$0xff]  ;;  %v16174_v15 = vcombine.high %v1754_v59, %v1758_v6  ;;  %4713 = vmatprep.subr.bf16.mxu1 %v16310_v5  ;;  %v16173_v46 = vcombine.low %v1754_v59, %v1758_v6  ;;  %v1463_v63 = vld [vmem:[#allocation2 + $0xe8] sm:$0xff]  ;;  %v16015_v5 = vcombine.low %v1595_v27, %v1599_v39 }
 0x6db   :  { %v1886_v12 = vld [vmem:[#allocation2 + $0xe20] sm:$0xff]  ;;  %4714 = vmatpush2.bf16.msra.mxu1 %v16309_v14  ;;  %v1587_v3 = vld [vmem:[#allocation2 + $0x4c8] sm:$0xff]  ;;  %v15880_v59 = vcombine.high %v1459_v62, %v1463_v63 }
 0x6dc   :  { %v16302_v16 = vcombine.high %v1882_v11, %v1886_v12  ;;  %4672 = vmatprep.subr.bf16.mxu0 %v16174_v15  ;;  %v16301_v47 = vcombine.low %v1882_v11, %v1886_v12  ;;  %v1591_v4 = vld [vmem:[#allocation2 + $0x4e8] sm:$0xff]  ;;  %v15879_v15 = vcombine.low %v1459_v62, %v1463_v63 }
 0x6dd   :  { %4673 = vmatpush2.bf16.msra.mxu0 %v16173_v46  ;;  %v16008_v6 = vcombine.high %v1587_v3, %v1591_v4  ;;  %v1451_v11 = vld [vmem:[#allocation2 + $0x88] sm:$0xff] }
 0x6de   :  { %4715 = vmatprep.subr.bf16.mxu1 %v16302_v16  ;;  %4728 = vmatprep.subr.bf16.mxu0 %v15912_v50  ;;  %v1455_v12 = vld [vmem:[#allocation2 + $0xa8] sm:$0xff]  ;;  %v16007_v16 = vcombine.low %v1587_v3, %v1591_v4 }
 0x6df   :  { %4716 = vmatpush2.bf16.msra.mxu1 %v16301_v47  ;;  %v1579_v13 = vld [vmem:[#allocation2 + $0x488] sm:$0xff]  ;;  %v15872_v19 = vcombine.high %v1451_v11, %v1455_v12  ;;  %v15871_v50 = vcombine.low %v1451_v11, %v1455_v12 }
 0x6e0   :  { %4771 = vmatprep.subr.bf16.mxu1 %v16040_v48  ;;  %4675 = vmatmul.mubr.bf16.vlgmr.msra.gmra.mxu0 %v19498_v49  ;;  %v1583_v14 = vld [vmem:[#allocation2 + $0x4a8] sm:$0xff] }
 0x6e1   :  { %4729 = vmatpush1.bf16.msra.mxu0 %v15911_v23  ;;  %4760 = vmatprep.mubr.bf16.mxu0 %v19460_v44  ;;  %v16000_v20 = vcombine.high %v1579_v13, %v1583_v14  ;;  %v1443_v26 = vld [vmem:[#allocation2 + $0x48] sm:$0xff]  ;;  %v15999_v48 = vcombine.low %v1579_v13, %v1583_v14 }
 0x6e2   :  { %4718 = vmatmul.mubr.bf16.vlgmr.msra.gmra.mxu1 %v19504_v2  ;;  %4730 = vmatprep.subr.bf16.mxu0 %v15904_v35  ;;  %v1447_v30 = vld [vmem:[#allocation2 + $0x68] sm:$0xff] }
 0x6e3   :  { %4772 = vmatpush1.bf16.msra.mxu1 %v16039_v0  ;;  %4803 = vmatprep.mubr.bf16.mxu1 %v19462_v45  ;;  %v1571_v46 = vld [vmem:[#allocation2 + $0x448] sm:$0xff]  ;;  %v15864_v51 = vcombine.high %v1443_v26, %v1447_v30  ;;  %v15863_v35 = vcombine.low %v1443_v26, %v1447_v30 }
 0x6e4   :  { %4773 = vmatprep.subr.bf16.mxu1 %v16032_v17  ;;  %v1575_v47 = vld [vmem:[#allocation2 + $0x468] sm:$0xff] }
 0x6e5   :  { %4731 = vmatpush1.bf16.msra.mxu0 %v15903_v18  ;;  %v15992_v60 = vcombine.high %v1571_v46, %v1575_v47  ;;  %v1435_v53 = vld [vmem:[#allocation2 + $0x8] sm:$0xff]  ;;  %v15991_v17 = vcombine.low %v1571_v46, %v1575_v47 }
 0x6e6   :  { %4732 = vmatprep.subr.bf16.mxu0 %v15896_v29  ;;  %v1439_v1 = vld [vmem:[#allocation2 + $0x28] sm:$0xff] }
 0x6e7   :  { %4774 = vmatpush1.bf16.msra.mxu1 %v16031_v22  ;;  %v1563_v23 = vld [vmem:[#allocation2 + $0x408] sm:$0xff]  ;;  %v15856_v42 = vcombine.high %v1435_v53, %v1439_v1  ;;  %v15855_v29 = vcombine.low %v1435_v53, %v1439_v1 }
 0x6e8   :  { %4775 = vmatprep.subr.bf16.mxu1 %v16024_v34  ;;  %v1567_v0 = vld [vmem:[#allocation2 + $0x428] sm:$0xff] }
 0x6e9   :  { %4733 = vmatpush1.bf16.msra.mxu0 %v15895_v43  ;;  %v15984_v28 = vcombine.high %v1563_v23, %v1567_v0  ;;  %v1555_v21 = vld [vmem:[#allocation2 + $0x3c8] sm:$0xff]  ;;  %v15983_v34 = vcombine.low %v1563_v23, %v1567_v0 }
 0x6ea   :  { %4734 = vmatprep.subr.bf16.mxu0 %v15888_v56  ;;  %v1559_v33 = vld [vmem:[#allocation2 + $0x3e8] sm:$0xff] }
 0x6eb   :  { %4776 = vmatpush1.bf16.msra.mxu1 %v16023_v55  ;;  %v1683_v18 = vld [vmem:[#allocation2 + $0x7c8] sm:$0xff]  ;;  %v15976_v54 = vcombine.high %v1555_v21, %v1559_v33  ;;  %v15975_v56 = vcombine.low %v1555_v21, %v1559_v33 }
 0x6ec   :  { %4777 = vmatprep.subr.bf16.mxu1 %v16016_v57  ;;  %v1687_v22 = vld [vmem:[#allocation2 + $0x7e8] sm:$0xff] }
 0x6ed   :  { %4735 = vmatpush1.bf16.msra.mxu0 %v15887_v58  ;;  %v16104_v24 = vcombine.high %v1683_v18, %v1687_v22  ;;  %v1547_v27 = vld [vmem:[#allocation2 + $0x388] sm:$0xff]  ;;  %v16103_v57 = vcombine.low %v1683_v18, %v1687_v22 }
 0x6ee   :  { %4736 = vmatprep.subr.bf16.mxu0 %v15880_v59  ;;  %v1551_v39 = vld [vmem:[#allocation2 + $0x3a8] sm:$0xff] }
 0x6ef   :  { %4778 = vmatpush1.bf16.msra.mxu1 %v16015_v5  ;;  %v1675_v43 = vld [vmem:[#allocation2 + $0x788] sm:$0xff]  ;;  %v15968_v62 = vcombine.high %v1547_v27, %v1551_v39  ;;  %v15967_v59 = vcombine.low %v1547_v27, %v1551_v39 }
 0x6f0   :  { %4779 = vmatprep.subr.bf16.mxu1 %v16008_v6  ;;  %v1679_v55 = vld [vmem:[#allocation2 + $0x7a8] sm:$0xff] }
 0x6f1   :  { %4737 = vmatpush1.bf16.msra.mxu0 %v15879_v15  ;;  %v16096_v63 = vcombine.high %v1675_v43, %v1679_v55  ;;  %v1539_v3 = vld [vmem:[#allocation2 + $0x348] sm:$0xff]  ;;  %v16095_v6 = vcombine.low %v1675_v43, %v1679_v55 }
 0x6f2   :  { %4738 = vmatprep.subr.bf16.mxu0 %v15872_v19  ;;  %v1543_v4 = vld [vmem:[#allocation2 + $0x368] sm:$0xff] }
 0x6f3   :  { %4780 = vmatpush1.bf16.msra.mxu1 %v16007_v16  ;;  %v1667_v58 = vld [vmem:[#allocation2 + $0x748] sm:$0xff]  ;;  %v15960_v11 = vcombine.high %v1539_v3, %v1543_v4  ;;  %v15959_v19 = vcombine.low %v1539_v3, %v1543_v4 }
 0x6f4   :  { %4781 = vmatprep.subr.bf16.mxu1 %v16000_v20  ;;  %v1671_v5 = vld [vmem:[#allocation2 + $0x768] sm:$0xff] }
 0x6f5   :  { %4739 = vmatpush1.bf16.msra.mxu0 %v15871_v50  ;;  %v16088_v12 = vcombine.high %v1667_v58, %v1671_v5  ;;  %v1531_v13 = vld [vmem:[#allocation2 + $0x308] sm:$0xff]  ;;  %v16087_v20 = vcombine.low %v1667_v58, %v1671_v5 }
 0x6f6   :  { %4740 = vmatprep.subr.bf16.mxu0 %v15864_v51  ;;  %v1535_v14 = vld [vmem:[#allocation2 + $0x328] sm:$0xff] }
 0x6f7   :  { %4782 = vmatpush1.bf16.msra.mxu1 %v15999_v48  ;;  %v1659_v15 = vld [vmem:[#allocation2 + $0x708] sm:$0xff]  ;;  %v15952_v26 = vcombine.high %v1531_v13, %v1535_v14  ;;  %v15951_v51 = vcombine.low %v1531_v13, %v1535_v14 }
 0x6f8   :  { %4783 = vmatprep.subr.bf16.mxu1 %v15992_v60  ;;  %v1663_v16 = vld [vmem:[#allocation2 + $0x728] sm:$0xff] }
 0x6f9   :  { %4741 = vmatpush1.bf16.msra.mxu0 %v15863_v35  ;;  %v16080_v30 = vcombine.high %v1659_v15, %v1663_v16  ;;  %v1523_v46 = vld [vmem:[#allocation2 + $0x2c8] sm:$0xff]  ;;  %v16079_v60 = vcombine.low %v1659_v15, %v1663_v16 }
 0x6fa   :  { %4742 = vmatprep.subr.bf16.mxu0 %v15856_v42  ;;  %v1527_v47 = vld [vmem:[#allocation2 + $0x2e8] sm:$0xff] }
 0x6fb   :  { %4784 = vmatpush1.bf16.msra.mxu1 %v15991_v17  ;;  %v1651_v50 = vld [vmem:[#allocation2 + $0x6c8] sm:$0xff]  ;;  %v15944_v53 = vcombine.high %v1523_v46, %v1527_v47  ;;  %v15943_v42 = vcombine.low %v1523_v46, %v1527_v47 }
 0x6fc   :  { %4785 = vmatprep.subr.bf16.mxu1 %v15984_v28  ;;  %v1655_v48 = vld [vmem:[#allocation2 + $0x6e8] sm:$0xff] }
 0x6fd   :  { %4743 = vmatpush1.bf16.msra.mxu0 %v15855_v29  ;;  %v16072_v1 = vcombine.high %v1651_v50, %v1655_v48  ;;  %v1515_v23 = vld [vmem:[#allocation2 + $0x288] sm:$0xff]  ;;  %v16071_v28 = vcombine.low %v1651_v50, %v1655_v48 }
 0x6fe   :  { %4744 = vmatprep.subr.bf16.mxu0 %v15976_v54  ;;  %v1519_v0 = vld [vmem:[#allocation2 + $0x2a8] sm:$0xff] }
 0x6ff   :  { %4786 = vmatpush1.bf16.msra.mxu1 %v15983_v34  ;;  %v1643_v35 = vld [vmem:[#allocation2 + $0x688] sm:$0xff]  ;;  %v15936_v21 = vcombine.high %v1515_v23, %v1519_v0  ;;  %v15935_v54 = vcombine.low %v1515_v23, %v1519_v0 }
 0x700   :  { %4787 = vmatprep.subr.bf16.mxu1 %v16104_v24  ;;  %v1647_v17 = vld [vmem:[#allocation2 + $0x6a8] sm:$0xff] }
 0x701   :  { %4745 = vmatpush2.bf16.msra.mxu0 %v15975_v56  ;;  %v16064_v33 = vcombine.high %v1643_v35, %v1647_v17  ;;  %v1507_v18 = vld [vmem:[#allocation2 + $0x248] sm:$0xff]  ;;  %v16063_v24 = vcombine.low %v1643_v35, %v1647_v17 }
 0x702   :  { %4746 = vmatprep.subr.bf16.mxu0 %v15968_v62  ;;  %v1511_v22 = vld [vmem:[#allocation2 + $0x268] sm:$0xff] }
 0x703   :  { %4788 = vmatpush2.bf16.msra.mxu1 %v16103_v57  ;;  %v1635_v29 = vld [vmem:[#allocation2 + $0x648] sm:$0xff]  ;;  %v15928_v27 = vcombine.high %v1507_v18, %v1511_v22  ;;  %v15927_v62 = vcombine.low %v1507_v18, %v1511_v22 }
 0x704   :  { %4789 = vmatprep.subr.bf16.mxu1 %v16096_v63  ;;  %v1639_v34 = vld [vmem:[#allocation2 + $0x668] sm:$0xff] }
 0x705   :  { %4747 = vmatpush2.bf16.msra.mxu0 %v15967_v59  ;;  %v16056_v39 = vcombine.high %v1635_v29, %v1639_v34  ;;  %v1499_v43 = vld [vmem:[#allocation2 + $0x208] sm:$0xff]  ;;  %v16055_v63 = vcombine.low %v1635_v29, %v1639_v34 }
 0x706   :  { %4748 = vmatprep.subr.bf16.mxu0 %v15960_v11  ;;  %v1503_v55 = vld [vmem:[#allocation2 + $0x228] sm:$0xff] }
 0x707   :  { %4790 = vmatpush2.bf16.msra.mxu1 %v16095_v6  ;;  %v1627_v56 = vld [vmem:[#allocation2 + $0x608] sm:$0xff]  ;;  %v15920_v3 = vcombine.high %v1499_v43, %v1503_v55  ;;  %v15919_v11 = vcombine.low %v1499_v43, %v1503_v55 }
 0x708   :  { %4791 = vmatprep.subr.bf16.mxu1 %v16088_v12  ;;  %v1631_v57 = vld [vmem:[#allocation2 + $0x628] sm:$0xff] }
 0x709   :  { %4749 = vmatpush2.bf16.msra.mxu0 %v15959_v19  ;;  %v16048_v4 = vcombine.high %v1627_v56, %v1631_v57  ;;  %v1747_v58 = vld [vmem:[#allocation2 + $0x9c8] sm:$0xff]  ;;  %v16047_v12 = vcombine.low %v1627_v56, %v1631_v57 }
 0x70a   :  { %4750 = vmatprep.subr.bf16.mxu0 %v15952_v26  ;;  %v1751_v5 = vld [vmem:[#allocation2 + $0x9e8] sm:$0xff] }
 0x70b   :  { %4792 = vmatpush2.bf16.msra.mxu1 %v16087_v20  ;;  %v1875_v59 = vld [vmem:[#allocation2 + $0xdc8] sm:$0xff]  ;;  %v16168_v13 = vcombine.high %v1747_v58, %v1751_v5  ;;  %v16167_v26 = vcombine.low %v1747_v58, %v1751_v5 }
 0x70c   :  { %4793 = vmatprep.subr.bf16.mxu1 %v16080_v30  ;;  %v1879_v6 = vld [vmem:[#allocation2 + $0xde8] sm:$0xff] }
 0x70d   :  { %4751 = vmatpush2.bf16.msra.mxu0 %v15951_v51  ;;  %v16296_v14 = vcombine.high %v1875_v59, %v1879_v6  ;;  %v1739_v15 = vld [vmem:[#allocation2 + $0x988] sm:$0xff]  ;;  %v16295_v30 = vcombine.low %v1875_v59, %v1879_v6 }
 0x70e   :  { %4752 = vmatprep.subr.bf16.mxu0 %v15944_v53  ;;  %v1743_v16 = vld [vmem:[#allocation2 + $0x9a8] sm:$0xff] }
 0x70f   :  { %4794 = vmatpush2.bf16.msra.mxu1 %v16079_v60  ;;  %v1867_v19 = vld [vmem:[#allocation2 + $0xd88] sm:$0xff]  ;;  %v16160_v46 = vcombine.high %v1739_v15, %v1743_v16  ;;  %v16159_v53 = vcombine.low %v1739_v15, %v1743_v16 }
 0x710   :  { %4795 = vmatprep.subr.bf16.mxu1 %v16072_v1  ;;  %v1871_v20 = vld [vmem:[#allocation2 + $0xda8] sm:$0xff] }
 0x711   :  { %4753 = vmatpush2.bf16.msra.mxu0 %v15943_v42  ;;  %v16288_v47 = vcombine.high %v1867_v19, %v1871_v20  ;;  %v1731_v50 = vld [vmem:[#allocation2 + $0x948] sm:$0xff]  ;;  %v16287_v1 = vcombine.low %v1867_v19, %v1871_v20 }
 0x712   :  { %4754 = vmatprep.subr.bf16.mxu0 %v15936_v21  ;;  %v1735_v48 = vld [vmem:[#allocation2 + $0x968] sm:$0xff] }
 0x713   :  { %4796 = vmatpush2.bf16.msra.mxu1 %v16071_v28  ;;  %v1859_v51 = vld [vmem:[#allocation2 + $0xd48] sm:$0xff]  ;;  %v16152_v23 = vcombine.high %v1731_v50, %v1735_v48  ;;  %v16151_v21 = vcombine.low %v1731_v50, %v1735_v48 }
 0x714   :  { %4797 = vmatprep.subr.bf16.mxu1 %v16064_v33  ;;  %v1863_v60 = vld [vmem:[#allocation2 + $0xd68] sm:$0xff] }
 0x715   :  { %4755 = vmatpush2.bf16.msra.mxu0 %v15935_v54  ;;  %v16280_v0 = vcombine.high %v1859_v51, %v1863_v60  ;;  %v1723_v35 = vld [vmem:[#allocation2 + $0x908] sm:$0xff]  ;;  %v16279_v33 = vcombine.low %v1859_v51, %v1863_v60 }
 0x716   :  { %4756 = vmatprep.subr.bf16.mxu0 %v15928_v27  ;;  %v1727_v17 = vld [vmem:[#allocation2 + $0x928] sm:$0xff] }
 0x717   :  { %4798 = vmatpush2.bf16.msra.mxu1 %v16063_v24  ;;  %v1851_v42 = vld [vmem:[#allocation2 + $0xd08] sm:$0xff]  ;;  %v16144_v18 = vcombine.high %v1723_v35, %v1727_v17  ;;  %v16143_v27 = vcombine.low %v1723_v35, %v1727_v17 }
 0x718   :  { %4799 = vmatprep.subr.bf16.mxu1 %v16056_v39  ;;  %v1855_v28 = vld [vmem:[#allocation2 + $0xd28] sm:$0xff] }
 0x719   :  { %4757 = vmatpush2.bf16.msra.mxu0 %v15927_v62  ;;  %v16272_v22 = vcombine.high %v1851_v42, %v1855_v28  ;;  %v1715_v29 = vld [vmem:[#allocation2 + $0x8c8] sm:$0xff]  ;;  %v16271_v39 = vcombine.low %v1851_v42, %v1855_v28 }
 0x71a   :  { %4758 = vmatprep.subr.bf16.mxu0 %v15920_v3  ;;  %v1719_v34 = vld [vmem:[#allocation2 + $0x8e8] sm:$0xff] }
 0x71b   :  { %4800 = vmatpush2.bf16.msra.mxu1 %v16055_v63  ;;  %v1843_v54 = vld [vmem:[#allocation2 + $0xcc8] sm:$0xff]  ;;  %v16136_v43 = vcombine.high %v1715_v29, %v1719_v34  ;;  %v16135_v3 = vcombine.low %v1715_v29, %v1719_v34 }
 0x71c   :  { %4801 = vmatprep.subr.bf16.mxu1 %v16048_v4  ;;  %v1847_v24 = vld [vmem:[#allocation2 + $0xce8] sm:$0xff] }
 0x71d   :  { %4759 = vmatpush2.bf16.msra.mxu0 %v15919_v11  ;;  %v16264_v55 = vcombine.high %v1843_v54, %v1847_v24  ;;  %v1707_v56 = vld [vmem:[#allocation2 + $0x888] sm:$0xff]  ;;  %v16263_v4 = vcombine.low %v1843_v54, %v1847_v24 }
 0x71e   :  { %4814 = vmatprep.subr.bf16.mxu0 %v16168_v13  ;;  %v1711_v57 = vld [vmem:[#allocation2 + $0x8a8] sm:$0xff] }
 0x71f   :  { %4802 = vmatpush2.bf16.msra.mxu1 %v16047_v12  ;;  %v1835_v62 = vld [vmem:[#allocation2 + $0xc88] sm:$0xff]  ;;  %v16128_v58 = vcombine.high %v1707_v56, %v1711_v57  ;;  %v16127_v13 = vcombine.low %v1707_v56, %v1711_v57 }
 0x720   :  { %4857 = vmatprep.subr.bf16.mxu1 %v16296_v14  ;;  %4761 = vmatmul.mubr.bf16.vlgmr.msra.gmra.mxu0 %v19470_v25  ;;  %v1839_v63 = vld [vmem:[#allocation2 + $0xca8] sm:$0xff] }
 0x721   :  { %4815 = vmatpush1.bf16.msra.mxu0 %v16167_v26  ;;  %4846 = vmatprep.mubr.bf16.mxu0 %v19482_v52  ;;  %v16256_v5 = vcombine.high %v1835_v62, %v1839_v63  ;;  %v1699_v59 = vld [vmem:[#allocation2 + $0x848] sm:$0xff]  ;;  %v16255_v14 = vcombine.low %v1835_v62, %v1839_v63 }
 0x722   :  { %4804 = vmatmul.mubr.bf16.vlgmr.msra.gmra.mxu1 %v19476_v32  ;;  %4816 = vmatprep.subr.bf16.mxu0 %v16160_v46  ;;  %v1703_v6 = vld [vmem:[#allocation2 + $0x868] sm:$0xff] }
 0x723   :  { %4858 = vmatpush1.bf16.msra.mxu1 %v16295_v30  ;;  %4889 = vmatprep.mubr.bf16.mxu1 %v19489_v61  ;;  %v1827_v11 = vld [vmem:[#allocation2 + $0xc48] sm:$0xff]  ;;  %v16120_v15 = vcombine.high %v1699_v59, %v1703_v6  ;;  %v16119_v46 = vcombine.low %v1699_v59, %v1703_v6 }
 0x724   :  { %4859 = vmatprep.subr.bf16.mxu1 %v16288_v47  ;;  %v1831_v12 = vld [vmem:[#allocation2 + $0xc68] sm:$0xff] }
 0x725   :  { %4817 = vmatpush1.bf16.msra.mxu0 %v16159_v53  ;;  %v16248_v16 = vcombine.high %v1827_v11, %v1831_v12  ;;  %v1691_v19 = vld [vmem:[#allocation2 + $0x808] sm:$0xff]  ;;  %v16247_v47 = vcombine.low %v1827_v11, %v1831_v12 }
 0x726   :  { %4818 = vmatprep.subr.bf16.mxu0 %v16152_v23  ;;  %v1695_v20 = vld [vmem:[#allocation2 + $0x828] sm:$0xff] }
 0x727   :  { %4860 = vmatpush1.bf16.msra.mxu1 %v16287_v1  ;;  %v1819_v26 = vld [vmem:[#allocation2 + $0xc08] sm:$0xff]  ;;  %v16112_v50 = vcombine.high %v1691_v19, %v1695_v20  ;;  %v16111_v23 = vcombine.low %v1691_v19, %v1695_v20 }
 0x728   :  { %4861 = vmatprep.subr.bf16.mxu1 %v16280_v0  ;;  %v1823_v30 = vld [vmem:[#allocation2 + $0xc28] sm:$0xff] }
 0x729   :  { %4819 = vmatpush1.bf16.msra.mxu0 %v16151_v21  ;;  %v16240_v48 = vcombine.high %v1819_v26, %v1823_v30  ;;  %v1811_v51 = vld [vmem:[#allocation2 + $0xbc8] sm:$0xff]  ;;  %v16239_v0 = vcombine.low %v1819_v26, %v1823_v30 }
 0x72a   :  { %4820 = vmatprep.subr.bf16.mxu0 %v16144_v18  ;;  %v1815_v60 = vld [vmem:[#allocation2 + $0xbe8] sm:$0xff] }
 0x72b   :  { %4862 = vmatpush1.bf16.msra.mxu1 %v16279_v33  ;;  %v1939_v53 = vld [vmem:[#allocation2 + $0xfc8] sm:$0xff]  ;;  %v16232_v35 = vcombine.high %v1811_v51, %v1815_v60  ;;  %v16231_v18 = vcombine.low %v1811_v51, %v1815_v60 }
 0x72c   :  { %4863 = vmatprep.subr.bf16.mxu1 %v16272_v22  ;;  %v1943_v1 = vld [vmem:[#allocation2 + $0xfe8] sm:$0xff] }
 0x72d   :  { %4821 = vmatpush1.bf16.msra.mxu0 %v16143_v27  ;;  %v16360_v17 = vcombine.high %v1939_v53, %v1943_v1  ;;  %v1803_v42 = vld [vmem:[#allocation2 + $0xb88] sm:$0xff]  ;;  %v16359_v22 = vcombine.low %v1939_v53, %v1943_v1 }
 0x72e   :  { %4822 = vmatprep.subr.bf16.mxu0 %v16136_v43  ;;  %v1807_v28 = vld [vmem:[#allocation2 + $0xba8] sm:$0xff] }
 0x72f   :  { %4864 = vmatpush1.bf16.msra.mxu1 %v16271_v39  ;;  %v1931_v21 = vld [vmem:[#allocation2 + $0xf88] sm:$0xff]  ;;  %v16224_v29 = vcombine.high %v1803_v42, %v1807_v28  ;;  %v16223_v43 = vcombine.low %v1803_v42, %v1807_v28 }
 0x730   :  { %4865 = vmatprep.subr.bf16.mxu1 %v16264_v55  ;;  %v1935_v33 = vld [vmem:[#allocation2 + $0xfa8] sm:$0xff] }
 0x731   :  { %4823 = vmatpush1.bf16.msra.mxu0 %v16135_v3  ;;  %v16352_v34 = vcombine.high %v1931_v21, %v1935_v33  ;;  %v1795_v54 = vld [vmem:[#allocation2 + $0xb48] sm:$0xff]  ;;  %v16351_v55 = vcombine.low %v1931_v21, %v1935_v33 }
 0x732   :  { %4824 = vmatprep.subr.bf16.mxu0 %v16128_v58  ;;  %v1799_v24 = vld [vmem:[#allocation2 + $0xb68] sm:$0xff] }
 0x733   :  { %4866 = vmatpush1.bf16.msra.mxu1 %v16263_v4  ;;  %v1923_v27 = vld [vmem:[#allocation2 + $0xf48] sm:$0xff]  ;;  %v16216_v56 = vcombine.high %v1795_v54, %v1799_v24  ;;  %v16215_v58 = vcombine.low %v1795_v54, %v1799_v24 }
 0x734   :  { %4867 = vmatprep.subr.bf16.mxu1 %v16256_v5  ;;  %v1927_v39 = vld [vmem:[#allocation2 + $0xf68] sm:$0xff] }
 0x735   :  { %4825 = vmatpush1.bf16.msra.mxu0 %v16127_v13  ;;  %v16344_v57 = vcombine.high %v1923_v27, %v1927_v39  ;;  %v1787_v62 = vld [vmem:[#allocation2 + $0xb08] sm:$0xff]  ;;  %v16343_v5 = vcombine.low %v1923_v27, %v1927_v39  ;;  %v1492_v27 = vld [vmem:[#allocation2 + $0x1d0] sm:$0xff] }
 0x736   :  { %4826 = vmatprep.subr.bf16.mxu0 %v16120_v15  ;;  %v1791_v63 = vld [vmem:[#allocation2 + $0xb28] sm:$0xff]  ;;  %v1496_v39 = vld [vmem:[#allocation2 + $0x1f0] sm:$0xff] }
 0x737   :  { %4868 = vmatpush1.bf16.msra.mxu1 %v16255_v14  ;;  %v1915_v3 = vld [vmem:[#allocation2 + $0xf08] sm:$0xff]  ;;  %v16208_v59 = vcombine.high %v1787_v62, %v1791_v63  ;;  %v16207_v15 = vcombine.low %v1787_v62, %v1791_v63  ;;  %v15914_v62 = vcombine.high %v1492_v27, %v1496_v39 }
 0x738   :  { %4869 = vmatprep.subr.bf16.mxu1 %v16248_v16  ;;  %v1919_v4 = vld [vmem:[#allocation2 + $0xf28] sm:$0xff] }
 0x739   :  { %4827 = vmatpush1.bf16.msra.mxu0 %v16119_v46  ;;  %v16336_v6 = vcombine.high %v1915_v3, %v1919_v4  ;;  %v1779_v11 = vld [vmem:[#allocation2 + $0xac8] sm:$0xff]  ;;  %v16335_v16 = vcombine.low %v1915_v3, %v1919_v4  ;;  %v1484_v3 = vld [vmem:[#allocation2 + $0x190] sm:$0xff] }
 0x73a   :  { %4828 = vmatprep.subr.bf16.mxu0 %v16112_v50  ;;  %v1783_v12 = vld [vmem:[#allocation2 + $0xae8] sm:$0xff]  ;;  %v1488_v4 = vld [vmem:[#allocation2 + $0x1b0] sm:$0xff] }
 0x73b   :  { %4870 = vmatpush1.bf16.msra.mxu1 %v16247_v47  ;;  %v1907_v13 = vld [vmem:[#allocation2 + $0xec8] sm:$0xff]  ;;  %v16200_v19 = vcombine.high %v1779_v11, %v1783_v12  ;;  %v16199_v50 = vcombine.low %v1779_v11, %v1783_v12  ;;  %v15906_v11 = vcombine.high %v1484_v3, %v1488_v4 }
 0x73c   :  { %4871 = vmatprep.subr.bf16.mxu1 %v16240_v48  ;;  %v1911_v14 = vld [vmem:[#allocation2 + $0xee8] sm:$0xff] }
 0x73d   :  { %4829 = vmatpush1.bf16.msra.mxu0 %v16111_v23  ;;  %v16328_v20 = vcombine.high %v1907_v13, %v1911_v14  ;;  %v1771_v26 = vld [vmem:[#allocation2 + $0xa88] sm:$0xff]  ;;  %v16327_v48 = vcombine.low %v1907_v13, %v1911_v14  ;;  %v1476_v13 = vld [vmem:[#allocation2 + $0x150] sm:$0xff] }
 0x73e   :  { %4830 = vmatprep.subr.bf16.mxu0 %v16232_v35  ;;  %v1775_v30 = vld [vmem:[#allocation2 + $0xaa8] sm:$0xff]  ;;  %v1480_v14 = vld [vmem:[#allocation2 + $0x170] sm:$0xff] }
 0x73f   :  { %4872 = vmatpush1.bf16.msra.mxu1 %v16239_v0  ;;  %v1899_v46 = vld [vmem:[#allocation2 + $0xe88] sm:$0xff]  ;;  %v16192_v51 = vcombine.high %v1771_v26, %v1775_v30  ;;  %v16191_v35 = vcombine.low %v1771_v26, %v1775_v30  ;;  %v15898_v26 = vcombine.high %v1476_v13, %v1480_v14 }
 0x740   :  { %4873 = vmatprep.subr.bf16.mxu1 %v16360_v17  ;;  %v1903_v47 = vld [vmem:[#allocation2 + $0xea8] sm:$0xff] }
 0x741   :  { %4831 = vmatpush2.bf16.msra.mxu0 %v16231_v18  ;;  %v16320_v60 = vcombine.high %v1899_v46, %v1903_v47  ;;  %v1763_v53 = vld [vmem:[#allocation2 + $0xa48] sm:$0xff]  ;;  %v16319_v17 = vcombine.low %v1899_v46, %v1903_v47  ;;  %v1468_v46 = vld [vmem:[#allocation2 + $0x110] sm:$0xff] }
 0x742   :  { %4832 = vmatprep.subr.bf16.mxu0 %v16224_v29  ;;  %v1767_v1 = vld [vmem:[#allocation2 + $0xa68] sm:$0xff]  ;;  %v1472_v47 = vld [vmem:[#allocation2 + $0x130] sm:$0xff] }
 0x743   :  { %4874 = vmatpush2.bf16.msra.mxu1 %v16359_v22  ;;  %v1891_v23 = vld [vmem:[#allocation2 + $0xe48] sm:$0xff]  ;;  %v16184_v42 = vcombine.high %v1763_v53, %v1767_v1  ;;  %v16183_v29 = vcombine.low %v1763_v53, %v1767_v1  ;;  %v15890_v53 = vcombine.high %v1468_v46, %v1472_v47 }
 0x744   :  { %4875 = vmatprep.subr.bf16.mxu1 %v16352_v34  ;;  %v1895_v0 = vld [vmem:[#allocation2 + $0xe68] sm:$0xff] }
 0x745   :  { %4833 = vmatpush2.bf16.msra.mxu0 %v16223_v43  ;;  %v16312_v28 = vcombine.high %v1891_v23, %v1895_v0  ;;  %v1755_v21 = vld [vmem:[#allocation2 + $0xa08] sm:$0xff]  ;;  %v16311_v34 = vcombine.low %v1891_v23, %v1895_v0  ;;  %v1620_v43 = vld [vmem:[#allocation2 + $0x5d0] sm:$0xff] }
 0x746   :  { %4834 = vmatprep.subr.bf16.mxu0 %v16216_v56  ;;  %v1759_v33 = vld [vmem:[#allocation2 + $0xa28] sm:$0xff]  ;;  %v1460_v23 = vld [vmem:[#allocation2 + $0xd0] sm:$0xff] }
 0x747   :  { %4876 = vmatpush2.bf16.msra.mxu1 %v16351_v55  ;;  %v1883_v18 = vld [vmem:[#allocation2 + $0xe08] sm:$0xff]  ;;  %v16176_v54 = vcombine.high %v1755_v21, %v1759_v33  ;;  %v1624_v55 = vld [vmem:[#allocation2 + $0x5f0] sm:$0xff]  ;;  %v16175_v56 = vcombine.low %v1755_v21, %v1759_v33 }
 0x748   :  { %4877 = vmatprep.subr.bf16.mxu1 %v16344_v57  ;;  %v1887_v22 = vld [vmem:[#allocation2 + $0xe28] sm:$0xff]  ;;  %v16042_v63 = vcombine.high %v1620_v43, %v1624_v55  ;;  %v1464_v0 = vld [vmem:[#allocation2 + $0xf0] sm:$0xff] }
 0x749   :  { %4835 = vmatpush2.bf16.msra.mxu0 %v16215_v58  ;;  %v16304_v24 = vcombine.high %v1883_v18, %v1887_v22  ;;  %v16303_v57 = vcombine.low %v1883_v18, %v1887_v22  ;;  %v1612_v58 = vld [vmem:[#allocation2 + $0x590] sm:$0xff]  ;;  %v15882_v21 = vcombine.high %v1460_v23, %v1464_v0 }
 0x74a   :  { %4836 = vmatprep.subr.bf16.mxu0 %v16208_v59  ;;  %v15913_v59 = vcombine.low %v1492_v27, %v1496_v39  ;;  %v1452_v18 = vld [vmem:[#allocation2 + $0x90] sm:$0xff] }
 0x74b   :  { %4878 = vmatpush2.bf16.msra.mxu1 %v16343_v5  ;;  %v1616_v5 = vld [vmem:[#allocation2 + $0x5b0] sm:$0xff] }
 0x74c   :  { %4879 = vmatprep.subr.bf16.mxu1 %v16336_v6  ;;  %v16041_v6 = vcombine.low %v1620_v43, %v1624_v55  ;;  %v16034_v12 = vcombine.high %v1612_v58, %v1616_v5  ;;  %v1456_v22 = vld [vmem:[#allocation2 + $0xb0] sm:$0xff] }
 0x74d   :  { %4837 = vmatpush2.bf16.msra.mxu0 %v16207_v15  ;;  %v1604_v15 = vld [vmem:[#allocation2 + $0x550] sm:$0xff]  ;;  %v15874_v27 = vcombine.high %v1452_v18, %v1456_v22 }
 0x74e   :  { %4838 = vmatprep.subr.bf16.mxu0 %v16200_v19  ;;  %v15905_v19 = vcombine.low %v1484_v3, %v1488_v4  ;;  %v1444_v43 = vld [vmem:[#allocation2 + $0x50] sm:$0xff] }
 0x74f   :  { %4880 = vmatpush2.bf16.msra.mxu1 %v16335_v16  ;;  %v1608_v16 = vld [vmem:[#allocation2 + $0x570] sm:$0xff] }
 0x750   :  { %4881 = vmatprep.subr.bf16.mxu1 %v16328_v20  ;;  %v16033_v20 = vcombine.low %v1612_v58, %v1616_v5  ;;  %v16026_v30 = vcombine.high %v1604_v15, %v1608_v16  ;;  %v1448_v55 = vld [vmem:[#allocation2 + $0x70] sm:$0xff] }
 0x751   :  { %4839 = vmatpush2.bf16.msra.mxu0 %v16199_v50  ;;  %v1596_v50 = vld [vmem:[#allocation2 + $0x510] sm:$0xff]  ;;  %v15866_v3 = vcombine.high %v1444_v43, %v1448_v55 }
 0x752   :  { %4840 = vmatprep.subr.bf16.mxu0 %v16192_v51  ;;  %v15897_v51 = vcombine.low %v1476_v13, %v1480_v14  ;;  %v1436_v58 = vld [vmem:[#allocation2 + $0x10] sm:$0xff] }
 0x753   :  { %4882 = vmatpush2.bf16.msra.mxu1 %v16327_v48  ;;  %v1600_v48 = vld [vmem:[#allocation2 + $0x530] sm:$0xff] }
 0x754   :  { %4883 = vmatprep.subr.bf16.mxu1 %v16320_v60  ;;  %v16025_v60 = vcombine.low %v1604_v15, %v1608_v16  ;;  %v16018_v1 = vcombine.high %v1596_v50, %v1600_v48  ;;  %v1440_v5 = vld [vmem:[#allocation2 + $0x30] sm:$0xff] }
 0x755   :  { %4841 = vmatpush2.bf16.msra.mxu0 %v16191_v35  ;;  %v1588_v35 = vld [vmem:[#allocation2 + $0x4d0] sm:$0xff]  ;;  %v15858_v13 = vcombine.high %v1436_v58, %v1440_v5 }
 0x756   :  { %4842 = vmatprep.subr.bf16.mxu0 %v16184_v42  ;;  %v15889_v42 = vcombine.low %v1468_v46, %v1472_v47  ;;  %v1556_v15 = vld [vmem:[#allocation2 + $0x3d0] sm:$0xff] }
 0x757   :  { %4884 = vmatpush2.bf16.msra.mxu1 %v16319_v17  ;;  %v1592_v17 = vld [vmem:[#allocation2 + $0x4f0] sm:$0xff] }
 0x758   :  { %4885 = vmatprep.subr.bf16.mxu1 %v16312_v28  ;;  %v16017_v28 = vcombine.low %v1596_v50, %v1600_v48  ;;  %v16010_v33 = vcombine.high %v1588_v35, %v1592_v17  ;;  %v1560_v16 = vld [vmem:[#allocation2 + $0x3f0] sm:$0xff] }
 0x759   :  { %4843 = vmatpush2.bf16.msra.mxu0 %v16183_v29  ;;  %v1580_v29 = vld [vmem:[#allocation2 + $0x490] sm:$0xff]  ;;  %v15978_v46 = vcombine.high %v1556_v15, %v1560_v16 }
 0x75a   :  { %4844 = vmatprep.subr.bf16.mxu0 %v16176_v54  ;;  %v15881_v54 = vcombine.low %v1460_v23, %v1464_v0  ;;  %v1548_v50 = vld [vmem:[#allocation2 + $0x390] sm:$0xff] }
 0x75b   :  { %4886 = vmatpush2.bf16.msra.mxu1 %v16311_v34  ;;  %v1584_v34 = vld [vmem:[#allocation2 + $0x4b0] sm:$0xff] }
 0x75c   :  { %4887 = vmatprep.subr.bf16.mxu1 %v16304_v24  ;;  %v16009_v24 = vcombine.low %v1588_v35, %v1592_v17  ;;  %v16002_v39 = vcombine.high %v1580_v29, %v1584_v34  ;;  %v1552_v48 = vld [vmem:[#allocation2 + $0x3b0] sm:$0xff] }
 0x75d   :  { %4845 = vmatpush2.bf16.msra.mxu0 %v16175_v56  ;;  %v1572_v56 = vld [vmem:[#allocation2 + $0x450] sm:$0xff]  ;;  %v15970_v23 = vcombine.high %v1548_v50, %v1552_v48 }
 0x75e   :  { %4900 = vmatprep.subr.bf16.mxu0 %v15914_v62  ;;  %v15873_v62 = vcombine.low %v1452_v18, %v1456_v22  ;;  %v1540_v35 = vld [vmem:[#allocation2 + $0x350] sm:$0xff] }
 0x75f   :  { %4888 = vmatpush2.bf16.msra.mxu1 %v16303_v57  ;;  %v1576_v57 = vld [vmem:[#allocation2 + $0x470] sm:$0xff] }
 0x760   :  { %4943 = vmatprep.subr.bf16.mxu1 %v16042_v63  ;;  %4847 = vmatmul.mubr.bf16.vlgmr.msra.gmra.mxu0 %v19498_v49  ;;  %v16001_v63 = vcombine.low %v1580_v29, %v1584_v34  ;;  %v15994_v4 = vcombine.high %v1572_v56, %v1576_v57  ;;  %v1544_v17 = vld [vmem:[#allocation2 + $0x370] sm:$0xff] }
 0x761   :  { %4901 = vmatpush1.bf16.msra.mxu0 %v15913_v59  ;;  %4932 = vmatprep.mubr.bf16.mxu0 %v19460_v44  ;;  %v1564_v59 = vld [vmem:[#allocation2 + $0x410] sm:$0xff]  ;;  %v15962_v18 = vcombine.high %v1540_v35, %v1544_v17 }
 0x762   :  { %4890 = vmatmul.mubr.bf16.vlgmr.msra.gmra.mxu1 %v19504_v2  ;;  %4902 = vmatprep.subr.bf16.mxu0 %v15906_v11  ;;  %v15865_v11 = vcombine.low %v1444_v43, %v1448_v55  ;;  %v1532_v29 = vld [vmem:[#allocation2 + $0x310] sm:$0xff] }
 0x763   :  { %4944 = vmatpush1.bf16.msra.mxu1 %v16041_v6  ;;  %4975 = vmatprep.mubr.bf16.mxu1 %v19462_v45  ;;  %v1568_v6 = vld [vmem:[#allocation2 + $0x430] sm:$0xff] }
 0x764   :  { %4945 = vmatprep.subr.bf16.mxu1 %v16034_v12  ;;  %v15993_v12 = vcombine.low %v1572_v56, %v1576_v57  ;;  %v15986_v14 = vcombine.high %v1564_v59, %v1568_v6  ;;  %v1536_v34 = vld [vmem:[#allocation2 + $0x330] sm:$0xff] }
 0x765   :  { %4903 = vmatpush1.bf16.msra.mxu0 %v15905_v19  ;;  %v1684_v19 = vld [vmem:[#allocation2 + $0x7d0] sm:$0xff]  ;;  %v15954_v43 = vcombine.high %v1532_v29, %v1536_v34 }
 0x766   :  { %4904 = vmatprep.subr.bf16.mxu0 %v15898_v26  ;;  %v15857_v26 = vcombine.low %v1436_v58, %v1440_v5  ;;  %v1524_v56 = vld [vmem:[#allocation2 + $0x2d0] sm:$0xff] }
 0x767   :  { %4946 = vmatpush1.bf16.msra.mxu1 %v16033_v20  ;;  %v1688_v20 = vld [vmem:[#allocation2 + $0x7f0] sm:$0xff] }
 0x768   :  { %4947 = vmatprep.subr.bf16.mxu1 %v16026_v30  ;;  %v15985_v30 = vcombine.low %v1564_v59, %v1568_v6  ;;  %v16106_v47 = vcombine.high %v1684_v19, %v1688_v20  ;;  %v1528_v57 = vld [vmem:[#allocation2 + $0x2f0] sm:$0xff] }
 0x769   :  { %4905 = vmatpush1.bf16.msra.mxu0 %v15897_v51  ;;  %v1676_v51 = vld [vmem:[#allocation2 + $0x790] sm:$0xff]  ;;  %v15946_v58 = vcombine.high %v1524_v56, %v1528_v57 }
 0x76a   :  { %4906 = vmatprep.subr.bf16.mxu0 %v15890_v53  ;;  %v15977_v53 = vcombine.low %v1556_v15, %v1560_v16  ;;  %v1516_v59 = vld [vmem:[#allocation2 + $0x290] sm:$0xff] }
 0x76b   :  { %4948 = vmatpush1.bf16.msra.mxu1 %v16025_v60  ;;  %v1680_v60 = vld [vmem:[#allocation2 + $0x7b0] sm:$0xff] }
 0x76c   :  { %4949 = vmatprep.subr.bf16.mxu1 %v16018_v1  ;;  %v16105_v1 = vcombine.low %v1684_v19, %v1688_v20  ;;  %v16098_v0 = vcombine.high %v1676_v51, %v1680_v60  ;;  %v1520_v6 = vld [vmem:[#allocation2 + $0x2b0] sm:$0xff] }
 0x76d   :  { %4907 = vmatpush1.bf16.msra.mxu0 %v15889_v42  ;;  %v1668_v42 = vld [vmem:[#allocation2 + $0x750] sm:$0xff]  ;;  %v15938_v15 = vcombine.high %v1516_v59, %v1520_v6 }
 0x76e   :  { %4908 = vmatprep.subr.bf16.mxu0 %v15882_v21  ;;  %v15969_v21 = vcombine.low %v1548_v50, %v1552_v48  ;;  %v1508_v19 = vld [vmem:[#allocation2 + $0x250] sm:$0xff] }
 0x76f   :  { %4950 = vmatpush1.bf16.msra.mxu1 %v16017_v28  ;;  %v1672_v28 = vld [vmem:[#allocation2 + $0x770] sm:$0xff] }
 0x770   :  { %4951 = vmatprep.subr.bf16.mxu1 %v16010_v33  ;;  %v16097_v33 = vcombine.low %v1676_v51, %v1680_v60  ;;  %v16090_v22 = vcombine.high %v1668_v42, %v1672_v28  ;;  %v1512_v20 = vld [vmem:[#allocation2 + $0x270] sm:$0xff]  ;;  %v4633_v51 = vpop.f32.mrf.mxu1 }
 0x771   :  { %4909 = vmatpush1.bf16.msra.mxu0 %v15881_v54  ;;  %v1660_v54 = vld [vmem:[#allocation2 + $0x710] sm:$0xff]  ;;  %v15930_v48 = vcombine.high %v1508_v19, %v1512_v20 }
 0x772   :  { %4910 = vmatprep.subr.bf16.mxu0 %v15874_v27  ;;  %v15961_v27 = vcombine.low %v1540_v35, %v1544_v17  ;;  %v1632_v35 = vld [vmem:[#allocation2 + $0x630] sm:$0xff]  ;;  %v15929_v17 = vcombine.low %v1508_v19, %v1512_v20 }
 0x773   :  { %4952 = vmatpush1.bf16.msra.mxu1 %v16009_v24  ;;  %v1664_v24 = vld [vmem:[#allocation2 + $0x730] sm:$0xff] }
 0x774   :  { %4953 = vmatprep.subr.bf16.mxu1 %v16002_v39  ;;  %v16089_v39 = vcombine.low %v1668_v42, %v1672_v28  ;;  %v16082_v55 = vcombine.high %v1660_v54, %v1664_v24 }
 0x775   :  { %4911 = vmatpush1.bf16.msra.mxu0 %v15873_v62  ;;  %v1652_v62 = vld [vmem:[#allocation2 + $0x6d0] sm:$0xff] }
 0x776   :  { %4912 = vmatprep.subr.bf16.mxu0 %v15866_v3  ;;  %v15953_v3 = vcombine.low %v1532_v29, %v1536_v34  ;;  %v1748_v29 = vld [vmem:[#allocation2 + $0x9d0] sm:$0xff] }
 0x777   :  { %4954 = vmatpush1.bf16.msra.mxu1 %v16001_v63  ;;  %v1656_v63 = vld [vmem:[#allocation2 + $0x6f0] sm:$0xff] }
 0x778   :  { %4955 = vmatprep.subr.bf16.mxu1 %v15994_v4  ;;  %v16081_v4 = vcombine.low %v1660_v54, %v1664_v24  ;;  %v16074_v5 = vcombine.high %v1652_v62, %v1656_v63  ;;  %v1752_v34 = vld [vmem:[#allocation2 + $0x9f0] sm:$0xff] }
 0x779   :  { %4913 = vmatpush1.bf16.msra.mxu0 %v15865_v11  ;;  %v1644_v11 = vld [vmem:[#allocation2 + $0x690] sm:$0xff] }
 0x77a   :  { %4914 = vmatprep.subr.bf16.mxu0 %v15858_v13  ;;  %v15945_v13 = vcombine.low %v1524_v56, %v1528_v57  ;;  %v1876_v54 = vld [vmem:[#allocation2 + $0xdd0] sm:$0xff]  ;;  %v16170_v56 = vcombine.high %v1748_v29, %v1752_v34 }
 0x77b   :  { %4956 = vmatpush1.bf16.msra.mxu1 %v15993_v12  ;;  %v1648_v12 = vld [vmem:[#allocation2 + $0x6b0] sm:$0xff] }
 0x77c   :  { %4957 = vmatprep.subr.bf16.mxu1 %v15986_v14  ;;  %v16073_v14 = vcombine.low %v1652_v62, %v1656_v63  ;;  %v16066_v16 = vcombine.high %v1644_v11, %v1648_v12  ;;  %v16065_v50 = vcombine.low %v1644_v11, %v1648_v12  ;;  %v1880_v24 = vld [vmem:[#allocation2 + $0xdf0] sm:$0xff] }
 0x77d   :  { %4915 = vmatpush1.bf16.msra.mxu0 %v15857_v26  ;;  %v1636_v26 = vld [vmem:[#allocation2 + $0x650] sm:$0xff]  ;;  %v16298_v63 = vcombine.high %v1876_v54, %v1880_v24  ;;  %v16297_v12 = vcombine.low %v1876_v54, %v1880_v24 }
 0x77e   :  { %4916 = vmatprep.subr.bf16.mxu0 %v15978_v46  ;;  %v15937_v46 = vcombine.low %v1516_v59, %v1520_v6  ;;  %v16169_v6 = vcombine.low %v1748_v29, %v1752_v34  ;;  %v1852_v54 = vld [vmem:[#allocation2 + $0xd10] sm:$0xff] }
 0x77f   :  { %4958 = vmatpush1.bf16.msra.mxu1 %v15985_v30  ;;  %v1640_v30 = vld [vmem:[#allocation2 + $0x670] sm:$0xff] }
 0x780   :  { %4959 = vmatprep.subr.bf16.mxu1 %v16106_v47  ;;  %v4590_v47 = vpop.f32.mrf.mxu0  ;;  %v16058_v60 = vcombine.high %v1636_v26, %v1640_v30  ;;  %v16057_v28 = vcombine.low %v1636_v26, %v1640_v30  ;;  %v1736_v26 = vld [vmem:[#allocation2 + $0x970] sm:$0xff] }
 0x781   :  { %4917 = vmatpush2.bf16.msra.mxu0 %v15977_v53  ;;  %v1500_v53 = vld [vmem:[#allocation2 + $0x210] sm:$0xff] }
 0x782   :  { %4918 = vmatprep.subr.bf16.mxu0 %v15970_v23  ;;  %v19518_v23 = vld [vmem:[#allocation26 + $0xe] sm:$0xff]  ;;  %v4592_v42 = vpop.f32.mrf.mxu0 }
 0x783   :  { %4960 = vmatpush2.bf16.msra.mxu1 %v16105_v1  ;;  %v1504_v1 = vld [vmem:[#allocation2 + $0x230] sm:$0xff] }
 0x784   :  { %4961 = vmatprep.subr.bf16.mxu1 %v16098_v0  ;;  %v1628_v0 = vld [vmem:[#allocation2 + $0x610] sm:$0xff] }
 0x785   :  { %4919 = vmatpush2.bf16.msra.mxu0 %v15969_v21  ;;  %v15922_v21 = vcombine.high %v1500_v53, %v1504_v1  ;;  %v1860_v30 = vld [vmem:[#allocation2 + $0xd50] sm:$0xff] }
 0x786   :  { %4920 = vmatprep.subr.bf16.mxu0 %v15962_v18  ;;  %v4635_v18 = vpop.f32.mrf.mxu1  ;;  %v1856_v24 = vld [vmem:[#allocation2 + $0xd30] sm:$0xff] }
 0x787   :  { %4962 = vmatpush2.bf16.msra.mxu1 %v16097_v33  ;;  %v1959_v33 = vrot.slane %v19518_v23, %v19393_v37 }
 0x788   :  { %4963 = vmatprep.subr.bf16.mxu1 %v16090_v22  ;;  %v16050_v22 = vcombine.high %v1628_v0, %v1632_v35  ;;  %v4637_v62 = vpop.f32.mrf.mxu1 }
 0x789   :  { %4921 = vmatpush2.bf16.msra.mxu0 %v15961_v27  ;;  %v1963_v27 = vrot.slane %v19518_v23, %v19399_v40  ;;  %v4591_v57 = vadd.f32 %v4590_v47, %v1959_v33 }
 0x78a   :  { %4922 = vmatprep.subr.bf16.mxu0 %v15954_v43  ;;  %v4594_v43 = vpop.f32.mrf.mxu0  ;;  %v4639_v19 = vpop.f32.mrf.mxu1 }
 0x78b   :  { %4964 = vmatpush2.bf16.msra.mxu1 %v16089_v39  ;;  %v15921_v39 = vcombine.low %v1500_v53, %v1504_v1  ;;  %v4593_v59 = vadd.f32 %v4592_v42, %v1963_v27 }
 0x78c   :  { %4965 = vmatprep.subr.bf16.mxu1 %v16082_v55  ;;  %v16049_v55 = vcombine.low %v1628_v0, %v1632_v35  ;;  %v4596_v11 = vpop.f32.mrf.mxu0 }
 0x78d   :  { %4923 = vmatpush2.bf16.msra.mxu0 %v15953_v3  ;;  %v1740_v3 = vld [vmem:[#allocation2 + $0x990] sm:$0xff] }
 0x78e   :  { %4924 = vmatprep.subr.bf16.mxu0 %v15946_v58  ;;  %v1868_v58 = vld [vmem:[#allocation2 + $0xd90] sm:$0xff] }
 0x78f   :  { %4966 = vmatpush2.bf16.msra.mxu1 %v16081_v4  ;;  %v1744_v4 = vld [vmem:[#allocation2 + $0x9b0] sm:$0xff] }
 0x790   :  { %4967 = vmatprep.subr.bf16.mxu1 %v16074_v5  ;;  %v1872_v5 = vld [vmem:[#allocation2 + $0xdb0] sm:$0xff] }
 0x791   :  { %4925 = vmatpush2.bf16.msra.mxu0 %v15945_v13  ;;  %v16162_v13 = vcombine.high %v1740_v3, %v1744_v4  ;;  %v16290_v20 = vcombine.high %v1868_v58, %v1872_v5  ;;  %v16289_v0 = vcombine.low %v1868_v58, %v1872_v5  ;;  %v16274_v5 = vcombine.high %v1852_v54, %v1856_v24 }
 0x792   :  { %4926 = vmatprep.subr.bf16.mxu0 %v15938_v15  ;;  %v4634_v15 = vadd.f32 %v4633_v51, %v4591_v57 }
 0x793   :  { %4968 = vmatpush2.bf16.msra.mxu1 %v16073_v14  ;;  %v1732_v14 = vld [vmem:[#allocation2 + $0x950] sm:$0xff] }
 0x794   :  { %4969 = vmatprep.subr.bf16.mxu1 %v16066_v16  ;;  %v4595_v16 = vadd.f32 %v4594_v43, %v1959_v33  ;;  %v16154_v35 = vcombine.high %v1732_v14, %v1736_v26  ;;  %v16153_v34 = vcombine.low %v1732_v14, %v1736_v26 }
 0x795   :  { %4927 = vmatpush2.bf16.msra.mxu0 %v15937_v46  ;;  %v1864_v46 = vld [vmem:[#allocation2 + $0xd70] sm:$0xff] }
 0x796   :  { %4928 = vmatprep.subr.bf16.mxu0 %v15930_v48  ;;  %v4636_v48 = vadd.f32 %v4635_v18, %v4593_v59  ;;  %v4638_v42 = vadd.f32 %v4637_v62, %v4595_v16  ;;  %v1728_v18 = vld [vmem:[#allocation2 + $0x930] sm:$0xff]  ;;  %v16281_v62 = vcombine.low %v1860_v30, %v1864_v46 }
 0x797   :  { %4970 = vmatpush2.bf16.msra.mxu1 %v16065_v50  ;;  %v16161_v50 = vcombine.low %v1740_v3, %v1744_v4  ;;  %v1716_v59 = vld [vmem:[#allocation2 + $0x8d0] sm:$0xff] }
 0x798   :  { %4971 = vmatprep.subr.bf16.mxu1 %v16058_v60  ;;  %v4597_v60 = vadd.f32 %v4596_v11, %v1963_v27 }
 0x799   :  { %4929 = vmatpush2.bf16.msra.mxu0 %v15929_v17  ;;  %v16282_v17 = vcombine.high %v1860_v30, %v1864_v46  ;;  %v1708_v46 = vld [vmem:[#allocation2 + $0x890] sm:$0xff] }
 0x79a   :  { %4930 = vmatprep.subr.bf16.mxu0 %v15922_v21  ;;  %v4640_v27 = vadd.f32 %v4639_v19, %v4597_v60  ;;  %v16273_v19 = vcombine.low %v1852_v54, %v1856_v24  ;;  %v1820_v54 = vld [vmem:[#allocation2 + $0xc10] sm:$0xff] }
 0x79b   :  { %4972 = vmatpush2.bf16.msra.mxu1 %v16057_v28  ;;  %v1824_v24 = vld [vmem:[#allocation2 + $0xc30] sm:$0xff] }
 0x79c   :  { %4973 = vmatprep.subr.bf16.mxu1 %v16050_v22  ;;  %v1724_v22 = vld [vmem:[#allocation2 + $0x910] sm:$0xff] }
 0x79d   :  { %4931 = vmatpush2.bf16.msra.mxu0 %v15921_v39  ;;  %v16145_v16 = vcombine.low %v1724_v22, %v1728_v18 }
 0x79e   :  { %4986 = vmatprep.subr.bf16.mxu0 %v16170_v56 }
 0x79f   :  { %4974 = vmatpush2.bf16.msra.mxu1 %v16049_v55 }
 0x7a0   :  { %5029 = vmatprep.subr.bf16.mxu1 %v16298_v63  ;;  %v4676_v47 = vpop.f32.mrf.mxu0  ;;  %4933 = vmatmul.mubr.bf16.vlgmr.msra.gmra.mxu0 %v19470_v25  ;;  %v16146_v63 = vcombine.high %v1724_v22, %v1728_v18 }
 0x7a1   :  { %v4677_v53 = vadd.f32 %v4676_v47, %v4634_v15  ;;  %4987 = vmatpush1.bf16.msra.mxu0 %v16169_v6  ;;  %5018 = vmatprep.mubr.bf16.mxu0 %v19482_v52  ;;  %v1720_v6 = vld [vmem:[#allocation2 + $0x8f0] sm:$0xff] }
 0x7a2   :  { %v4719_v1 = vpop.f32.mrf.mxu1  ;;  %4976 = vmatmul.mubr.bf16.vlgmr.msra.gmra.mxu1 %v19476_v32  ;;  %v4678_v51 = vpop.f32.mrf.mxu0  ;;  %4988 = vmatprep.subr.bf16.mxu0 %v16162_v13  ;;  %v1848_v13 = vld [vmem:[#allocation2 + $0xcf0] sm:$0xff]  ;;  %v16137_v60 = vcombine.low %v1716_v59, %v1720_v6 }
 0x7a3   :  { %5030 = vmatpush1.bf16.msra.mxu1 %v16297_v12  ;;  %v19526_v28 = vadd.f32 %v4719_v1, %v4677_v53  ;;  %v4679_v21 = vadd.f32 %v4678_v51, %v4636_v48  ;;  %5061 = vmatprep.mubr.bf16.mxu1 %v19489_v61  ;;  %v1844_v12 = vld [vmem:[#allocation2 + $0xcd0] sm:$0xff] }
 0x7a4   :  { %v4721_v33 = vpop.f32.mrf.mxu1  ;;  %5031 = vmatprep.subr.bf16.mxu1 %v16290_v20  ;;  %v4680_v29 = vpop.f32.mrf.mxu0  ;;  %v16138_v20 = vcombine.high %v1716_v59, %v1720_v6  ;;  %v16266_v30 = vcombine.high %v1844_v12, %v1848_v13  ;;  %v1712_v47 = vld [vmem:[#allocation2 + $0x8b0] sm:$0xff]  ;;  %v16265_v53 = vcombine.low %v1844_v12, %v1848_v13  ;;  %v16241_v6 = vcombine.low %v1820_v54, %v1824_v24 }
 0x7a5   :  { %v5244_v39 = vmax.f32 %v19526_v28, 0.0  ;;  %v19531_v43 = vadd.f32 %v4721_v33, %v4679_v21  ;;  %v4681_v55 = vadd.f32 %v4680_v29, %v4638_v42  ;;  %4989 = vmatpush1.bf16.msra.mxu0 %v16161_v50  ;;  %v1836_v50 = vld [vmem:[#allocation2 + $0xc90] sm:$0xff]  ;;  %v16130_v1 = vcombine.high %v1708_v46, %v1712_v47 }
 0x7a6   :  { %v4723_v56 = vpop.f32.mrf.mxu1  ;;  %v4682_v57 = vpop.f32.mrf.mxu0  ;;  %4990 = vmatprep.subr.bf16.mxu0 %v16154_v35  ;;  %v1840_v48 = vld [vmem:[#allocation2 + $0xcb0] sm:$0xff]  ;;  %v16129_v21 = vcombine.low %v1708_v46, %v1712_v47 }
 0x7a7   :  { %5032 = vmatpush1.bf16.msra.mxu1 %v16289_v0  ;;  %v5245_v3 = vmax.f32 %v19531_v43, 0.0  ;;  %v19534_v4 = vadd.f32 %v4723_v56, %v4681_v55  ;;  %v4683_v58 = vadd.f32 %v4682_v57, %v4640_v27  ;;  %v16258_v51 = vcombine.high %v1836_v50, %v1840_v48  ;;  %v1700_v0 = vld [vmem:[#allocation2 + $0x850] sm:$0xff] }
 0x7a8   :  { %5033 = vmatprep.subr.bf16.mxu1 %v16282_v17  ;;  %v4725_v11 = vpop.f32.mrf.mxu1  ;;  %v1704_v35 = vld [vmem:[#allocation2 + $0x870] sm:$0xff]  ;;  %v16257_v33 = vcombine.low %v1836_v50, %v1840_v48  ;;  %v16242_v57 = vcombine.high %v1820_v54, %v1824_v24 }
 0x7a9   :  { %v5252_v14 = vmax.f32 %v19534_v4, 0.0  ;;  %v19537_v15 = vadd.f32 %v4725_v11, %v4683_v58  ;;  %4991 = vmatpush1.bf16.msra.mxu0 %v16153_v34  ;;  %v1828_v17 = vld [vmem:[#allocation2 + $0xc50] sm:$0xff]  ;;  %v16122_v22 = vcombine.high %v1700_v0, %v1704_v35  ;;  %v16121_v27 = vcombine.low %v1700_v0, %v1704_v35 }
 0x7aa   :  { %4992 = vmatprep.subr.bf16.mxu0 %v16146_v63  ;;  %v1832_v42 = vld [vmem:[#allocation2 + $0xc70] sm:$0xff] }
 0x7ab   :  { %5034 = vmatpush1.bf16.msra.mxu1 %v16281_v62  ;;  %v5253_v26 = vmax.f32 %v19537_v15, 0.0  ;;  %v16250_v18 = vcombine.high %v1828_v17, %v1832_v42  ;;  %v1692_v29 = vld [vmem:[#allocation2 + $0x810] sm:$0xff]  ;;  %v16249_v55 = vcombine.low %v1828_v17, %v1832_v42 }
 0x7ac   :  { %5035 = vmatprep.subr.bf16.mxu1 %v16274_v5  ;;  %v1696_v34 = vld [vmem:[#allocation2 + $0x830] sm:$0xff] }
 0x7ad   :  { %4993 = vmatpush1.bf16.msra.mxu0 %v16145_v16  ;;  %v16114_v56 = vcombine.high %v1692_v29, %v1696_v34  ;;  %v1812_v62 = vld [vmem:[#allocation2 + $0xbd0] sm:$0xff]  ;;  %v16113_v59 = vcombine.low %v1692_v29, %v1696_v34 }
 0x7ae   :  { %4994 = vmatprep.subr.bf16.mxu0 %v16138_v20  ;;  %v1816_v63 = vld [vmem:[#allocation2 + $0xbf0] sm:$0xff] }
 0x7af   :  { %5036 = vmatpush1.bf16.msra.mxu1 %v16273_v19  ;;  %v1940_v58 = vld [vmem:[#allocation2 + $0xfd0] sm:$0xff]  ;;  %v16234_v11 = vcombine.high %v1812_v62, %v1816_v63 }
 0x7b0   :  { %5037 = vmatprep.subr.bf16.mxu1 %v16266_v30  ;;  %v1944_v5 = vld [vmem:[#allocation2 + $0xff0] sm:$0xff]  ;;  %v16233_v30 = vcombine.low %v1812_v62, %v1816_v63 }
 0x7b1   :  { %4995 = vmatpush1.bf16.msra.mxu0 %v16137_v60  ;;  %v16362_v12 = vcombine.high %v1940_v58, %v1944_v5  ;;  %v1804_v13 = vld [vmem:[#allocation2 + $0xb90] sm:$0xff]  ;;  %v16361_v46 = vcombine.low %v1940_v58, %v1944_v5 }
 0x7b2   :  { %4996 = vmatprep.subr.bf16.mxu0 %v16130_v1  ;;  %v1808_v16 = vld [vmem:[#allocation2 + $0xbb0] sm:$0xff] }
 0x7b3   :  { %5038 = vmatpush1.bf16.msra.mxu1 %v16265_v53  ;;  %v1932_v19 = vld [vmem:[#allocation2 + $0xf90] sm:$0xff]  ;;  %v16226_v47 = vcombine.high %v1804_v13, %v1808_v16 }
 0x7b4   :  { %5039 = vmatprep.subr.bf16.mxu1 %v16258_v51  ;;  %v1936_v20 = vld [vmem:[#allocation2 + $0xfb0] sm:$0xff]  ;;  %v16225_v51 = vcombine.low %v1804_v13, %v1808_v16 }
 0x7b5   :  { %4997 = vmatpush1.bf16.msra.mxu0 %v16129_v21  ;;  %v16354_v50 = vcombine.high %v1932_v19, %v1936_v20  ;;  %v1796_v48 = vld [vmem:[#allocation2 + $0xb50] sm:$0xff]  ;;  %v16353_v0 = vcombine.low %v1932_v19, %v1936_v20 }
 0x7b6   :  { %4998 = vmatprep.subr.bf16.mxu0 %v16122_v22  ;;  %v1800_v60 = vld [vmem:[#allocation2 + $0xb70] sm:$0xff] }
 0x7b7   :  { %5040 = vmatpush1.bf16.msra.mxu1 %v16257_v33  ;;  %v1924_v53 = vld [vmem:[#allocation2 + $0xf50] sm:$0xff]  ;;  %v16218_v35 = vcombine.high %v1796_v48, %v1800_v60 }
 0x7b8   :  { %5041 = vmatprep.subr.bf16.mxu1 %v16250_v18  ;;  %v1928_v1 = vld [vmem:[#allocation2 + $0xf70] sm:$0xff]  ;;  %v16217_v18 = vcombine.low %v1796_v48, %v1800_v60 }
 0x7b9   :  { %4999 = vmatpush1.bf16.msra.mxu0 %v16121_v27  ;;  %v16346_v17 = vcombine.high %v1924_v53, %v1928_v1  ;;  %v1788_v42 = vld [vmem:[#allocation2 + $0xb10] sm:$0xff]  ;;  %v16345_v29 = vcombine.low %v1924_v53, %v1928_v1 }
 0x7ba   :  { %5000 = vmatprep.subr.bf16.mxu0 %v16114_v56  ;;  %v1792_v21 = vld [vmem:[#allocation2 + $0xb30] sm:$0xff] }
 0x7bb   :  { %5042 = vmatpush1.bf16.msra.mxu1 %v16249_v55  ;;  %v1916_v33 = vld [vmem:[#allocation2 + $0xf10] sm:$0xff]  ;;  %v16210_v34 = vcombine.high %v1788_v42, %v1792_v21 }
 0x7bc   :  { %5043 = vmatprep.subr.bf16.mxu1 %v16242_v57  ;;  %v1920_v22 = vld [vmem:[#allocation2 + $0xf30] sm:$0xff]  ;;  %v16209_v57 = vcombine.low %v1788_v42, %v1792_v21 }
 0x7bd   :  { %5001 = vmatpush1.bf16.msra.mxu0 %v16113_v59  ;;  %v16338_v54 = vcombine.high %v1916_v33, %v1920_v22  ;;  %v1780_v24 = vld [vmem:[#allocation2 + $0xad0] sm:$0xff]  ;;  %v16337_v62 = vcombine.low %v1916_v33, %v1920_v22  ;;  %v1493_v22 = vld [vmem:[#allocation2 + $0x1d8] sm:$0xff] }
 0x7be   :  { %5002 = vmatprep.subr.bf16.mxu0 %v16234_v11  ;;  %v1784_v27 = vld [vmem:[#allocation2 + $0xaf0] sm:$0xff] }
 0x7bf   :  { %5044 = vmatpush1.bf16.msra.mxu1 %v16241_v6  ;;  %v1908_v55 = vld [vmem:[#allocation2 + $0xed0] sm:$0xff]  ;;  %v16202_v63 = vcombine.high %v1780_v24, %v1784_v27 }
 0x7c0   :  { %5045 = vmatprep.subr.bf16.mxu1 %v16362_v12  ;;  %v1912_v56 = vld [vmem:[#allocation2 + $0xef0] sm:$0xff]  ;;  %v16201_v12 = vcombine.low %v1780_v24, %v1784_v27 }
 0x7c1   :  { %5003 = vmatpush2.bf16.msra.mxu0 %v16233_v30  ;;  %v16330_v58 = vcombine.high %v1908_v55, %v1912_v56  ;;  %v1772_v5 = vld [vmem:[#allocation2 + $0xa90] sm:$0xff]  ;;  %v16329_v13 = vcombine.low %v1908_v55, %v1912_v56  ;;  %v1485_v56 = vld [vmem:[#allocation2 + $0x198] sm:$0xff] }
 0x7c2   :  { %5004 = vmatprep.subr.bf16.mxu0 %v16226_v47  ;;  %v1776_v59 = vld [vmem:[#allocation2 + $0xab0] sm:$0xff] }
 0x7c3   :  { %5046 = vmatpush2.bf16.msra.mxu1 %v16361_v46  ;;  %v1900_v6 = vld [vmem:[#allocation2 + $0xe90] sm:$0xff]  ;;  %v16194_v16 = vcombine.high %v1772_v5, %v1776_v59 }
 0x7c4   :  { %5047 = vmatprep.subr.bf16.mxu1 %v16354_v50  ;;  %v1904_v11 = vld [vmem:[#allocation2 + $0xeb0] sm:$0xff]  ;;  %v16193_v50 = vcombine.low %v1772_v5, %v1776_v59 }
 0x7c5   :  { %5005 = vmatpush2.bf16.msra.mxu0 %v16225_v51  ;;  %v16322_v19 = vcombine.high %v1900_v6, %v1904_v11  ;;  %v1764_v20 = vld [vmem:[#allocation2 + $0xa50] sm:$0xff]  ;;  %v16321_v48 = vcombine.low %v1900_v6, %v1904_v11  ;;  %v1477_v11 = vld [vmem:[#allocation2 + $0x158] sm:$0xff] }
 0x7c6   :  { %5006 = vmatprep.subr.bf16.mxu0 %v16218_v35  ;;  %v1768_v30 = vld [vmem:[#allocation2 + $0xa70] sm:$0xff] }
 0x7c7   :  { %5048 = vmatpush2.bf16.msra.mxu1 %v16353_v0  ;;  %v1892_v46 = vld [vmem:[#allocation2 + $0xe50] sm:$0xff]  ;;  %v16186_v60 = vcombine.high %v1764_v20, %v1768_v30 }
 0x7c8   :  { %5049 = vmatprep.subr.bf16.mxu1 %v16346_v17  ;;  %v1896_v47 = vld [vmem:[#allocation2 + $0xe70] sm:$0xff]  ;;  %v16185_v17 = vcombine.low %v1764_v20, %v1768_v30 }
 0x7c9   :  { %5007 = vmatpush2.bf16.msra.mxu0 %v16217_v18  ;;  %v16314_v53 = vcombine.high %v1892_v46, %v1896_v47  ;;  %v1756_v1 = vld [vmem:[#allocation2 + $0xa10] sm:$0xff]  ;;  %v16313_v42 = vcombine.low %v1892_v46, %v1896_v47  ;;  %v1497_v18 = vld [vmem:[#allocation2 + $0x1f8] sm:$0xff] }
 0x7ca   :  { %5008 = vmatprep.subr.bf16.mxu0 %v16210_v34  ;;  %v1760_v51 = vld [vmem:[#allocation2 + $0xa30] sm:$0xff]  ;;  %v1625_v34 = vld [vmem:[#allocation2 + $0x5f8] sm:$0xff]  ;;  %v15916_v27 = vcombine.high %v1493_v22, %v1497_v18 }
 0x7cb   :  { %5050 = vmatpush2.bf16.msra.mxu1 %v16345_v29  ;;  %v1884_v0 = vld [vmem:[#allocation2 + $0xe10] sm:$0xff]  ;;  %v16178_v21 = vcombine.high %v1756_v1, %v1760_v51  ;;  %v1621_v29 = vld [vmem:[#allocation2 + $0x5d8] sm:$0xff] }
 0x7cc   :  { %5051 = vmatprep.subr.bf16.mxu1 %v16338_v54  ;;  %v1888_v35 = vld [vmem:[#allocation2 + $0xe30] sm:$0xff]  ;;  %v16177_v54 = vcombine.low %v1756_v1, %v1760_v51  ;;  %v16044_v55 = vcombine.high %v1621_v29, %v1625_v34  ;;  %v16043_v5 = vcombine.low %v1621_v29, %v1625_v34  ;;  %v1469_v47 = vld [vmem:[#allocation2 + $0x118] sm:$0xff] }
 0x7cd   :  { %5009 = vmatpush2.bf16.msra.mxu0 %v16209_v57  ;;  %v16306_v33 = vcombine.high %v1884_v0, %v1888_v35  ;;  %v16305_v24 = vcombine.low %v1884_v0, %v1888_v35  ;;  %v1489_v57 = vld [vmem:[#allocation2 + $0x1b8] sm:$0xff] }
 0x7ce   :  { %5010 = vmatprep.subr.bf16.mxu0 %v16202_v63  ;;  %v1617_v63 = vld [vmem:[#allocation2 + $0x5b8] sm:$0xff]  ;;  %v15908_v59 = vcombine.high %v1485_v56, %v1489_v57 }
 0x7cf   :  { %5052 = vmatpush2.bf16.msra.mxu1 %v16337_v62  ;;  %v1613_v62 = vld [vmem:[#allocation2 + $0x598] sm:$0xff] }
 0x7d0   :  { %5053 = vmatprep.subr.bf16.mxu1 %v16330_v58  ;;  %v15915_v58 = vcombine.low %v1493_v22, %v1497_v18  ;;  %v16036_v6 = vcombine.high %v1613_v62, %v1617_v63  ;;  %v16035_v20 = vcombine.low %v1613_v62, %v1617_v63  ;;  %v1461_v35 = vld [vmem:[#allocation2 + $0xd8] sm:$0xff] }
 0x7d1   :  { %5011 = vmatpush2.bf16.msra.mxu0 %v16201_v12  ;;  %v1481_v12 = vld [vmem:[#allocation2 + $0x178] sm:$0xff] }
 0x7d2   :  { %5012 = vmatprep.subr.bf16.mxu0 %v16194_v16  ;;  %v1609_v16 = vld [vmem:[#allocation2 + $0x578] sm:$0xff]  ;;  %v15900_v30 = vcombine.high %v1477_v11, %v1481_v12 }
 0x7d3   :  { %5054 = vmatpush2.bf16.msra.mxu1 %v16329_v13  ;;  %v1605_v13 = vld [vmem:[#allocation2 + $0x558] sm:$0xff] }
 0x7d4   :  { %5055 = vmatprep.subr.bf16.mxu1 %v16322_v19  ;;  %v15907_v19 = vcombine.low %v1485_v56, %v1489_v57  ;;  %v16028_v46 = vcombine.high %v1605_v13, %v1609_v16  ;;  %v16027_v1 = vcombine.low %v1605_v13, %v1609_v16  ;;  %v1453_v18 = vld [vmem:[#allocation2 + $0x98] sm:$0xff] }
 0x7d5   :  { %5013 = vmatpush2.bf16.msra.mxu0 %v16193_v50  ;;  %v1473_v50 = vld [vmem:[#allocation2 + $0x138] sm:$0xff] }
 0x7d6   :  { %5014 = vmatprep.subr.bf16.mxu0 %v16186_v60  ;;  %v1601_v60 = vld [vmem:[#allocation2 + $0x538] sm:$0xff]  ;;  %v15892_v51 = vcombine.high %v1469_v47, %v1473_v50 }
 0x7d7   :  { %5056 = vmatpush2.bf16.msra.mxu1 %v16321_v48  ;;  %v1597_v48 = vld [vmem:[#allocation2 + $0x518] sm:$0xff] }
 0x7d8   :  { %5057 = vmatprep.subr.bf16.mxu1 %v16314_v53  ;;  %v15899_v53 = vcombine.low %v1477_v11, %v1481_v12  ;;  %v16020_v0 = vcombine.high %v1597_v48, %v1601_v60  ;;  %v1457_v29 = vld [vmem:[#allocation2 + $0xb8] sm:$0xff] }
 0x7d9   :  { %5015 = vmatpush2.bf16.msra.mxu0 %v16185_v17  ;;  %v1465_v17 = vld [vmem:[#allocation2 + $0xf8] sm:$0xff] }
 0x7da   :  { %5016 = vmatprep.subr.bf16.mxu0 %v16178_v21  ;;  %v1593_v21 = vld [vmem:[#allocation2 + $0x4f8] sm:$0xff]  ;;  %v15884_v22 = vcombine.high %v1461_v35, %v1465_v17 }
 0x7db   :  { %5058 = vmatpush2.bf16.msra.mxu1 %v16313_v42  ;;  %v1589_v42 = vld [vmem:[#allocation2 + $0x4d8] sm:$0xff] }
 0x7dc   :  { %5059 = vmatprep.subr.bf16.mxu1 %v16306_v33  ;;  %v15891_v33 = vcombine.low %v1469_v47, %v1473_v50  ;;  %v1581_v34 = vld [vmem:[#allocation2 + $0x498] sm:$0xff] }
 0x7dd   :  { %5017 = vmatpush2.bf16.msra.mxu0 %v16177_v54  ;;  %v1585_v54 = vld [vmem:[#allocation2 + $0x4b8] sm:$0xff] }
 0x7de   :  { %5072 = vmatprep.subr.bf16.mxu0 %v15916_v27  ;;  %v16011_v27 = vcombine.low %v1589_v42, %v1593_v21  ;;  %v16004_v56 = vcombine.high %v1581_v34, %v1585_v54  ;;  %v1445_v57 = vld [vmem:[#allocation2 + $0x58] sm:$0xff] }
 0x7df   :  { %5060 = vmatpush2.bf16.msra.mxu1 %v16305_v24  ;;  %v15883_v24 = vcombine.low %v1461_v35, %v1465_v17  ;;  %v1449_v62 = vld [vmem:[#allocation2 + $0x78] sm:$0xff] }
 0x7e0   :  { %5115 = vmatprep.subr.bf16.mxu1 %v16044_v55  ;;  %5019 = vmatmul.mubr.bf16.vlgmr.msra.gmra.mxu0 %v19498_v49  ;;  %v15876_v55 = vcombine.high %v1453_v18, %v1457_v29  ;;  %v1573_v63 = vld [vmem:[#allocation2 + $0x458] sm:$0xff] }
 0x7e1   :  { %5073 = vmatpush1.bf16.msra.mxu0 %v15915_v58  ;;  %5104 = vmatprep.mubr.bf16.mxu0 %v19460_v44  ;;  %v16019_v44 = vcombine.low %v1597_v48, %v1601_v60  ;;  %v1577_v58 = vld [vmem:[#allocation2 + $0x478] sm:$0xff] }
 0x7e2   :  { %5062 = vmatmul.mubr.bf16.vlgmr.msra.gmra.mxu1 %v19504_v2  ;;  %5074 = vmatprep.subr.bf16.mxu0 %v15908_v59  ;;  %v16003_v59 = vcombine.low %v1581_v34, %v1585_v54  ;;  %v15996_v11 = vcombine.high %v1573_v63, %v1577_v58  ;;  %v1437_v12 = vld [vmem:[#allocation2 + $0x18] sm:$0xff] }
 0x7e3   :  { %5116 = vmatpush1.bf16.msra.mxu1 %v16043_v5  ;;  %5147 = vmatprep.mubr.bf16.mxu1 %v19462_v45  ;;  %v16012_v45 = vcombine.high %v1589_v42, %v1593_v21  ;;  %v15875_v5 = vcombine.low %v1453_v18, %v1457_v29  ;;  %v1441_v13 = vld [vmem:[#allocation2 + $0x38] sm:$0xff] }
 0x7e4   :  { %5117 = vmatprep.subr.bf16.mxu1 %v16036_v6  ;;  %v15868_v6 = vcombine.high %v1445_v57, %v1449_v62  ;;  %v1565_v16 = vld [vmem:[#allocation2 + $0x418] sm:$0xff] }
 0x7e5   :  { %5075 = vmatpush1.bf16.msra.mxu0 %v15907_v19  ;;  %v1569_v19 = vld [vmem:[#allocation2 + $0x438] sm:$0xff] }
 0x7e6   :  { %5076 = vmatprep.subr.bf16.mxu0 %v15900_v30  ;;  %v15995_v30 = vcombine.low %v1573_v63, %v1577_v58  ;;  %v15988_v47 = vcombine.high %v1565_v16, %v1569_v19  ;;  %v1557_v50 = vld [vmem:[#allocation2 + $0x3d8] sm:$0xff] }
 0x7e7   :  { %5118 = vmatpush1.bf16.msra.mxu1 %v16035_v20  ;;  %v15867_v20 = vcombine.low %v1445_v57, %v1449_v62  ;;  %v1561_v48 = vld [vmem:[#allocation2 + $0x3f8] sm:$0xff] }
 0x7e8   :  { %5119 = vmatprep.subr.bf16.mxu1 %v16028_v46  ;;  %v15860_v46 = vcombine.high %v1437_v12, %v1441_v13  ;;  %v1685_v60 = vld [vmem:[#allocation2 + $0x7d8] sm:$0xff] }
 0x7e9   :  { %5077 = vmatpush1.bf16.msra.mxu0 %v15899_v53  ;;  %v1689_v53 = vld [vmem:[#allocation2 + $0x7f8] sm:$0xff] }
 0x7ea   :  { %5078 = vmatprep.subr.bf16.mxu0 %v15892_v51  ;;  %v15987_v51 = vcombine.low %v1565_v16, %v1569_v19  ;;  %v16108_v35 = vcombine.high %v1685_v60, %v1689_v53  ;;  %v1549_v17 = vld [vmem:[#allocation2 + $0x398] sm:$0xff] }
 0x7eb   :  { %5120 = vmatpush1.bf16.msra.mxu1 %v16027_v1  ;;  %v15859_v1 = vcombine.low %v1437_v12, %v1441_v13  ;;  %v1553_v42 = vld [vmem:[#allocation2 + $0x3b8] sm:$0xff] }
 0x7ec   :  { %5121 = vmatprep.subr.bf16.mxu1 %v16020_v0  ;;  %v15980_v0 = vcombine.high %v1557_v50, %v1561_v48  ;;  %v1677_v21 = vld [vmem:[#allocation2 + $0x798] sm:$0xff] }
 0x7ed   :  { %5079 = vmatpush1.bf16.msra.mxu0 %v15891_v33  ;;  %v1681_v33 = vld [vmem:[#allocation2 + $0x7b8] sm:$0xff] }
 0x7ee   :  { %5080 = vmatprep.subr.bf16.mxu0 %v15884_v22  ;;  %v16107_v22 = vcombine.low %v1685_v60, %v1689_v53  ;;  %v16100_v18 = vcombine.high %v1677_v21, %v1681_v33  ;;  %v1541_v29 = vld [vmem:[#allocation2 + $0x358] sm:$0xff] }
 0x7ef   :  { %5122 = vmatpush1.bf16.msra.mxu1 %v16019_v44  ;;  %v15979_v44 = vcombine.low %v1557_v50, %v1561_v48  ;;  %v1545_v34 = vld [vmem:[#allocation2 + $0x378] sm:$0xff] }
 0x7f0   :  { %5123 = vmatprep.subr.bf16.mxu1 %v16012_v45  ;;  %v15972_v45 = vcombine.high %v1549_v17, %v1553_v42  ;;  %v1669_v54 = vld [vmem:[#allocation2 + $0x758] sm:$0xff] }
 0x7f1   :  { %5081 = vmatpush1.bf16.msra.mxu0 %v15883_v24  ;;  %v1673_v24 = vld [vmem:[#allocation2 + $0x778] sm:$0xff] }
 0x7f2   :  { %5082 = vmatprep.subr.bf16.mxu0 %v15876_v55  ;;  %v16099_v55 = vcombine.low %v1677_v21, %v1681_v33  ;;  %v16092_v57 = vcombine.high %v1669_v54, %v1673_v24  ;;  %v1533_v62 = vld [vmem:[#allocation2 + $0x318] sm:$0xff] }
 0x7f3   :  { %5124 = vmatpush1.bf16.msra.mxu1 %v16011_v27  ;;  %v15971_v27 = vcombine.low %v1549_v17, %v1553_v42  ;;  %v1537_v63 = vld [vmem:[#allocation2 + $0x338] sm:$0xff] }
 0x7f4   :  { %5125 = vmatprep.subr.bf16.mxu1 %v16004_v56  ;;  %v15964_v56 = vcombine.high %v1541_v29, %v1545_v34  ;;  %v1661_v58 = vld [vmem:[#allocation2 + $0x718] sm:$0xff] }
 0x7f5   :  { %5083 = vmatpush1.bf16.msra.mxu0 %v15875_v5  ;;  %v1665_v5 = vld [vmem:[#allocation2 + $0x738] sm:$0xff] }
 0x7f6   :  { %5084 = vmatprep.subr.bf16.mxu0 %v15868_v6  ;;  %v16091_v6 = vcombine.low %v1669_v54, %v1673_v24  ;;  %v16084_v12 = vcombine.high %v1661_v58, %v1665_v5  ;;  %v1525_v13 = vld [vmem:[#allocation2 + $0x2d8] sm:$0xff] }
 0x7f7   :  { %5126 = vmatpush1.bf16.msra.mxu1 %v16003_v59  ;;  %v15963_v59 = vcombine.low %v1541_v29, %v1545_v34  ;;  %v1529_v16 = vld [vmem:[#allocation2 + $0x2f8] sm:$0xff]  ;;  %v4805_v34 = vpop.f32.mrf.mxu1 }
 0x7f8   :  { %5127 = vmatprep.subr.bf16.mxu1 %v15996_v11  ;;  %v15956_v11 = vcombine.high %v1533_v62, %v1537_v63  ;;  %v1653_v19 = vld [vmem:[#allocation2 + $0x6d8] sm:$0xff] }
 0x7f9   :  { %5085 = vmatpush1.bf16.msra.mxu0 %v15867_v20  ;;  %v1657_v20 = vld [vmem:[#allocation2 + $0x6f8] sm:$0xff] }
 0x7fa   :  { %5086 = vmatprep.subr.bf16.mxu0 %v15860_v46  ;;  %v16083_v46 = vcombine.low %v1661_v58, %v1665_v5  ;;  %v16076_v50 = vcombine.high %v1653_v19, %v1657_v20  ;;  %v1517_v48 = vld [vmem:[#allocation2 + $0x298] sm:$0xff]  ;;  %v1967_v5 = vrot.slane %v19518_v23, %v19396_v38 }
 0x7fb   :  { %5128 = vmatpush1.bf16.msra.mxu1 %v15995_v30  ;;  %v15955_v30 = vcombine.low %v1533_v62, %v1537_v63  ;;  %v1521_v60 = vld [vmem:[#allocation2 + $0x2b8] sm:$0xff] }
 0x7fc   :  { %5129 = vmatprep.subr.bf16.mxu1 %v15988_v47  ;;  %v15948_v47 = vcombine.high %v1525_v13, %v1529_v16  ;;  %v1645_v53 = vld [vmem:[#allocation2 + $0x698] sm:$0xff] }
 0x7fd   :  { %5087 = vmatpush1.bf16.msra.mxu0 %v15859_v1  ;;  %v1649_v1 = vld [vmem:[#allocation2 + $0x6b8] sm:$0xff] }
 0x7fe   :  { %5088 = vmatprep.subr.bf16.mxu0 %v15980_v0  ;;  %v16075_v0 = vcombine.low %v1653_v19, %v1657_v20  ;;  %v16068_v17 = vcombine.high %v1645_v53, %v1649_v1  ;;  %v1509_v42 = vld [vmem:[#allocation2 + $0x258] sm:$0xff]  ;;  %v1971_v19 = vrot.slane %v19518_v23, %v19402_v41 }
 0x7ff   :  { %5130 = vmatpush1.bf16.msra.mxu1 %v15987_v51  ;;  %v15947_v51 = vcombine.low %v1525_v13, %v1529_v16  ;;  %v1513_v21 = vld [vmem:[#allocation2 + $0x278] sm:$0xff] }
 0x800   :  { %5131 = vmatprep.subr.bf16.mxu1 %v16108_v35  ;;  %v15940_v35 = vcombine.high %v1517_v48, %v1521_v60  ;;  %v1637_v33 = vld [vmem:[#allocation2 + $0x658] sm:$0xff]  ;;  %v15932_v29 = vcombine.high %v1509_v42, %v1513_v21 }
 0x801   :  { %5089 = vmatpush2.bf16.msra.mxu0 %v15979_v44  ;;  %v1641_v44 = vld [vmem:[#allocation2 + $0x678] sm:$0xff] }
 0x802   :  { %5090 = vmatprep.subr.bf16.mxu0 %v15972_v45  ;;  %v4762_v45 = vpop.f32.mrf.mxu0  ;;  %v16060_v54 = vcombine.high %v1637_v33, %v1641_v44  ;;  %v1501_v24 = vld [vmem:[#allocation2 + $0x218] sm:$0xff]  ;;  %v16059_v63 = vcombine.low %v1637_v33, %v1641_v44 }
 0x803   :  { %5132 = vmatpush2.bf16.msra.mxu1 %v16107_v22  ;;  %v15939_v22 = vcombine.low %v1517_v48, %v1521_v60  ;;  %v1877_v13 = vld [vmem:[#allocation2 + $0xdd8] sm:$0xff] }
 0x804   :  { %5133 = vmatprep.subr.bf16.mxu1 %v16100_v18  ;;  %v16067_v18 = vcombine.low %v1645_v53, %v1649_v1  ;;  %v4764_v62 = vpop.f32.mrf.mxu0  ;;  %v1881_v16 = vld [vmem:[#allocation2 + $0xdf8] sm:$0xff] }
 0x805   :  { %5091 = vmatpush2.bf16.msra.mxu0 %v15971_v27  ;;  %v1505_v27 = vld [vmem:[#allocation2 + $0x238] sm:$0xff]  ;;  %v16300_v60 = vcombine.high %v1877_v13, %v1881_v16  ;;  %v16299_v23 = vcombine.low %v1877_v13, %v1881_v16 }
 0x806   :  { %5092 = vmatprep.subr.bf16.mxu0 %v15964_v56  ;;  %v1633_v56 = vld [vmem:[#allocation2 + $0x638] sm:$0xff]  ;;  %v15924_v58 = vcombine.high %v1501_v24, %v1505_v27  ;;  %v15923_v20 = vcombine.low %v1501_v24, %v1505_v27 }
 0x807   :  { %5134 = vmatpush2.bf16.msra.mxu1 %v16099_v55  ;;  %v1629_v55 = vld [vmem:[#allocation2 + $0x618] sm:$0xff] }
 0x808   :  { %5135 = vmatprep.subr.bf16.mxu1 %v16092_v57  ;;  %v15931_v57 = vcombine.low %v1509_v42, %v1513_v21  ;;  %v1741_v53 = vld [vmem:[#allocation2 + $0x998] sm:$0xff] }
 0x809   :  { %5093 = vmatpush2.bf16.msra.mxu0 %v15963_v59  ;;  %v4807_v59 = vpop.f32.mrf.mxu1  ;;  %v1745_v1 = vld [vmem:[#allocation2 + $0x9b8] sm:$0xff] }
 0x80a   :  { %5094 = vmatprep.subr.bf16.mxu0 %v15956_v11  ;;  %v1749_v11 = vld [vmem:[#allocation2 + $0x9d8] sm:$0xff]  ;;  %v16164_v21 = vcombine.high %v1741_v53, %v1745_v1 }
 0x80b   :  { %5136 = vmatpush2.bf16.msra.mxu1 %v16091_v6  ;;  %v16052_v6 = vcombine.high %v1629_v55, %v1633_v56  ;;  %v4809_v48 = vpop.f32.mrf.mxu1  ;;  %v1733_v33 = vld [vmem:[#allocation2 + $0x958] sm:$0xff] }
 0x80c   :  { %5137 = vmatprep.subr.bf16.mxu1 %v16084_v12  ;;  %v1753_v12 = vld [vmem:[#allocation2 + $0x9f8] sm:$0xff] }
 0x80d   :  { %5095 = vmatpush2.bf16.msra.mxu0 %v15955_v30  ;;  %v4766_v30 = vpop.f32.mrf.mxu0  ;;  %v1865_v24 = vld [vmem:[#allocation2 + $0xd78] sm:$0xff] }
 0x80e   :  { %5096 = vmatprep.subr.bf16.mxu0 %v15948_v47  ;;  %v16172_v47 = vcombine.high %v1749_v11, %v1753_v12 }
 0x80f   :  { %5138 = vmatpush2.bf16.msra.mxu1 %v16083_v46  ;;  %v16051_v46 = vcombine.low %v1629_v55, %v1633_v56  ;;  %v4768_v42 = vpop.f32.mrf.mxu0  ;;  %v16163_v55 = vcombine.low %v1741_v53, %v1745_v1 }
 0x810   :  { %5139 = vmatprep.subr.bf16.mxu1 %v16076_v50  ;;  %v4763_v50 = vadd.f32 %v4762_v45, %v1967_v5 }
 0x811   :  { %5097 = vmatpush2.bf16.msra.mxu0 %v15947_v51  ;;  %v1869_v51 = vld [vmem:[#allocation2 + $0xd98] sm:$0xff] }
 0x812   :  { %5098 = vmatprep.subr.bf16.mxu0 %v15940_v35  ;;  %v4765_v35 = vadd.f32 %v4764_v62, %v1971_v19  ;;  %v4806_v44 = vadd.f32 %v4805_v34, %v4763_v50 }
 0x813   :  { %5140 = vmatpush2.bf16.msra.mxu1 %v16075_v0  ;;  %v1873_v0 = vld [vmem:[#allocation2 + $0xdb8] sm:$0xff] }
 0x814   :  { %5141 = vmatprep.subr.bf16.mxu1 %v16068_v17  ;;  %v16171_v17 = vcombine.low %v1749_v11, %v1753_v12  ;;  %v16292_v45 = vcombine.high %v1869_v51, %v1873_v0  ;;  %v4808_v56 = vadd.f32 %v4807_v59, %v4765_v35  ;;  %v1729_v59 = vld [vmem:[#allocation2 + $0x938] sm:$0xff] }
 0x815   :  { %5099 = vmatpush2.bf16.msra.mxu0 %v15939_v22  ;;  %v4767_v22 = vadd.f32 %v4766_v30, %v1967_v5  ;;  %v1857_v30 = vld [vmem:[#allocation2 + $0xd38] sm:$0xff] }
 0x816   :  { %5100 = vmatprep.subr.bf16.mxu0 %v15932_v29  ;;  %v1737_v29 = vld [vmem:[#allocation2 + $0x978] sm:$0xff] }
 0x817   :  { %5142 = vmatpush2.bf16.msra.mxu1 %v16067_v18  ;;  %v4811_v18 = vpop.f32.mrf.mxu1  ;;  %v16156_v5 = vcombine.high %v1733_v33, %v1737_v29  ;;  %v4810_v11 = vadd.f32 %v4809_v48, %v4767_v22 }
 0x818   :  { %5143 = vmatprep.subr.bf16.mxu1 %v16060_v54  ;;  %v1861_v54 = vld [vmem:[#allocation2 + $0xd58] sm:$0xff] }
 0x819   :  { %5101 = vmatpush2.bf16.msra.mxu0 %v15931_v57  ;;  %v4769_v57 = vadd.f32 %v4768_v42, %v1971_v19  ;;  %v16283_v1 = vcombine.low %v1861_v54, %v1865_v24  ;;  %v1721_v42 = vld [vmem:[#allocation2 + $0x8f8] sm:$0xff] }
 0x81a   :  { %5102 = vmatprep.subr.bf16.mxu0 %v15924_v58  ;;  %v16291_v58 = vcombine.low %v1869_v51, %v1873_v0 }
 0x81b   :  { %5144 = vmatpush2.bf16.msra.mxu1 %v16059_v63 }
 0x81c   :  { %5145 = vmatprep.subr.bf16.mxu1 %v16052_v6  ;;  %v16284_v6 = vcombine.high %v1861_v54, %v1865_v24 }
 0x81d   :  { %5103 = vmatpush2.bf16.msra.mxu0 %v15923_v20  ;;  %v16155_v20 = vcombine.low %v1733_v33, %v1737_v29  ;;  %v1849_v33 = vld [vmem:[#allocation2 + $0xcf8] sm:$0xff] }
 0x81e   :  { %5158 = vmatprep.subr.bf16.mxu0 %v16172_v47 }
 0x81f   :  { %5146 = vmatpush2.bf16.msra.mxu1 %v16051_v46  ;;  %v4812_v46 = vadd.f32 %v4811_v18, %v4769_v57  ;;  %v1841_v57 = vld [vmem:[#allocation2 + $0xcb8] sm:$0xff] }
 0x820   :  { %5201 = vmatprep.subr.bf16.mxu1 %v16300_v60  ;;  %v4848_v27 = vpop.f32.mrf.mxu0  ;;  %5105 = vmatmul.mubr.bf16.vlgmr.msra.gmra.mxu0 %v19470_v25  ;;  %v1725_v25 = vld [vmem:[#allocation2 + $0x918] sm:$0xff] }
 0x821   :  { %v4849_v62 = vadd.f32 %v4848_v27, %v4806_v44  ;;  %5159 = vmatpush1.bf16.msra.mxu0 %v16171_v17  ;;  %5190 = vmatprep.mubr.bf16.mxu0 %v19482_v52  ;;  %v16148_v51 = vcombine.high %v1725_v25, %v1729_v59  ;;  %v1717_v17 = vld [vmem:[#allocation2 + $0x8d8] sm:$0xff]  ;;  %v16147_v18 = vcombine.low %v1725_v25, %v1729_v59 }
 0x822   :  { %v4891_v63 = vpop.f32.mrf.mxu1  ;;  %5148 = vmatmul.mubr.bf16.vlgmr.msra.gmra.mxu1 %v19476_v32  ;;  %v4850_v34 = vpop.f32.mrf.mxu0  ;;  %5160 = vmatprep.subr.bf16.mxu0 %v16164_v21  ;;  %v1853_v32 = vld [vmem:[#allocation2 + $0xd18] sm:$0xff]  ;;  %v16140_v29 = vcombine.high %v1717_v17, %v1721_v42 }
 0x823   :  { %5202 = vmatpush1.bf16.msra.mxu1 %v16299_v23  ;;  %v19550_v12 = vadd.f32 %v4891_v63, %v4849_v62  ;;  %v4851_v13 = vadd.f32 %v4850_v34, %v4808_v56  ;;  %5233 = vmatprep.mubr.bf16.mxu1 %v19489_v61  ;;  %v16276_v61 = vcombine.high %v1853_v32, %v1857_v30  ;;  %v1845_v21 = vld [vmem:[#allocation2 + $0xcd8] sm:$0xff] }
 0x824   :  { %v4893_v16 = vpop.f32.mrf.mxu1  ;;  %5203 = vmatprep.subr.bf16.mxu1 %v16292_v45  ;;  %v4852_v19 = vpop.f32.mrf.mxu0  ;;  %v16275_v45 = vcombine.low %v1853_v32, %v1857_v30  ;;  %v16268_v24 = vcombine.high %v1845_v21, %v1849_v33  ;;  %v1709_v27 = vld [vmem:[#allocation2 + $0x898] sm:$0xff]  ;;  %v16139_v62 = vcombine.low %v1717_v17, %v1721_v42  ;;  %v16267_v63 = vcombine.low %v1845_v21, %v1849_v33 }
 0x825   :  { %v5246_v47 = vmax.f32 %v19550_v12, 0.0  ;;  %v19555_v50 = vadd.f32 %v4893_v16, %v4851_v13  ;;  %v4853_v48 = vadd.f32 %v4852_v19, %v4810_v11  ;;  %5161 = vmatpush1.bf16.msra.mxu0 %v16163_v55  ;;  %v1713_v55 = vld [vmem:[#allocation2 + $0x8b8] sm:$0xff] }
 0x826   :  { %v4895_v60 = vpop.f32.mrf.mxu1  ;;  %v4854_v53 = vpop.f32.mrf.mxu0  ;;  %5162 = vmatprep.subr.bf16.mxu0 %v16156_v5  ;;  %v1837_v56 = vld [vmem:[#allocation2 + $0xc98] sm:$0xff]  ;;  %v16132_v34 = vcombine.high %v1709_v27, %v1713_v55  ;;  %v16131_v16 = vcombine.low %v1709_v27, %v1713_v55 }
 0x827   :  { %5204 = vmatpush1.bf16.msra.mxu1 %v16291_v58  ;;  %v5247_v52 = vmax.f32 %v19555_v50, 0.0  ;;  %v19558_v0 = vadd.f32 %v4895_v60, %v4853_v48  ;;  %v4855_v35 = vadd.f32 %v4854_v53, %v4812_v46  ;;  %v16260_v58 = vcombine.high %v1837_v56, %v1841_v57  ;;  %v1701_v5 = vld [vmem:[#allocation2 + $0x858] sm:$0xff] }
 0x828   :  { %5205 = vmatprep.subr.bf16.mxu1 %v16284_v6  ;;  %v4897_v23 = vpop.f32.mrf.mxu1  ;;  %v1705_v6 = vld [vmem:[#allocation2 + $0x878] sm:$0xff]  ;;  %v16259_v25 = vcombine.low %v1837_v56, %v1841_v57 }
 0x829   :  { %v5254_v44 = vmax.f32 %v19558_v0, 0.0  ;;  %v19561_v22 = vadd.f32 %v4897_v23, %v4855_v35  ;;  %5163 = vmatpush1.bf16.msra.mxu0 %v16155_v20  ;;  %v1829_v11 = vld [vmem:[#allocation2 + $0xc58] sm:$0xff]  ;;  %v16124_v59 = vcombine.high %v1701_v5, %v1705_v6  ;;  %v16123_v48 = vcombine.low %v1701_v5, %v1705_v6 }
 0x82a   :  { %5164 = vmatprep.subr.bf16.mxu0 %v16148_v51  ;;  %v1833_v13 = vld [vmem:[#allocation2 + $0xc78] sm:$0xff] }
 0x82b   :  { %5206 = vmatpush1.bf16.msra.mxu1 %v16283_v1  ;;  %v5255_v54 = vmax.f32 %v19561_v22, 0.0  ;;  %v16252_v19 = vcombine.high %v1829_v11, %v1833_v13  ;;  %v1693_v20 = vld [vmem:[#allocation2 + $0x818] sm:$0xff]  ;;  %v16251_v60 = vcombine.low %v1829_v11, %v1833_v13 }
 0x82c   :  { %5207 = vmatprep.subr.bf16.mxu1 %v16276_v61  ;;  %v1697_v32 = vld [vmem:[#allocation2 + $0x838] sm:$0xff] }
 0x82d   :  { %5165 = vmatpush1.bf16.msra.mxu0 %v16147_v18  ;;  %v1821_v30 = vld [vmem:[#allocation2 + $0xc18] sm:$0xff]  ;;  %v16116_v53 = vcombine.high %v1693_v20, %v1697_v32  ;;  %v16115_v42 = vcombine.low %v1693_v20, %v1697_v32 }
 0x82e   :  { %5166 = vmatprep.subr.bf16.mxu0 %v16140_v29  ;;  %v1825_v46 = vld [vmem:[#allocation2 + $0xc38] sm:$0xff] }
 0x82f   :  { %5208 = vmatpush1.bf16.msra.mxu1 %v16275_v45  ;;  %v16244_v1 = vcombine.high %v1821_v30, %v1825_v46  ;;  %v1813_v51 = vld [vmem:[#allocation2 + $0xbd8] sm:$0xff]  ;;  %v16243_v23 = vcombine.low %v1821_v30, %v1825_v46 }
 0x830   :  { %5209 = vmatprep.subr.bf16.mxu1 %v16268_v24  ;;  %v1817_v35 = vld [vmem:[#allocation2 + $0xbf8] sm:$0xff] }
 0x831   :  { %5167 = vmatpush1.bf16.msra.mxu0 %v16139_v62  ;;  %v1941_v61 = vld [vmem:[#allocation2 + $0xfd8] sm:$0xff]  ;;  %v16236_v21 = vcombine.high %v1813_v51, %v1817_v35  ;;  %v16235_v27 = vcombine.low %v1813_v51, %v1817_v35 }
 0x832   :  { %5168 = vmatprep.subr.bf16.mxu0 %v16132_v34  ;;  %v1945_v17 = vld [vmem:[#allocation2 + $0xff8] sm:$0xff] }
 0x833   :  { %5210 = vmatpush1.bf16.msra.mxu1 %v16267_v63  ;;  %v16364_v33 = vcombine.high %v1941_v61, %v1945_v17  ;;  %v1805_v18 = vld [vmem:[#allocation2 + $0xb98] sm:$0xff]  ;;  %v16363_v55 = vcombine.low %v1941_v61, %v1945_v17 }
 0x834   :  { %5211 = vmatprep.subr.bf16.mxu1 %v16260_v58  ;;  %v1809_v45 = vld [vmem:[#allocation2 + $0xbb8] sm:$0xff] }
 0x835   :  { %5169 = vmatpush1.bf16.msra.mxu0 %v16131_v16  ;;  %v1933_v29 = vld [vmem:[#allocation2 + $0xf98] sm:$0xff]  ;;  %v16228_v56 = vcombine.high %v1805_v18, %v1809_v45  ;;  %v16227_v5 = vcombine.low %v1805_v18, %v1809_v45 }
 0x836   :  { %5170 = vmatprep.subr.bf16.mxu0 %v16124_v59  ;;  %v1937_v24 = vld [vmem:[#allocation2 + $0xfb8] sm:$0xff] }
 0x837   :  { %5212 = vmatpush1.bf16.msra.mxu1 %v16259_v25  ;;  %v16356_v57 = vcombine.high %v1933_v29, %v1937_v24  ;;  %v1797_v62 = vld [vmem:[#allocation2 + $0xb58] sm:$0xff]  ;;  %v16355_v6 = vcombine.low %v1933_v29, %v1937_v24 }
 0x838   :  { %5213 = vmatprep.subr.bf16.mxu1 %v16252_v19  ;;  %v1801_v63 = vld [vmem:[#allocation2 + $0xb78] sm:$0xff] }
 0x839   :  { %5171 = vmatpush1.bf16.msra.mxu0 %v16123_v48  ;;  %v1925_v34 = vld [vmem:[#allocation2 + $0xf58] sm:$0xff]  ;;  %v16220_v11 = vcombine.high %v1797_v62, %v1801_v63  ;;  %v16219_v20 = vcombine.low %v1797_v62, %v1801_v63 }
 0x83a   :  { %5172 = vmatprep.subr.bf16.mxu0 %v16116_v53  ;;  %v1929_v58 = vld [vmem:[#allocation2 + $0xf78] sm:$0xff] }
 0x83b   :  { %5214 = vmatpush1.bf16.msra.mxu1 %v16251_v60  ;;  %v16348_v13 = vcombine.high %v1925_v34, %v1929_v58  ;;  %v1789_v16 = vld [vmem:[#allocation2 + $0xb18] sm:$0xff]  ;;  %v16347_v32 = vcombine.low %v1925_v34, %v1929_v58 }
 0x83c   :  { %5215 = vmatprep.subr.bf16.mxu1 %v16244_v1  ;;  %v1793_v25 = vld [vmem:[#allocation2 + $0xb38] sm:$0xff] }
 0x83d   :  { %5173 = vmatpush1.bf16.msra.mxu0 %v16115_v42  ;;  %v1917_v59 = vld [vmem:[#allocation2 + $0xf18] sm:$0xff]  ;;  %v16212_v30 = vcombine.high %v1789_v16, %v1793_v25  ;;  %v16211_v51 = vcombine.low %v1789_v16, %v1793_v25 }
 0x83e   :  { %5174 = vmatprep.subr.bf16.mxu0 %v16236_v21  ;;  %v1921_v19 = vld [vmem:[#allocation2 + $0xf38] sm:$0xff] }
 0x83f   :  { %5216 = vmatpush1.bf16.msra.mxu1 %v16243_v23  ;;  %v16340_v46 = vcombine.high %v1917_v59, %v1921_v19  ;;  %v1781_v48 = vld [vmem:[#allocation2 + $0xad8] sm:$0xff]  ;;  %v16339_v35 = vcombine.low %v1917_v59, %v1921_v19 }
 0x840   :  { %5217 = vmatprep.subr.bf16.mxu1 %v16364_v33  ;;  %v1785_v60 = vld [vmem:[#allocation2 + $0xaf8] sm:$0xff] }
 0x841   :  { %5175 = vmatpush2.bf16.msra.mxu0 %v16235_v27  ;;  %v1909_v53 = vld [vmem:[#allocation2 + $0xed8] sm:$0xff]  ;;  %v16204_v61 = vcombine.high %v1781_v48, %v1785_v60  ;;  %v16203_v18 = vcombine.low %v1781_v48, %v1785_v60 }
 0x842   :  { %5176 = vmatprep.subr.bf16.mxu0 %v16228_v56  ;;  %v1913_v1 = vld [vmem:[#allocation2 + $0xef8] sm:$0xff] }
 0x843   :  { %5218 = vmatpush2.bf16.msra.mxu1 %v16363_v55  ;;  %v16332_v17 = vcombine.high %v1909_v53, %v1913_v1  ;;  %v1773_v42 = vld [vmem:[#allocation2 + $0xa98] sm:$0xff]  ;;  %v16331_v45 = vcombine.low %v1909_v53, %v1913_v1 }
 0x844   :  { %5219 = vmatprep.subr.bf16.mxu1 %v16356_v57  ;;  %v1777_v23 = vld [vmem:[#allocation2 + $0xab8] sm:$0xff] }
 0x845   :  { %5177 = vmatpush2.bf16.msra.mxu0 %v16227_v5  ;;  %v1901_v21 = vld [vmem:[#allocation2 + $0xe98] sm:$0xff]  ;;  %v16196_v29 = vcombine.high %v1773_v42, %v1777_v23  ;;  %v16195_v62 = vcombine.low %v1773_v42, %v1777_v23 }
 0x846   :  { %5178 = vmatprep.subr.bf16.mxu0 %v16220_v11  ;;  %v1905_v33 = vld [vmem:[#allocation2 + $0xeb8] sm:$0xff] }
 0x847   :  { %5220 = vmatpush2.bf16.msra.mxu1 %v16355_v6  ;;  %v16324_v24 = vcombine.high %v1901_v21, %v1905_v33  ;;  %v1765_v27 = vld [vmem:[#allocation2 + $0xa58] sm:$0xff]  ;;  %v16323_v63 = vcombine.low %v1901_v21, %v1905_v33 }
 0x848   :  { %5221 = vmatprep.subr.bf16.mxu1 %v16348_v13  ;;  %v1769_v55 = vld [vmem:[#allocation2 + $0xa78] sm:$0xff] }
 0x849   :  { %5179 = vmatpush2.bf16.msra.mxu0 %v16219_v20  ;;  %v1893_v56 = vld [vmem:[#allocation2 + $0xe58] sm:$0xff]  ;;  %v16188_v34 = vcombine.high %v1765_v27, %v1769_v55  ;;  %v16187_v16 = vcombine.low %v1765_v27, %v1769_v55 }
 0x84a   :  { %5180 = vmatprep.subr.bf16.mxu0 %v16212_v30  ;;  %v1897_v57 = vld [vmem:[#allocation2 + $0xe78] sm:$0xff] }
 0x84b   :  { %5222 = vmatpush2.bf16.msra.mxu1 %v16347_v32  ;;  %v16316_v58 = vcombine.high %v1893_v56, %v1897_v57  ;;  %v1757_v5 = vld [vmem:[#allocation2 + $0xa18] sm:$0xff]  ;;  %v16315_v25 = vcombine.low %v1893_v56, %v1897_v57 }
 0x84c   :  { %5223 = vmatprep.subr.bf16.mxu1 %v16340_v46  ;;  %v1761_v6 = vld [vmem:[#allocation2 + $0xa38] sm:$0xff] }
 0x84d   :  { %5181 = vmatpush2.bf16.msra.mxu0 %v16211_v51  ;;  %v1885_v11 = vld [vmem:[#allocation2 + $0xe18] sm:$0xff]  ;;  %v16180_v59 = vcombine.high %v1757_v5, %v1761_v6  ;;  %v16179_v20 = vcombine.low %v1757_v5, %v1761_v6 }
 0x84e   :  { %5182 = vmatprep.subr.bf16.mxu0 %v16204_v61  ;;  %v1889_v13 = vld [vmem:[#allocation2 + $0xe38] sm:$0xff] }
 0x84f   :  { %5224 = vmatpush2.bf16.msra.mxu1 %v16339_v35  ;;  %v16308_v19 = vcombine.high %v1885_v11, %v1889_v13  ;;  %v16307_v32 = vcombine.low %v1885_v11, %v1889_v13  ;;  %v17770_v60 = vld [vmem:[#allocation26 + $0xe] sm:$0xff] }
 0x850   :  { %5225 = vmatprep.subr.bf16.mxu1 %v16332_v17  ;;  %v1975_v53 = vrot.slane %v17770_v60, %v19421_v7  ;;  %v1979_v51 = vrot.slane %v17770_v60, %v19427_v9 }
 0x851   :  { %5183 = vmatpush2.bf16.msra.mxu0 %v16203_v18 }
 0x852   :  { %5184 = vmatprep.subr.bf16.mxu0 %v16196_v29 }
 0x853   :  { %5226 = vmatpush2.bf16.msra.mxu1 %v16331_v45 }
 0x854   :  { %5227 = vmatprep.subr.bf16.mxu1 %v16324_v24 }
 0x855   :  { %5185 = vmatpush2.bf16.msra.mxu0 %v16195_v62 }
 0x856   :  { %5186 = vmatprep.subr.bf16.mxu0 %v16188_v34 }
 0x857   :  { %5228 = vmatpush2.bf16.msra.mxu1 %v16323_v63 }
 0x858   :  { %5229 = vmatprep.subr.bf16.mxu1 %v16316_v58 }
 0x859   :  { %5187 = vmatpush2.bf16.msra.mxu0 %v16187_v16 }
 0x85a   :  { %5188 = vmatprep.subr.bf16.mxu0 %v16180_v59 }
 0x85b   :  { %5230 = vmatpush2.bf16.msra.mxu1 %v16315_v25 }
 0x85c   :  { %5231 = vmatprep.subr.bf16.mxu1 %v16308_v19 }
 0x85d   :  { %5189 = vmatpush2.bf16.msra.mxu0 %v16179_v20 }
 0x85f   :  { %5232 = vmatpush2.bf16.msra.mxu1 %v16307_v32 }
 0x860   :  { %5191 = vmatmul.mubr.bf16.vlgmr.msra.gmra.mxu0 %v19498_v49  ;;  %v4934_v30 = vpop.f32.mrf.mxu0 }
 0x861   :  { %v4935_v61 = vadd.f32 %v4934_v30, %v1975_v53 }
 0x862   :  { %5234 = vmatmul.mubr.bf16.vlgmr.msra.gmra.mxu1 %v19504_v2  ;;  %v4977_v46 = vpop.f32.mrf.mxu1  ;;  %v4936_v48 = vpop.f32.mrf.mxu0 }
 0x863   :  { %v4937_v42 = vadd.f32 %v4936_v48, %v1979_v51  ;;  %v4978_v21 = vadd.f32 %v4977_v46, %v4935_v61 }
 0x864   :  { %v4979_v1 = vpop.f32.mrf.mxu1  ;;  %v4938_v35 = vpop.f32.mrf.mxu0 }
 0x865   :  { %v4939_v33 = vadd.f32 %v4938_v35, %v1975_v53  ;;  %v4980_v45 = vadd.f32 %v4979_v1, %v4937_v42  ;;  %v1983_v1 = vrot.slane %v17770_v60, %v19424_v8  ;;  %v1987_v35 = vrot.slane %v17770_v60, %v19430_v10 }
 0x866   :  { %v4981_v17 = vpop.f32.mrf.mxu1  ;;  %v4940_v23 = vpop.f32.mrf.mxu0 }
 0x867   :  { %v4941_v2 = vadd.f32 %v4940_v23, %v1979_v51  ;;  %v4982_v55 = vadd.f32 %v4981_v17, %v4939_v33 }
 0x868   :  { %v4983_v18 = vpop.f32.mrf.mxu1 }
 0x869   :  { %v4984_v34 = vadd.f32 %v4983_v18, %v4941_v2 }
 0x8a0   :  { %v5020_v49 = vpop.f32.mrf.mxu0 }
 0x8a1   :  { %v5021_v29 = vadd.f32 %v5020_v49, %v4978_v21 }
 0x8a2   :  { %v5063_v24 = vpop.f32.mrf.mxu1  ;;  %v5022_v27 = vpop.f32.mrf.mxu0 }
 0x8a3   :  { %v19568_v56 = vadd.f32 %v5063_v24, %v5021_v29  ;;  %v5023_v57 = vadd.f32 %v5022_v27, %v4980_v45 }
 0x8a4   :  { %v5065_v62 = vpop.f32.mrf.mxu1  ;;  %v5024_v63 = vpop.f32.mrf.mxu0 }
 0x8a5   :  { %v5248_v58 = vmax.f32 %v19568_v56, 0.0  ;;  %v19571_v5 = vadd.f32 %v5065_v62, %v5023_v57  ;;  %v5025_v6 = vadd.f32 %v5024_v63, %v4982_v55 }
 0x8a6   :  { %v5067_v11 = vpop.f32.mrf.mxu1  ;;  %v5026_v13 = vpop.f32.mrf.mxu0 }
 0x8a7   :  { %v5249_v16 = vmax.f32 %v19571_v5, 0.0  ;;  %v19574_v25 = vadd.f32 %v5067_v11, %v5025_v6  ;;  %v5027_v59 = vadd.f32 %v5026_v13, %v4984_v34 }
 0x8a8   :  { %v5069_v19 = vpop.f32.mrf.mxu1 }
 0x8a9   :  { %v5256_v20 = vmax.f32 %v19574_v25, 0.0  ;;  %v19577_v32 = vadd.f32 %v5069_v19, %v5027_v59 }
 0x8ab   :  { %v5257_v30 = vmax.f32 %v19577_v32, 0.0 }
 0x8e0   :  { %v5106_v46 = vpop.f32.mrf.mxu0 }
 0x8e1   :  { %v5107_v17 = vadd.f32 %v5106_v46, %v1983_v1 }
 0x8e2   :  { %v5149_v48 = vpop.f32.mrf.mxu1  ;;  %v5108_v53 = vpop.f32.mrf.mxu0 }
 0x8e3   :  { %v5109_v23 = vadd.f32 %v5108_v53, %v1987_v35  ;;  %v5150_v33 = vadd.f32 %v5149_v48, %v5107_v17 }
 0x8e4   :  { %v5151_v51 = vpop.f32.mrf.mxu1  ;;  %v5110_v61 = vpop.f32.mrf.mxu0 }
 0x8e5   :  { %v5111_v18 = vadd.f32 %v5110_v61, %v1983_v1  ;;  %v5152_v2 = vadd.f32 %v5151_v51, %v5109_v23 }
 0x8e6   :  { %v5153_v42 = vpop.f32.mrf.mxu1  ;;  %v5112_v21 = vpop.f32.mrf.mxu0 }
 0x8e7   :  { %v5113_v29 = vadd.f32 %v5112_v21, %v1987_v35  ;;  %v5154_v57 = vadd.f32 %v5153_v42, %v5111_v18 }
 0x8e8   :  { %v5155_v49 = vpop.f32.mrf.mxu1 }
 0x8e9   :  { %v5156_v6 = vadd.f32 %v5155_v49, %v5113_v29 }
 0x920   :  { %v5192_v45 = vpop.f32.mrf.mxu0 }
 0x921   :  { %v5193_v24 = vadd.f32 %v5192_v45, %v5150_v33 }
 0x922   :  { %v5235_v27 = vpop.f32.mrf.mxu1  ;;  %v5194_v55 = vpop.f32.mrf.mxu0 }
 0x923   :  { %v19582_v62 = vadd.f32 %v5235_v27, %v5193_v24  ;;  %v5195_v63 = vadd.f32 %v5194_v55, %v5152_v2 }
 0x924   :  { %v5237_v34 = vpop.f32.mrf.mxu1  ;;  %v5196_v60 = vpop.f32.mrf.mxu0 }
 0x925   :  { %v5250_v11 = vmax.f32 %v19582_v62, 0.0  ;;  %v19585_v13 = vadd.f32 %v5237_v34, %v5195_v63  ;;  %v5197_v59 = vadd.f32 %v5196_v60, %v5154_v57 }
 0x926   :  { %v5239_v19 = vpop.f32.mrf.mxu1  ;;  %v5198_v46 = vpop.f32.mrf.mxu0 }
 0x927   :  { %v5251_v48 = vmax.f32 %v19585_v13, 0.0  ;;  %v19588_v53 = vadd.f32 %v5239_v19, %v5197_v59  ;;  %v5199_v1 = vadd.f32 %v5198_v46, %v5156_v6 }
 0x928   :  { %v5241_v51 = vpop.f32.mrf.mxu1 }
 0x929   :  { %v5258_v35 = vmax.f32 %v19588_v53, 0.0  ;;  %v19591_v61 = vadd.f32 %v5241_v51, %v5199_v1 }
 0x92b   :  { %v5259_v17 = vmax.f32 %v19591_v61, 0.0 }
 0x92c   :  { %19115 = dma.done.wait [#allocation6 + $0x1], 65536 }
 0x92d   :  { %19116 = vsyncadd [#allocation6 + $0x1], 4294901760  ;;  %v19598_v42 = vpack.c.bf16 %v5253_v26, %v5245_v3  ;;  %v19604_v23 = vpack.c.bf16 %v5255_v54, %v5247_v52  ;;  %v5318_v21 = vld [vmem:[#allocation3 + $0x1c0] sm:$0xff]  ;;  %v5307_v25 = vld [vmem:[#allocation3 + $0x168] sm:$0xff] }
 0x92e   :  { %v5322_v33 = vld [vmem:[#allocation3 + $0x1e0] sm:$0xff] }
 0x92f   :  { %8416 = vmatprep.mubr.bf16.mxu0 %v19598_v42  ;;  %8459 = vmatprep.mubr.bf16.mxu1 %v19604_v23  ;;  %v5446_v18 = vld [vmem:[#allocation3 + $0x5c0] sm:$0xff]  ;;  %v16422_v49 = vcombine.high %v5318_v21, %v5322_v33  ;;  %v16421_v43 = vcombine.low %v5318_v21, %v5322_v33 }
 0x930   :  { %v5450_v45 = vld [vmem:[#allocation3 + $0x5e0] sm:$0xff] }
 0x931   :  { %v5310_v2 = vld [vmem:[#allocation3 + $0x180] sm:$0xff]  ;;  %v16550_v3 = vcombine.high %v5446_v18, %v5450_v45  ;;  %v16549_v26 = vcombine.low %v5446_v18, %v5450_v45  ;;  %8384 = vmatprep.subr.bf16.mxu0 %v16422_v49 }
 0x932   :  { %v5314_v15 = vld [vmem:[#allocation3 + $0x1a0] sm:$0xff]  ;;  %8385 = vmatpush1.bf16.msra.mxu0 %v16421_v43 }
 0x933   :  { %v16414_v29 = vcombine.high %v5310_v2, %v5314_v15  ;;  %v5438_v50 = vld [vmem:[#allocation3 + $0x580] sm:$0xff]  ;;  %8427 = vmatprep.subr.bf16.mxu1 %v16550_v3  ;;  %v16413_v57 = vcombine.low %v5310_v2, %v5314_v15 }
 0x934   :  { %v5442_v24 = vld [vmem:[#allocation3 + $0x5a0] sm:$0xff]  ;;  %8428 = vmatpush1.bf16.msra.mxu1 %v16549_v26 }
 0x935   :  { %v5302_v22 = vld [vmem:[#allocation3 + $0x140] sm:$0xff]  ;;  %v16542_v52 = vcombine.high %v5438_v50, %v5442_v24  ;;  %8386 = vmatprep.subr.bf16.mxu0 %v16414_v29  ;;  %v16541_v63 = vcombine.low %v5438_v50, %v5442_v24 }
 0x936   :  { %v5306_v54 = vld [vmem:[#allocation3 + $0x160] sm:$0xff]  ;;  %8387 = vmatpush1.bf16.msra.mxu0 %v16413_v57 }
 0x937   :  { %v5430_v27 = vld [vmem:[#allocation3 + $0x540] sm:$0xff]  ;;  %v16406_v34 = vcombine.high %v5302_v22, %v5306_v54  ;;  %8429 = vmatprep.subr.bf16.mxu1 %v16542_v52  ;;  %v16405_v1 = vcombine.low %v5302_v22, %v5306_v54 }
 0x938   :  { %v5434_v55 = vld [vmem:[#allocation3 + $0x560] sm:$0xff]  ;;  %8430 = vmatpush1.bf16.msra.mxu1 %v16541_v63 }
 0x939   :  { %v16534_v60 = vcombine.high %v5430_v27, %v5434_v55  ;;  %v5294_v6 = vld [vmem:[#allocation3 + $0x100] sm:$0xff]  ;;  %8388 = vmatprep.subr.bf16.mxu0 %v16406_v34  ;;  %v16533_v51 = vcombine.low %v5430_v27, %v5434_v55 }
 0x93a   :  { %v5298_v59 = vld [vmem:[#allocation3 + $0x120] sm:$0xff]  ;;  %8389 = vmatpush1.bf16.msra.mxu0 %v16405_v1 }
 0x93b   :  { %v5422_v19 = vld [vmem:[#allocation3 + $0x500] sm:$0xff]  ;;  %v16398_v21 = vcombine.high %v5294_v6, %v5298_v59  ;;  %8431 = vmatprep.subr.bf16.mxu1 %v16534_v60  ;;  %v16397_v2 = vcombine.low %v5294_v6, %v5298_v59 }
 0x93c   :  { %v5426_v46 = vld [vmem:[#allocation3 + $0x520] sm:$0xff]  ;;  %8432 = vmatpush1.bf16.msra.mxu1 %v16533_v51 }
 0x93d   :  { %v16526_v33 = vcombine.high %v5422_v19, %v5426_v46  ;;  %v5286_v18 = vld [vmem:[#allocation3 + $0xc0] sm:$0xff]  ;;  %8390 = vmatprep.subr.bf16.mxu0 %v16398_v21  ;;  %v16525_v15 = vcombine.low %v5422_v19, %v5426_v46 }
 0x93e   :  { %v5290_v49 = vld [vmem:[#allocation3 + $0xe0] sm:$0xff]  ;;  %8391 = vmatpush1.bf16.msra.mxu0 %v16397_v2 }
 0x93f   :  { %v5414_v45 = vld [vmem:[#allocation3 + $0x4c0] sm:$0xff]  ;;  %v16390_v3 = vcombine.high %v5286_v18, %v5290_v49  ;;  %8433 = vmatprep.subr.bf16.mxu1 %v16526_v33  ;;  %v16389_v52 = vcombine.low %v5286_v18, %v5290_v49 }
 0x940   :  { %v5418_v43 = vld [vmem:[#allocation3 + $0x4e0] sm:$0xff]  ;;  %8434 = vmatpush1.bf16.msra.mxu1 %v16525_v15 }
 0x941   :  { %v16518_v26 = vcombine.high %v5414_v45, %v5418_v43  ;;  %v5278_v29 = vld [vmem:[#allocation3 + $0x80] sm:$0xff]  ;;  %8392 = vmatprep.subr.bf16.mxu0 %v16390_v3  ;;  %v16517_v54 = vcombine.low %v5414_v45, %v5418_v43 }
 0x942   :  { %v5282_v50 = vld [vmem:[#allocation3 + $0xa0] sm:$0xff]  ;;  %8393 = vmatpush1.bf16.msra.mxu0 %v16389_v52 }
 0x943   :  { %v5406_v24 = vld [vmem:[#allocation3 + $0x480] sm:$0xff]  ;;  %v16382_v27 = vcombine.high %v5278_v29, %v5282_v50  ;;  %8435 = vmatprep.subr.bf16.mxu1 %v16518_v26  ;;  %v16381_v6 = vcombine.low %v5278_v29, %v5282_v50 }
 0x944   :  { %v5410_v22 = vld [vmem:[#allocation3 + $0x4a0] sm:$0xff]  ;;  %8436 = vmatpush1.bf16.msra.mxu1 %v16517_v54 }
 0x945   :  { %v16510_v55 = vcombine.high %v5406_v24, %v5410_v22  ;;  %v5270_v57 = vld [vmem:[#allocation3 + $0x40] sm:$0xff]  ;;  %8394 = vmatprep.subr.bf16.mxu0 %v16382_v27  ;;  %v16509_v59 = vcombine.low %v5406_v24, %v5410_v22 }
 0x946   :  { %v5274_v63 = vld [vmem:[#allocation3 + $0x60] sm:$0xff]  ;;  %8395 = vmatpush1.bf16.msra.mxu0 %v16381_v6 }
 0x947   :  { %v5398_v34 = vld [vmem:[#allocation3 + $0x440] sm:$0xff]  ;;  %v16374_v19 = vcombine.high %v5270_v57, %v5274_v63  ;;  %8437 = vmatprep.subr.bf16.mxu1 %v16510_v55  ;;  %v16373_v18 = vcombine.low %v5270_v57, %v5274_v63 }
 0x948   :  { %v5402_v60 = vld [vmem:[#allocation3 + $0x460] sm:$0xff]  ;;  %8438 = vmatpush1.bf16.msra.mxu1 %v16509_v59 }
 0x949   :  { %v16502_v46 = vcombine.high %v5398_v34, %v5402_v60  ;;  %v5262_v1 = vld [vmem:[#allocation3] sm:$0xff]  ;;  %8396 = vmatprep.subr.bf16.mxu0 %v16374_v19  ;;  %v16501_v49 = vcombine.low %v5398_v34, %v5402_v60 }
 0x94a   :  { %v5266_v51 = vld [vmem:[#allocation3 + $0x20] sm:$0xff]  ;;  %8397 = vmatpush1.bf16.msra.mxu0 %v16373_v18 }
 0x94b   :  { %v5390_v21 = vld [vmem:[#allocation3 + $0x400] sm:$0xff]  ;;  %v16366_v45 = vcombine.high %v5262_v1, %v5266_v51  ;;  %8439 = vmatprep.subr.bf16.mxu1 %v16502_v46  ;;  %v16365_v29 = vcombine.low %v5262_v1, %v5266_v51 }
 0x94c   :  { %v5394_v33 = vld [vmem:[#allocation3 + $0x420] sm:$0xff]  ;;  %8440 = vmatpush1.bf16.msra.mxu1 %v16501_v49 }
 0x94d   :  { %v16494_v43 = vcombine.high %v5390_v21, %v5394_v33  ;;  %v5382_v2 = vld [vmem:[#allocation3 + $0x3c0] sm:$0xff]  ;;  %8398 = vmatprep.subr.bf16.mxu0 %v16366_v45  ;;  %v16493_v50 = vcombine.low %v5390_v21, %v5394_v33 }
 0x94e   :  { %v5386_v15 = vld [vmem:[#allocation3 + $0x3e0] sm:$0xff]  ;;  %8399 = vmatpush1.bf16.msra.mxu0 %v16365_v29 }
 0x94f   :  { %v5510_v3 = vld [vmem:[#allocation3 + $0x7c0] sm:$0xff]  ;;  %v16486_v24 = vcombine.high %v5382_v2, %v5386_v15  ;;  %8441 = vmatprep.subr.bf16.mxu1 %v16494_v43  ;;  %v16485_v57 = vcombine.low %v5382_v2, %v5386_v15 }
 0x950   :  { %v5514_v26 = vld [vmem:[#allocation3 + $0x7e0] sm:$0xff]  ;;  %8442 = vmatpush1.bf16.msra.mxu1 %v16493_v50 }
 0x951   :  { %v16614_v22 = vcombine.high %v5510_v3, %v5514_v26  ;;  %v5374_v52 = vld [vmem:[#allocation3 + $0x380] sm:$0xff]  ;;  %8400 = vmatprep.subr.bf16.mxu0 %v16486_v24  ;;  %v16613_v63 = vcombine.low %v5510_v3, %v5514_v26 }
 0x952   :  { %v5378_v54 = vld [vmem:[#allocation3 + $0x3a0] sm:$0xff]  ;;  %8401 = vmatpush2.bf16.msra.mxu0 %v16485_v57 }
 0x953   :  { %v5502_v27 = vld [vmem:[#allocation3 + $0x780] sm:$0xff]  ;;  %v16478_v34 = vcombine.high %v5374_v52, %v5378_v54  ;;  %8443 = vmatprep.subr.bf16.mxu1 %v16614_v22  ;;  %v16477_v1 = vcombine.low %v5374_v52, %v5378_v54 }
 0x954   :  { %v5506_v55 = vld [vmem:[#allocation3 + $0x7a0] sm:$0xff]  ;;  %8444 = vmatpush2.bf16.msra.mxu1 %v16613_v63 }
 0x955   :  { %v16606_v60 = vcombine.high %v5502_v27, %v5506_v55  ;;  %v5366_v6 = vld [vmem:[#allocation3 + $0x340] sm:$0xff]  ;;  %8402 = vmatprep.subr.bf16.mxu0 %v16478_v34  ;;  %v16605_v51 = vcombine.low %v5502_v27, %v5506_v55 }
 0x956   :  { %v5370_v59 = vld [vmem:[#allocation3 + $0x360] sm:$0xff]  ;;  %8403 = vmatpush2.bf16.msra.mxu0 %v16477_v1 }
 0x957   :  { %v5494_v19 = vld [vmem:[#allocation3 + $0x740] sm:$0xff]  ;;  %v16470_v21 = vcombine.high %v5366_v6, %v5370_v59  ;;  %8445 = vmatprep.subr.bf16.mxu1 %v16606_v60  ;;  %v16469_v2 = vcombine.low %v5366_v6, %v5370_v59 }
 0x958   :  { %v5498_v46 = vld [vmem:[#allocation3 + $0x760] sm:$0xff]  ;;  %8446 = vmatpush2.bf16.msra.mxu1 %v16605_v51 }
 0x959   :  { %v16598_v33 = vcombine.high %v5494_v19, %v5498_v46  ;;  %v5358_v18 = vld [vmem:[#allocation3 + $0x300] sm:$0xff]  ;;  %8404 = vmatprep.subr.bf16.mxu0 %v16470_v21  ;;  %v16597_v15 = vcombine.low %v5494_v19, %v5498_v46 }
 0x95a   :  { %v5362_v49 = vld [vmem:[#allocation3 + $0x320] sm:$0xff]  ;;  %8405 = vmatpush2.bf16.msra.mxu0 %v16469_v2 }
 0x95b   :  { %v5486_v45 = vld [vmem:[#allocation3 + $0x700] sm:$0xff]  ;;  %v16462_v3 = vcombine.high %v5358_v18, %v5362_v49  ;;  %8447 = vmatprep.subr.bf16.mxu1 %v16598_v33  ;;  %v16461_v52 = vcombine.low %v5358_v18, %v5362_v49 }
 0x95c   :  { %v5490_v43 = vld [vmem:[#allocation3 + $0x720] sm:$0xff]  ;;  %8448 = vmatpush2.bf16.msra.mxu1 %v16597_v15 }
 0x95d   :  { %v16590_v26 = vcombine.high %v5486_v45, %v5490_v43  ;;  %v5350_v29 = vld [vmem:[#allocation3 + $0x2c0] sm:$0xff]  ;;  %8406 = vmatprep.subr.bf16.mxu0 %v16462_v3  ;;  %v16589_v54 = vcombine.low %v5486_v45, %v5490_v43 }
 0x95e   :  { %v5354_v50 = vld [vmem:[#allocation3 + $0x2e0] sm:$0xff]  ;;  %8407 = vmatpush2.bf16.msra.mxu0 %v16461_v52 }
 0x95f   :  { %v5478_v24 = vld [vmem:[#allocation3 + $0x6c0] sm:$0xff]  ;;  %v16454_v27 = vcombine.high %v5350_v29, %v5354_v50  ;;  %8449 = vmatprep.subr.bf16.mxu1 %v16590_v26  ;;  %v16453_v6 = vcombine.low %v5350_v29, %v5354_v50 }
 0x960   :  { %v5482_v22 = vld [vmem:[#allocation3 + $0x6e0] sm:$0xff]  ;;  %8450 = vmatpush2.bf16.msra.mxu1 %v16589_v54 }
 0x961   :  { %v16582_v55 = vcombine.high %v5478_v24, %v5482_v22  ;;  %v5342_v57 = vld [vmem:[#allocation3 + $0x280] sm:$0xff]  ;;  %8408 = vmatprep.subr.bf16.mxu0 %v16454_v27  ;;  %v16581_v59 = vcombine.low %v5478_v24, %v5482_v22 }
 0x962   :  { %v5346_v63 = vld [vmem:[#allocation3 + $0x2a0] sm:$0xff]  ;;  %8409 = vmatpush2.bf16.msra.mxu0 %v16453_v6 }
 0x963   :  { %v5470_v34 = vld [vmem:[#allocation3 + $0x680] sm:$0xff]  ;;  %v16446_v19 = vcombine.high %v5342_v57, %v5346_v63  ;;  %8451 = vmatprep.subr.bf16.mxu1 %v16582_v55  ;;  %v16445_v18 = vcombine.low %v5342_v57, %v5346_v63 }
 0x964   :  { %v5474_v60 = vld [vmem:[#allocation3 + $0x6a0] sm:$0xff]  ;;  %8452 = vmatpush2.bf16.msra.mxu1 %v16581_v59 }
 0x965   :  { %v16574_v46 = vcombine.high %v5470_v34, %v5474_v60  ;;  %v5334_v1 = vld [vmem:[#allocation3 + $0x240] sm:$0xff]  ;;  %8410 = vmatprep.subr.bf16.mxu0 %v16446_v19  ;;  %v16573_v49 = vcombine.low %v5470_v34, %v5474_v60  ;;  %v19612_v19 = vpack.c.bf16 %v5252_v14, %v5244_v39  ;;  %v19624_v39 = vpack.c.bf16 %v5257_v30, %v5249_v16 }
 0x966   :  { %v5338_v51 = vld [vmem:[#allocation3 + $0x260] sm:$0xff]  ;;  %8411 = vmatpush2.bf16.msra.mxu0 %v16445_v18 }
 0x967   :  { %v5462_v21 = vld [vmem:[#allocation3 + $0x640] sm:$0xff]  ;;  %v16438_v45 = vcombine.high %v5334_v1, %v5338_v51  ;;  %8453 = vmatprep.subr.bf16.mxu1 %v16574_v46  ;;  %v16437_v29 = vcombine.low %v5334_v1, %v5338_v51  ;;  %v19618_v51 = vpack.c.bf16 %v5254_v44, %v5246_v47  ;;  %v19631_v47 = vpack.c.bf16 %v5259_v17, %v5251_v48 }
 0x968   :  { %v5466_v33 = vld [vmem:[#allocation3 + $0x660] sm:$0xff]  ;;  %8454 = vmatpush2.bf16.msra.mxu1 %v16573_v49 }
 0x969   :  { %v16566_v43 = vcombine.high %v5462_v21, %v5466_v33  ;;  %v5326_v2 = vld [vmem:[#allocation3 + $0x200] sm:$0xff]  ;;  %8412 = vmatprep.subr.bf16.mxu0 %v16438_v45  ;;  %v16565_v50 = vcombine.low %v5462_v21, %v5466_v33 }
 0x96a   :  { %v5330_v15 = vld [vmem:[#allocation3 + $0x220] sm:$0xff]  ;;  %8413 = vmatpush2.bf16.msra.mxu0 %v16437_v29 }
 0x96b   :  { %v5454_v3 = vld [vmem:[#allocation3 + $0x600] sm:$0xff]  ;;  %v16430_v24 = vcombine.high %v5326_v2, %v5330_v15  ;;  %8455 = vmatprep.subr.bf16.mxu1 %v16566_v43  ;;  %v16429_v57 = vcombine.low %v5326_v2, %v5330_v15 }
 0x96c   :  { %v5458_v26 = vld [vmem:[#allocation3 + $0x620] sm:$0xff]  ;;  %8456 = vmatpush2.bf16.msra.mxu1 %v16565_v50 }
 0x96d   :  { %v16558_v22 = vcombine.high %v5454_v3, %v5458_v26  ;;  %v5574_v52 = vld [vmem:[#allocation3 + $0x9c0] sm:$0xff]  ;;  %8414 = vmatprep.subr.bf16.mxu0 %v16430_v24  ;;  %v16557_v63 = vcombine.low %v5454_v3, %v5458_v26 }
 0x96e   :  { %v5578_v54 = vld [vmem:[#allocation3 + $0x9e0] sm:$0xff]  ;;  %8415 = vmatpush2.bf16.msra.mxu0 %v16429_v57 }
 0x96f   :  { %v5702_v27 = vld [vmem:[#allocation3 + $0xdc0] sm:$0xff]  ;;  %v16678_v34 = vcombine.high %v5574_v52, %v5578_v54  ;;  %8457 = vmatprep.subr.bf16.mxu1 %v16558_v22  ;;  %v16677_v21 = vcombine.low %v5574_v52, %v5578_v54 }
 0x970   :  { %v5706_v55 = vld [vmem:[#allocation3 + $0xde0] sm:$0xff]  ;;  %8458 = vmatpush2.bf16.msra.mxu1 %v16557_v63 }
 0x971   :  { %v16806_v60 = vcombine.high %v5702_v27, %v5706_v55  ;;  %v5566_v6 = vld [vmem:[#allocation3 + $0x980] sm:$0xff]  ;;  %8470 = vmatprep.subr.bf16.mxu0 %v16678_v34  ;;  %v16805_v33 = vcombine.low %v5702_v27, %v5706_v55  ;;  %8417 = vmatmul.mubr.bf16.vlgmr.msra.gmra.mxu0 %v19612_v19 }
 0x972   :  { %v5570_v59 = vld [vmem:[#allocation3 + $0x9a0] sm:$0xff]  ;;  %8471 = vmatpush1.bf16.msra.mxu0 %v16677_v21  ;;  %8502 = vmatprep.mubr.bf16.mxu0 %v19624_v39 }
 0x973   :  { %v5694_v46 = vld [vmem:[#allocation3 + $0xd80] sm:$0xff]  ;;  %v16670_v18 = vcombine.high %v5566_v6, %v5570_v59  ;;  %8513 = vmatprep.subr.bf16.mxu1 %v16806_v60  ;;  %8460 = vmatmul.mubr.bf16.vlgmr.msra.gmra.mxu1 %v19618_v51  ;;  %v16669_v0 = vcombine.low %v5566_v6, %v5570_v59 }
 0x974   :  { %v5698_v1 = vld [vmem:[#allocation3 + $0xda0] sm:$0xff]  ;;  %8514 = vmatpush1.bf16.msra.mxu1 %v16805_v33  ;;  %8545 = vmatprep.mubr.bf16.mxu1 %v19631_v47 }
 0x975   :  { %v16798_v28 = vcombine.high %v5694_v46, %v5698_v1  ;;  %v5558_v49 = vld [vmem:[#allocation3 + $0x940] sm:$0xff]  ;;  %8472 = vmatprep.subr.bf16.mxu0 %v16670_v18  ;;  %v16797_v44 = vcombine.low %v5694_v46, %v5698_v1 }
 0x976   :  { %v5562_v4 = vld [vmem:[#allocation3 + $0x960] sm:$0xff]  ;;  %8473 = vmatpush1.bf16.msra.mxu0 %v16669_v0 }
 0x977   :  { %v5686_v14 = vld [vmem:[#allocation3 + $0xd40] sm:$0xff]  ;;  %v16662_v5 = vcombine.high %v5558_v49, %v5562_v4  ;;  %8515 = vmatprep.subr.bf16.mxu1 %v16798_v28  ;;  %v16661_v48 = vcombine.low %v5558_v49, %v5562_v4 }
 0x978   :  { %v5690_v12 = vld [vmem:[#allocation3 + $0xd60] sm:$0xff]  ;;  %8516 = vmatpush1.bf16.msra.mxu1 %v16797_v44 }
 0x979   :  { %v16790_v16 = vcombine.high %v5686_v14, %v5690_v12  ;;  %v5550_v32 = vld [vmem:[#allocation3 + $0x900] sm:$0xff]  ;;  %8474 = vmatprep.subr.bf16.mxu0 %v16662_v5  ;;  %v16789_v61 = vcombine.low %v5686_v14, %v5690_v12 }
 0x97a   :  { %v5554_v30 = vld [vmem:[#allocation3 + $0x920] sm:$0xff]  ;;  %8475 = vmatpush1.bf16.msra.mxu0 %v16661_v48 }
 0x97b   :  { %v5678_v45 = vld [vmem:[#allocation3 + $0xd00] sm:$0xff]  ;;  %v16654_v17 = vcombine.high %v5550_v32, %v5554_v30  ;;  %8517 = vmatprep.subr.bf16.mxu1 %v16790_v16  ;;  %v16653_v29 = vcombine.low %v5550_v32, %v5554_v30 }
 0x97c   :  { %v5682_v13 = vld [vmem:[#allocation3 + $0xd20] sm:$0xff]  ;;  %8518 = vmatpush1.bf16.msra.mxu1 %v16789_v61 }
 0x97d   :  { %v16782_v43 = vcombine.high %v5678_v45, %v5682_v13  ;;  %v5542_v2 = vld [vmem:[#allocation3 + $0x8c0] sm:$0xff]  ;;  %8476 = vmatprep.subr.bf16.mxu0 %v16654_v17  ;;  %v16781_v50 = vcombine.low %v5678_v45, %v5682_v13 }
 0x97e   :  { %v5546_v15 = vld [vmem:[#allocation3 + $0x8e0] sm:$0xff]  ;;  %8477 = vmatpush1.bf16.msra.mxu0 %v16653_v29 }
 0x97f   :  { %v5670_v3 = vld [vmem:[#allocation3 + $0xcc0] sm:$0xff]  ;;  %v16646_v24 = vcombine.high %v5542_v2, %v5546_v15  ;;  %8519 = vmatprep.subr.bf16.mxu1 %v16782_v43  ;;  %v16645_v57 = vcombine.low %v5542_v2, %v5546_v15 }
 0x980   :  { %v5674_v26 = vld [vmem:[#allocation3 + $0xce0] sm:$0xff]  ;;  %8520 = vmatpush1.bf16.msra.mxu1 %v16781_v50 }
 0x981   :  { %v16774_v22 = vcombine.high %v5670_v3, %v5674_v26  ;;  %v5534_v52 = vld [vmem:[#allocation3 + $0x880] sm:$0xff]  ;;  %8478 = vmatprep.subr.bf16.mxu0 %v16646_v24  ;;  %v16773_v63 = vcombine.low %v5670_v3, %v5674_v26 }
 0x982   :  { %v5538_v54 = vld [vmem:[#allocation3 + $0x8a0] sm:$0xff]  ;;  %8479 = vmatpush1.bf16.msra.mxu0 %v16645_v57 }
 0x983   :  { %v5662_v27 = vld [vmem:[#allocation3 + $0xc80] sm:$0xff]  ;;  %v16638_v34 = vcombine.high %v5534_v52, %v5538_v54  ;;  %8521 = vmatprep.subr.bf16.mxu1 %v16774_v22  ;;  %v16637_v21 = vcombine.low %v5534_v52, %v5538_v54 }
 0x984   :  { %v5666_v55 = vld [vmem:[#allocation3 + $0xca0] sm:$0xff]  ;;  %8522 = vmatpush1.bf16.msra.mxu1 %v16773_v63 }
 0x985   :  { %v16766_v60 = vcombine.high %v5662_v27, %v5666_v55  ;;  %v5526_v6 = vld [vmem:[#allocation3 + $0x840] sm:$0xff]  ;;  %8480 = vmatprep.subr.bf16.mxu0 %v16638_v34  ;;  %v16765_v33 = vcombine.low %v5662_v27, %v5666_v55 }
 0x986   :  { %v5530_v59 = vld [vmem:[#allocation3 + $0x860] sm:$0xff]  ;;  %8481 = vmatpush1.bf16.msra.mxu0 %v16637_v21 }
 0x987   :  { %v5654_v46 = vld [vmem:[#allocation3 + $0xc40] sm:$0xff]  ;;  %v16630_v18 = vcombine.high %v5526_v6, %v5530_v59  ;;  %8523 = vmatprep.subr.bf16.mxu1 %v16766_v60  ;;  %v16629_v0 = vcombine.low %v5526_v6, %v5530_v59 }
 0x988   :  { %v5658_v1 = vld [vmem:[#allocation3 + $0xc60] sm:$0xff]  ;;  %8524 = vmatpush1.bf16.msra.mxu1 %v16765_v33 }
 0x989   :  { %v16758_v28 = vcombine.high %v5654_v46, %v5658_v1  ;;  %v5518_v49 = vld [vmem:[#allocation3 + $0x800] sm:$0xff]  ;;  %8482 = vmatprep.subr.bf16.mxu0 %v16630_v18  ;;  %v16757_v44 = vcombine.low %v5654_v46, %v5658_v1 }
 0x98a   :  { %v5522_v4 = vld [vmem:[#allocation3 + $0x820] sm:$0xff]  ;;  %8483 = vmatpush1.bf16.msra.mxu0 %v16629_v0 }
 0x98b   :  { %v5646_v14 = vld [vmem:[#allocation3 + $0xc00] sm:$0xff]  ;;  %v16622_v5 = vcombine.high %v5518_v49, %v5522_v4  ;;  %8525 = vmatprep.subr.bf16.mxu1 %v16758_v28  ;;  %v16621_v48 = vcombine.low %v5518_v49, %v5522_v4 }
 0x98c   :  { %v5650_v12 = vld [vmem:[#allocation3 + $0xc20] sm:$0xff]  ;;  %8526 = vmatpush1.bf16.msra.mxu1 %v16757_v44 }
 0x98d   :  { %v16750_v16 = vcombine.high %v5646_v14, %v5650_v12  ;;  %v5638_v32 = vld [vmem:[#allocation3 + $0xbc0] sm:$0xff]  ;;  %8484 = vmatprep.subr.bf16.mxu0 %v16622_v5  ;;  %v16749_v61 = vcombine.low %v5646_v14, %v5650_v12 }
 0x98e   :  { %v5642_v30 = vld [vmem:[#allocation3 + $0xbe0] sm:$0xff]  ;;  %8485 = vmatpush1.bf16.msra.mxu0 %v16621_v48 }
 0x98f   :  { %v5766_v45 = vld [vmem:[#allocation3 + $0xfc0] sm:$0xff]  ;;  %v16742_v17 = vcombine.high %v5638_v32, %v5642_v30  ;;  %8527 = vmatprep.subr.bf16.mxu1 %v16750_v16  ;;  %v16741_v29 = vcombine.low %v5638_v32, %v5642_v30 }
 0x990   :  { %v5770_v13 = vld [vmem:[#allocation3 + $0xfe0] sm:$0xff]  ;;  %8528 = vmatpush1.bf16.msra.mxu1 %v16749_v61 }
 0x991   :  { %v16870_v43 = vcombine.high %v5766_v45, %v5770_v13  ;;  %v5630_v2 = vld [vmem:[#allocation3 + $0xb80] sm:$0xff]  ;;  %8486 = vmatprep.subr.bf16.mxu0 %v16742_v17  ;;  %v16869_v50 = vcombine.low %v5766_v45, %v5770_v13 }
 0x992   :  { %v5634_v15 = vld [vmem:[#allocation3 + $0xba0] sm:$0xff]  ;;  %8487 = vmatpush2.bf16.msra.mxu0 %v16741_v29 }
 0x993   :  { %v5758_v3 = vld [vmem:[#allocation3 + $0xf80] sm:$0xff]  ;;  %v16734_v24 = vcombine.high %v5630_v2, %v5634_v15  ;;  %8529 = vmatprep.subr.bf16.mxu1 %v16870_v43  ;;  %v16733_v57 = vcombine.low %v5630_v2, %v5634_v15 }
 0x994   :  { %v5762_v26 = vld [vmem:[#allocation3 + $0xfa0] sm:$0xff]  ;;  %8530 = vmatpush2.bf16.msra.mxu1 %v16869_v50 }
 0x995   :  { %v16862_v22 = vcombine.high %v5758_v3, %v5762_v26  ;;  %v5622_v52 = vld [vmem:[#allocation3 + $0xb40] sm:$0xff]  ;;  %8488 = vmatprep.subr.bf16.mxu0 %v16734_v24  ;;  %v16861_v63 = vcombine.low %v5758_v3, %v5762_v26 }
 0x996   :  { %v5626_v54 = vld [vmem:[#allocation3 + $0xb60] sm:$0xff]  ;;  %8489 = vmatpush2.bf16.msra.mxu0 %v16733_v57 }
 0x997   :  { %v5750_v27 = vld [vmem:[#allocation3 + $0xf40] sm:$0xff]  ;;  %v16726_v34 = vcombine.high %v5622_v52, %v5626_v54  ;;  %8531 = vmatprep.subr.bf16.mxu1 %v16862_v22  ;;  %v16725_v21 = vcombine.low %v5622_v52, %v5626_v54 }
 0x998   :  { %v5754_v55 = vld [vmem:[#allocation3 + $0xf60] sm:$0xff]  ;;  %8532 = vmatpush2.bf16.msra.mxu1 %v16861_v63 }
 0x999   :  { %v16854_v60 = vcombine.high %v5750_v27, %v5754_v55  ;;  %v5614_v6 = vld [vmem:[#allocation3 + $0xb00] sm:$0xff]  ;;  %8490 = vmatprep.subr.bf16.mxu0 %v16726_v34  ;;  %v16853_v33 = vcombine.low %v5750_v27, %v5754_v55 }
 0x99a   :  { %v5618_v59 = vld [vmem:[#allocation3 + $0xb20] sm:$0xff]  ;;  %8491 = vmatpush2.bf16.msra.mxu0 %v16725_v21 }
 0x99b   :  { %v5742_v46 = vld [vmem:[#allocation3 + $0xf00] sm:$0xff]  ;;  %v16718_v18 = vcombine.high %v5614_v6, %v5618_v59  ;;  %8533 = vmatprep.subr.bf16.mxu1 %v16854_v60  ;;  %v16717_v0 = vcombine.low %v5614_v6, %v5618_v59  ;;  %v5319_v6 = vld [vmem:[#allocation3 + $0x1c8] sm:$0xff] }
 0x99c   :  { %v5746_v1 = vld [vmem:[#allocation3 + $0xf20] sm:$0xff]  ;;  %8534 = vmatpush2.bf16.msra.mxu1 %v16853_v33  ;;  %v5323_v59 = vld [vmem:[#allocation3 + $0x1e8] sm:$0xff] }
 0x99d   :  { %v16846_v28 = vcombine.high %v5742_v46, %v5746_v1  ;;  %v5606_v49 = vld [vmem:[#allocation3 + $0xac0] sm:$0xff]  ;;  %8492 = vmatprep.subr.bf16.mxu0 %v16718_v18  ;;  %v16845_v44 = vcombine.low %v5742_v46, %v5746_v1  ;;  %v5447_v46 = vld [vmem:[#allocation3 + $0x5c8] sm:$0xff]  ;;  %v16424_v18 = vcombine.high %v5319_v6, %v5323_v59 }
 0x99e   :  { %v5610_v4 = vld [vmem:[#allocation3 + $0xae0] sm:$0xff]  ;;  %8493 = vmatpush2.bf16.msra.mxu0 %v16717_v0  ;;  %v5451_v1 = vld [vmem:[#allocation3 + $0x5e8] sm:$0xff] }
 0x99f   :  { %v5734_v14 = vld [vmem:[#allocation3 + $0xec0] sm:$0xff]  ;;  %v16710_v5 = vcombine.high %v5606_v49, %v5610_v4  ;;  %8535 = vmatprep.subr.bf16.mxu1 %v16846_v28  ;;  %v16709_v48 = vcombine.low %v5606_v49, %v5610_v4  ;;  %v16552_v28 = vcombine.high %v5447_v46, %v5451_v1  ;;  %v5311_v49 = vld [vmem:[#allocation3 + $0x188] sm:$0xff] }
 0x9a0   :  { %v5738_v12 = vld [vmem:[#allocation3 + $0xee0] sm:$0xff]  ;;  %8536 = vmatpush2.bf16.msra.mxu1 %v16845_v44  ;;  %v5315_v4 = vld [vmem:[#allocation3 + $0x1a8] sm:$0xff]  ;;  %v19646_v44 = vpack.c.bf16 %v5258_v35, %v5250_v11 }
 0x9a1   :  { %v16838_v16 = vcombine.high %v5734_v14, %v5738_v12  ;;  %v5598_v32 = vld [vmem:[#allocation3 + $0xa80] sm:$0xff]  ;;  %8494 = vmatprep.subr.bf16.mxu0 %v16710_v5  ;;  %v16837_v61 = vcombine.low %v5734_v14, %v5738_v12  ;;  %v19640_v14 = vpack.c.bf16 %v5256_v20, %v5248_v58  ;;  %v5439_v12 = vld [vmem:[#allocation3 + $0x588] sm:$0xff]  ;;  %v16423_v5 = vcombine.low %v5319_v6, %v5323_v59 }
 0x9a2   :  { %v5602_v30 = vld [vmem:[#allocation3 + $0xaa0] sm:$0xff]  ;;  %8495 = vmatpush2.bf16.msra.mxu0 %v16709_v48  ;;  %v5443_v0 = vld [vmem:[#allocation3 + $0x5a8] sm:$0xff]  ;;  %v16415_v62 = vcombine.low %v5311_v49, %v5315_v4 }
 0x9a3   :  { %v5726_v45 = vld [vmem:[#allocation3 + $0xe80] sm:$0xff]  ;;  %v16702_v17 = vcombine.high %v5598_v32, %v5602_v30  ;;  %8537 = vmatprep.subr.bf16.mxu1 %v16838_v16  ;;  %v16701_v29 = vcombine.low %v5598_v32, %v5602_v30  ;;  %v16551_v16 = vcombine.low %v5447_v46, %v5451_v1  ;;  %v16416_v32 = vcombine.high %v5311_v49, %v5315_v4  ;;  %v5303_v30 = vld [vmem:[#allocation3 + $0x148] sm:$0xff] }
 0x9a4   :  { %v5730_v13 = vld [vmem:[#allocation3 + $0xea0] sm:$0xff]  ;;  %8538 = vmatpush2.bf16.msra.mxu1 %v16837_v61  ;;  %v16544_v56 = vcombine.high %v5439_v12, %v5443_v0  ;;  %v5431_v58 = vld [vmem:[#allocation3 + $0x548] sm:$0xff]  ;;  %v16543_v11 = vcombine.low %v5439_v12, %v5443_v0  ;;  %v16408_v53 = vcombine.high %v5303_v30, %v5307_v25 }
 0x9a5   :  { %v16830_v43 = vcombine.high %v5726_v45, %v5730_v13  ;;  %v5590_v2 = vld [vmem:[#allocation3 + $0xa40] sm:$0xff]  ;;  %8496 = vmatprep.subr.bf16.mxu0 %v16702_v17  ;;  %v16829_v50 = vcombine.low %v5726_v45, %v5730_v13  ;;  %v5435_v20 = vld [vmem:[#allocation3 + $0x568] sm:$0xff]  ;;  %v16407_v17 = vcombine.low %v5303_v30, %v5307_v25 }
 0x9a6   :  { %v5594_v15 = vld [vmem:[#allocation3 + $0xa60] sm:$0xff]  ;;  %8497 = vmatpush2.bf16.msra.mxu0 %v16701_v29  ;;  %v16536_v35 = vcombine.high %v5431_v58, %v5435_v20  ;;  %v5295_v45 = vld [vmem:[#allocation3 + $0x108] sm:$0xff] }
 0x9a7   :  { %v5718_v3 = vld [vmem:[#allocation3 + $0xe40] sm:$0xff]  ;;  %v16694_v24 = vcombine.high %v5590_v2, %v5594_v15  ;;  %8539 = vmatprep.subr.bf16.mxu1 %v16830_v43  ;;  %v16693_v57 = vcombine.low %v5590_v2, %v5594_v15  ;;  %v5299_v13 = vld [vmem:[#allocation3 + $0x128] sm:$0xff]  ;;  %v16535_v43 = vcombine.low %v5431_v58, %v5435_v20 }
 0x9a8   :  { %v5722_v26 = vld [vmem:[#allocation3 + $0xe60] sm:$0xff]  ;;  %8540 = vmatpush2.bf16.msra.mxu1 %v16829_v50  ;;  %v5423_v48 = vld [vmem:[#allocation3 + $0x508] sm:$0xff]  ;;  %v16400_v2 = vcombine.high %v5295_v45, %v5299_v13 }
 0x9a9   :  { %v16822_v22 = vcombine.high %v5718_v3, %v5722_v26  ;;  %v5582_v52 = vld [vmem:[#allocation3 + $0xa00] sm:$0xff]  ;;  %8498 = vmatprep.subr.bf16.mxu0 %v16694_v24  ;;  %v16821_v63 = vcombine.low %v5718_v3, %v5722_v26  ;;  %v5427_v61 = vld [vmem:[#allocation3 + $0x528] sm:$0xff]  ;;  %v16399_v24 = vcombine.low %v5295_v45, %v5299_v13 }
 0x9aa   :  { %v5586_v54 = vld [vmem:[#allocation3 + $0xa20] sm:$0xff]  ;;  %8499 = vmatpush2.bf16.msra.mxu0 %v16693_v57  ;;  %v16528_v15 = vcombine.high %v5423_v48, %v5427_v61  ;;  %v5287_v3 = vld [vmem:[#allocation3 + $0xc8] sm:$0xff] }
 0x9ab   :  { %v5710_v27 = vld [vmem:[#allocation3 + $0xe00] sm:$0xff]  ;;  %v16686_v34 = vcombine.high %v5582_v52, %v5586_v54  ;;  %8541 = vmatprep.subr.bf16.mxu1 %v16822_v22  ;;  %v16685_v21 = vcombine.low %v5582_v52, %v5586_v54  ;;  %v5291_v26 = vld [vmem:[#allocation3 + $0xe8] sm:$0xff]  ;;  %v16527_v22 = vcombine.low %v5423_v48, %v5427_v61 }
 0x9ac   :  { %v5714_v55 = vld [vmem:[#allocation3 + $0xe20] sm:$0xff]  ;;  %8542 = vmatpush2.bf16.msra.mxu1 %v16821_v63  ;;  %v5415_v29 = vld [vmem:[#allocation3 + $0x4c8] sm:$0xff]  ;;  %v16392_v52 = vcombine.high %v5287_v3, %v5291_v26 }
 0x9ad   :  { %v16814_v60 = vcombine.high %v5710_v27, %v5714_v55  ;;  %8500 = vmatprep.subr.bf16.mxu0 %v16686_v34  ;;  %v16813_v33 = vcombine.low %v5710_v27, %v5714_v55  ;;  %v5419_v50 = vld [vmem:[#allocation3 + $0x4e8] sm:$0xff]  ;;  %v16391_v34 = vcombine.low %v5287_v3, %v5291_v26 }
 0x9ae   :  { %8501 = vmatpush2.bf16.msra.mxu0 %v16685_v21  ;;  %v16520_v54 = vcombine.high %v5415_v29, %v5419_v50  ;;  %v5279_v27 = vld [vmem:[#allocation3 + $0x88] sm:$0xff] }
 0x9af   :  { %8543 = vmatprep.subr.bf16.mxu1 %v16814_v60  ;;  %8556 = vmatprep.subr.bf16.mxu0 %v16424_v18  ;;  %v5283_v55 = vld [vmem:[#allocation3 + $0xa8] sm:$0xff]  ;;  %v16519_v60 = vcombine.low %v5415_v29, %v5419_v50 }
 0x9b0   :  { %8544 = vmatpush2.bf16.msra.mxu1 %v16813_v33  ;;  %v5407_v57 = vld [vmem:[#allocation3 + $0x488] sm:$0xff]  ;;  %v16384_v6 = vcombine.high %v5279_v27, %v5283_v55  ;;  %v16383_v18 = vcombine.low %v5279_v27, %v5283_v55 }
 0x9b1   :  { %8599 = vmatprep.subr.bf16.mxu1 %v16552_v28  ;;  %8503 = vmatmul.mubr.bf16.vlgmr.msra.gmra.mxu0 %v19640_v14  ;;  %v5411_v63 = vld [vmem:[#allocation3 + $0x4a8] sm:$0xff] }
 0x9b2   :  { %8557 = vmatpush1.bf16.msra.mxu0 %v16423_v5  ;;  %8588 = vmatprep.mubr.bf16.mxu0 %v19598_v42  ;;  %v16512_v59 = vcombine.high %v5407_v57, %v5411_v63  ;;  %v5271_v46 = vld [vmem:[#allocation3 + $0x48] sm:$0xff]  ;;  %v16511_v28 = vcombine.low %v5407_v57, %v5411_v63 }
 0x9b3   :  { %8546 = vmatmul.mubr.bf16.vlgmr.msra.gmra.mxu1 %v19646_v44  ;;  %8558 = vmatprep.subr.bf16.mxu0 %v16416_v32  ;;  %v5275_v1 = vld [vmem:[#allocation3 + $0x68] sm:$0xff] }
 0x9b4   :  { %8600 = vmatpush1.bf16.msra.mxu1 %v16551_v16  ;;  %8631 = vmatprep.mubr.bf16.mxu1 %v19604_v23  ;;  %v5399_v21 = vld [vmem:[#allocation3 + $0x448] sm:$0xff]  ;;  %v16376_v49 = vcombine.high %v5271_v46, %v5275_v1  ;;  %v16375_v32 = vcombine.low %v5271_v46, %v5275_v1 }
 0x9b5   :  { %8601 = vmatprep.subr.bf16.mxu1 %v16544_v56  ;;  %v5403_v33 = vld [vmem:[#allocation3 + $0x468] sm:$0xff] }
 0x9b6   :  { %8559 = vmatpush1.bf16.msra.mxu0 %v16415_v62  ;;  %v16504_v4 = vcombine.high %v5399_v21, %v5403_v33  ;;  %v5263_v12 = vld [vmem:[#allocation3 + $0x8] sm:$0xff]  ;;  %v16503_v56 = vcombine.low %v5399_v21, %v5403_v33 }
 0x9b7   :  { %8560 = vmatprep.subr.bf16.mxu0 %v16408_v53  ;;  %v5267_v0 = vld [vmem:[#allocation3 + $0x28] sm:$0xff] }
 0x9b8   :  { %8602 = vmatpush1.bf16.msra.mxu1 %v16543_v11  ;;  %v5391_v5 = vld [vmem:[#allocation3 + $0x408] sm:$0xff]  ;;  %v16368_v30 = vcombine.high %v5263_v12, %v5267_v0  ;;  %v16367_v53 = vcombine.low %v5263_v12, %v5267_v0 }
 0x9b9   :  { %8603 = vmatprep.subr.bf16.mxu1 %v16536_v35  ;;  %v5395_v16 = vld [vmem:[#allocation3 + $0x428] sm:$0xff] }
 0x9ba   :  { %8561 = vmatpush1.bf16.msra.mxu0 %v16407_v17  ;;  %v16496_v25 = vcombine.high %v5391_v5, %v5395_v16  ;;  %v5383_v58 = vld [vmem:[#allocation3 + $0x3c8] sm:$0xff]  ;;  %v16495_v35 = vcombine.low %v5391_v5, %v5395_v16 }
 0x9bb   :  { %8562 = vmatprep.subr.bf16.mxu0 %v16400_v2  ;;  %v5387_v20 = vld [vmem:[#allocation3 + $0x3e8] sm:$0xff] }
 0x9bc   :  { %8604 = vmatpush1.bf16.msra.mxu1 %v16535_v43  ;;  %v5511_v62 = vld [vmem:[#allocation3 + $0x7c8] sm:$0xff]  ;;  %v16488_v45 = vcombine.high %v5383_v58, %v5387_v20  ;;  %v16487_v2 = vcombine.low %v5383_v58, %v5387_v20 }
 0x9bd   :  { %8605 = vmatprep.subr.bf16.mxu1 %v16528_v15  ;;  %v5515_v11 = vld [vmem:[#allocation3 + $0x7e8] sm:$0xff] }
 0x9be   :  { %8563 = vmatpush1.bf16.msra.mxu0 %v16399_v24  ;;  %v16616_v13 = vcombine.high %v5511_v62, %v5515_v11  ;;  %v5375_v48 = vld [vmem:[#allocation3 + $0x388] sm:$0xff]  ;;  %v16615_v15 = vcombine.low %v5511_v62, %v5515_v11 }
 0x9bf   :  { %8564 = vmatprep.subr.bf16.mxu0 %v16392_v52  ;;  %v5379_v61 = vld [vmem:[#allocation3 + $0x3a8] sm:$0xff] }
 0x9c0   :  { %8606 = vmatpush1.bf16.msra.mxu1 %v16527_v22  ;;  %v5503_v17 = vld [vmem:[#allocation3 + $0x788] sm:$0xff]  ;;  %v16480_v3 = vcombine.high %v5375_v48, %v5379_v61  ;;  %v16479_v52 = vcombine.low %v5375_v48, %v5379_v61 }
 0x9c1   :  { %8607 = vmatprep.subr.bf16.mxu1 %v16520_v54  ;;  %v5507_v43 = vld [vmem:[#allocation3 + $0x7a8] sm:$0xff] }
 0x9c2   :  { %8565 = vmatpush1.bf16.msra.mxu0 %v16391_v34  ;;  %v16608_v26 = vcombine.high %v5503_v17, %v5507_v43  ;;  %v5367_v29 = vld [vmem:[#allocation3 + $0x348] sm:$0xff]  ;;  %v16607_v54 = vcombine.low %v5503_v17, %v5507_v43 }
 0x9c3   :  { %8566 = vmatprep.subr.bf16.mxu0 %v16384_v6  ;;  %v5371_v50 = vld [vmem:[#allocation3 + $0x368] sm:$0xff] }
 0x9c4   :  { %8608 = vmatpush1.bf16.msra.mxu1 %v16519_v60  ;;  %v5495_v24 = vld [vmem:[#allocation3 + $0x748] sm:$0xff]  ;;  %v16472_v27 = vcombine.high %v5367_v29, %v5371_v50  ;;  %v16471_v6 = vcombine.low %v5367_v29, %v5371_v50 }
 0x9c5   :  { %8609 = vmatprep.subr.bf16.mxu1 %v16512_v59  ;;  %v5499_v22 = vld [vmem:[#allocation3 + $0x768] sm:$0xff] }
 0x9c6   :  { %8567 = vmatpush1.bf16.msra.mxu0 %v16383_v18  ;;  %v16600_v55 = vcombine.high %v5495_v24, %v5499_v22  ;;  %v5359_v57 = vld [vmem:[#allocation3 + $0x308] sm:$0xff]  ;;  %v16599_v59 = vcombine.low %v5495_v24, %v5499_v22 }
 0x9c7   :  { %8568 = vmatprep.subr.bf16.mxu0 %v16376_v49  ;;  %v5363_v63 = vld [vmem:[#allocation3 + $0x328] sm:$0xff] }
 0x9c8   :  { %8610 = vmatpush1.bf16.msra.mxu1 %v16511_v28  ;;  %v5487_v34 = vld [vmem:[#allocation3 + $0x708] sm:$0xff]  ;;  %v16464_v46 = vcombine.high %v5359_v57, %v5363_v63  ;;  %v16463_v49 = vcombine.low %v5359_v57, %v5363_v63 }
 0x9c9   :  { %8611 = vmatprep.subr.bf16.mxu1 %v16504_v4  ;;  %v5491_v60 = vld [vmem:[#allocation3 + $0x728] sm:$0xff] }
 0x9ca   :  { %8569 = vmatpush1.bf16.msra.mxu0 %v16375_v32  ;;  %v16592_v1 = vcombine.high %v5487_v34, %v5491_v60  ;;  %v5351_v21 = vld [vmem:[#allocation3 + $0x2c8] sm:$0xff]  ;;  %v16591_v4 = vcombine.low %v5487_v34, %v5491_v60 }
 0x9cb   :  { %8570 = vmatprep.subr.bf16.mxu0 %v16368_v30  ;;  %v5355_v33 = vld [vmem:[#allocation3 + $0x2e8] sm:$0xff] }
 0x9cc   :  { %8612 = vmatpush1.bf16.msra.mxu1 %v16503_v56  ;;  %v5479_v18 = vld [vmem:[#allocation3 + $0x6c8] sm:$0xff]  ;;  %v16456_v12 = vcombine.high %v5351_v21, %v5355_v33  ;;  %v16455_v30 = vcombine.low %v5351_v21, %v5355_v33 }
 0x9cd   :  { %8613 = vmatprep.subr.bf16.mxu1 %v16496_v25  ;;  %v5483_v28 = vld [vmem:[#allocation3 + $0x6e8] sm:$0xff] }
 0x9ce   :  { %8571 = vmatpush1.bf16.msra.mxu0 %v16367_v53  ;;  %v16584_v0 = vcombine.high %v5479_v18, %v5483_v28  ;;  %v5343_v5 = vld [vmem:[#allocation3 + $0x288] sm:$0xff]  ;;  %v16583_v25 = vcombine.low %v5479_v18, %v5483_v28 }
 0x9cf   :  { %8572 = vmatprep.subr.bf16.mxu0 %v16488_v45  ;;  %v5347_v16 = vld [vmem:[#allocation3 + $0x2a8] sm:$0xff] }
 0x9d0   :  { %8614 = vmatpush1.bf16.msra.mxu1 %v16495_v35  ;;  %v5471_v32 = vld [vmem:[#allocation3 + $0x688] sm:$0xff]  ;;  %v16448_v58 = vcombine.high %v5343_v5, %v5347_v16  ;;  %v16447_v45 = vcombine.low %v5343_v5, %v5347_v16 }
 0x9d1   :  { %8615 = vmatprep.subr.bf16.mxu1 %v16616_v13  ;;  %v5475_v56 = vld [vmem:[#allocation3 + $0x6a8] sm:$0xff] }
 0x9d2   :  { %8573 = vmatpush2.bf16.msra.mxu0 %v16487_v2  ;;  %v16576_v20 = vcombine.high %v5471_v32, %v5475_v56  ;;  %v5335_v62 = vld [vmem:[#allocation3 + $0x248] sm:$0xff]  ;;  %v16575_v13 = vcombine.low %v5471_v32, %v5475_v56 }
 0x9d3   :  { %8574 = vmatprep.subr.bf16.mxu0 %v16480_v3  ;;  %v5339_v11 = vld [vmem:[#allocation3 + $0x268] sm:$0xff] }
 0x9d4   :  { %8616 = vmatpush2.bf16.msra.mxu1 %v16615_v15  ;;  %v5463_v53 = vld [vmem:[#allocation3 + $0x648] sm:$0xff]  ;;  %v16440_v48 = vcombine.high %v5335_v62, %v5339_v11  ;;  %v16439_v3 = vcombine.low %v5335_v62, %v5339_v11 }
 0x9d5   :  { %8617 = vmatprep.subr.bf16.mxu1 %v16608_v26  ;;  %v5467_v35 = vld [vmem:[#allocation3 + $0x668] sm:$0xff] }
 0x9d6   :  { %8575 = vmatpush2.bf16.msra.mxu0 %v16479_v52  ;;  %v16568_v61 = vcombine.high %v5463_v53, %v5467_v35  ;;  %v5327_v17 = vld [vmem:[#allocation3 + $0x208] sm:$0xff]  ;;  %v16567_v26 = vcombine.low %v5463_v53, %v5467_v35 }
 0x9d7   :  { %8576 = vmatprep.subr.bf16.mxu0 %v16472_v27  ;;  %v5331_v43 = vld [vmem:[#allocation3 + $0x228] sm:$0xff] }
 0x9d8   :  { %8618 = vmatpush2.bf16.msra.mxu1 %v16607_v54  ;;  %v5455_v2 = vld [vmem:[#allocation3 + $0x608] sm:$0xff]  ;;  %v16432_v29 = vcombine.high %v5327_v17, %v5331_v43  ;;  %v16431_v27 = vcombine.low %v5327_v17, %v5331_v43 }
 0x9d9   :  { %8619 = vmatprep.subr.bf16.mxu1 %v16600_v55  ;;  %v5459_v15 = vld [vmem:[#allocation3 + $0x628] sm:$0xff] }
 0x9da   :  { %8577 = vmatpush2.bf16.msra.mxu0 %v16471_v6  ;;  %v16560_v50 = vcombine.high %v5455_v2, %v5459_v15  ;;  %v5575_v24 = vld [vmem:[#allocation3 + $0x9c8] sm:$0xff]  ;;  %v16559_v55 = vcombine.low %v5455_v2, %v5459_v15 }
 0x9db   :  { %8578 = vmatprep.subr.bf16.mxu0 %v16464_v46  ;;  %v5579_v22 = vld [vmem:[#allocation3 + $0x9e8] sm:$0xff] }
 0x9dc   :  { %8620 = vmatpush2.bf16.msra.mxu1 %v16599_v59  ;;  %v5703_v52 = vld [vmem:[#allocation3 + $0xdc8] sm:$0xff]  ;;  %v16680_v57 = vcombine.high %v5575_v24, %v5579_v22  ;;  %v16679_v46 = vcombine.low %v5575_v24, %v5579_v22 }
 0x9dd   :  { %8621 = vmatprep.subr.bf16.mxu1 %v16592_v1  ;;  %v5707_v54 = vld [vmem:[#allocation3 + $0xde8] sm:$0xff] }
 0x9de   :  { %8579 = vmatpush2.bf16.msra.mxu0 %v16463_v49  ;;  %v16808_v63 = vcombine.high %v5703_v52, %v5707_v54  ;;  %v5567_v34 = vld [vmem:[#allocation3 + $0x988] sm:$0xff]  ;;  %v16807_v1 = vcombine.low %v5703_v52, %v5707_v54 }
 0x9df   :  { %8580 = vmatprep.subr.bf16.mxu0 %v16456_v12  ;;  %v5571_v60 = vld [vmem:[#allocation3 + $0x9a8] sm:$0xff] }
 0x9e0   :  { %8622 = vmatpush2.bf16.msra.mxu1 %v16591_v4  ;;  %v5695_v6 = vld [vmem:[#allocation3 + $0xd88] sm:$0xff]  ;;  %v16672_v21 = vcombine.high %v5567_v34, %v5571_v60  ;;  %v16671_v12 = vcombine.low %v5567_v34, %v5571_v60 }
 0x9e1   :  { %8623 = vmatprep.subr.bf16.mxu1 %v16584_v0  ;;  %v5699_v59 = vld [vmem:[#allocation3 + $0xda8] sm:$0xff] }
 0x9e2   :  { %8581 = vmatpush2.bf16.msra.mxu0 %v16455_v30  ;;  %v16800_v33 = vcombine.high %v5695_v6, %v5699_v59  ;;  %v5559_v18 = vld [vmem:[#allocation3 + $0x948] sm:$0xff]  ;;  %v16799_v0 = vcombine.low %v5695_v6, %v5699_v59 }
 0x9e3   :  { %8582 = vmatprep.subr.bf16.mxu0 %v16448_v58  ;;  %v5563_v28 = vld [vmem:[#allocation3 + $0x968] sm:$0xff] }
 0x9e4   :  { %8624 = vmatpush2.bf16.msra.mxu1 %v16583_v25  ;;  %v5687_v49 = vld [vmem:[#allocation3 + $0xd48] sm:$0xff]  ;;  %v16664_v5 = vcombine.high %v5559_v18, %v5563_v28  ;;  %v16663_v58 = vcombine.low %v5559_v18, %v5563_v28 }
 0x9e5   :  { %8625 = vmatprep.subr.bf16.mxu1 %v16576_v20  ;;  %v5691_v4 = vld [vmem:[#allocation3 + $0xd68] sm:$0xff] }
 0x9e6   :  { %8583 = vmatpush2.bf16.msra.mxu0 %v16447_v45  ;;  %v16792_v16 = vcombine.high %v5687_v49, %v5691_v4  ;;  %v5551_v32 = vld [vmem:[#allocation3 + $0x908] sm:$0xff]  ;;  %v16791_v20 = vcombine.low %v5687_v49, %v5691_v4 }
 0x9e7   :  { %8584 = vmatprep.subr.bf16.mxu0 %v16440_v48  ;;  %v5555_v56 = vld [vmem:[#allocation3 + $0x928] sm:$0xff] }
 0x9e8   :  { %8626 = vmatpush2.bf16.msra.mxu1 %v16575_v13  ;;  %v5679_v30 = vld [vmem:[#allocation3 + $0xd08] sm:$0xff]  ;;  %v16656_v62 = vcombine.high %v5551_v32, %v5555_v56  ;;  %v16655_v48 = vcombine.low %v5551_v32, %v5555_v56 }
 0x9e9   :  { %8627 = vmatprep.subr.bf16.mxu1 %v16568_v61  ;;  %v5683_v25 = vld [vmem:[#allocation3 + $0xd28] sm:$0xff] }
 0x9ea   :  { %8585 = vmatpush2.bf16.msra.mxu0 %v16439_v3  ;;  %v16784_v11 = vcombine.high %v5679_v30, %v5683_v25  ;;  %v5543_v53 = vld [vmem:[#allocation3 + $0x8c8] sm:$0xff]  ;;  %v16783_v61 = vcombine.low %v5679_v30, %v5683_v25 }
 0x9eb   :  { %8586 = vmatprep.subr.bf16.mxu0 %v16432_v29  ;;  %v5547_v35 = vld [vmem:[#allocation3 + $0x8e8] sm:$0xff] }
 0x9ec   :  { %8628 = vmatpush2.bf16.msra.mxu1 %v16567_v26  ;;  %v5671_v45 = vld [vmem:[#allocation3 + $0xcc8] sm:$0xff]  ;;  %v16648_v17 = vcombine.high %v5543_v53, %v5547_v35  ;;  %v16647_v29 = vcombine.low %v5543_v53, %v5547_v35 }
 0x9ed   :  { %8629 = vmatprep.subr.bf16.mxu1 %v16560_v50  ;;  %v5675_v13 = vld [vmem:[#allocation3 + $0xce8] sm:$0xff] }
 0x9ee   :  { %8587 = vmatpush2.bf16.msra.mxu0 %v16431_v27  ;;  %v16776_v43 = vcombine.high %v5671_v45, %v5675_v13  ;;  %v5535_v2 = vld [vmem:[#allocation3 + $0x888] sm:$0xff]  ;;  %v16775_v50 = vcombine.low %v5671_v45, %v5675_v13 }
 0x9ef   :  { %8642 = vmatprep.subr.bf16.mxu0 %v16680_v57  ;;  %v5539_v15 = vld [vmem:[#allocation3 + $0x8a8] sm:$0xff] }
 0x9f0   :  { %8630 = vmatpush2.bf16.msra.mxu1 %v16559_v55  ;;  %v5663_v3 = vld [vmem:[#allocation3 + $0xc88] sm:$0xff]  ;;  %v16640_v24 = vcombine.high %v5535_v2, %v5539_v15  ;;  %v16639_v57 = vcombine.low %v5535_v2, %v5539_v15 }
 0x9f1   :  { %8685 = vmatprep.subr.bf16.mxu1 %v16808_v63  ;;  %8589 = vmatmul.mubr.bf16.vlgmr.msra.gmra.mxu0 %v19612_v19  ;;  %v5667_v26 = vld [vmem:[#allocation3 + $0xca8] sm:$0xff] }
 0x9f2   :  { %8643 = vmatpush1.bf16.msra.mxu0 %v16679_v46  ;;  %8674 = vmatprep.mubr.bf16.mxu0 %v19624_v39  ;;  %v16768_v22 = vcombine.high %v5663_v3, %v5667_v26  ;;  %v5527_v52 = vld [vmem:[#allocation3 + $0x848] sm:$0xff]  ;;  %v16767_v63 = vcombine.low %v5663_v3, %v5667_v26 }
 0x9f3   :  { %8632 = vmatmul.mubr.bf16.vlgmr.msra.gmra.mxu1 %v19618_v51  ;;  %8644 = vmatprep.subr.bf16.mxu0 %v16672_v21  ;;  %v5531_v54 = vld [vmem:[#allocation3 + $0x868] sm:$0xff] }
 0x9f4   :  { %8686 = vmatpush1.bf16.msra.mxu1 %v16807_v1  ;;  %8717 = vmatprep.mubr.bf16.mxu1 %v19631_v47  ;;  %v5655_v27 = vld [vmem:[#allocation3 + $0xc48] sm:$0xff]  ;;  %v16632_v34 = vcombine.high %v5527_v52, %v5531_v54  ;;  %v16631_v21 = vcombine.low %v5527_v52, %v5531_v54 }
 0x9f5   :  { %8687 = vmatprep.subr.bf16.mxu1 %v16800_v33  ;;  %v5659_v55 = vld [vmem:[#allocation3 + $0xc68] sm:$0xff] }
 0x9f6   :  { %8645 = vmatpush1.bf16.msra.mxu0 %v16671_v12  ;;  %v16760_v60 = vcombine.high %v5655_v27, %v5659_v55  ;;  %v5519_v6 = vld [vmem:[#allocation3 + $0x808] sm:$0xff]  ;;  %v16759_v33 = vcombine.low %v5655_v27, %v5659_v55 }
 0x9f7   :  { %8646 = vmatprep.subr.bf16.mxu0 %v16664_v5  ;;  %v5523_v59 = vld [vmem:[#allocation3 + $0x828] sm:$0xff] }
 0x9f8   :  { %8688 = vmatpush1.bf16.msra.mxu1 %v16799_v0  ;;  %v5647_v46 = vld [vmem:[#allocation3 + $0xc08] sm:$0xff]  ;;  %v16624_v18 = vcombine.high %v5519_v6, %v5523_v59  ;;  %v16623_v5 = vcombine.low %v5519_v6, %v5523_v59 }
 0x9f9   :  { %8689 = vmatprep.subr.bf16.mxu1 %v16792_v16  ;;  %v5651_v1 = vld [vmem:[#allocation3 + $0xc28] sm:$0xff] }
 0x9fa   :  { %8647 = vmatpush1.bf16.msra.mxu0 %v16663_v58  ;;  %v16752_v28 = vcombine.high %v5647_v46, %v5651_v1  ;;  %v5639_v49 = vld [vmem:[#allocation3 + $0xbc8] sm:$0xff]  ;;  %v16751_v16 = vcombine.low %v5647_v46, %v5651_v1 }
 0x9fb   :  { %8648 = vmatprep.subr.bf16.mxu0 %v16656_v62  ;;  %v5643_v4 = vld [vmem:[#allocation3 + $0xbe8] sm:$0xff] }
 0x9fc   :  { %8690 = vmatpush1.bf16.msra.mxu1 %v16791_v20  ;;  %v5767_v12 = vld [vmem:[#allocation3 + $0xfc8] sm:$0xff]  ;;  %v16744_v32 = vcombine.high %v5639_v49, %v5643_v4  ;;  %v16743_v62 = vcombine.low %v5639_v49, %v5643_v4 }
 0x9fd   :  { %8691 = vmatprep.subr.bf16.mxu1 %v16784_v11  ;;  %v5771_v0 = vld [vmem:[#allocation3 + $0xfe8] sm:$0xff] }
 0x9fe   :  { %8649 = vmatpush1.bf16.msra.mxu0 %v16655_v48  ;;  %v16872_v56 = vcombine.high %v5767_v12, %v5771_v0  ;;  %v5631_v30 = vld [vmem:[#allocation3 + $0xb88] sm:$0xff]  ;;  %v16871_v11 = vcombine.low %v5767_v12, %v5771_v0 }
 0x9ff   :  { %8650 = vmatprep.subr.bf16.mxu0 %v16648_v17  ;;  %v5635_v25 = vld [vmem:[#allocation3 + $0xba8] sm:$0xff] }
 0xa00   :  { %8692 = vmatpush1.bf16.msra.mxu1 %v16783_v61  ;;  %v5759_v58 = vld [vmem:[#allocation3 + $0xf88] sm:$0xff]  ;;  %v16736_v53 = vcombine.high %v5631_v30, %v5635_v25  ;;  %v16735_v17 = vcombine.low %v5631_v30, %v5635_v25 }
 0xa01   :  { %8693 = vmatprep.subr.bf16.mxu1 %v16776_v43  ;;  %v5763_v20 = vld [vmem:[#allocation3 + $0xfa8] sm:$0xff] }
 0xa02   :  { %8651 = vmatpush1.bf16.msra.mxu0 %v16647_v29  ;;  %v16864_v35 = vcombine.high %v5759_v58, %v5763_v20  ;;  %v5623_v45 = vld [vmem:[#allocation3 + $0xb48] sm:$0xff]  ;;  %v16863_v43 = vcombine.low %v5759_v58, %v5763_v20 }
 0xa03   :  { %8652 = vmatprep.subr.bf16.mxu0 %v16640_v24  ;;  %v5627_v13 = vld [vmem:[#allocation3 + $0xb68] sm:$0xff] }
 0xa04   :  { %8694 = vmatpush1.bf16.msra.mxu1 %v16775_v50  ;;  %v5751_v48 = vld [vmem:[#allocation3 + $0xf48] sm:$0xff]  ;;  %v16728_v2 = vcombine.high %v5623_v45, %v5627_v13  ;;  %v16727_v24 = vcombine.low %v5623_v45, %v5627_v13 }
 0xa05   :  { %8695 = vmatprep.subr.bf16.mxu1 %v16768_v22  ;;  %v5755_v61 = vld [vmem:[#allocation3 + $0xf68] sm:$0xff] }
 0xa06   :  { %8653 = vmatpush1.bf16.msra.mxu0 %v16639_v57  ;;  %v16856_v15 = vcombine.high %v5751_v48, %v5755_v61  ;;  %v5615_v3 = vld [vmem:[#allocation3 + $0xb08] sm:$0xff]  ;;  %v16855_v22 = vcombine.low %v5751_v48, %v5755_v61  ;;  %v5320_v48 = vld [vmem:[#allocation3 + $0x1d0] sm:$0xff] }
 0xa07   :  { %8654 = vmatprep.subr.bf16.mxu0 %v16632_v34  ;;  %v5619_v26 = vld [vmem:[#allocation3 + $0xb28] sm:$0xff]  ;;  %v5324_v61 = vld [vmem:[#allocation3 + $0x1f0] sm:$0xff] }
 0xa08   :  { %8696 = vmatpush1.bf16.msra.mxu1 %v16767_v63  ;;  %v5743_v29 = vld [vmem:[#allocation3 + $0xf08] sm:$0xff]  ;;  %v16720_v52 = vcombine.high %v5615_v3, %v5619_v26  ;;  %v16719_v34 = vcombine.low %v5615_v3, %v5619_v26  ;;  %v16426_v3 = vcombine.high %v5320_v48, %v5324_v61 }
 0xa09   :  { %8697 = vmatprep.subr.bf16.mxu1 %v16760_v60  ;;  %v5747_v50 = vld [vmem:[#allocation3 + $0xf28] sm:$0xff] }
 0xa0a   :  { %8655 = vmatpush1.bf16.msra.mxu0 %v16631_v21  ;;  %v16848_v54 = vcombine.high %v5743_v29, %v5747_v50  ;;  %v5607_v27 = vld [vmem:[#allocation3 + $0xac8] sm:$0xff]  ;;  %v16847_v60 = vcombine.low %v5743_v29, %v5747_v50  ;;  %v5312_v29 = vld [vmem:[#allocation3 + $0x190] sm:$0xff] }
 0xa0b   :  { %8656 = vmatprep.subr.bf16.mxu0 %v16624_v18  ;;  %v5611_v55 = vld [vmem:[#allocation3 + $0xae8] sm:$0xff]  ;;  %v5316_v50 = vld [vmem:[#allocation3 + $0x1b0] sm:$0xff] }
 0xa0c   :  { %8698 = vmatpush1.bf16.msra.mxu1 %v16759_v33  ;;  %v5735_v57 = vld [vmem:[#allocation3 + $0xec8] sm:$0xff]  ;;  %v16712_v6 = vcombine.high %v5607_v27, %v5611_v55  ;;  %v16711_v18 = vcombine.low %v5607_v27, %v5611_v55  ;;  %v16418_v27 = vcombine.high %v5312_v29, %v5316_v50 }
 0xa0d   :  { %8699 = vmatprep.subr.bf16.mxu1 %v16752_v28  ;;  %v5739_v63 = vld [vmem:[#allocation3 + $0xee8] sm:$0xff] }
 0xa0e   :  { %8657 = vmatpush1.bf16.msra.mxu0 %v16623_v5  ;;  %v16840_v59 = vcombine.high %v5735_v57, %v5739_v63  ;;  %v5599_v46 = vld [vmem:[#allocation3 + $0xa88] sm:$0xff]  ;;  %v16839_v28 = vcombine.low %v5735_v57, %v5739_v63  ;;  %v5304_v57 = vld [vmem:[#allocation3 + $0x150] sm:$0xff] }
 0xa0f   :  { %8658 = vmatprep.subr.bf16.mxu0 %v16744_v32  ;;  %v5603_v1 = vld [vmem:[#allocation3 + $0xaa8] sm:$0xff]  ;;  %v5308_v63 = vld [vmem:[#allocation3 + $0x170] sm:$0xff] }
 0xa10   :  { %8700 = vmatpush1.bf16.msra.mxu1 %v16751_v16  ;;  %v5727_v21 = vld [vmem:[#allocation3 + $0xe88] sm:$0xff]  ;;  %v16704_v49 = vcombine.high %v5599_v46, %v5603_v1  ;;  %v16703_v32 = vcombine.low %v5599_v46, %v5603_v1  ;;  %v16410_v46 = vcombine.high %v5304_v57, %v5308_v63 }
 0xa11   :  { %8701 = vmatprep.subr.bf16.mxu1 %v16872_v56  ;;  %v5731_v33 = vld [vmem:[#allocation3 + $0xea8] sm:$0xff] }
 0xa12   :  { %8659 = vmatpush2.bf16.msra.mxu0 %v16743_v62  ;;  %v16832_v4 = vcombine.high %v5727_v21, %v5731_v33  ;;  %v5591_v12 = vld [vmem:[#allocation3 + $0xa48] sm:$0xff]  ;;  %v16831_v56 = vcombine.low %v5727_v21, %v5731_v33  ;;  %v5296_v21 = vld [vmem:[#allocation3 + $0x110] sm:$0xff] }
 0xa13   :  { %8660 = vmatprep.subr.bf16.mxu0 %v16736_v53  ;;  %v5595_v0 = vld [vmem:[#allocation3 + $0xa68] sm:$0xff]  ;;  %v5300_v33 = vld [vmem:[#allocation3 + $0x130] sm:$0xff] }
 0xa14   :  { %8702 = vmatpush2.bf16.msra.mxu1 %v16871_v11  ;;  %v5719_v5 = vld [vmem:[#allocation3 + $0xe48] sm:$0xff]  ;;  %v16696_v30 = vcombine.high %v5591_v12, %v5595_v0  ;;  %v16695_v53 = vcombine.low %v5591_v12, %v5595_v0  ;;  %v16402_v12 = vcombine.high %v5296_v21, %v5300_v33 }
 0xa15   :  { %8703 = vmatprep.subr.bf16.mxu1 %v16864_v35  ;;  %v5723_v16 = vld [vmem:[#allocation3 + $0xe68] sm:$0xff] }
 0xa16   :  { %8661 = vmatpush2.bf16.msra.mxu0 %v16735_v17  ;;  %v16824_v25 = vcombine.high %v5719_v5, %v5723_v16  ;;  %v5583_v58 = vld [vmem:[#allocation3 + $0xa08] sm:$0xff]  ;;  %v16823_v35 = vcombine.low %v5719_v5, %v5723_v16  ;;  %v5448_v17 = vld [vmem:[#allocation3 + $0x5d0] sm:$0xff] }
 0xa17   :  { %8662 = vmatprep.subr.bf16.mxu0 %v16728_v2  ;;  %v5587_v20 = vld [vmem:[#allocation3 + $0xa28] sm:$0xff]  ;;  %v5288_v5 = vld [vmem:[#allocation3 + $0xd0] sm:$0xff] }
 0xa18   :  { %8704 = vmatpush2.bf16.msra.mxu1 %v16863_v43  ;;  %v5711_v62 = vld [vmem:[#allocation3 + $0xe08] sm:$0xff]  ;;  %v16688_v45 = vcombine.high %v5583_v58, %v5587_v20  ;;  %v5452_v43 = vld [vmem:[#allocation3 + $0x5f0] sm:$0xff]  ;;  %v16687_v2 = vcombine.low %v5583_v58, %v5587_v20 }
 0xa19   :  { %8705 = vmatprep.subr.bf16.mxu1 %v16856_v15  ;;  %v5715_v11 = vld [vmem:[#allocation3 + $0xe28] sm:$0xff]  ;;  %v16554_v26 = vcombine.high %v5448_v17, %v5452_v43  ;;  %v5292_v16 = vld [vmem:[#allocation3 + $0xf0] sm:$0xff] }
 0xa1a   :  { %8663 = vmatpush2.bf16.msra.mxu0 %v16727_v24  ;;  %v16816_v13 = vcombine.high %v5711_v62, %v5715_v11  ;;  %v16815_v15 = vcombine.low %v5711_v62, %v5715_v11  ;;  %v5440_v24 = vld [vmem:[#allocation3 + $0x590] sm:$0xff]  ;;  %v16394_v58 = vcombine.high %v5288_v5, %v5292_v16 }
 0xa1b   :  { %8664 = vmatprep.subr.bf16.mxu0 %v16720_v52  ;;  %v16425_v52 = vcombine.low %v5320_v48, %v5324_v61  ;;  %v5280_v62 = vld [vmem:[#allocation3 + $0x90] sm:$0xff] }
 0xa1c   :  { %8706 = vmatpush2.bf16.msra.mxu1 %v16855_v22  ;;  %v5444_v22 = vld [vmem:[#allocation3 + $0x5b0] sm:$0xff] }
 0xa1d   :  { %8707 = vmatprep.subr.bf16.mxu1 %v16848_v54  ;;  %v16553_v54 = vcombine.low %v5448_v17, %v5452_v43  ;;  %v16546_v55 = vcombine.high %v5440_v24, %v5444_v22  ;;  %v5284_v11 = vld [vmem:[#allocation3 + $0xb0] sm:$0xff] }
 0xa1e   :  { %8665 = vmatpush2.bf16.msra.mxu0 %v16719_v34  ;;  %v5432_v34 = vld [vmem:[#allocation3 + $0x550] sm:$0xff]  ;;  %v16386_v48 = vcombine.high %v5280_v62, %v5284_v11 }
 0xa1f   :  { %8666 = vmatprep.subr.bf16.mxu0 %v16712_v6  ;;  %v16417_v6 = vcombine.low %v5312_v29, %v5316_v50  ;;  %v5272_v17 = vld [vmem:[#allocation3 + $0x50] sm:$0xff] }
 0xa20   :  { %8708 = vmatpush2.bf16.msra.mxu1 %v16847_v60  ;;  %v5436_v60 = vld [vmem:[#allocation3 + $0x570] sm:$0xff] }
 0xa21   :  { %8709 = vmatprep.subr.bf16.mxu1 %v16840_v59  ;;  %v16545_v59 = vcombine.low %v5440_v24, %v5444_v22  ;;  %v16538_v1 = vcombine.high %v5432_v34, %v5436_v60  ;;  %v5276_v43 = vld [vmem:[#allocation3 + $0x70] sm:$0xff] }
 0xa22   :  { %8667 = vmatpush2.bf16.msra.mxu0 %v16711_v18  ;;  %v5424_v18 = vld [vmem:[#allocation3 + $0x510] sm:$0xff]  ;;  %v16378_v29 = vcombine.high %v5272_v17, %v5276_v43 }
 0xa23   :  { %8668 = vmatprep.subr.bf16.mxu0 %v16704_v49  ;;  %v16409_v49 = vcombine.low %v5304_v57, %v5308_v63  ;;  %v5264_v24 = vld [vmem:[#allocation3 + $0x10] sm:$0xff] }
 0xa24   :  { %8710 = vmatpush2.bf16.msra.mxu1 %v16839_v28  ;;  %v5428_v28 = vld [vmem:[#allocation3 + $0x530] sm:$0xff] }
 0xa25   :  { %8711 = vmatprep.subr.bf16.mxu1 %v16832_v4  ;;  %v16537_v4 = vcombine.low %v5432_v34, %v5436_v60  ;;  %v16530_v0 = vcombine.high %v5424_v18, %v5428_v28  ;;  %v5268_v22 = vld [vmem:[#allocation3 + $0x30] sm:$0xff] }
 0xa26   :  { %8669 = vmatpush2.bf16.msra.mxu0 %v16703_v32  ;;  %v5416_v32 = vld [vmem:[#allocation3 + $0x4d0] sm:$0xff]  ;;  %v16370_v57 = vcombine.high %v5264_v24, %v5268_v22 }
 0xa27   :  { %8670 = vmatprep.subr.bf16.mxu0 %v16696_v30  ;;  %v16401_v30 = vcombine.low %v5296_v21, %v5300_v33  ;;  %v5384_v34 = vld [vmem:[#allocation3 + $0x3d0] sm:$0xff] }
 0xa28   :  { %8712 = vmatpush2.bf16.msra.mxu1 %v16831_v56  ;;  %v5420_v56 = vld [vmem:[#allocation3 + $0x4f0] sm:$0xff] }
 0xa29   :  { %8713 = vmatprep.subr.bf16.mxu1 %v16824_v25  ;;  %v16529_v25 = vcombine.low %v5424_v18, %v5428_v28  ;;  %v16522_v20 = vcombine.high %v5416_v32, %v5420_v56  ;;  %v5388_v60 = vld [vmem:[#allocation3 + $0x3f0] sm:$0xff] }
 0xa2a   :  { %8671 = vmatpush2.bf16.msra.mxu0 %v16695_v53  ;;  %v5408_v53 = vld [vmem:[#allocation3 + $0x490] sm:$0xff]  ;;  %v16490_v21 = vcombine.high %v5384_v34, %v5388_v60 }
 0xa2b   :  { %8672 = vmatprep.subr.bf16.mxu0 %v16688_v45  ;;  %v16393_v45 = vcombine.low %v5288_v5, %v5292_v16  ;;  %v5376_v18 = vld [vmem:[#allocation3 + $0x390] sm:$0xff] }
 0xa2c   :  { %8714 = vmatpush2.bf16.msra.mxu1 %v16823_v35  ;;  %v5412_v35 = vld [vmem:[#allocation3 + $0x4b0] sm:$0xff] }
 0xa2d   :  { %8715 = vmatprep.subr.bf16.mxu1 %v16816_v13  ;;  %v16521_v13 = vcombine.low %v5416_v32, %v5420_v56  ;;  %v16514_v61 = vcombine.high %v5408_v53, %v5412_v35  ;;  %v5380_v28 = vld [vmem:[#allocation3 + $0x3b0] sm:$0xff] }
 0xa2e   :  { %8673 = vmatpush2.bf16.msra.mxu0 %v16687_v2  ;;  %v5400_v2 = vld [vmem:[#allocation3 + $0x450] sm:$0xff]  ;;  %v16482_v5 = vcombine.high %v5376_v18, %v5380_v28 }
 0xa2f   :  { %8728 = vmatprep.subr.bf16.mxu0 %v16426_v3  ;;  %v16385_v3 = vcombine.low %v5280_v62, %v5284_v11  ;;  %v5368_v32 = vld [vmem:[#allocation3 + $0x350] sm:$0xff] }
 0xa30   :  { %8716 = vmatpush2.bf16.msra.mxu1 %v16815_v15  ;;  %v5404_v15 = vld [vmem:[#allocation3 + $0x470] sm:$0xff] }
 0xa31   :  { %8771 = vmatprep.subr.bf16.mxu1 %v16554_v26  ;;  %8675 = vmatmul.mubr.bf16.vlgmr.msra.gmra.mxu0 %v19640_v14  ;;  %v16513_v26 = vcombine.low %v5408_v53, %v5412_v35  ;;  %v16506_v50 = vcombine.high %v5400_v2, %v5404_v15  ;;  %v5372_v56 = vld [vmem:[#allocation3 + $0x370] sm:$0xff] }
 0xa32   :  { %8729 = vmatpush1.bf16.msra.mxu0 %v16425_v52  ;;  %8760 = vmatprep.mubr.bf16.mxu0 %v19598_v42  ;;  %v5392_v52 = vld [vmem:[#allocation3 + $0x410] sm:$0xff]  ;;  %v16474_v62 = vcombine.high %v5368_v32, %v5372_v56 }
 0xa33   :  { %8718 = vmatmul.mubr.bf16.vlgmr.msra.gmra.mxu1 %v19646_v44  ;;  %8730 = vmatprep.subr.bf16.mxu0 %v16418_v27  ;;  %v16377_v27 = vcombine.low %v5272_v17, %v5276_v43  ;;  %v5360_v53 = vld [vmem:[#allocation3 + $0x310] sm:$0xff] }
 0xa34   :  { %8772 = vmatpush1.bf16.msra.mxu1 %v16553_v54  ;;  %8803 = vmatprep.mubr.bf16.mxu1 %v19604_v23  ;;  %v5396_v54 = vld [vmem:[#allocation3 + $0x430] sm:$0xff] }
 0xa35   :  { %8773 = vmatprep.subr.bf16.mxu1 %v16546_v55  ;;  %v16505_v55 = vcombine.low %v5400_v2, %v5404_v15  ;;  %v16498_v63 = vcombine.high %v5392_v52, %v5396_v54  ;;  %v5364_v35 = vld [vmem:[#allocation3 + $0x330] sm:$0xff] }
 0xa36   :  { %8731 = vmatpush1.bf16.msra.mxu0 %v16417_v6  ;;  %v5512_v6 = vld [vmem:[#allocation3 + $0x7d0] sm:$0xff]  ;;  %v16466_v17 = vcombine.high %v5360_v53, %v5364_v35 }
 0xa37   :  { %8732 = vmatprep.subr.bf16.mxu0 %v16410_v46  ;;  %v16369_v46 = vcombine.low %v5264_v24, %v5268_v22  ;;  %v5352_v2 = vld [vmem:[#allocation3 + $0x2d0] sm:$0xff] }
 0xa38   :  { %8774 = vmatpush1.bf16.msra.mxu1 %v16545_v59  ;;  %v5516_v59 = vld [vmem:[#allocation3 + $0x7f0] sm:$0xff] }
 0xa39   :  { %8775 = vmatprep.subr.bf16.mxu1 %v16538_v1  ;;  %v16497_v1 = vcombine.low %v5392_v52, %v5396_v54  ;;  %v16618_v33 = vcombine.high %v5512_v6, %v5516_v59  ;;  %v5356_v15 = vld [vmem:[#allocation3 + $0x2f0] sm:$0xff] }
 0xa3a   :  { %8733 = vmatpush1.bf16.msra.mxu0 %v16409_v49  ;;  %v5504_v49 = vld [vmem:[#allocation3 + $0x790] sm:$0xff]  ;;  %v16458_v24 = vcombine.high %v5352_v2, %v5356_v15 }
 0xa3b   :  { %8734 = vmatprep.subr.bf16.mxu0 %v16402_v12  ;;  %v16489_v12 = vcombine.low %v5384_v34, %v5388_v60  ;;  %v5344_v52 = vld [vmem:[#allocation3 + $0x290] sm:$0xff] }
 0xa3c   :  { %8776 = vmatpush1.bf16.msra.mxu1 %v16537_v4  ;;  %v5508_v4 = vld [vmem:[#allocation3 + $0x7b0] sm:$0xff] }
 0xa3d   :  { %8777 = vmatprep.subr.bf16.mxu1 %v16530_v0  ;;  %v16617_v0 = vcombine.low %v5512_v6, %v5516_v59  ;;  %v16610_v16 = vcombine.high %v5504_v49, %v5508_v4  ;;  %v5348_v54 = vld [vmem:[#allocation3 + $0x2b0] sm:$0xff] }
 0xa3e   :  { %8735 = vmatpush1.bf16.msra.mxu0 %v16401_v30  ;;  %v5496_v30 = vld [vmem:[#allocation3 + $0x750] sm:$0xff]  ;;  %v16450_v34 = vcombine.high %v5344_v52, %v5348_v54 }
 0xa3f   :  { %8736 = vmatprep.subr.bf16.mxu0 %v16394_v58  ;;  %v16481_v58 = vcombine.low %v5376_v18, %v5380_v28  ;;  %v5336_v6 = vld [vmem:[#allocation3 + $0x250] sm:$0xff] }
 0xa40   :  { %8778 = vmatpush1.bf16.msra.mxu1 %v16529_v25  ;;  %v5500_v25 = vld [vmem:[#allocation3 + $0x770] sm:$0xff] }
 0xa41   :  { %8779 = vmatprep.subr.bf16.mxu1 %v16522_v20  ;;  %v16609_v20 = vcombine.low %v5504_v49, %v5508_v4  ;;  %v16602_v11 = vcombine.high %v5496_v30, %v5500_v25  ;;  %v5340_v59 = vld [vmem:[#allocation3 + $0x270] sm:$0xff]  ;;  %v8461_v49 = vpop.f32.mrf.mxu1 }
 0xa42   :  { %8737 = vmatpush1.bf16.msra.mxu0 %v16393_v45  ;;  %v5488_v45 = vld [vmem:[#allocation3 + $0x710] sm:$0xff]  ;;  %v16442_v28 = vcombine.high %v5336_v6, %v5340_v59 }
 0xa43   :  { %8738 = vmatprep.subr.bf16.mxu0 %v16386_v48  ;;  %v16473_v48 = vcombine.low %v5368_v32, %v5372_v56  ;;  %v5460_v32 = vld [vmem:[#allocation3 + $0x630] sm:$0xff]  ;;  %v16441_v56 = vcombine.low %v5336_v6, %v5340_v59 }
 0xa44   :  { %8780 = vmatpush1.bf16.msra.mxu1 %v16521_v13  ;;  %v5492_v13 = vld [vmem:[#allocation3 + $0x730] sm:$0xff] }
 0xa45   :  { %8781 = vmatprep.subr.bf16.mxu1 %v16514_v61  ;;  %v16601_v61 = vcombine.low %v5496_v30, %v5500_v25  ;;  %v16594_v43 = vcombine.high %v5488_v45, %v5492_v13  ;;  %v5560_v59 = vld [vmem:[#allocation3 + $0x950] sm:$0xff] }
 0xa46   :  { %8739 = vmatpush1.bf16.msra.mxu0 %v16385_v3  ;;  %v5480_v3 = vld [vmem:[#allocation3 + $0x6d0] sm:$0xff] }
 0xa47   :  { %8740 = vmatprep.subr.bf16.mxu0 %v16378_v29  ;;  %v16465_v29 = vcombine.low %v5360_v53, %v5364_v35  ;;  %v5576_v53 = vld [vmem:[#allocation3 + $0x9d0] sm:$0xff] }
 0xa48   :  { %8782 = vmatpush1.bf16.msra.mxu1 %v16513_v26  ;;  %v5484_v26 = vld [vmem:[#allocation3 + $0x6f0] sm:$0xff] }
 0xa49   :  { %8783 = vmatprep.subr.bf16.mxu1 %v16506_v50  ;;  %v16593_v50 = vcombine.low %v5488_v45, %v5492_v13  ;;  %v16586_v22 = vcombine.high %v5480_v3, %v5484_v26  ;;  %v5580_v35 = vld [vmem:[#allocation3 + $0x9f0] sm:$0xff] }
 0xa4a   :  { %8741 = vmatpush1.bf16.msra.mxu0 %v16377_v27  ;;  %v5472_v27 = vld [vmem:[#allocation3 + $0x690] sm:$0xff] }
 0xa4b   :  { %8742 = vmatprep.subr.bf16.mxu0 %v16370_v57  ;;  %v16457_v57 = vcombine.low %v5352_v2, %v5356_v15  ;;  %v5704_v45 = vld [vmem:[#allocation3 + $0xdd0] sm:$0xff] }
 0xa4c   :  { %8784 = vmatpush1.bf16.msra.mxu1 %v16505_v55  ;;  %v5476_v55 = vld [vmem:[#allocation3 + $0x6b0] sm:$0xff] }
 0xa4d   :  { %8785 = vmatprep.subr.bf16.mxu1 %v16498_v63  ;;  %v16585_v63 = vcombine.low %v5480_v3, %v5484_v26  ;;  %v16578_v60 = vcombine.high %v5472_v27, %v5476_v55  ;;  %v16577_v18 = vcombine.low %v5472_v27, %v5476_v55  ;;  %v5708_v13 = vld [vmem:[#allocation3 + $0xdf0] sm:$0xff] }
 0xa4e   :  { %8743 = vmatpush1.bf16.msra.mxu0 %v16369_v46  ;;  %v5464_v46 = vld [vmem:[#allocation3 + $0x650] sm:$0xff]  ;;  %v16810_v26 = vcombine.high %v5704_v45, %v5708_v13  ;;  %v16809_v27 = vcombine.low %v5704_v45, %v5708_v13 }
 0xa4f   :  { %8744 = vmatprep.subr.bf16.mxu0 %v16490_v21  ;;  %v16449_v21 = vcombine.low %v5344_v52, %v5348_v54  ;;  %v16681_v52 = vcombine.low %v5576_v53, %v5580_v35  ;;  %v5684_v45 = vld [vmem:[#allocation3 + $0xd30] sm:$0xff] }
 0xa50   :  { %8786 = vmatpush1.bf16.msra.mxu1 %v16497_v1  ;;  %v5468_v1 = vld [vmem:[#allocation3 + $0x670] sm:$0xff] }
 0xa51   :  { %8787 = vmatprep.subr.bf16.mxu1 %v16618_v33  ;;  %v8418_v33 = vpop.f32.mrf.mxu0  ;;  %v16570_v4 = vcombine.high %v5464_v46, %v5468_v1  ;;  %v16569_v25 = vcombine.low %v5464_v46, %v5468_v1  ;;  %v5564_v46 = vld [vmem:[#allocation3 + $0x970] sm:$0xff] }
 0xa52   :  { %8745 = vmatpush2.bf16.msra.mxu0 %v16489_v12  ;;  %v5328_v12 = vld [vmem:[#allocation3 + $0x210] sm:$0xff] }
 0xa53   :  { %8746 = vmatprep.subr.bf16.mxu0 %v16482_v5  ;;  %v19660_v5 = vld [vmem:[#allocation26 + $0x16] sm:$0xff]  ;;  %v8420_v30 = vpop.f32.mrf.mxu0 }
 0xa54   :  { %8788 = vmatpush2.bf16.msra.mxu1 %v16617_v0  ;;  %v5332_v0 = vld [vmem:[#allocation3 + $0x230] sm:$0xff]  ;;  %v5791_v15 = vrot.slane %v19660_v5, %v19399_v40 }
 0xa55   :  { %8789 = vmatprep.subr.bf16.mxu1 %v16610_v16  ;;  %v5456_v16 = vld [vmem:[#allocation3 + $0x610] sm:$0xff] }
 0xa56   :  { %8747 = vmatpush2.bf16.msra.mxu0 %v16481_v58  ;;  %v16434_v58 = vcombine.high %v5328_v12, %v5332_v0 }
 0xa57   :  { %8748 = vmatprep.subr.bf16.mxu0 %v16474_v62  ;;  %v8463_v62 = vpop.f32.mrf.mxu1 }
 0xa58   :  { %8790 = vmatpush2.bf16.msra.mxu1 %v16609_v20  ;;  %v5787_v20 = vrot.slane %v19660_v5, %v19393_v37 }
 0xa59   :  { %8791 = vmatprep.subr.bf16.mxu1 %v16602_v11  ;;  %v16562_v11 = vcombine.high %v5456_v16, %v5460_v32  ;;  %v8465_v3 = vpop.f32.mrf.mxu1 }
 0xa5a   :  { %8749 = vmatpush2.bf16.msra.mxu0 %v16473_v48  ;;  %v16433_v48 = vcombine.low %v5328_v12, %v5332_v0  ;;  %v8419_v2 = vadd.f32 %v8418_v33, %v5787_v20  ;;  %v5692_v33 = vld [vmem:[#allocation3 + $0xd70] sm:$0xff] }
 0xa5b   :  { %8750 = vmatprep.subr.bf16.mxu0 %v16466_v17  ;;  %v16561_v17 = vcombine.low %v5456_v16, %v5460_v32  ;;  %v16666_v16 = vcombine.high %v5560_v59, %v5564_v46 }
 0xa5c   :  { %8792 = vmatpush2.bf16.msra.mxu1 %v16601_v61  ;;  %v8422_v61 = vpop.f32.mrf.mxu0 }
 0xa5d   :  { %8793 = vmatprep.subr.bf16.mxu1 %v16594_v43  ;;  %v16682_v43 = vcombine.high %v5576_v53, %v5580_v35  ;;  %v16665_v53 = vcombine.low %v5560_v59, %v5564_v46  ;;  %v5680_v35 = vld [vmem:[#allocation3 + $0xd10] sm:$0xff] }
 0xa5e   :  { %8751 = vmatpush2.bf16.msra.mxu0 %v16465_v29  ;;  %v5568_v29 = vld [vmem:[#allocation3 + $0x990] sm:$0xff]  ;;  %v8424_v54 = vpop.f32.mrf.mxu0 }
 0xa5f   :  { %8752 = vmatprep.subr.bf16.mxu0 %v16458_v24  ;;  %v5696_v24 = vld [vmem:[#allocation3 + $0xd90] sm:$0xff] }
 0xa60   :  { %8794 = vmatpush2.bf16.msra.mxu1 %v16593_v50  ;;  %v5572_v50 = vld [vmem:[#allocation3 + $0x9b0] sm:$0xff] }
 0xa61   :  { %8795 = vmatprep.subr.bf16.mxu1 %v16586_v22  ;;  %v5700_v22 = vld [vmem:[#allocation3 + $0xdb0] sm:$0xff]  ;;  %v16674_v55 = vcombine.high %v5568_v29, %v5572_v50  ;;  %v16673_v12 = vcombine.low %v5568_v29, %v5572_v50  ;;  %v16786_v29 = vcombine.high %v5680_v35, %v5684_v45 }
 0xa62   :  { %8753 = vmatpush2.bf16.msra.mxu0 %v16457_v57  ;;  %v8462_v57 = vadd.f32 %v8461_v49, %v8419_v2  ;;  %v16802_v6 = vcombine.high %v5696_v24, %v5700_v22  ;;  %v16801_v0 = vcombine.low %v5696_v24, %v5700_v22  ;;  %v5544_v50 = vld [vmem:[#allocation3 + $0x8d0] sm:$0xff] }
 0xa63   :  { %8754 = vmatprep.subr.bf16.mxu0 %v16450_v34  ;;  %v8423_v34 = vadd.f32 %v8422_v61, %v5787_v20  ;;  %v5556_v20 = vld [vmem:[#allocation3 + $0x930] sm:$0xff] }
 0xa64   :  { %8796 = vmatpush2.bf16.msra.mxu1 %v16585_v63  ;;  %v8421_v63 = vadd.f32 %v8420_v30, %v5791_v15  ;;  %v5548_v24 = vld [vmem:[#allocation3 + $0x8f0] sm:$0xff] }
 0xa65   :  { %8797 = vmatprep.subr.bf16.mxu1 %v16578_v60  ;;  %v8467_v60 = vpop.f32.mrf.mxu1 }
 0xa66   :  { %8755 = vmatpush2.bf16.msra.mxu0 %v16449_v21  ;;  %v5688_v21 = vld [vmem:[#allocation3 + $0xd50] sm:$0xff]  ;;  %v8464_v32 = vadd.f32 %v8463_v62, %v8421_v63 }
 0xa67   :  { %8756 = vmatprep.subr.bf16.mxu0 %v16442_v28  ;;  %v16793_v2 = vcombine.low %v5688_v21, %v5692_v33 }
 0xa68   :  { %8798 = vmatpush2.bf16.msra.mxu1 %v16577_v18  ;;  %v8425_v18 = vadd.f32 %v8424_v54, %v5791_v15  ;;  %v5672_v54 = vld [vmem:[#allocation3 + $0xcd0] sm:$0xff] }
 0xa69   :  { %8799 = vmatprep.subr.bf16.mxu1 %v16570_v4 }
 0xa6a   :  { %8757 = vmatpush2.bf16.msra.mxu0 %v16441_v56  ;;  %v8466_v56 = vadd.f32 %v8465_v3, %v8423_v34  ;;  %v8468_v13 = vadd.f32 %v8467_v60, %v8425_v18  ;;  %v16785_v60 = vcombine.low %v5680_v35, %v5684_v45  ;;  %v5664_v18 = vld [vmem:[#allocation3 + $0xc90] sm:$0xff] }
 0xa6b   :  { %8758 = vmatprep.subr.bf16.mxu0 %v16434_v58  ;;  %v5552_v58 = vld [vmem:[#allocation3 + $0x910] sm:$0xff] }
 0xa6c   :  { %8800 = vmatpush2.bf16.msra.mxu1 %v16569_v25  ;;  %v16794_v25 = vcombine.high %v5688_v21, %v5692_v33  ;;  %v16658_v15 = vcombine.high %v5552_v58, %v5556_v20  ;;  %v5536_v21 = vld [vmem:[#allocation3 + $0x890] sm:$0xff] }
 0xa6d   :  { %8801 = vmatprep.subr.bf16.mxu1 %v16562_v11  ;;  %v5540_v33 = vld [vmem:[#allocation3 + $0x8b0] sm:$0xff] }
 0xa6e   :  { %8759 = vmatpush2.bf16.msra.mxu0 %v16433_v48  ;;  %v5520_v45 = vld [vmem:[#allocation3 + $0x810] sm:$0xff] }
 0xa6f   :  { %8814 = vmatprep.subr.bf16.mxu0 %v16682_v43 }
 0xa70   :  { %8802 = vmatpush2.bf16.msra.mxu1 %v16561_v17 }
 0xa71   :  { %8857 = vmatprep.subr.bf16.mxu1 %v16810_v26  ;;  %v8504_v1 = vpop.f32.mrf.mxu0  ;;  %8761 = vmatmul.mubr.bf16.vlgmr.msra.gmra.mxu0 %v19612_v19 }
 0xa72   :  { %v8505_v28 = vadd.f32 %v8504_v1, %v8462_v57  ;;  %8815 = vmatpush1.bf16.msra.mxu0 %v16681_v52  ;;  %8846 = vmatprep.mubr.bf16.mxu0 %v19624_v39  ;;  %v16657_v52 = vcombine.low %v5552_v58, %v5556_v20  ;;  %v5660_v58 = vld [vmem:[#allocation3 + $0xc70] sm:$0xff]  ;;  %v16641_v20 = vcombine.low %v5536_v21, %v5540_v33 }
 0xa73   :  { %v8547_v4 = vpop.f32.mrf.mxu1  ;;  %8804 = vmatmul.mubr.bf16.vlgmr.msra.gmra.mxu1 %v19618_v51  ;;  %v8506_v49 = vpop.f32.mrf.mxu0  ;;  %8816 = vmatprep.subr.bf16.mxu0 %v16674_v55 }
 0xa74   :  { %8858 = vmatpush1.bf16.msra.mxu1 %v16809_v27  ;;  %8889 = vmatprep.mubr.bf16.mxu1 %v19631_v47  ;;  %v19670_v48 = vadd.f32 %v8547_v4, %v8505_v28  ;;  %v8507_v61 = vadd.f32 %v8506_v49, %v8464_v32  ;;  %v5676_v27 = vld [vmem:[#allocation3 + $0xcf0] sm:$0xff] }
 0xa75   :  { %v8549_v30 = vpop.f32.mrf.mxu1  ;;  %8859 = vmatprep.subr.bf16.mxu1 %v16802_v6  ;;  %v8508_v11 = vpop.f32.mrf.mxu0  ;;  %v16650_v6 = vcombine.high %v5544_v50, %v5548_v24  ;;  %v16778_v1 = vcombine.high %v5672_v54, %v5676_v27  ;;  %v5668_v28 = vld [vmem:[#allocation3 + $0xcb0] sm:$0xff]  ;;  %v16777_v49 = vcombine.low %v5672_v54, %v5676_v27 }
 0xa76   :  { %v8509_v17 = vadd.f32 %v8508_v11, %v8466_v56  ;;  %8817 = vmatpush1.bf16.msra.mxu0 %v16673_v12  ;;  %v9072_v55 = vmax.f32 %v19670_v48, 0.0  ;;  %v19675_v57 = vadd.f32 %v8549_v30, %v8507_v61  ;;  %v16649_v12 = vcombine.low %v5544_v50, %v5548_v24  ;;  %v5528_v56 = vld [vmem:[#allocation3 + $0x850] sm:$0xff] }
 0xa77   :  { %v8551_v62 = vpop.f32.mrf.mxu1  ;;  %v8510_v43 = vpop.f32.mrf.mxu0  ;;  %8818 = vmatprep.subr.bf16.mxu0 %v16666_v16  ;;  %v16770_v32 = vcombine.high %v5664_v18, %v5668_v28  ;;  %v5532_v30 = vld [vmem:[#allocation3 + $0x870] sm:$0xff]  ;;  %v16769_v11 = vcombine.low %v5664_v18, %v5668_v28 }
 0xa78   :  { %8860 = vmatpush1.bf16.msra.mxu1 %v16801_v0  ;;  %v19672_v3 = vadd.f32 %v8551_v62, %v8509_v17  ;;  %v8511_v26 = vadd.f32 %v8510_v43, %v8468_v13  ;;  %v9073_v4 = vmax.f32 %v19675_v57, 0.0  ;;  %v16642_v0 = vcombine.high %v5536_v21, %v5540_v33  ;;  %v5524_v13 = vld [vmem:[#allocation3 + $0x830] sm:$0xff] }
 0xa79   :  { %8861 = vmatprep.subr.bf16.mxu1 %v16794_v25  ;;  %v8553_v22 = vpop.f32.mrf.mxu1  ;;  %v5656_v25 = vld [vmem:[#allocation3 + $0xc50] sm:$0xff]  ;;  %v16633_v62 = vcombine.low %v5528_v56, %v5532_v30 }
 0xa7a   :  { %v9080_v63 = vmax.f32 %v19672_v3, 0.0  ;;  %v19678_v34 = vadd.f32 %v8553_v22, %v8511_v26  ;;  %8819 = vmatpush1.bf16.msra.mxu0 %v16665_v53  ;;  %v16634_v53 = vcombine.high %v5528_v56, %v5532_v30  ;;  %v16762_v35 = vcombine.high %v5656_v25, %v5660_v58  ;;  %v5648_v61 = vld [vmem:[#allocation3 + $0xc10] sm:$0xff] }
 0xa7b   :  { %8820 = vmatprep.subr.bf16.mxu0 %v16658_v15  ;;  %v5652_v17 = vld [vmem:[#allocation3 + $0xc30] sm:$0xff]  ;;  %v16761_v43 = vcombine.low %v5656_v25, %v5660_v58  ;;  %v16625_v22 = vcombine.low %v5520_v45, %v5524_v13 }
 0xa7c   :  { %8862 = vmatpush1.bf16.msra.mxu1 %v16793_v2  ;;  %v9081_v59 = vmax.f32 %v19678_v34, 0.0  ;;  %v17771_v46 = vpack.i.bf16 %v9080_v63, %v9072_v55  ;;  %v16626_v2 = vcombine.high %v5520_v45, %v5524_v13  ;;  %v16754_v15 = vcombine.high %v5648_v61, %v5652_v17  ;;  %v5640_v26 = vld [vmem:[#allocation3 + $0xbd0] sm:$0xff] }
 0xa7d   :  { %8863 = vmatprep.subr.bf16.mxu1 %v16786_v29  ;;  %v5644_v29 = vld [vmem:[#allocation3 + $0xbf0] sm:$0xff] }
 0xa7e   :  { %8821 = vmatpush1.bf16.msra.mxu0 %v16657_v52  ;;  %17772 = vrot.lane.b32.xlu0 %v17771_v46, %s19120_s30  ;;  %v17776_v16 = vpack.i.bf16 %v9081_v59, %v9073_v4  ;;  %v5768_v50 = vld [vmem:[#allocation3 + $0xfd0] sm:$0xff]  ;;  %v16753_v52 = vcombine.low %v5648_v61, %v5652_v17  ;;  %v16746_v54 = vcombine.high %v5640_v26, %v5644_v29 }
 0xa7f   :  { %8822 = vmatprep.subr.bf16.mxu0 %v16650_v6  ;;  %v5772_v24 = vld [vmem:[#allocation3 + $0xff0] sm:$0xff]  ;;  %v16745_v21 = vcombine.low %v5640_v26, %v5644_v29 }
 0xa80   :  { %8864 = vmatpush1.bf16.msra.mxu1 %v16785_v60  ;;  %v16874_v27 = vcombine.high %v5768_v50, %v5772_v24  ;;  %v5632_v60 = vld [vmem:[#allocation3 + $0xb90] sm:$0xff]  ;;  %v16873_v33 = vcombine.low %v5768_v50, %v5772_v24 }
 0xa81   :  { %8865 = vmatprep.subr.bf16.mxu1 %v16778_v1  ;;  %v5636_v6 = vld [vmem:[#allocation3 + $0xbb0] sm:$0xff] }
 0xa82   :  { %8823 = vmatpush1.bf16.msra.mxu0 %v16649_v12  ;;  %17777 = vrot.lane.b32.xlu0 %v17776_v16, %s19120_s30  ;;  %v5760_v46 = vld [vmem:[#allocation3 + $0xf90] sm:$0xff]  ;;  %v16738_v18 = vcombine.high %v5632_v60, %v5636_v6 }
 0xa83   :  { %8824 = vmatprep.subr.bf16.mxu0 %v16642_v0  ;;  %v5764_v1 = vld [vmem:[#allocation3 + $0xfb0] sm:$0xff] }
 0xa84   :  { %8866 = vmatpush1.bf16.msra.mxu1 %v16777_v49  ;;  %v16866_v28 = vcombine.high %v5760_v46, %v5764_v1  ;;  %v5624_v12 = vld [vmem:[#allocation3 + $0xb50] sm:$0xff]  ;;  %v16865_v56 = vcombine.low %v5760_v46, %v5764_v1 }
 0xa85   :  { %8867 = vmatprep.subr.bf16.mxu1 %v16770_v32  ;;  %v5628_v49 = vld [vmem:[#allocation3 + $0xb70] sm:$0xff]  ;;  %v16737_v32 = vcombine.low %v5632_v60, %v5636_v6 }
 0xa86   :  { %8825 = vmatpush1.bf16.msra.mxu0 %v16641_v20  ;;  %v5752_v0 = vld [vmem:[#allocation3 + $0xf50] sm:$0xff]  ;;  %v16730_v30 = vcombine.high %v5624_v12, %v5628_v49 }
 0xa87   :  { %8826 = vmatprep.subr.bf16.mxu0 %v16634_v53  ;;  %v5756_v16 = vld [vmem:[#allocation3 + $0xf70] sm:$0xff] }
 0xa88   :  { %8868 = vmatpush1.bf16.msra.mxu1 %v16769_v11  ;;  %v16858_v25 = vcombine.high %v5752_v0, %v5756_v16  ;;  %v5616_v58 = vld [vmem:[#allocation3 + $0xb10] sm:$0xff]  ;;  %v16857_v45 = vcombine.low %v5752_v0, %v5756_v16 }
 0xa89   :  { %8869 = vmatprep.subr.bf16.mxu1 %v16762_v35  ;;  %v5620_v20 = vld [vmem:[#allocation3 + $0xb30] sm:$0xff]  ;;  %v16729_v35 = vcombine.low %v5624_v12, %v5628_v49 }
 0xa8a   :  { %8827 = vmatpush1.bf16.msra.mxu0 %v16633_v62  ;;  %v5744_v11 = vld [vmem:[#allocation3 + $0xf10] sm:$0xff]  ;;  %v16722_v13 = vcombine.high %v5616_v58, %v5620_v20 }
 0xa8b   :  { %8828 = vmatprep.subr.bf16.mxu0 %v16626_v2  ;;  %v5748_v53 = vld [vmem:[#allocation3 + $0xf30] sm:$0xff] }
 0xa8c   :  { %8870 = vmatpush1.bf16.msra.mxu1 %v16761_v43  ;;  %v16850_v61 = vcombine.high %v5744_v11, %v5748_v53  ;;  %v5608_v17 = vld [vmem:[#allocation3 + $0xad0] sm:$0xff]  ;;  %v16849_v26 = vcombine.low %v5744_v11, %v5748_v53  ;;  %v5321_v53 = vld [vmem:[#allocation3 + $0x1d8] sm:$0xff] }
 0xa8d   :  { %8871 = vmatprep.subr.bf16.mxu1 %v16754_v15  ;;  %v5612_v62 = vld [vmem:[#allocation3 + $0xaf0] sm:$0xff]  ;;  %v16721_v15 = vcombine.low %v5616_v58, %v5620_v20 }
 0xa8e   :  { %8829 = vmatpush1.bf16.msra.mxu0 %v16625_v22  ;;  %v5736_v43 = vld [vmem:[#allocation3 + $0xed0] sm:$0xff]  ;;  %v16714_v29 = vcombine.high %v5608_v17, %v5612_v62 }
 0xa8f   :  { %8830 = vmatprep.subr.bf16.mxu0 %v16746_v54  ;;  %v5740_v2 = vld [vmem:[#allocation3 + $0xef0] sm:$0xff] }
 0xa90   :  { %8872 = vmatpush1.bf16.msra.mxu1 %v16753_v52  ;;  %v16842_v50 = vcombine.high %v5736_v43, %v5740_v2  ;;  %v5600_v24 = vld [vmem:[#allocation3 + $0xa90] sm:$0xff]  ;;  %v16841_v60 = vcombine.low %v5736_v43, %v5740_v2  ;;  %v5313_v2 = vld [vmem:[#allocation3 + $0x198] sm:$0xff] }
 0xa91   :  { %8873 = vmatprep.subr.bf16.mxu1 %v16874_v27  ;;  %v5604_v22 = vld [vmem:[#allocation3 + $0xab0] sm:$0xff]  ;;  %v16713_v27 = vcombine.low %v5608_v17, %v5612_v62 }
 0xa92   :  { %8831 = vmatpush2.bf16.msra.mxu0 %v16745_v21  ;;  %v5728_v52 = vld [vmem:[#allocation3 + $0xe90] sm:$0xff]  ;;  %v16706_v6 = vcombine.high %v5600_v24, %v5604_v22 }
 0xa93   :  { %8832 = vmatprep.subr.bf16.mxu0 %v16738_v18  ;;  %v5732_v54 = vld [vmem:[#allocation3 + $0xeb0] sm:$0xff] }
 0xa94   :  { %8874 = vmatpush2.bf16.msra.mxu1 %v16873_v33  ;;  %v16834_v46 = vcombine.high %v5728_v52, %v5732_v54  ;;  %v5592_v1 = vld [vmem:[#allocation3 + $0xa50] sm:$0xff]  ;;  %v16833_v12 = vcombine.low %v5728_v52, %v5732_v54  ;;  %v5305_v54 = vld [vmem:[#allocation3 + $0x158] sm:$0xff] }
 0xa95   :  { %8875 = vmatprep.subr.bf16.mxu1 %v16866_v28  ;;  %v5596_v21 = vld [vmem:[#allocation3 + $0xa70] sm:$0xff]  ;;  %v16705_v28 = vcombine.low %v5600_v24, %v5604_v22 }
 0xa96   :  { %8833 = vmatpush2.bf16.msra.mxu0 %v16737_v32  ;;  %v5720_v33 = vld [vmem:[#allocation3 + $0xe50] sm:$0xff]  ;;  %v16698_v49 = vcombine.high %v5592_v1, %v5596_v21 }
 0xa97   :  { %8834 = vmatprep.subr.bf16.mxu0 %v16730_v30  ;;  %v5724_v18 = vld [vmem:[#allocation3 + $0xe70] sm:$0xff] }
 0xa98   :  { %8876 = vmatpush2.bf16.msra.mxu1 %v16865_v56  ;;  %v16826_v0 = vcombine.high %v5720_v33, %v5724_v18  ;;  %v5584_v16 = vld [vmem:[#allocation3 + $0xa10] sm:$0xff]  ;;  %v16825_v58 = vcombine.low %v5720_v33, %v5724_v18  ;;  %v5297_v18 = vld [vmem:[#allocation3 + $0x118] sm:$0xff] }
 0xa99   :  { %8877 = vmatprep.subr.bf16.mxu1 %v16858_v25  ;;  %v5588_v32 = vld [vmem:[#allocation3 + $0xa30] sm:$0xff]  ;;  %v16697_v25 = vcombine.low %v5592_v1, %v5596_v21 }
 0xa9a   :  { %8835 = vmatpush2.bf16.msra.mxu0 %v16729_v35  ;;  %v5712_v56 = vld [vmem:[#allocation3 + $0xe10] sm:$0xff]  ;;  %v16690_v20 = vcombine.high %v5584_v16, %v5588_v32  ;;  %v5325_v35 = vld [vmem:[#allocation3 + $0x1f8] sm:$0xff] }
 0xa9b   :  { %8836 = vmatprep.subr.bf16.mxu0 %v16722_v13  ;;  %v5716_v30 = vld [vmem:[#allocation3 + $0xe30] sm:$0xff]  ;;  %v5453_v13 = vld [vmem:[#allocation3 + $0x5f8] sm:$0xff]  ;;  %v16428_v62 = vcombine.high %v5321_v53, %v5325_v35 }
 0xa9c   :  { %8878 = vmatpush2.bf16.msra.mxu1 %v16857_v45  ;;  %v16818_v11 = vcombine.high %v5712_v56, %v5716_v30  ;;  %v5449_v45 = vld [vmem:[#allocation3 + $0x5d8] sm:$0xff]  ;;  %v16817_v17 = vcombine.low %v5712_v56, %v5716_v30 }
 0xa9d   :  { %8879 = vmatprep.subr.bf16.mxu1 %v16850_v61  ;;  %v16689_v61 = vcombine.low %v5584_v16, %v5588_v32  ;;  %v16556_v43 = vcombine.high %v5449_v45, %v5453_v13  ;;  %v16555_v24 = vcombine.low %v5449_v45, %v5453_v13  ;;  %v5289_v30 = vld [vmem:[#allocation3 + $0xd8] sm:$0xff] }
 0xa9e   :  { %8837 = vmatpush2.bf16.msra.mxu0 %v16721_v15  ;;  %v5317_v15 = vld [vmem:[#allocation3 + $0x1b8] sm:$0xff] }
 0xa9f   :  { %8838 = vmatprep.subr.bf16.mxu0 %v16714_v29  ;;  %v5445_v29 = vld [vmem:[#allocation3 + $0x5b8] sm:$0xff]  ;;  %v16420_v22 = vcombine.high %v5313_v2, %v5317_v15 }
 0xaa0   :  { %8880 = vmatpush2.bf16.msra.mxu1 %v16849_v26  ;;  %v5441_v26 = vld [vmem:[#allocation3 + $0x598] sm:$0xff] }
 0xaa1   :  { %8881 = vmatprep.subr.bf16.mxu1 %v16842_v50  ;;  %v16427_v50 = vcombine.low %v5321_v53, %v5325_v35  ;;  %v16548_v52 = vcombine.high %v5441_v26, %v5445_v29  ;;  %v16547_v1 = vcombine.low %v5441_v26, %v5445_v29  ;;  %v5281_v35 = vld [vmem:[#allocation3 + $0x98] sm:$0xff] }
 0xaa2   :  { %8839 = vmatpush2.bf16.msra.mxu0 %v16713_v27  ;;  %v5309_v27 = vld [vmem:[#allocation3 + $0x178] sm:$0xff] }
 0xaa3   :  { %8840 = vmatprep.subr.bf16.mxu0 %v16706_v6  ;;  %v5437_v6 = vld [vmem:[#allocation3 + $0x578] sm:$0xff]  ;;  %v16412_v21 = vcombine.high %v5305_v54, %v5309_v27 }
 0xaa4   :  { %8882 = vmatpush2.bf16.msra.mxu1 %v16841_v60  ;;  %v5433_v60 = vld [vmem:[#allocation3 + $0x558] sm:$0xff] }
 0xaa5   :  { %8883 = vmatprep.subr.bf16.mxu1 %v16834_v46  ;;  %v16419_v46 = vcombine.low %v5313_v2, %v5317_v15  ;;  %v16540_v33 = vcombine.high %v5433_v60, %v5437_v6  ;;  %v16539_v16 = vcombine.low %v5433_v60, %v5437_v6  ;;  %v5285_v45 = vld [vmem:[#allocation3 + $0xb8] sm:$0xff] }
 0xaa6   :  { %8841 = vmatpush2.bf16.msra.mxu0 %v16705_v28  ;;  %v5301_v28 = vld [vmem:[#allocation3 + $0x138] sm:$0xff] }
 0xaa7   :  { %8842 = vmatprep.subr.bf16.mxu0 %v16698_v49  ;;  %v5429_v49 = vld [vmem:[#allocation3 + $0x538] sm:$0xff]  ;;  %v16404_v32 = vcombine.high %v5297_v18, %v5301_v28 }
 0xaa8   :  { %8884 = vmatpush2.bf16.msra.mxu1 %v16833_v12  ;;  %v5425_v12 = vld [vmem:[#allocation3 + $0x518] sm:$0xff] }
 0xaa9   :  { %8885 = vmatprep.subr.bf16.mxu1 %v16826_v0  ;;  %v16411_v0 = vcombine.low %v5305_v54, %v5309_v27  ;;  %v16532_v56 = vcombine.high %v5425_v12, %v5429_v49  ;;  %v5409_v13 = vld [vmem:[#allocation3 + $0x498] sm:$0xff] }
 0xaaa   :  { %8843 = vmatpush2.bf16.msra.mxu0 %v16697_v25  ;;  %v5293_v25 = vld [vmem:[#allocation3 + $0xf8] sm:$0xff] }
 0xaab   :  { %8844 = vmatprep.subr.bf16.mxu0 %v16690_v20  ;;  %v5421_v20 = vld [vmem:[#allocation3 + $0x4f8] sm:$0xff]  ;;  %v16396_v53 = vcombine.high %v5289_v30, %v5293_v25 }
 0xaac   :  { %8886 = vmatpush2.bf16.msra.mxu1 %v16825_v58  ;;  %v5417_v58 = vld [vmem:[#allocation3 + $0x4d8] sm:$0xff] }
 0xaad   :  { %8887 = vmatprep.subr.bf16.mxu1 %v16818_v11  ;;  %v16403_v11 = vcombine.low %v5297_v18, %v5301_v28  ;;  %v5273_v15 = vld [vmem:[#allocation3 + $0x58] sm:$0xff] }
 0xaae   :  { %8845 = vmatpush2.bf16.msra.mxu0 %v16689_v61  ;;  %v5413_v61 = vld [vmem:[#allocation3 + $0x4b8] sm:$0xff] }
 0xaaf   :  { %8900 = vmatprep.subr.bf16.mxu0 %v16428_v62  ;;  %v16523_v62 = vcombine.low %v5417_v58, %v5421_v20  ;;  %v16516_v2 = vcombine.high %v5409_v13, %v5413_v61  ;;  %v5277_v26 = vld [vmem:[#allocation3 + $0x78] sm:$0xff] }
 0xab0   :  { %8888 = vmatpush2.bf16.msra.mxu1 %v16817_v17  ;;  %v16395_v17 = vcombine.low %v5289_v30, %v5293_v25  ;;  %v5401_v29 = vld [vmem:[#allocation3 + $0x458] sm:$0xff] }
 0xab1   :  { %8943 = vmatprep.subr.bf16.mxu1 %v16556_v43  ;;  %8847 = vmatmul.mubr.bf16.vlgmr.msra.gmra.mxu0 %v19640_v14  ;;  %v16388_v43 = vcombine.high %v5281_v35, %v5285_v45  ;;  %v5265_v27 = vld [vmem:[#allocation3 + $0x18] sm:$0xff] }
 0xab2   :  { %8901 = vmatpush1.bf16.msra.mxu0 %v16427_v50  ;;  %8932 = vmatprep.mubr.bf16.mxu0 %v19598_v42  ;;  %v16531_v42 = vcombine.low %v5425_v12, %v5429_v49  ;;  %v5405_v50 = vld [vmem:[#allocation3 + $0x478] sm:$0xff] }
 0xab3   :  { %8890 = vmatmul.mubr.bf16.vlgmr.msra.gmra.mxu1 %v19646_v44  ;;  %8902 = vmatprep.subr.bf16.mxu0 %v16420_v22  ;;  %v16515_v22 = vcombine.low %v5409_v13, %v5413_v61  ;;  %v16508_v54 = vcombine.high %v5401_v29, %v5405_v50  ;;  %v5269_v60 = vld [vmem:[#allocation3 + $0x38] sm:$0xff] }
 0xab4   :  { %8944 = vmatpush1.bf16.msra.mxu1 %v16555_v24  ;;  %8975 = vmatprep.mubr.bf16.mxu1 %v19604_v23  ;;  %v16524_v23 = vcombine.high %v5417_v58, %v5421_v20  ;;  %v16387_v24 = vcombine.low %v5281_v35, %v5285_v45  ;;  %v5393_v6 = vld [vmem:[#allocation3 + $0x418] sm:$0xff] }
 0xab5   :  { %8945 = vmatprep.subr.bf16.mxu1 %v16548_v52  ;;  %v16380_v52 = vcombine.high %v5273_v15, %v5277_v26  ;;  %v5385_v28 = vld [vmem:[#allocation3 + $0x3d8] sm:$0xff] }
 0xab6   :  { %8903 = vmatpush1.bf16.msra.mxu0 %v16419_v46  ;;  %v5397_v46 = vld [vmem:[#allocation3 + $0x438] sm:$0xff] }
 0xab7   :  { %8904 = vmatprep.subr.bf16.mxu0 %v16412_v21  ;;  %v16507_v21 = vcombine.low %v5401_v29, %v5405_v50  ;;  %v16500_v18 = vcombine.high %v5393_v6, %v5397_v46  ;;  %v5389_v12 = vld [vmem:[#allocation3 + $0x3f8] sm:$0xff] }
 0xab8   :  { %8946 = vmatpush1.bf16.msra.mxu1 %v16547_v1  ;;  %v16379_v1 = vcombine.low %v5273_v15, %v5277_v26  ;;  %v5513_v49 = vld [vmem:[#allocation3 + $0x7d8] sm:$0xff] }
 0xab9   :  { %8947 = vmatprep.subr.bf16.mxu1 %v16540_v33  ;;  %v16372_v33 = vcombine.high %v5265_v27, %v5269_v60  ;;  %v5377_v25 = vld [vmem:[#allocation3 + $0x398] sm:$0xff] }
 0xaba   :  { %8905 = vmatpush1.bf16.msra.mxu0 %v16411_v0  ;;  %v5517_v0 = vld [vmem:[#allocation3 + $0x7f8] sm:$0xff] }
 0xabb   :  { %8906 = vmatprep.subr.bf16.mxu0 %v16404_v32  ;;  %v16499_v32 = vcombine.low %v5393_v6, %v5397_v46  ;;  %v16620_v30 = vcombine.high %v5513_v49, %v5517_v0  ;;  %v5381_v58 = vld [vmem:[#allocation3 + $0x3b8] sm:$0xff] }
 0xabc   :  { %8948 = vmatpush1.bf16.msra.mxu1 %v16539_v16  ;;  %v16371_v16 = vcombine.low %v5265_v27, %v5269_v60  ;;  %v5505_v20 = vld [vmem:[#allocation3 + $0x798] sm:$0xff] }
 0xabd   :  { %8949 = vmatprep.subr.bf16.mxu1 %v16532_v56  ;;  %v16492_v56 = vcombine.high %v5385_v28, %v5389_v12  ;;  %v5369_v45 = vld [vmem:[#allocation3 + $0x358] sm:$0xff] }
 0xabe   :  { %8907 = vmatpush1.bf16.msra.mxu0 %v16403_v11  ;;  %v5509_v11 = vld [vmem:[#allocation3 + $0x7b8] sm:$0xff] }
 0xabf   :  { %8908 = vmatprep.subr.bf16.mxu0 %v16396_v53  ;;  %v16619_v53 = vcombine.low %v5513_v49, %v5517_v0  ;;  %v16612_v35 = vcombine.high %v5505_v20, %v5509_v11  ;;  %v5373_v13 = vld [vmem:[#allocation3 + $0x378] sm:$0xff] }
 0xac0   :  { %8950 = vmatpush1.bf16.msra.mxu1 %v16531_v42  ;;  %v16491_v42 = vcombine.low %v5385_v28, %v5389_v12  ;;  %v5497_v61 = vld [vmem:[#allocation3 + $0x758] sm:$0xff] }
 0xac1   :  { %8951 = vmatprep.subr.bf16.mxu1 %v16524_v23  ;;  %v16484_v23 = vcombine.high %v5377_v25, %v5381_v58  ;;  %v5361_v26 = vld [vmem:[#allocation3 + $0x318] sm:$0xff] }
 0xac2   :  { %8909 = vmatpush1.bf16.msra.mxu0 %v16395_v17  ;;  %v5501_v17 = vld [vmem:[#allocation3 + $0x778] sm:$0xff] }
 0xac3   :  { %8910 = vmatprep.subr.bf16.mxu0 %v16388_v43  ;;  %v16611_v43 = vcombine.low %v5505_v20, %v5509_v11  ;;  %v16604_v15 = vcombine.high %v5497_v61, %v5501_v17  ;;  %v5365_v29 = vld [vmem:[#allocation3 + $0x338] sm:$0xff] }
 0xac4   :  { %8952 = vmatpush1.bf16.msra.mxu1 %v16523_v62  ;;  %v16483_v62 = vcombine.low %v5377_v25, %v5381_v58  ;;  %v5489_v50 = vld [vmem:[#allocation3 + $0x718] sm:$0xff] }
 0xac5   :  { %8953 = vmatprep.subr.bf16.mxu1 %v16516_v2  ;;  %v16476_v2 = vcombine.high %v5369_v45, %v5373_v13  ;;  %v5353_v60 = vld [vmem:[#allocation3 + $0x2d8] sm:$0xff] }
 0xac6   :  { %8911 = vmatpush1.bf16.msra.mxu0 %v16387_v24  ;;  %v5493_v24 = vld [vmem:[#allocation3 + $0x738] sm:$0xff] }
 0xac7   :  { %8912 = vmatprep.subr.bf16.mxu0 %v16380_v52  ;;  %v16603_v52 = vcombine.low %v5497_v61, %v5501_v17  ;;  %v16596_v27 = vcombine.high %v5489_v50, %v5493_v24  ;;  %v5357_v6 = vld [vmem:[#allocation3 + $0x2f8] sm:$0xff] }
 0xac8   :  { %8954 = vmatpush1.bf16.msra.mxu1 %v16515_v22  ;;  %v16475_v22 = vcombine.low %v5369_v45, %v5373_v13  ;;  %v5481_v46 = vld [vmem:[#allocation3 + $0x6d8] sm:$0xff]  ;;  %v8633_v13 = vpop.f32.mrf.mxu1 }
 0xac9   :  { %8955 = vmatprep.subr.bf16.mxu1 %v16508_v54  ;;  %v16468_v54 = vcombine.high %v5361_v26, %v5365_v29  ;;  %v5345_v12 = vld [vmem:[#allocation3 + $0x298] sm:$0xff] }
 0xaca   :  { %8913 = vmatpush1.bf16.msra.mxu0 %v16379_v1  ;;  %v5485_v1 = vld [vmem:[#allocation3 + $0x6f8] sm:$0xff] }
 0xacb   :  { %8914 = vmatprep.subr.bf16.mxu0 %v16372_v33  ;;  %v16595_v33 = vcombine.low %v5489_v50, %v5493_v24  ;;  %v16588_v28 = vcombine.high %v5481_v46, %v5485_v1  ;;  %v5349_v49 = vld [vmem:[#allocation3 + $0x2b8] sm:$0xff]  ;;  %v5795_v24 = vrot.slane %v19660_v5, %v19396_v38 }
 0xacc   :  { %8956 = vmatpush1.bf16.msra.mxu1 %v16507_v21  ;;  %v16467_v21 = vcombine.low %v5361_v26, %v5365_v29  ;;  %v5473_v0 = vld [vmem:[#allocation3 + $0x698] sm:$0xff] }
 0xacd   :  { %8957 = vmatprep.subr.bf16.mxu1 %v16500_v18  ;;  %v16460_v18 = vcombine.high %v5353_v60, %v5357_v6  ;;  %v5337_v58 = vld [vmem:[#allocation3 + $0x258] sm:$0xff] }
 0xace   :  { %8915 = vmatpush1.bf16.msra.mxu0 %v16371_v16  ;;  %v5477_v16 = vld [vmem:[#allocation3 + $0x6b8] sm:$0xff] }
 0xacf   :  { %8916 = vmatprep.subr.bf16.mxu0 %v16492_v56  ;;  %v16587_v56 = vcombine.low %v5481_v46, %v5485_v1  ;;  %v16580_v25 = vcombine.high %v5473_v0, %v5477_v16  ;;  %v5341_v20 = vld [vmem:[#allocation3 + $0x278] sm:$0xff] }
 0xad0   :  { %8958 = vmatpush1.bf16.msra.mxu1 %v16499_v32  ;;  %v16459_v32 = vcombine.low %v5353_v60, %v5357_v6  ;;  %v5465_v11 = vld [vmem:[#allocation3 + $0x658] sm:$0xff]  ;;  %v16444_v45 = vcombine.high %v5337_v58, %v5341_v20 }
 0xad1   :  { %8959 = vmatprep.subr.bf16.mxu1 %v16620_v30  ;;  %v16452_v30 = vcombine.high %v5345_v12, %v5349_v49  ;;  %v5329_v17 = vld [vmem:[#allocation3 + $0x218] sm:$0xff] }
 0xad2   :  { %8917 = vmatpush2.bf16.msra.mxu0 %v16491_v42  ;;  %v5469_v42 = vld [vmem:[#allocation3 + $0x678] sm:$0xff] }
 0xad3   :  { %8918 = vmatprep.subr.bf16.mxu0 %v16484_v23  ;;  %v8590_v23 = vpop.f32.mrf.mxu0  ;;  %v16572_v61 = vcombine.high %v5465_v11, %v5469_v42  ;;  %v16571_v29 = vcombine.low %v5465_v11, %v5469_v42  ;;  %v5705_v60 = vld [vmem:[#allocation3 + $0xdd8] sm:$0xff] }
 0xad4   :  { %8960 = vmatpush2.bf16.msra.mxu1 %v16619_v53  ;;  %v16451_v53 = vcombine.low %v5345_v12, %v5349_v49  ;;  %v5709_v6 = vld [vmem:[#allocation3 + $0xdf8] sm:$0xff] }
 0xad5   :  { %8961 = vmatprep.subr.bf16.mxu1 %v16612_v35  ;;  %v16579_v35 = vcombine.low %v5473_v0, %v5477_v16  ;;  %v8592_v26 = vpop.f32.mrf.mxu0  ;;  %v16812_v49 = vcombine.high %v5705_v60, %v5709_v6  ;;  %v5569_v0 = vld [vmem:[#allocation3 + $0x998] sm:$0xff] }
 0xad6   :  { %8919 = vmatpush2.bf16.msra.mxu0 %v16483_v62  ;;  %v5333_v62 = vld [vmem:[#allocation3 + $0x238] sm:$0xff] }
 0xad7   :  { %8920 = vmatprep.subr.bf16.mxu0 %v16476_v2  ;;  %v5461_v2 = vld [vmem:[#allocation3 + $0x638] sm:$0xff]  ;;  %v16436_v50 = vcombine.high %v5329_v17, %v5333_v62  ;;  %v16435_v46 = vcombine.low %v5329_v17, %v5333_v62  ;;  %v8594_v1 = vpop.f32.mrf.mxu0 }
 0xad8   :  { %8962 = vmatpush2.bf16.msra.mxu1 %v16611_v43  ;;  %v5457_v43 = vld [vmem:[#allocation3 + $0x618] sm:$0xff] }
 0xad9   :  { %8963 = vmatprep.subr.bf16.mxu1 %v16604_v15  ;;  %v16443_v15 = vcombine.low %v5337_v58, %v5341_v20  ;;  %v5573_v16 = vld [vmem:[#allocation3 + $0x9b8] sm:$0xff]  ;;  %v16811_v58 = vcombine.low %v5705_v60, %v5709_v6 }
 0xada   :  { %8921 = vmatpush2.bf16.msra.mxu0 %v16475_v22  ;;  %v8635_v22 = vpop.f32.mrf.mxu1  ;;  %v16676_v20 = vcombine.high %v5569_v0, %v5573_v16  ;;  %v5689_v17 = vld [vmem:[#allocation3 + $0xd58] sm:$0xff] }
 0xadb   :  { %8922 = vmatprep.subr.bf16.mxu0 %v16468_v54  ;;  %v5577_v54 = vld [vmem:[#allocation3 + $0x9d8] sm:$0xff] }
 0xadc   :  { %8964 = vmatpush2.bf16.msra.mxu1 %v16603_v52  ;;  %v16564_v52 = vcombine.high %v5457_v43, %v5461_v2  ;;  %v8637_v12 = vpop.f32.mrf.mxu1  ;;  %v5693_v62 = vld [vmem:[#allocation3 + $0xd78] sm:$0xff] }
 0xadd   :  { %8965 = vmatprep.subr.bf16.mxu1 %v16596_v27  ;;  %v5581_v27 = vld [vmem:[#allocation3 + $0x9f8] sm:$0xff] }
 0xade   :  { %8923 = vmatpush2.bf16.msra.mxu0 %v16467_v21  ;;  %v16563_v21 = vcombine.low %v5457_v43, %v5461_v2  ;;  %v5557_v60 = vld [vmem:[#allocation3 + $0x938] sm:$0xff] }
 0xadf   :  { %8924 = vmatprep.subr.bf16.mxu0 %v16460_v18  ;;  %v8591_v18 = vadd.f32 %v8590_v23, %v5795_v24  ;;  %v8639_v23 = vpop.f32.mrf.mxu1 }
 0xae0   :  { %8966 = vmatpush2.bf16.msra.mxu1 %v16595_v33  ;;  %v16684_v33 = vcombine.high %v5577_v54, %v5581_v27 }
 0xae1   :  { %8967 = vmatprep.subr.bf16.mxu1 %v16588_v28  ;;  %v5799_v28 = vrot.slane %v19660_v5, %v19402_v41  ;;  %v8634_v11 = vadd.f32 %v8633_v13, %v8591_v18 }
 0xae2   :  { %8925 = vmatpush2.bf16.msra.mxu0 %v16459_v32  ;;  %v5697_v32 = vld [vmem:[#allocation3 + $0xd98] sm:$0xff] }
 0xae3   :  { %8926 = vmatprep.subr.bf16.mxu0 %v16452_v30  ;;  %v16683_v30 = vcombine.low %v5577_v54, %v5581_v27  ;;  %v8593_v42 = vadd.f32 %v8592_v26, %v5799_v28  ;;  %v16796_v27 = vcombine.high %v5689_v17, %v5693_v62 }
 0xae4   :  { %8968 = vmatpush2.bf16.msra.mxu1 %v16587_v56  ;;  %v5701_v56 = vld [vmem:[#allocation3 + $0xdb8] sm:$0xff] }
 0xae5   :  { %8969 = vmatprep.subr.bf16.mxu1 %v16580_v25  ;;  %v8596_v25 = vpop.f32.mrf.mxu0  ;;  %v16804_v5 = vcombine.high %v5697_v32, %v5701_v56  ;;  %v16803_v26 = vcombine.low %v5697_v32, %v5701_v56  ;;  %v5545_v56 = vld [vmem:[#allocation3 + $0x8d8] sm:$0xff] }
 0xae6   :  { %8927 = vmatpush2.bf16.msra.mxu0 %v16451_v53  ;;  %v8595_v53 = vadd.f32 %v8594_v1, %v5795_v24  ;;  %v8597_v43 = vadd.f32 %v8596_v25, %v5799_v28  ;;  %v8636_v24 = vadd.f32 %v8635_v22, %v8593_v42  ;;  %v5681_v1 = vld [vmem:[#allocation3 + $0xd18] sm:$0xff] }
 0xae7   :  { %8928 = vmatprep.subr.bf16.mxu0 %v16444_v45  ;;  %v5565_v45 = vld [vmem:[#allocation3 + $0x978] sm:$0xff] }
 0xae8   :  { %8970 = vmatpush2.bf16.msra.mxu1 %v16579_v35  ;;  %v5561_v35 = vld [vmem:[#allocation3 + $0x958] sm:$0xff] }
 0xae9   :  { %8971 = vmatprep.subr.bf16.mxu1 %v16572_v61 }
 0xaea   :  { %8929 = vmatpush2.bf16.msra.mxu0 %v16443_v15 }
 0xaeb   :  { %8930 = vmatprep.subr.bf16.mxu0 %v16436_v50  ;;  %v16668_v50 = vcombine.high %v5561_v35, %v5565_v45 }
 0xaec   :  { %8972 = vmatpush2.bf16.msra.mxu1 %v16571_v29  ;;  %v16675_v29 = vcombine.low %v5569_v0, %v5573_v16 }
 0xaed   :  { %8973 = vmatprep.subr.bf16.mxu1 %v16564_v52  ;;  %v8638_v52 = vadd.f32 %v8637_v12, %v8595_v53 }
 0xaee   :  { %8931 = vmatpush2.bf16.msra.mxu0 %v16435_v46  ;;  %v16667_v46 = vcombine.low %v5561_v35, %v5565_v45 }
 0xaef   :  { %8986 = vmatprep.subr.bf16.mxu0 %v16684_v33 }
 0xaf0   :  { %8974 = vmatpush2.bf16.msra.mxu1 %v16563_v21  ;;  %v8640_v21 = vadd.f32 %v8639_v23, %v8597_v43  ;;  %v5541_v43 = vld [vmem:[#allocation3 + $0x8b8] sm:$0xff] }
 0xaf1   :  { %9029 = vmatprep.subr.bf16.mxu1 %v16812_v49  ;;  %v8676_v61 = vpop.f32.mrf.mxu0  ;;  %8933 = vmatmul.mubr.bf16.vlgmr.msra.gmra.mxu0 %v19612_v19  ;;  %v5553_v19 = vld [vmem:[#allocation3 + $0x918] sm:$0xff]  ;;  %v16795_v49 = vcombine.low %v5689_v17, %v5693_v62 }
 0xaf2   :  { %v8677_v2 = vadd.f32 %v8676_v61, %v8634_v11  ;;  %8987 = vmatpush1.bf16.msra.mxu0 %v16683_v30  ;;  %9018 = vmatprep.mubr.bf16.mxu0 %v19624_v39  ;;  %v16660_v0 = vcombine.high %v5553_v19, %v5557_v60  ;;  %v5549_v30 = vld [vmem:[#allocation3 + $0x8f8] sm:$0xff]  ;;  %v16659_v25 = vcombine.low %v5553_v19, %v5557_v60 }
 0xaf3   :  { %v8719_v15 = vpop.f32.mrf.mxu1  ;;  %8976 = vmatmul.mubr.bf16.vlgmr.msra.gmra.mxu1 %v19618_v51  ;;  %v8678_v13 = vpop.f32.mrf.mxu0  ;;  %8988 = vmatprep.subr.bf16.mxu0 %v16676_v20  ;;  %v5685_v51 = vld [vmem:[#allocation3 + $0xd38] sm:$0xff]  ;;  %v16652_v35 = vcombine.high %v5545_v56, %v5549_v30 }
 0xaf4   :  { %9030 = vmatpush1.bf16.msra.mxu1 %v16811_v58  ;;  %9061 = vmatprep.mubr.bf16.mxu1 %v19631_v47  ;;  %v19704_v33 = vadd.f32 %v8719_v15, %v8677_v2  ;;  %v8679_v18 = vadd.f32 %v8678_v13, %v8636_v24  ;;  %v16788_v32 = vcombine.high %v5681_v1, %v5685_v51  ;;  %v5673_v58 = vld [vmem:[#allocation3 + $0xcd8] sm:$0xff] }
 0xaf5   :  { %v8721_v54 = vpop.f32.mrf.mxu1  ;;  %9031 = vmatprep.subr.bf16.mxu1 %v16804_v5  ;;  %v8680_v6 = vpop.f32.mrf.mxu0  ;;  %v5677_v20 = vld [vmem:[#allocation3 + $0xcf8] sm:$0xff]  ;;  %v16787_v5 = vcombine.low %v5681_v1, %v5685_v51  ;;  %v16651_v13 = vcombine.low %v5545_v56, %v5549_v30 }
 0xaf6   :  { %v8681_v28 = vadd.f32 %v8680_v6, %v8638_v52  ;;  %8989 = vmatpush1.bf16.msra.mxu0 %v16675_v29  ;;  %v9074_v11 = vmax.f32 %v19704_v33, 0.0  ;;  %v19709_v42 = vadd.f32 %v8721_v54, %v8679_v18  ;;  %v16780_v17 = vcombine.high %v5673_v58, %v5677_v20  ;;  %v5537_v62 = vld [vmem:[#allocation3 + $0x898] sm:$0xff] }
 0xaf7   :  { %v8723_v22 = vpop.f32.mrf.mxu1  ;;  %v8682_v12 = vpop.f32.mrf.mxu0  ;;  %8990 = vmatprep.subr.bf16.mxu0 %v16668_v50  ;;  %v5665_v2 = vld [vmem:[#allocation3 + $0xc98] sm:$0xff]  ;;  %v16644_v50 = vcombine.high %v5537_v62, %v5541_v43  ;;  %v16643_v6 = vcombine.low %v5537_v62, %v5541_v43 }
 0xaf8   :  { %9032 = vmatpush1.bf16.msra.mxu1 %v16803_v26  ;;  %v19706_v16 = vadd.f32 %v8723_v22, %v8681_v28  ;;  %v8683_v39 = vadd.f32 %v8682_v12, %v8640_v21  ;;  %v5669_v15 = vld [vmem:[#allocation3 + $0xcb8] sm:$0xff]  ;;  %v9075_v29 = vmax.f32 %v19709_v42, 0.0  ;;  %v16779_v26 = vcombine.low %v5673_v58, %v5677_v20 }
 0xaf9   :  { %9033 = vmatprep.subr.bf16.mxu1 %v16796_v27  ;;  %v8725_v47 = vpop.f32.mrf.mxu1  ;;  %v16772_v52 = vcombine.high %v5665_v2, %v5669_v15  ;;  %v5529_v54 = vld [vmem:[#allocation3 + $0x858] sm:$0xff] }
 0xafa   :  { %v9082_v53 = vmax.f32 %v19706_v16, 0.0  ;;  %v19712_v23 = vadd.f32 %v8725_v47, %v8683_v39  ;;  %8991 = vmatpush1.bf16.msra.mxu0 %v16667_v46  ;;  %v5533_v27 = vld [vmem:[#allocation3 + $0x878] sm:$0xff]  ;;  %v16771_v46 = vcombine.low %v5665_v2, %v5669_v15 }
 0xafb   :  { %8992 = vmatprep.subr.bf16.mxu0 %v16660_v0  ;;  %v5657_v19 = vld [vmem:[#allocation3 + $0xc58] sm:$0xff]  ;;  %v16636_v1 = vcombine.high %v5529_v54, %v5533_v27  ;;  %v16635_v12 = vcombine.low %v5529_v54, %v5533_v27 }
 0xafc   :  { %9034 = vmatpush1.bf16.msra.mxu1 %v16795_v49  ;;  %v9083_v45 = vmax.f32 %v19712_v23, 0.0  ;;  %v17781_v61 = vpack.i.bf16 %v9082_v53, %v9074_v11  ;;  %v5661_v60 = vld [vmem:[#allocation3 + $0xc78] sm:$0xff] }
 0xafd   :  { %9035 = vmatprep.subr.bf16.mxu1 %v16788_v32  ;;  %v16764_v51 = vcombine.high %v5657_v19, %v5661_v60  ;;  %v5521_v21 = vld [vmem:[#allocation3 + $0x818] sm:$0xff]  ;;  %v16763_v49 = vcombine.low %v5657_v19, %v5661_v60 }
 0xafe   :  { %8993 = vmatpush1.bf16.msra.mxu0 %v16659_v25  ;;  %17782 = vrot.lane.b32.xlu1 %v17781_v61, %s19120_s30  ;;  %v17786_v24 = vpack.i.bf16 %v9083_v45, %v9075_v29  ;;  %v5525_v18 = vld [vmem:[#allocation3 + $0x838] sm:$0xff] }
 0xaff   :  { %8994 = vmatprep.subr.bf16.mxu0 %v16652_v35  ;;  %v5649_v28 = vld [vmem:[#allocation3 + $0xc18] sm:$0xff]  ;;  %v16628_v0 = vcombine.high %v5521_v21, %v5525_v18  ;;  %v16627_v25 = vcombine.low %v5521_v21, %v5525_v18 }
 0xb00   :  { %9036 = vmatpush1.bf16.msra.mxu1 %v16787_v5  ;;  %v5653_v22 = vld [vmem:[#allocation3 + $0xc38] sm:$0xff] }
 0xb01   :  { %9037 = vmatprep.subr.bf16.mxu1 %v16780_v17  ;;  %v16756_v39 = vcombine.high %v5649_v28, %v5653_v22  ;;  %v5641_v32 = vld [vmem:[#allocation3 + $0xbd8] sm:$0xff]  ;;  %v16755_v58 = vcombine.low %v5649_v28, %v5653_v22 }
 0xb02   :  { %8995 = vmatpush1.bf16.msra.mxu0 %v16651_v13  ;;  %17787 = vrot.lane.b32.xlu1 %v17786_v24, %s19120_s30  ;;  %v5645_v56 = vld [vmem:[#allocation3 + $0xbf8] sm:$0xff] }
 0xb03   :  { %8996 = vmatprep.subr.bf16.mxu0 %v16644_v50  ;;  %v5769_v30 = vld [vmem:[#allocation3 + $0xfd8] sm:$0xff]  ;;  %v16748_v20 = vcombine.high %v5641_v32, %v5645_v56  ;;  %v16747_v43 = vcombine.low %v5641_v32, %v5645_v56 }
 0xb04   :  { %9038 = vmatpush1.bf16.msra.mxu1 %v16779_v26  ;;  %v5773_v47 = vld [vmem:[#allocation3 + $0xff8] sm:$0xff] }
 0xb05   :  { %9039 = vmatprep.subr.bf16.mxu1 %v16772_v52  ;;  %v16876_v5 = vcombine.high %v5769_v30, %v5773_v47  ;;  %v5633_v35 = vld [vmem:[#allocation3 + $0xb98] sm:$0xff]  ;;  %v16875_v2 = vcombine.low %v5769_v30, %v5773_v47 }
 0xb06   :  { %8997 = vmatpush1.bf16.msra.mxu0 %v16643_v6  ;;  %v5637_v61 = vld [vmem:[#allocation3 + $0xbb8] sm:$0xff] }
 0xb07   :  { %8998 = vmatprep.subr.bf16.mxu0 %v16636_v1  ;;  %v5761_v17 = vld [vmem:[#allocation3 + $0xf98] sm:$0xff]  ;;  %v16740_v15 = vcombine.high %v5633_v35, %v5637_v61  ;;  %v16739_v54 = vcombine.low %v5633_v35, %v5637_v61 }
 0xb08   :  { %9040 = vmatpush1.bf16.msra.mxu1 %v16771_v46  ;;  %v5765_v62 = vld [vmem:[#allocation3 + $0xfb8] sm:$0xff] }
 0xb09   :  { %9041 = vmatprep.subr.bf16.mxu1 %v16764_v51  ;;  %v16868_v13 = vcombine.high %v5761_v17, %v5765_v62  ;;  %v5625_v26 = vld [vmem:[#allocation3 + $0xb58] sm:$0xff]  ;;  %v16867_v27 = vcombine.low %v5761_v17, %v5765_v62 }
 0xb0a   :  { %8999 = vmatpush1.bf16.msra.mxu0 %v16635_v12  ;;  %v5629_v50 = vld [vmem:[#allocation3 + $0xb78] sm:$0xff] }
 0xb0b   :  { %9000 = vmatprep.subr.bf16.mxu0 %v16628_v0  ;;  %v5753_v24 = vld [vmem:[#allocation3 + $0xf58] sm:$0xff]  ;;  %v16732_v19 = vcombine.high %v5625_v26, %v5629_v50  ;;  %v16731_v21 = vcombine.low %v5625_v26, %v5629_v50 }
 0xb0c   :  { %9042 = vmatpush1.bf16.msra.mxu1 %v16763_v49  ;;  %v5757_v52 = vld [vmem:[#allocation3 + $0xf78] sm:$0xff] }
 0xb0d   :  { %9043 = vmatprep.subr.bf16.mxu1 %v16756_v39  ;;  %v16860_v60 = vcombine.high %v5753_v24, %v5757_v52  ;;  %v5617_v6 = vld [vmem:[#allocation3 + $0xb18] sm:$0xff]  ;;  %v16859_v18 = vcombine.low %v5753_v24, %v5757_v52 }
 0xb0e   :  { %9001 = vmatpush1.bf16.msra.mxu0 %v16627_v25  ;;  %v5621_v46 = vld [vmem:[#allocation3 + $0xb38] sm:$0xff] }
 0xb0f   :  { %9002 = vmatprep.subr.bf16.mxu0 %v16748_v20  ;;  %v5745_v1 = vld [vmem:[#allocation3 + $0xf18] sm:$0xff]  ;;  %v16724_v28 = vcombine.high %v5617_v6, %v5621_v46  ;;  %v16723_v32 = vcombine.low %v5617_v6, %v5621_v46 }
 0xb10   :  { %9044 = vmatpush1.bf16.msra.mxu1 %v16755_v58  ;;  %v5749_v51 = vld [vmem:[#allocation3 + $0xf38] sm:$0xff] }
 0xb11   :  { %9045 = vmatprep.subr.bf16.mxu1 %v16876_v5  ;;  %v16852_v22 = vcombine.high %v5745_v1, %v5749_v51  ;;  %v5609_v12 = vld [vmem:[#allocation3 + $0xad8] sm:$0xff]  ;;  %v16851_v56 = vcombine.low %v5745_v1, %v5749_v51 }
 0xb12   :  { %9003 = vmatpush2.bf16.msra.mxu0 %v16747_v43  ;;  %v5613_v49 = vld [vmem:[#allocation3 + $0xaf8] sm:$0xff] }
 0xb13   :  { %9004 = vmatprep.subr.bf16.mxu0 %v16740_v15  ;;  %v5737_v0 = vld [vmem:[#allocation3 + $0xed8] sm:$0xff]  ;;  %v16716_v30 = vcombine.high %v5609_v12, %v5613_v49  ;;  %v16715_v35 = vcombine.low %v5609_v12, %v5613_v49 }
 0xb14   :  { %9046 = vmatpush2.bf16.msra.mxu1 %v16875_v2  ;;  %v5741_v39 = vld [vmem:[#allocation3 + $0xef8] sm:$0xff] }
 0xb15   :  { %9047 = vmatprep.subr.bf16.mxu1 %v16868_v13  ;;  %v16844_v47 = vcombine.high %v5737_v0, %v5741_v39  ;;  %v5601_v25 = vld [vmem:[#allocation3 + $0xa98] sm:$0xff]  ;;  %v16843_v61 = vcombine.low %v5737_v0, %v5741_v39 }
 0xb16   :  { %9005 = vmatpush2.bf16.msra.mxu0 %v16739_v54  ;;  %v5605_v58 = vld [vmem:[#allocation3 + $0xab8] sm:$0xff] }
 0xb17   :  { %9006 = vmatprep.subr.bf16.mxu0 %v16732_v19  ;;  %v5729_v20 = vld [vmem:[#allocation3 + $0xe98] sm:$0xff]  ;;  %v16708_v17 = vcombine.high %v5601_v25, %v5605_v58  ;;  %v16707_v26 = vcombine.low %v5601_v25, %v5605_v58 }
 0xb18   :  { %9048 = vmatpush2.bf16.msra.mxu1 %v16867_v27  ;;  %v5733_v5 = vld [vmem:[#allocation3 + $0xeb8] sm:$0xff] }
 0xb19   :  { %9049 = vmatprep.subr.bf16.mxu1 %v16860_v60  ;;  %v16836_v62 = vcombine.high %v5729_v20, %v5733_v5  ;;  %v5593_v43 = vld [vmem:[#allocation3 + $0xa58] sm:$0xff]  ;;  %v16835_v50 = vcombine.low %v5729_v20, %v5733_v5 }
 0xb1a   :  { %9007 = vmatpush2.bf16.msra.mxu0 %v16731_v21  ;;  %v5597_v2 = vld [vmem:[#allocation3 + $0xa78] sm:$0xff] }
 0xb1b   :  { %9008 = vmatprep.subr.bf16.mxu0 %v16724_v28  ;;  %v5721_v15 = vld [vmem:[#allocation3 + $0xe58] sm:$0xff]  ;;  %v16700_v24 = vcombine.high %v5593_v43, %v5597_v2  ;;  %v16699_v6 = vcombine.low %v5593_v43, %v5597_v2  ;;  %v17773_v28 = vpop.permute.xlu0 %17772 }
 0xb1c   :  { %9050 = vmatpush2.bf16.msra.mxu1 %v16859_v18  ;;  %v5725_v13 = vld [vmem:[#allocation3 + $0xe78] sm:$0xff]  ;;  %v17775_v49 = vunpack.i.h.bf16 %v17773_v28 }
 0xb1d   :  { %9051 = vmatprep.subr.bf16.mxu1 %v16852_v22  ;;  %v16828_v52 = vcombine.high %v5721_v15, %v5725_v13  ;;  %v5585_v54 = vld [vmem:[#allocation3 + $0xa18] sm:$0xff]  ;;  %v16827_v46 = vcombine.low %v5721_v15, %v5725_v13  ;;  %v17774_v22 = vunpack.i.l.bf16 %v17773_v28 }
 0xb1e   :  { %9009 = vmatpush2.bf16.msra.mxu0 %v16723_v32  ;;  %v5589_v27 = vld [vmem:[#allocation3 + $0xa38] sm:$0xff] }
 0xb1f   :  { %9010 = vmatprep.subr.bf16.mxu0 %v16716_v30  ;;  %v5713_v19 = vld [vmem:[#allocation3 + $0xe18] sm:$0xff]  ;;  %v16692_v1 = vcombine.high %v5585_v54, %v5589_v27  ;;  %v16691_v21 = vcombine.low %v5585_v54, %v5589_v27  ;;  %v9096_v0 = vmax.f32 %v9072_v55, %v17774_v22  ;;  %v17778_v32 = vpop.permute.xlu0 %17777  ;;  %v9097_v30 = vmax.f32 %v9080_v63, %v17775_v49 }
 0xb20   :  { %9052 = vmatpush2.bf16.msra.mxu1 %v16851_v56  ;;  %v5717_v60 = vld [vmem:[#allocation3 + $0xe38] sm:$0xff]  ;;  %v17780_v20 = vunpack.i.h.bf16 %v17778_v32 }
 0xb21   :  { %9053 = vmatprep.subr.bf16.mxu1 %v16844_v47  ;;  %v16820_v51 = vcombine.high %v5713_v19, %v5717_v60  ;;  %v16819_v18 = vcombine.low %v5713_v19, %v5717_v60  ;;  %v17779_v47 = vunpack.i.l.bf16 %v17778_v32  ;;  %v9098_v25 = vmax.f32 %v9096_v0, %v9073_v4 }
 0xb22   :  { %9011 = vmatpush2.bf16.msra.mxu0 %v16715_v35  ;;  %v9099_v5 = vmax.f32 %v9097_v30, %v9081_v59 }
 0xb23   :  { %9012 = vmatprep.subr.bf16.mxu0 %v16708_v17  ;;  %v9108_v3 = vmax.f32 %v9098_v25, %v17779_v47 }
 0xb24   :  { %9054 = vmatpush2.bf16.msra.mxu1 %v16843_v61  ;;  %v9109_v4 = vmax.f32 %v9099_v5, %v17780_v20 }
 0xb25   :  { %9055 = vmatprep.subr.bf16.mxu1 %v16836_v62 }
 0xb26   :  { %9013 = vmatpush2.bf16.msra.mxu0 %v16707_v26 }
 0xb27   :  { %9014 = vmatprep.subr.bf16.mxu0 %v16700_v24 }
 0xb28   :  { %9056 = vmatpush2.bf16.msra.mxu1 %v16835_v50 }
 0xb29   :  { %9057 = vmatprep.subr.bf16.mxu1 %v16828_v52 }
 0xb2a   :  { %9015 = vmatpush2.bf16.msra.mxu0 %v16699_v6 }
 0xb2b   :  { %9016 = vmatprep.subr.bf16.mxu0 %v16692_v1 }
 0xb2c   :  { %9058 = vmatpush2.bf16.msra.mxu1 %v16827_v46 }
 0xb2d   :  { %9059 = vmatprep.subr.bf16.mxu1 %v16820_v51 }
 0xb2e   :  { %9017 = vmatpush2.bf16.msra.mxu0 %v16691_v21 }
 0xb30   :  { %9060 = vmatpush2.bf16.msra.mxu1 %v16819_v18 }
 0xb31   :  { %9019 = vmatmul.mubr.bf16.vlgmr.msra.gmra.mxu0 %v19640_v14  ;;  %v8762_v12 = vpop.f32.mrf.mxu0  ;;  %v19734_v14 = vld [vmem:[#allocation26 + $0x16] sm:$0xff] }
 0xb32   :  { %v5807_v48 = vrot.slane %v19734_v14, %v19427_v9  ;;  %v9111_v9 = vmax.f32 %v9109_v4, %v9082_v53  ;;  %v5811_v5 = vrot.slane %v19734_v14, %v19424_v8 }
 0xb33   :  { %9062 = vmatmul.mubr.bf16.vlgmr.msra.gmra.mxu1 %v19646_v44  ;;  %v8805_v39 = vpop.f32.mrf.mxu1  ;;  %v8764_v56 = vpop.f32.mrf.mxu0  ;;  %v5803_v44 = vrot.slane %v19734_v14, %v19421_v7  ;;  %v9110_v7 = vmax.f32 %v9108_v3, %v9074_v11 }
 0xb34   :  { %v8765_v61 = vadd.f32 %v8764_v56, %v5807_v48 }
 0xb35   :  { %v8807_v58 = vpop.f32.mrf.mxu1  ;;  %v8766_v55 = vpop.f32.mrf.mxu0  ;;  %v8763_v63 = vadd.f32 %v8762_v12, %v5803_v44 }
 0xb36   :  { %v8767_v62 = vadd.f32 %v8766_v55, %v5803_v44  ;;  %v8808_v26 = vadd.f32 %v8807_v58, %v8765_v61 }
 0xb37   :  { %v8809_v35 = vpop.f32.mrf.mxu1  ;;  %v8768_v57 = vpop.f32.mrf.mxu0  ;;  %v8806_v17 = vadd.f32 %v8805_v39, %v8763_v63  ;;  %v5815_v63 = vrot.slane %v19734_v14, %v19430_v10 }
 0xb38   :  { %v8769_v15 = vadd.f32 %v8768_v57, %v5807_v48  ;;  %v8810_v19 = vadd.f32 %v8809_v35, %v8767_v62 }
 0xb39   :  { %v8811_v43 = vpop.f32.mrf.mxu1 }
 0xb3a   :  { %v8812_v33 = vadd.f32 %v8811_v43, %v8769_v15 }
 0xb70   :  { %v17783_v2 = vpop.permute.xlu1 %17782 }
 0xb71   :  { %v17785_v13 = vunpack.i.h.bf16 %v17783_v2  ;;  %v17784_v34 = vunpack.i.l.bf16 %v17783_v2  ;;  %v8848_v59 = vpop.f32.mrf.mxu0 }
 0xb72   :  { %v8849_v50 = vadd.f32 %v8848_v59, %v8806_v17 }
 0xb73   :  { %v8891_v24 = vpop.f32.mrf.mxu1  ;;  %v9120_v52 = vmax.f32 %v9110_v7, %v17784_v34  ;;  %v9121_v54 = vmax.f32 %v9111_v9, %v17785_v13  ;;  %v8850_v27 = vpop.f32.mrf.mxu0 }
 0xb74   :  { %v8892_v60 = vadd.f32 %v8891_v24, %v8849_v50  ;;  %v8851_v6 = vadd.f32 %v8850_v27, %v8808_v26  ;;  %v17788_v1 = vpop.permute.xlu1 %17787 }
 0xb75   :  { %v8893_v46 = vpop.f32.mrf.mxu1  ;;  %v17789_v11 = vunpack.i.l.bf16 %v17788_v1  ;;  %v9122_v16 = vmax.f32 %v9120_v52, %v9075_v29  ;;  %v8852_v53 = vpop.f32.mrf.mxu0  ;;  %v17790_v21 = vunpack.i.h.bf16 %v17788_v1  ;;  %v9123_v18 = vmax.f32 %v9121_v54, %v9083_v45 }
 0xb76   :  { %v9076_v51 = vmax.f32 %v8892_v60, 0.0  ;;  %v8853_v28 = vadd.f32 %v8852_v53, %v8810_v19  ;;  %v8894_v0 = vadd.f32 %v8893_v46, %v8851_v6 }
 0xb77   :  { %v8895_v22 = vpop.f32.mrf.mxu1  ;;  %v9132_v12 = vmax.f32 %v9122_v16, %v17789_v11  ;;  %v8854_v49 = vpop.f32.mrf.mxu0  ;;  %v9133_v47 = vmax.f32 %v9123_v18, %v17790_v21 }
 0xb78   :  { %v8896_v39 = vadd.f32 %v8895_v22, %v8853_v28  ;;  %v8855_v32 = vadd.f32 %v8854_v49, %v8812_v33  ;;  %v9077_v42 = vmax.f32 %v8894_v0, 0.0 }
 0xb79   :  { %v8897_v56 = vpop.f32.mrf.mxu1  ;;  %v9134_v30 = vmax.f32 %v9132_v12, %v9076_v51 }
 0xb7a   :  { %v9084_v25 = vmax.f32 %v8896_v39, 0.0  ;;  %v8898_v44 = vadd.f32 %v8897_v56, %v8855_v32 }
 0xb7c   :  { %v9135_v29 = vmax.f32 %v9133_v47, %v9084_v25  ;;  %v9085_v58 = vmax.f32 %v8898_v44, 0.0  ;;  %v17791_v48 = vpack.i.bf16 %v9084_v25, %v9076_v51 }
 0xb7e   :  { %17792 = vrot.lane.b32.xlu0 %v17791_v48, %s19120_s30  ;;  %v17796_v23 = vpack.i.bf16 %v9085_v58, %v9077_v42 }
 0xb80   :  { %17797 = vrot.lane.b32.xlu1 %v17796_v23, %s19120_s30 }
 0xbb1   :  { %v8934_v45 = vpop.f32.mrf.mxu0 }
 0xbb2   :  { %v8935_v61 = vadd.f32 %v8934_v45, %v5811_v5 }
 0xbb3   :  { %v8977_v55 = vpop.f32.mrf.mxu1  ;;  %v8936_v20 = vpop.f32.mrf.mxu0 }
 0xbb4   :  { %v8937_v4 = vadd.f32 %v8936_v20, %v5815_v63  ;;  %v8978_v62 = vadd.f32 %v8977_v55, %v8935_v61 }
 0xbb5   :  { %v8979_v3 = vpop.f32.mrf.mxu1  ;;  %v8938_v35 = vpop.f32.mrf.mxu0 }
 0xbb6   :  { %v8939_v43 = vadd.f32 %v8938_v35, %v5811_v5  ;;  %v8980_v34 = vadd.f32 %v8979_v3, %v8937_v4 }
 0xbb7   :  { %v8981_v57 = vpop.f32.mrf.mxu1  ;;  %v8940_v17 = vpop.f32.mrf.mxu0 }
 0xbb8   :  { %v8941_v59 = vadd.f32 %v8940_v17, %v5815_v63  ;;  %v8982_v14 = vadd.f32 %v8981_v57, %v8939_v43 }
 0xbb9   :  { %v8983_v2 = vpop.f32.mrf.mxu1 }
 0xbba   :  { %v8984_v1 = vadd.f32 %v8983_v2, %v8941_v59 }
 0xbf0   :  { %v17793_v7 = vpop.permute.xlu0 %17792 }
 0xbf1   :  { %v17795_v9 = vunpack.i.h.bf16 %v17793_v7  ;;  %v17794_v15 = vunpack.i.l.bf16 %v17793_v7  ;;  %v9020_v13 = vpop.f32.mrf.mxu0 }
 0xbf2   :  { %v9021_v26 = vadd.f32 %v9020_v13, %v8978_v62  ;;  %v17798_v50 = vpop.permute.xlu1 %17797 }
 0xbf3   :  { %v9063_v8 = vpop.f32.mrf.mxu1  ;;  %v9144_v24 = vmax.f32 %v9134_v30, %v17794_v15  ;;  %v9145_v52 = vmax.f32 %v9135_v29, %v17795_v9  ;;  %v9022_v10 = vpop.f32.mrf.mxu0  ;;  %v17799_v60 = vunpack.i.l.bf16 %v17798_v50  ;;  %v17800_v18 = vunpack.i.h.bf16 %v17798_v50 }
 0xbf4   :  { %v9064_v54 = vadd.f32 %v9063_v8, %v9021_v26  ;;  %v9023_v27 = vadd.f32 %v9022_v10, %v8980_v34 }
 0xbf5   :  { %v9065_v19 = vpop.f32.mrf.mxu1  ;;  %v9146_v6 = vmax.f32 %v9144_v24, %v9077_v42  ;;  %v9024_v46 = vpop.f32.mrf.mxu0  ;;  %v9147_v11 = vmax.f32 %v9145_v52, %v9085_v58 }
 0xbf6   :  { %v9078_v33 = vmax.f32 %v9064_v54, 0.0  ;;  %v9025_v16 = vadd.f32 %v9024_v46, %v8982_v14  ;;  %v9066_v28 = vadd.f32 %v9065_v19, %v9023_v27 }
 0xbf7   :  { %v9067_v53 = vpop.f32.mrf.mxu1  ;;  %v9156_v51 = vmax.f32 %v9146_v6, %v17799_v60  ;;  %v9026_v21 = vpop.f32.mrf.mxu0  ;;  %v9157_v39 = vmax.f32 %v9147_v11, %v17800_v18 }
 0xbf8   :  { %v9068_v22 = vadd.f32 %v9067_v53, %v9025_v16  ;;  %v9027_v12 = vadd.f32 %v9026_v21, %v8984_v1  ;;  %v9079_v30 = vmax.f32 %v9066_v28, 0.0 }
 0xbf9   :  { %v9069_v49 = vpop.f32.mrf.mxu1  ;;  %v9158_v0 = vmax.f32 %v9156_v51, %v9078_v33 }
 0xbfa   :  { %v9086_v32 = vmax.f32 %v9068_v22, 0.0  ;;  %v9070_v56 = vadd.f32 %v9069_v49, %v9027_v12 }
 0xbfc   :  { %v9159_v47 = vmax.f32 %v9157_v39, %v9086_v32  ;;  %v9087_v25 = vmax.f32 %v9070_v56, 0.0  ;;  %v17801_v44 = vpack.i.bf16 %v9086_v32, %v9078_v33 }
 0xbfe   :  { %17802 = vrot.lane.b32.xlu0 %v17801_v44, %s19120_s30  ;;  %v17806_v42 = vpack.i.bf16 %v9087_v25, %v9079_v30 }
 0xc00   :  { %17807 = vrot.lane.b32.xlu1 %v17806_v42, %s19120_s30 }
 0xc70   :  { %v17803_v29 = vpop.permute.xlu0 %17802 }
 0xc71   :  { %v17805_v58 = vunpack.i.h.bf16 %v17803_v29  ;;  %v17804_v48 = vunpack.i.l.bf16 %v17803_v29 }
 0xc72   :  { %v17808_v23 = vpop.permute.xlu1 %17807 }
 0xc73   :  { %v9168_v45 = vmax.f32 %v9158_v0, %v17804_v48  ;;  %v9169_v55 = vmax.f32 %v9159_v47, %v17805_v58  ;;  %v17810_v20 = vunpack.i.h.bf16 %v17808_v23  ;;  %v17809_v5 = vunpack.i.l.bf16 %v17808_v23 }
 0xc75   :  { %v9170_v3 = vmax.f32 %v9168_v45, %v9079_v30  ;;  %v9171_v63 = vmax.f32 %v9169_v55, %v9087_v25 }
 0xc77   :  { %v9180_v35 = vmax.f32 %v9170_v3, %v17809_v5  ;;  %v19758_v61 = vmax.f32 %v9171_v63, %v17810_v20 }
 0xc78   :  { %19117 = dma.done.wait [#allocation6 + $0x2], 32768 }
 0xc79   :  { %19118 = vsyncadd [#allocation6 + $0x2], 4294934528  ;;  %9318 = vmatprep.mubr.bf16.mxu0 %v19143_v31  ;;  %9359 = vmatprep.mubr.bf16.mxu1 %v19143_v31  ;;  %v17819_v57 = vld [vmem:[#allocation4 + $0x64] ss:$16 sps:$4 sm:$0xff]   ;;  %v17821_v4 = vld [vmem:[#allocation4 + $0x6c] ss:$16 sps:$4 sm:$0xff]   ;;  %v19762_v14 = vpack.c.bf16 %v9180_v35, %v9180_v35 }
 0xc7a   :  { %9294 = vmatprep.subr.bf16.mxu0 %v17819_v57  ;;  %v17823_v17 = vld [vmem:[#allocation4 + $0x60] ss:$16 sps:$4 sm:$0xff]   ;;  %v17824_v62 = vld [vmem:[#allocation4 + $0x68] ss:$16 sps:$4 sm:$0xff]   ;;  %9335 = vmatprep.subr.bf16.mxu1 %v17821_v4  ;;  %v17825_v43 = vld [vmem:[#allocation4 + $0x44] ss:$16 sps:$4 sm:$0xff]  }
 0xc7b   :  { %9295 = vmatpush1.bf16.msra.mxu0 %v17823_v17  ;;  %9336 = vmatpush1.bf16.msra.mxu1 %v17824_v62  ;;  %v17827_v2 = vld [vmem:[#allocation4 + $0x4c] ss:$16 sps:$4 sm:$0xff]   ;;  %v17829_v7 = vld [vmem:[#allocation4 + $0x40] ss:$16 sps:$4 sm:$0xff]   ;;  %v17830_v9 = vld [vmem:[#allocation4 + $0x48] ss:$16 sps:$4 sm:$0xff]  }
 0xc7c   :  { %9296 = vmatprep.subr.bf16.mxu0 %v17825_v43  ;;  %9337 = vmatprep.subr.bf16.mxu1 %v17827_v2  ;;  %v17831_v15 = vld [vmem:[#allocation4 + $0x24] ss:$16 sps:$4 sm:$0xff]   ;;  %v17833_v13 = vld [vmem:[#allocation4 + $0x2c] ss:$16 sps:$4 sm:$0xff]   ;;  %v17835_v34 = vld [vmem:[#allocation4 + $0x20] ss:$16 sps:$4 sm:$0xff]  }
 0xc7d   :  { %v17836_v59 = vld [vmem:[#allocation4 + $0x28] ss:$16 sps:$4 sm:$0xff]   ;;  %v17837_v26 = vld [vmem:[#allocation4 + $0x4] ss:$16 sps:$4 sm:$0xff]   ;;  %v17839_v8 = vld [vmem:[#allocation4 + $0xc] ss:$16 sps:$4 sm:$0xff]  }
 0xc7e   :  { %v17841_v50 = vld [vmem:[#allocation4] ss:$16 sps:$4 sm:$0xff]   ;;  %v17842_v24 = vld [vmem:[#allocation4 + $0x8] ss:$16 sps:$4 sm:$0xff]   ;;  %v17845_v52 = vld [vmem:[#allocation4 + $0xe4] ss:$16 sps:$4 sm:$0xff]  }
 0xc7f   :  { %9297 = vmatpush1.bf16.msra.mxu0 %v17829_v7  ;;  %9338 = vmatpush1.bf16.msra.mxu1 %v17830_v9  ;;  %v17848_v10 = vld [vmem:[#allocation4 + $0xec] ss:$16 sps:$4 sm:$0xff]   ;;  %v17843_v54 = vld [vmem:[#allocation4 + $0xe0] ss:$16 sps:$4 sm:$0xff]   ;;  %v17846_v27 = vld [vmem:[#allocation4 + $0xe8] ss:$16 sps:$4 sm:$0xff]  }
 0xc80   :  { %9298 = vmatprep.subr.bf16.mxu0 %v17831_v15  ;;  %9339 = vmatprep.subr.bf16.mxu1 %v17833_v13  ;;  %v17851_v19 = vld [vmem:[#allocation4 + $0xc4] ss:$16 sps:$4 sm:$0xff]   ;;  %v17854_v60 = vld [vmem:[#allocation4 + $0xcc] ss:$16 sps:$4 sm:$0xff]   ;;  %v17849_v6 = vld [vmem:[#allocation4 + $0xc0] ss:$16 sps:$4 sm:$0xff]  }
 0xc81   :  { %v17852_v46 = vld [vmem:[#allocation4 + $0xc8] ss:$16 sps:$4 sm:$0xff]   ;;  %v17857_v1 = vld [vmem:[#allocation4 + $0xa4] ss:$16 sps:$4 sm:$0xff]   ;;  %v17860_v33 = vld [vmem:[#allocation4 + $0xac] ss:$16 sps:$4 sm:$0xff]  }
 0xc82   :  { %v17855_v11 = vld [vmem:[#allocation4 + $0xa0] ss:$16 sps:$4 sm:$0xff]   ;;  %v17858_v16 = vld [vmem:[#allocation4 + $0xa8] ss:$16 sps:$4 sm:$0xff]   ;;  %v17863_v53 = vld [vmem:[#allocation4 + $0x84] ss:$16 sps:$4 sm:$0xff]  }
 0xc83   :  { %9299 = vmatpush1.bf16.msra.mxu0 %v17835_v34  ;;  %9340 = vmatpush1.bf16.msra.mxu1 %v17836_v59  ;;  %v17866_v51 = vld [vmem:[#allocation4 + $0x8c] ss:$16 sps:$4 sm:$0xff]   ;;  %v17861_v21 = vld [vmem:[#allocation4 + $0x80] ss:$16 sps:$4 sm:$0xff]   ;;  %v17864_v18 = vld [vmem:[#allocation4 + $0x88] ss:$16 sps:$4 sm:$0xff]  }
 0xc84   :  { %9300 = vmatprep.subr.bf16.mxu0 %v17837_v26  ;;  %9341 = vmatprep.subr.bf16.mxu1 %v17839_v8  ;;  %v17869_v28 = vld [vmem:[#allocation4 + $0x164] ss:$16 sps:$4 sm:$0xff]   ;;  %v17872_v22 = vld [vmem:[#allocation4 + $0x16c] ss:$16 sps:$4 sm:$0xff]   ;;  %v19771_v12 = vshrl.u32 %v19762_v14, 16  ;;  %v9628_v20 = vrot.slane %v19762_v14, 1 }
 0xc85   :  { %v17867_v49 = vld [vmem:[#allocation4 + $0x160] ss:$16 sps:$4 sm:$0xff]   ;;  %v17870_v0 = vld [vmem:[#allocation4 + $0x168] ss:$16 sps:$4 sm:$0xff]   ;;  %v17875_v39 = vld [vmem:[#allocation4 + $0x144] ss:$16 sps:$4 sm:$0xff]  }
 0xc86   :  { %v17878_v32 = vld [vmem:[#allocation4 + $0x14c] ss:$16 sps:$4 sm:$0xff]   ;;  %v17873_v56 = vld [vmem:[#allocation4 + $0x140] ss:$16 sps:$4 sm:$0xff]   ;;  %v17876_v30 = vld [vmem:[#allocation4 + $0x148] ss:$16 sps:$4 sm:$0xff]  }
 0xc87   :  { %9301 = vmatpush1.bf16.msra.mxu0 %v17841_v50  ;;  %9342 = vmatpush1.bf16.msra.mxu1 %v17842_v24  ;;  %v17881_v47 = vld [vmem:[#allocation4 + $0x124] ss:$16 sps:$4 sm:$0xff]   ;;  %v17884_v25 = vld [vmem:[#allocation4 + $0x12c] ss:$16 sps:$4 sm:$0xff]   ;;  %v17879_v44 = vld [vmem:[#allocation4 + $0x120] ss:$16 sps:$4 sm:$0xff]  }
 0xc88   :  { %9507 = vmatprep.subr.bf16.mxu0 %v17845_v52  ;;  %9548 = vmatprep.subr.bf16.mxu1 %v17848_v10  ;;  %v17882_v42 = vld [vmem:[#allocation4 + $0x128] ss:$16 sps:$4 sm:$0xff]   ;;  %v17887_v29 = vld [vmem:[#allocation4 + $0x104] ss:$16 sps:$4 sm:$0xff]   ;;  %v17890_v58 = vld [vmem:[#allocation4 + $0x10c] ss:$16 sps:$4 sm:$0xff]  }
 0xc89   :  { %v17885_v48 = vld [vmem:[#allocation4 + $0x100] ss:$16 sps:$4 sm:$0xff]   ;;  %v17888_v23 = vld [vmem:[#allocation4 + $0x108] ss:$16 sps:$4 sm:$0xff]   ;;  %v17893_v45 = vld [vmem:[#allocation4 + $0x1e4] ss:$16 sps:$4 sm:$0xff]  }
 0xc8a   :  { %16893 = vmatmul.mubr.msk.bf16.vlgmr.msra.gmra.mxu0 %vm366_vm4, %v19762_v14  ;;  %16894 = vmatmul.mubr.msk.bf16.vlgmr.msra.gmra.mxu1 %vm366_vm4, %v19762_v14  ;;  %v17896_v55 = vld [vmem:[#allocation4 + $0x1ec] ss:$16 sps:$4 sm:$0xff]   ;;  %v17891_v5 = vld [vmem:[#allocation4 + $0x1e0] ss:$16 sps:$4 sm:$0xff]   ;;  %v17894_v3 = vld [vmem:[#allocation4 + $0x1e8] ss:$16 sps:$4 sm:$0xff]  }
 0xc8b   :  { %9508 = vmatpush1.bf16.msra.mxu0 %v17843_v54  ;;  %9549 = vmatpush1.bf16.msra.mxu1 %v17846_v27  ;;  %v17899_v63 = vld [vmem:[#allocation4 + $0x1c4] ss:$16 sps:$4 sm:$0xff]   ;;  %v17902_v35 = vld [vmem:[#allocation4 + $0x1cc] ss:$16 sps:$4 sm:$0xff]   ;;  %v17897_v57 = vld [vmem:[#allocation4 + $0x1c0] ss:$16 sps:$4 sm:$0xff]  }
 0xc8c   :  { %9509 = vmatprep.subr.bf16.mxu0 %v17851_v19  ;;  %9550 = vmatprep.subr.bf16.mxu1 %v17854_v60  ;;  %v17900_v4 = vld [vmem:[#allocation4 + $0x1c8] ss:$16 sps:$4 sm:$0xff]   ;;  %v17905_v17 = vld [vmem:[#allocation4 + $0x1a4] ss:$16 sps:$4 sm:$0xff]   ;;  %v17908_v62 = vld [vmem:[#allocation4 + $0x1ac] ss:$16 sps:$4 sm:$0xff]  }
 0xc8d   :  { %9531 = vmatprep.mubr.bf16.mxu0 %v19143_v31  ;;  %9572 = vmatprep.mubr.bf16.mxu1 %v19143_v31  ;;  %v17903_v43 = vld [vmem:[#allocation4 + $0x1a0] ss:$16 sps:$4 sm:$0xff]   ;;  %v17906_v2 = vld [vmem:[#allocation4 + $0x1a8] ss:$16 sps:$4 sm:$0xff]   ;;  %v17911_v7 = vld [vmem:[#allocation4 + $0x184] ss:$16 sps:$4 sm:$0xff]  }
 0xc8e   :  { %v17914_v9 = vld [vmem:[#allocation4 + $0x18c] ss:$16 sps:$4 sm:$0xff]   ;;  %v17909_v15 = vld [vmem:[#allocation4 + $0x180] ss:$16 sps:$4 sm:$0xff]   ;;  %v17912_v13 = vld [vmem:[#allocation4 + $0x188] ss:$16 sps:$4 sm:$0xff]  }
 0xc8f   :  { %9510 = vmatpush1.bf16.msra.mxu0 %v17849_v6  ;;  %9551 = vmatpush1.bf16.msra.mxu1 %v17852_v46  ;;  %v17917_v34 = vld [vmem:[#allocation4 + $0x264] ss:$16 sps:$4 sm:$0xff]   ;;  %v17920_v59 = vld [vmem:[#allocation4 + $0x26c] ss:$16 sps:$4 sm:$0xff]   ;;  %v9840_v26 = vrot.slane %v19771_v12, 1  ;;  %vm15613_vm5 = vcmask 196608  }
 0xc90   :  { %9511 = vmatprep.subr.bf16.mxu0 %v17857_v1  ;;  %9552 = vmatprep.subr.bf16.mxu1 %v17860_v33  ;;  %v17915_v8 = vld [vmem:[#allocation4 + $0x260] ss:$16 sps:$4 sm:$0xff]   ;;  %v17918_v50 = vld [vmem:[#allocation4 + $0x268] ss:$16 sps:$4 sm:$0xff]   ;;  %v17923_v24 = vld [vmem:[#allocation4 + $0x244] ss:$16 sps:$4 sm:$0xff]  }
 0xc91   :  { %v17926_v52 = vld [vmem:[#allocation4 + $0x24c] ss:$16 sps:$4 sm:$0xff]   ;;  %v17921_v10 = vld [vmem:[#allocation4 + $0x240] ss:$16 sps:$4 sm:$0xff]   ;;  %v17924_v54 = vld [vmem:[#allocation4 + $0x248] ss:$16 sps:$4 sm:$0xff]  }
 0xc92   :  { %v17929_v27 = vld [vmem:[#allocation4 + $0x224] ss:$16 sps:$4 sm:$0xff]   ;;  %v17932_v19 = vld [vmem:[#allocation4 + $0x22c] ss:$16 sps:$4 sm:$0xff]   ;;  %v17927_v60 = vld [vmem:[#allocation4 + $0x220] ss:$16 sps:$4 sm:$0xff]  }
 0xc93   :  { %9512 = vmatpush1.bf16.msra.mxu0 %v17855_v11  ;;  %9553 = vmatpush1.bf16.msra.mxu1 %v17858_v16  ;;  %v17930_v6 = vld [vmem:[#allocation4 + $0x228] ss:$16 sps:$4 sm:$0xff]   ;;  %v17935_v46 = vld [vmem:[#allocation4 + $0x204] ss:$16 sps:$4 sm:$0xff]   ;;  %v17938_v1 = vld [vmem:[#allocation4 + $0x20c] ss:$16 sps:$4 sm:$0xff]  }
 0xc94   :  { %9513 = vmatprep.subr.bf16.mxu0 %v17863_v53  ;;  %9554 = vmatprep.subr.bf16.mxu1 %v17866_v51  ;;  %v17933_v33 = vld [vmem:[#allocation4 + $0x200] ss:$16 sps:$4 sm:$0xff]   ;;  %v17936_v11 = vld [vmem:[#allocation4 + $0x208] ss:$16 sps:$4 sm:$0xff]   ;;  %v17941_v16 = vld [vmem:[#allocation4 + $0x2e4] ss:$16 sps:$4 sm:$0xff]  }
 0xc95   :  { %v17944_v53 = vld [vmem:[#allocation4 + $0x2ec] ss:$16 sps:$4 sm:$0xff]   ;;  %v10052_v51 = vrot.slane %v19762_v14, 2  ;;  %s19154_s23 = smov 113   ;;  %s19155_s3 = smov 108  }
 0xc97   :  { %9514 = vmatpush1.bf16.msra.mxu0 %v17861_v21  ;;  %9555 = vmatpush1.bf16.msra.mxu1 %v17864_v18  ;;  %v17939_v21 = vld [vmem:[#allocation4 + $0x2e0] ss:$16 sps:$4 sm:$0xff]   ;;  %v17942_v18 = vld [vmem:[#allocation4 + $0x2e8] ss:$16 sps:$4 sm:$0xff]  }
 0xc98   :  { %9720 = vmatprep.subr.bf16.mxu0 %v17869_v28  ;;  %9761 = vmatprep.subr.bf16.mxu1 %v17872_v22  ;;  %v17947_v28 = vld [vmem:[#allocation4 + $0x2c4] ss:$16 sps:$4 sm:$0xff]   ;;  %v17950_v22 = vld [vmem:[#allocation4 + $0x2cc] ss:$16 sps:$4 sm:$0xff]  }
 0xc9a   :  { %16911 = vmatmul.mubr.msk.bf16.vlgmr.msra.gmra.mxu0 %vm366_vm4, %v19771_v12  ;;  %16912 = vmatmul.mubr.msk.bf16.vlgmr.msra.gmra.mxu1 %vm366_vm4, %v19771_v12 }
 0xc9b   :  { %9721 = vmatpush1.bf16.msra.mxu0 %v17867_v49  ;;  %9762 = vmatpush1.bf16.msra.mxu1 %v17870_v0  ;;  %v17945_v49 = vld [vmem:[#allocation4 + $0x2c0] ss:$16 sps:$4 sm:$0xff]   ;;  %v17948_v0 = vld [vmem:[#allocation4 + $0x2c8] ss:$16 sps:$4 sm:$0xff]  }
 0xc9c   :  { %9722 = vmatprep.subr.bf16.mxu0 %v17875_v39  ;;  %9763 = vmatprep.subr.bf16.mxu1 %v17878_v32  ;;  %v17953_v39 = vld [vmem:[#allocation4 + $0x2a4] ss:$16 sps:$4 sm:$0xff]   ;;  %v17956_v32 = vld [vmem:[#allocation4 + $0x2ac] ss:$16 sps:$4 sm:$0xff]  }
 0xc9d   :  { %9744 = vmatprep.mubr.bf16.mxu0 %v19143_v31  ;;  %9785 = vmatprep.mubr.bf16.mxu1 %v19143_v31 }
 0xc9f   :  { %9723 = vmatpush1.bf16.msra.mxu0 %v17873_v56  ;;  %9764 = vmatpush1.bf16.msra.mxu1 %v17876_v30  ;;  %v17951_v56 = vld [vmem:[#allocation4 + $0x2a0] ss:$16 sps:$4 sm:$0xff]   ;;  %v17954_v30 = vld [vmem:[#allocation4 + $0x2a8] ss:$16 sps:$4 sm:$0xff]  }
 0xca0   :  { %9724 = vmatprep.subr.bf16.mxu0 %v17881_v47  ;;  %9765 = vmatprep.subr.bf16.mxu1 %v17884_v25  ;;  %v17959_v47 = vld [vmem:[#allocation4 + $0x284] ss:$16 sps:$4 sm:$0xff]   ;;  %v17962_v25 = vld [vmem:[#allocation4 + $0x28c] ss:$16 sps:$4 sm:$0xff]  }
 0xca3   :  { %9725 = vmatpush1.bf16.msra.mxu0 %v17879_v44  ;;  %9766 = vmatpush1.bf16.msra.mxu1 %v17882_v42  ;;  %v17957_v44 = vld [vmem:[#allocation4 + $0x280] ss:$16 sps:$4 sm:$0xff]   ;;  %v17960_v42 = vld [vmem:[#allocation4 + $0x288] ss:$16 sps:$4 sm:$0xff]  }
 0xca4   :  { %9726 = vmatprep.subr.bf16.mxu0 %v17887_v29  ;;  %9767 = vmatprep.subr.bf16.mxu1 %v17890_v58  ;;  %v17965_v29 = vld [vmem:[#allocation4 + $0x364] ss:$16 sps:$4 sm:$0xff]   ;;  %v17968_v58 = vld [vmem:[#allocation4 + $0x36c] ss:$16 sps:$4 sm:$0xff]  }
 0xca7   :  { %9727 = vmatpush1.bf16.msra.mxu0 %v17885_v48  ;;  %9768 = vmatpush1.bf16.msra.mxu1 %v17888_v23  ;;  %v10264_v48 = vrot.slane %v19771_v12, 2  ;;  %v17963_v23 = vld [vmem:[#allocation4 + $0x360] ss:$16 sps:$4 sm:$0xff]  }
 0xca8   :  { %9932 = vmatprep.subr.bf16.mxu0 %v17893_v45  ;;  %9973 = vmatprep.subr.bf16.mxu1 %v17896_v55  ;;  %v17966_v45 = vld [vmem:[#allocation4 + $0x368] ss:$16 sps:$4 sm:$0xff]   ;;  %v17971_v55 = vld [vmem:[#allocation4 + $0x344] ss:$16 sps:$4 sm:$0xff]  }
 0xcaa   :  { %16929 = vmatmul.mubr.msk.bf16.vlgmr.msra.gmra.mxu0 %vm366_vm4, %v9628_v20  ;;  %16930 = vmatmul.mubr.msk.bf16.vlgmr.msra.gmra.mxu1 %vm366_vm4, %v9628_v20  ;;  %v17974_v20 = vld [vmem:[#allocation4 + $0x34c] ss:$16 sps:$4 sm:$0xff]  }
 0xcab   :  { %9933 = vmatpush1.bf16.msra.mxu0 %v17891_v5  ;;  %9974 = vmatpush1.bf16.msra.mxu1 %v17894_v3  ;;  %v17969_v5 = vld [vmem:[#allocation4 + $0x340] ss:$16 sps:$4 sm:$0xff]   ;;  %v17972_v3 = vld [vmem:[#allocation4 + $0x348] ss:$16 sps:$4 sm:$0xff]  }
 0xcac   :  { %9934 = vmatprep.subr.bf16.mxu0 %v17899_v63  ;;  %9975 = vmatprep.subr.bf16.mxu1 %v17902_v35  ;;  %v17977_v63 = vld [vmem:[#allocation4 + $0x324] ss:$16 sps:$4 sm:$0xff]   ;;  %v17980_v35 = vld [vmem:[#allocation4 + $0x32c] ss:$16 sps:$4 sm:$0xff]  }
 0xcad   :  { %9956 = vmatprep.mubr.bf16.mxu0 %v19143_v31  ;;  %9997 = vmatprep.mubr.bf16.mxu1 %v19143_v31 }
 0xcaf   :  { %9935 = vmatpush1.bf16.msra.mxu0 %v17897_v57  ;;  %9976 = vmatpush1.bf16.msra.mxu1 %v17900_v4  ;;  %v17975_v57 = vld [vmem:[#allocation4 + $0x320] ss:$16 sps:$4 sm:$0xff]   ;;  %v17978_v4 = vld [vmem:[#allocation4 + $0x328] ss:$16 sps:$4 sm:$0xff]  }
 0xcb0   :  { %9936 = vmatprep.subr.bf16.mxu0 %v17905_v17  ;;  %9977 = vmatprep.subr.bf16.mxu1 %v17908_v62  ;;  %v17983_v17 = vld [vmem:[#allocation4 + $0x304] ss:$16 sps:$4 sm:$0xff]   ;;  %v17986_v62 = vld [vmem:[#allocation4 + $0x30c] ss:$16 sps:$4 sm:$0xff]  }
 0xcb3   :  { %9937 = vmatpush1.bf16.msra.mxu0 %v17903_v43  ;;  %9978 = vmatpush1.bf16.msra.mxu1 %v17906_v2  ;;  %v17981_v43 = vld [vmem:[#allocation4 + $0x300] ss:$16 sps:$4 sm:$0xff]   ;;  %v17984_v2 = vld [vmem:[#allocation4 + $0x308] ss:$16 sps:$4 sm:$0xff]  }
 0xcb4   :  { %9938 = vmatprep.subr.bf16.mxu0 %v17911_v7  ;;  %9979 = vmatprep.subr.bf16.mxu1 %v17914_v9  ;;  %v17989_v7 = vld [vmem:[#allocation4 + $0x3e4] ss:$16 sps:$4 sm:$0xff]   ;;  %v17992_v9 = vld [vmem:[#allocation4 + $0x3ec] ss:$16 sps:$4 sm:$0xff]  }
 0xcb7   :  { %9939 = vmatpush1.bf16.msra.mxu0 %v17909_v15  ;;  %9980 = vmatpush1.bf16.msra.mxu1 %v17912_v13  ;;  %v10476_v15 = vrot.slane %v19762_v14, 3  ;;  %v17987_v13 = vld [vmem:[#allocation4 + $0x3e0] ss:$16 sps:$4 sm:$0xff]   ;;  %v18004_v14 = vld [vmem:[#allocation4 + $0x3ac] ss:$16 sps:$4 sm:$0xff]  }
 0xcb8   :  { %10144 = vmatprep.subr.bf16.mxu0 %v17917_v34  ;;  %10185 = vmatprep.subr.bf16.mxu1 %v17920_v59  ;;  %v17990_v34 = vld [vmem:[#allocation4 + $0x3e8] ss:$16 sps:$4 sm:$0xff]   ;;  %v17995_v59 = vld [vmem:[#allocation4 + $0x3c4] ss:$16 sps:$4 sm:$0xff]  }
 0xcba   :  { %16947 = vmatmul.mubr.msk.bf16.vlgmr.msra.gmra.mxu0 %vm366_vm4, %v9840_v26  ;;  %16948 = vmatmul.mubr.msk.bf16.vlgmr.msra.gmra.mxu1 %vm366_vm4, %v9840_v26  ;;  %v17998_v26 = vld [vmem:[#allocation4 + $0x3cc] ss:$16 sps:$4 sm:$0xff]  }
 0xcbb   :  { %10145 = vmatpush1.bf16.msra.mxu0 %v17915_v8  ;;  %10186 = vmatpush1.bf16.msra.mxu1 %v17918_v50  ;;  %v17993_v8 = vld [vmem:[#allocation4 + $0x3c0] ss:$16 sps:$4 sm:$0xff]   ;;  %v17996_v50 = vld [vmem:[#allocation4 + $0x3c8] ss:$16 sps:$4 sm:$0xff]  }
 0xcbc   :  { %10146 = vmatprep.subr.bf16.mxu0 %v17923_v24  ;;  %10187 = vmatprep.subr.bf16.mxu1 %v17926_v52  ;;  %v18001_v24 = vld [vmem:[#allocation4 + $0x3a4] ss:$16 sps:$4 sm:$0xff]   ;;  %v17999_v52 = vld [vmem:[#allocation4 + $0x3a0] ss:$16 sps:$4 sm:$0xff]  }
 0xcbd   :  { %10168 = vmatprep.mubr.bf16.mxu0 %v19143_v31  ;;  %10209 = vmatprep.mubr.bf16.mxu1 %v19143_v31 }
 0xcbf   :  { %10147 = vmatpush1.bf16.msra.mxu0 %v17921_v10  ;;  %10188 = vmatpush1.bf16.msra.mxu1 %v17924_v54  ;;  %v18002_v10 = vld [vmem:[#allocation4 + $0x3a8] ss:$16 sps:$4 sm:$0xff]   ;;  %v18007_v54 = vld [vmem:[#allocation4 + $0x384] ss:$16 sps:$4 sm:$0xff]  }
 0xcc0   :  { %10148 = vmatprep.subr.bf16.mxu0 %v17929_v27  ;;  %10189 = vmatprep.subr.bf16.mxu1 %v17932_v19  ;;  %v18010_v27 = vld [vmem:[#allocation4 + $0x38c] ss:$16 sps:$4 sm:$0xff]   ;;  %v18005_v19 = vld [vmem:[#allocation4 + $0x380] ss:$16 sps:$4 sm:$0xff]  }
 0xcc3   :  { %10149 = vmatpush1.bf16.msra.mxu0 %v17927_v60  ;;  %10190 = vmatpush1.bf16.msra.mxu1 %v17930_v6  ;;  %v18008_v60 = vld [vmem:[#allocation4 + $0x388] ss:$16 sps:$4 sm:$0xff]   ;;  %v18013_v6 = vld [vmem:[#allocation4 + $0x464] ss:$16 sps:$4 sm:$0xff]  }
 0xcc4   :  { %10150 = vmatprep.subr.bf16.mxu0 %v17935_v46  ;;  %10191 = vmatprep.subr.bf16.mxu1 %v17938_v1  ;;  %v18016_v46 = vld [vmem:[#allocation4 + $0x46c] ss:$16 sps:$4 sm:$0xff]   ;;  %v10688_v1 = vrot.slane %v19771_v12, 3 }
 0xcc5   :  { %v18028_v12 = vld [vmem:[#allocation4 + $0x42c] ss:$16 sps:$4 sm:$0xff]  }
 0xcc7   :  { %10151 = vmatpush1.bf16.msra.mxu0 %v17933_v33  ;;  %10192 = vmatpush1.bf16.msra.mxu1 %v17936_v11  ;;  %v18011_v33 = vld [vmem:[#allocation4 + $0x460] ss:$16 sps:$4 sm:$0xff]   ;;  %v18014_v11 = vld [vmem:[#allocation4 + $0x468] ss:$16 sps:$4 sm:$0xff]  }
 0xcc8   :  { %10356 = vmatprep.subr.bf16.mxu0 %v17941_v16  ;;  %10397 = vmatprep.subr.bf16.mxu1 %v17944_v53  ;;  %v18019_v16 = vld [vmem:[#allocation4 + $0x444] ss:$16 sps:$4 sm:$0xff]   ;;  %v18022_v53 = vld [vmem:[#allocation4 + $0x44c] ss:$16 sps:$4 sm:$0xff]  }
 0xcca   :  { %16965 = vmatmul.mubr.msk.bf16.vlgmr.msra.gmra.mxu0 %vm366_vm4, %v10052_v51  ;;  %16966 = vmatmul.mubr.msk.bf16.vlgmr.msra.gmra.mxu1 %vm366_vm4, %v10052_v51  ;;  %v18017_v51 = vld [vmem:[#allocation4 + $0x440] ss:$16 sps:$4 sm:$0xff]  }
 0xccb   :  { %10357 = vmatpush1.bf16.msra.mxu0 %v17939_v21  ;;  %10398 = vmatpush1.bf16.msra.mxu1 %v17942_v18  ;;  %v18020_v21 = vld [vmem:[#allocation4 + $0x448] ss:$16 sps:$4 sm:$0xff]   ;;  %v18025_v18 = vld [vmem:[#allocation4 + $0x424] ss:$16 sps:$4 sm:$0xff]  }
 0xccc   :  { %10358 = vmatprep.subr.bf16.mxu0 %v17947_v28  ;;  %10399 = vmatprep.subr.bf16.mxu1 %v17950_v22  ;;  %v18023_v28 = vld [vmem:[#allocation4 + $0x420] ss:$16 sps:$4 sm:$0xff]   ;;  %v18026_v22 = vld [vmem:[#allocation4 + $0x428] ss:$16 sps:$4 sm:$0xff]  }
 0xccd   :  { %10380 = vmatprep.mubr.bf16.mxu0 %v19143_v31  ;;  %10421 = vmatprep.mubr.bf16.mxu1 %v19143_v31 }
 0xccf   :  { %10359 = vmatpush1.bf16.msra.mxu0 %v17945_v49  ;;  %10400 = vmatpush1.bf16.msra.mxu1 %v17948_v0  ;;  %v18031_v49 = vld [vmem:[#allocation4 + $0x404] ss:$16 sps:$4 sm:$0xff]   ;;  %v18034_v0 = vld [vmem:[#allocation4 + $0x40c] ss:$16 sps:$4 sm:$0xff]  }
 0xcd0   :  { %10360 = vmatprep.subr.bf16.mxu0 %v17953_v39  ;;  %10401 = vmatprep.subr.bf16.mxu1 %v17956_v32  ;;  %v18029_v39 = vld [vmem:[#allocation4 + $0x400] ss:$16 sps:$4 sm:$0xff]   ;;  %v18032_v32 = vld [vmem:[#allocation4 + $0x408] ss:$16 sps:$4 sm:$0xff]  }
 0xcd3   :  { %10361 = vmatpush1.bf16.msra.mxu0 %v17951_v56  ;;  %10402 = vmatpush1.bf16.msra.mxu1 %v17954_v30  ;;  %v18037_v56 = vld [vmem:[#allocation4 + $0x4e4] ss:$16 sps:$4 sm:$0xff]   ;;  %v18040_v30 = vld [vmem:[#allocation4 + $0x4ec] ss:$16 sps:$4 sm:$0xff]  }
 0xcd4   :  { %10362 = vmatprep.subr.bf16.mxu0 %v17959_v47  ;;  %10403 = vmatprep.subr.bf16.mxu1 %v17962_v25  ;;  %v19811_v47 = vpack.c.bf16 %v19758_v61, %v19758_v61  ;;  %v18035_v25 = vld [vmem:[#allocation4 + $0x4e0] ss:$16 sps:$4 sm:$0xff]   ;;  %v18049_v61 = vld [vmem:[#allocation4 + $0x4a4] ss:$16 sps:$4 sm:$0xff]  }
 0xcd7   :  { %10363 = vmatpush1.bf16.msra.mxu0 %v17957_v44  ;;  %10404 = vmatpush1.bf16.msra.mxu1 %v17960_v42  ;;  %v18038_v44 = vld [vmem:[#allocation4 + $0x4e8] ss:$16 sps:$4 sm:$0xff]   ;;  %v18043_v42 = vld [vmem:[#allocation4 + $0x4c4] ss:$16 sps:$4 sm:$0xff]  }
 0xcd8   :  { %10568 = vmatprep.subr.bf16.mxu0 %v17965_v29  ;;  %10609 = vmatprep.subr.bf16.mxu1 %v17968_v58  ;;  %v18046_v29 = vld [vmem:[#allocation4 + $0x4cc] ss:$16 sps:$4 sm:$0xff]   ;;  %v18041_v58 = vld [vmem:[#allocation4 + $0x4c0] ss:$16 sps:$4 sm:$0xff]  }
 0xcda   :  { %16983 = vmatmul.mubr.msk.bf16.vlgmr.msra.gmra.mxu0 %vm366_vm4, %v10264_v48  ;;  %16984 = vmatmul.mubr.msk.bf16.vlgmr.msra.gmra.mxu1 %vm366_vm4, %v10264_v48  ;;  %v18044_v48 = vld [vmem:[#allocation4 + $0x4c8] ss:$16 sps:$4 sm:$0xff]  }
 0xcdb   :  { %10569 = vmatpush1.bf16.msra.mxu0 %v17963_v23  ;;  %10610 = vmatpush1.bf16.msra.mxu1 %v17966_v45  ;;  %v18052_v23 = vld [vmem:[#allocation4 + $0x4ac] ss:$16 sps:$4 sm:$0xff]   ;;  %v18047_v45 = vld [vmem:[#allocation4 + $0x4a0] ss:$16 sps:$4 sm:$0xff]  }
 0xcdc   :  { %10570 = vmatprep.subr.bf16.mxu0 %v17971_v55  ;;  %10611 = vmatprep.subr.bf16.mxu1 %v17974_v20  ;;  %v18050_v55 = vld [vmem:[#allocation4 + $0x4a8] ss:$16 sps:$4 sm:$0xff]   ;;  %v18055_v20 = vld [vmem:[#allocation4 + $0x484] ss:$16 sps:$4 sm:$0xff]  }
 0xcdd   :  { %10592 = vmatprep.mubr.bf16.mxu0 %v19143_v31  ;;  %10633 = vmatprep.mubr.bf16.mxu1 %v19143_v31 }
 0xcdf   :  { %10571 = vmatpush1.bf16.msra.mxu0 %v17969_v5  ;;  %10612 = vmatpush1.bf16.msra.mxu1 %v17972_v3  ;;  %v18058_v5 = vld [vmem:[#allocation4 + $0x48c] ss:$16 sps:$4 sm:$0xff]   ;;  %v18053_v3 = vld [vmem:[#allocation4 + $0x480] ss:$16 sps:$4 sm:$0xff]  }
 0xce0   :  { %10572 = vmatprep.subr.bf16.mxu0 %v17977_v63  ;;  %10613 = vmatprep.subr.bf16.mxu1 %v17980_v35  ;;  %v18056_v63 = vld [vmem:[#allocation4 + $0x488] ss:$16 sps:$4 sm:$0xff]   ;;  %v18061_v35 = vld [vmem:[#allocation4 + $0x564] ss:$16 sps:$4 sm:$0xff]  }
 0xce3   :  { %10573 = vmatpush1.bf16.msra.mxu0 %v17975_v57  ;;  %10614 = vmatpush1.bf16.msra.mxu1 %v17978_v4  ;;  %v18064_v57 = vld [vmem:[#allocation4 + $0x56c] ss:$16 sps:$4 sm:$0xff]   ;;  %v19820_v4 = vshrl.u32 %v19811_v47, 16 }
 0xce4   :  { %10574 = vmatprep.subr.bf16.mxu0 %v17983_v17  ;;  %10615 = vmatprep.subr.bf16.mxu1 %v17986_v62  ;;  %v18059_v17 = vld [vmem:[#allocation4 + $0x560] ss:$16 sps:$4 sm:$0xff]   ;;  %v18062_v62 = vld [vmem:[#allocation4 + $0x568] ss:$16 sps:$4 sm:$0xff]  }
 0xce7   :  { %10575 = vmatpush1.bf16.msra.mxu0 %v17981_v43  ;;  %10616 = vmatpush1.bf16.msra.mxu1 %v17984_v2  ;;  %v18067_v43 = vld [vmem:[#allocation4 + $0x544] ss:$16 sps:$4 sm:$0xff]   ;;  %v18070_v2 = vld [vmem:[#allocation4 + $0x54c] ss:$16 sps:$4 sm:$0xff]  }
 0xce8   :  { %10780 = vmatprep.subr.bf16.mxu0 %v17989_v7  ;;  %10821 = vmatprep.subr.bf16.mxu1 %v17992_v9  ;;  %v18065_v7 = vld [vmem:[#allocation4 + $0x540] ss:$16 sps:$4 sm:$0xff]   ;;  %v18068_v9 = vld [vmem:[#allocation4 + $0x548] ss:$16 sps:$4 sm:$0xff]  }
 0xcea   :  { %17001 = vmatmul.mubr.msk.bf16.vlgmr.msra.gmra.mxu0 %vm366_vm4, %v10476_v15  ;;  %17002 = vmatmul.mubr.msk.bf16.vlgmr.msra.gmra.mxu1 %vm366_vm4, %v10476_v15  ;;  %v18073_v15 = vld [vmem:[#allocation4 + $0x524] ss:$16 sps:$4 sm:$0xff]  }
 0xceb   :  { %10781 = vmatpush1.bf16.msra.mxu0 %v17987_v13  ;;  %10822 = vmatpush1.bf16.msra.mxu1 %v17990_v34  ;;  %v18076_v13 = vld [vmem:[#allocation4 + $0x52c] ss:$16 sps:$4 sm:$0xff]   ;;  %v18071_v34 = vld [vmem:[#allocation4 + $0x520] ss:$16 sps:$4 sm:$0xff]  }
 0xcec   :  { %10782 = vmatprep.subr.bf16.mxu0 %v17995_v59  ;;  %10823 = vmatprep.subr.bf16.mxu1 %v17998_v26  ;;  %v18074_v59 = vld [vmem:[#allocation4 + $0x528] ss:$16 sps:$4 sm:$0xff]   ;;  %v18079_v26 = vld [vmem:[#allocation4 + $0x504] ss:$16 sps:$4 sm:$0xff]  }
 0xced   :  { %10804 = vmatprep.mubr.bf16.mxu0 %v19143_v31  ;;  %10845 = vmatprep.mubr.bf16.mxu1 %v19143_v31 }
 0xcef   :  { %10783 = vmatpush1.bf16.msra.mxu0 %v17993_v8  ;;  %10824 = vmatpush1.bf16.msra.mxu1 %v17996_v50  ;;  %v18082_v8 = vld [vmem:[#allocation4 + $0x50c] ss:$16 sps:$4 sm:$0xff]   ;;  %v18077_v50 = vld [vmem:[#allocation4 + $0x500] ss:$16 sps:$4 sm:$0xff]  }
 0xcf0   :  { %10784 = vmatprep.subr.bf16.mxu0 %v18001_v24  ;;  %10825 = vmatprep.subr.bf16.mxu1 %v18004_v14  ;;  %v18080_v24 = vld [vmem:[#allocation4 + $0x508] ss:$16 sps:$4 sm:$0xff]   ;;  %v18085_v14 = vld [vmem:[#allocation4 + $0x5e4] ss:$16 sps:$4 sm:$0xff]  }
 0xcf3   :  { %10785 = vmatpush1.bf16.msra.mxu0 %v17999_v52  ;;  %10826 = vmatpush1.bf16.msra.mxu1 %v18002_v10  ;;  %v18088_v52 = vld [vmem:[#allocation4 + $0x5ec] ss:$16 sps:$4 sm:$0xff]   ;;  %v18083_v10 = vld [vmem:[#allocation4 + $0x5e0] ss:$16 sps:$4 sm:$0xff]  }
 0xcf4   :  { %10786 = vmatprep.subr.bf16.mxu0 %v18007_v54  ;;  %10827 = vmatprep.subr.bf16.mxu1 %v18010_v27  ;;  %v18086_v54 = vld [vmem:[#allocation4 + $0x5e8] ss:$16 sps:$4 sm:$0xff]   ;;  %v11326_v27 = vrot.slane %v19811_v47, 1 }
 0xcf7   :  { %10787 = vmatpush1.bf16.msra.mxu0 %v18005_v19  ;;  %10828 = vmatpush1.bf16.msra.mxu1 %v18008_v60  ;;  %v18091_v19 = vld [vmem:[#allocation4 + $0x5c4] ss:$16 sps:$4 sm:$0xff]   ;;  %v18094_v60 = vld [vmem:[#allocation4 + $0x5cc] ss:$16 sps:$4 sm:$0xff]  }
 0xcf8   :  { %10992 = vmatprep.subr.bf16.mxu0 %v18013_v6  ;;  %11033 = vmatprep.subr.bf16.mxu1 %v18016_v46  ;;  %v18089_v6 = vld [vmem:[#allocation4 + $0x5c0] ss:$16 sps:$4 sm:$0xff]   ;;  %v18092_v46 = vld [vmem:[#allocation4 + $0x5c8] ss:$16 sps:$4 sm:$0xff]  }
 0xcfa   :  { %17019 = vmatmul.mubr.msk.bf16.vlgmr.msra.gmra.mxu0 %vm366_vm4, %v10688_v1  ;;  %17020 = vmatmul.mubr.msk.bf16.vlgmr.msra.gmra.mxu1 %vm366_vm4, %v10688_v1  ;;  %v18097_v1 = vld [vmem:[#allocation4 + $0x5a4] ss:$16 sps:$4 sm:$0xff]  }
 0xcfb   :  { %10993 = vmatpush1.bf16.msra.mxu0 %v18011_v33  ;;  %11034 = vmatpush1.bf16.msra.mxu1 %v18014_v11  ;;  %v18100_v33 = vld [vmem:[#allocation4 + $0x5ac] ss:$16 sps:$4 sm:$0xff]   ;;  %v18095_v11 = vld [vmem:[#allocation4 + $0x5a0] ss:$16 sps:$4 sm:$0xff]  }
 0xcfc   :  { %10994 = vmatprep.subr.bf16.mxu0 %v18019_v16  ;;  %11035 = vmatprep.subr.bf16.mxu1 %v18022_v53  ;;  %v18098_v16 = vld [vmem:[#allocation4 + $0x5a8] ss:$16 sps:$4 sm:$0xff]   ;;  %v18103_v53 = vld [vmem:[#allocation4 + $0x584] ss:$16 sps:$4 sm:$0xff]  }
 0xcfd   :  { %11016 = vmatprep.mubr.bf16.mxu0 %v19143_v31  ;;  %11057 = vmatprep.mubr.bf16.mxu1 %v19143_v31 }
 0xcff   :  { %10995 = vmatpush1.bf16.msra.mxu0 %v18017_v51  ;;  %11036 = vmatpush1.bf16.msra.mxu1 %v18020_v21  ;;  %v18106_v51 = vld [vmem:[#allocation4 + $0x58c] ss:$16 sps:$4 sm:$0xff]   ;;  %v18101_v21 = vld [vmem:[#allocation4 + $0x580] ss:$16 sps:$4 sm:$0xff]  }
 0xd00   :  { %10996 = vmatprep.subr.bf16.mxu0 %v18025_v18  ;;  %11037 = vmatprep.subr.bf16.mxu1 %v18028_v12  ;;  %v18104_v18 = vld [vmem:[#allocation4 + $0x588] ss:$16 sps:$4 sm:$0xff]   ;;  %v18109_v12 = vld [vmem:[#allocation4 + $0x664] ss:$16 sps:$4 sm:$0xff]  }
 0xd03   :  { %10997 = vmatpush1.bf16.msra.mxu0 %v18023_v28  ;;  %11038 = vmatpush1.bf16.msra.mxu1 %v18026_v22  ;;  %v18112_v28 = vld [vmem:[#allocation4 + $0x66c] ss:$16 sps:$4 sm:$0xff]   ;;  %v18107_v22 = vld [vmem:[#allocation4 + $0x660] ss:$16 sps:$4 sm:$0xff]  }
 0xd04   :  { %10998 = vmatprep.subr.bf16.mxu0 %v18031_v49  ;;  %11039 = vmatprep.subr.bf16.mxu1 %v18034_v0  ;;  %v18110_v49 = vld [vmem:[#allocation4 + $0x668] ss:$16 sps:$4 sm:$0xff]   ;;  %v11538_v0 = vrot.slane %v19820_v4, 1 }
 0xd07   :  { %10999 = vmatpush1.bf16.msra.mxu0 %v18029_v39  ;;  %11040 = vmatpush1.bf16.msra.mxu1 %v18032_v32  ;;  %v18115_v39 = vld [vmem:[#allocation4 + $0x644] ss:$16 sps:$4 sm:$0xff]   ;;  %v18118_v32 = vld [vmem:[#allocation4 + $0x64c] ss:$16 sps:$4 sm:$0xff]  }
 0xd08   :  { %11205 = vmatprep.subr.bf16.mxu0 %v18037_v56  ;;  %11246 = vmatprep.subr.bf16.mxu1 %v18040_v30  ;;  %v18113_v56 = vld [vmem:[#allocation4 + $0x640] ss:$16 sps:$4 sm:$0xff]   ;;  %v18116_v30 = vld [vmem:[#allocation4 + $0x648] ss:$16 sps:$4 sm:$0xff]  }
 0xd0a   :  { %17037 = vmatmul.mubr.msk.bf16.vlgmr.msra.gmra.mxu0 %vm366_vm4, %v19811_v47  ;;  %17038 = vmatmul.mubr.msk.bf16.vlgmr.msra.gmra.mxu1 %vm366_vm4, %v19811_v47 }
 0xd0b   :  { %11206 = vmatpush1.bf16.msra.mxu0 %v18035_v25  ;;  %11247 = vmatpush1.bf16.msra.mxu1 %v18038_v44  ;;  %v18121_v25 = vld [vmem:[#allocation4 + $0x624] ss:$16 sps:$4 sm:$0xff]   ;;  %v18124_v44 = vld [vmem:[#allocation4 + $0x62c] ss:$16 sps:$4 sm:$0xff]  }
 0xd0c   :  { %11207 = vmatprep.subr.bf16.mxu0 %v18043_v42  ;;  %11248 = vmatprep.subr.bf16.mxu1 %v18046_v29  ;;  %v18119_v42 = vld [vmem:[#allocation4 + $0x620] ss:$16 sps:$4 sm:$0xff]   ;;  %v18122_v29 = vld [vmem:[#allocation4 + $0x628] ss:$16 sps:$4 sm:$0xff]  }
 0xd0d   :  { %11229 = vmatprep.mubr.bf16.mxu0 %v19143_v31  ;;  %11270 = vmatprep.mubr.bf16.mxu1 %v19143_v31 }
 0xd0f   :  { %11208 = vmatpush1.bf16.msra.mxu0 %v18041_v58  ;;  %11249 = vmatpush1.bf16.msra.mxu1 %v18044_v48  ;;  %v18127_v58 = vld [vmem:[#allocation4 + $0x604] ss:$16 sps:$4 sm:$0xff]   ;;  %v18130_v48 = vld [vmem:[#allocation4 + $0x60c] ss:$16 sps:$4 sm:$0xff]  }
 0xd10   :  { %11209 = vmatprep.subr.bf16.mxu0 %v18049_v61  ;;  %11250 = vmatprep.subr.bf16.mxu1 %v18052_v23  ;;  %v18125_v61 = vld [vmem:[#allocation4 + $0x600] ss:$16 sps:$4 sm:$0xff]   ;;  %v18128_v23 = vld [vmem:[#allocation4 + $0x608] ss:$16 sps:$4 sm:$0xff]  }
 0xd13   :  { %11210 = vmatpush1.bf16.msra.mxu0 %v18047_v45  ;;  %11251 = vmatpush1.bf16.msra.mxu1 %v18050_v55  ;;  %v18133_v45 = vld [vmem:[#allocation4 + $0x6e4] ss:$16 sps:$4 sm:$0xff]   ;;  %v18136_v55 = vld [vmem:[#allocation4 + $0x6ec] ss:$16 sps:$4 sm:$0xff]  }
 0xd14   :  { %11211 = vmatprep.subr.bf16.mxu0 %v18055_v20  ;;  %11252 = vmatprep.subr.bf16.mxu1 %v18058_v5  ;;  %v19147_v20 = vmov 1966171168  }
 0xd15   :  { %v9375_v5 = vunpack.c.l.s4 %v19147_v20 }
 0xd17   :  { %11212 = vmatpush1.bf16.msra.mxu0 %v18053_v3  ;;  %11253 = vmatpush1.bf16.msra.mxu1 %v18056_v63  ;;  %v18131_v3 = vld [vmem:[#allocation4 + $0x6e0] ss:$16 sps:$4 sm:$0xff]   ;;  %v18134_v63 = vld [vmem:[#allocation4 + $0x6e8] ss:$16 sps:$4 sm:$0xff]  }
 0xd18   :  { %11418 = vmatprep.subr.bf16.mxu0 %v18061_v35  ;;  %11459 = vmatprep.subr.bf16.mxu1 %v18064_v57  ;;  %v11750_v35 = vrot.slane %v19811_v47, 2  ;;  %v18139_v57 = vld [vmem:[#allocation4 + $0x6c4] ss:$16 sps:$4 sm:$0xff]  }
 0xd1a   :  { %17055 = vmatmul.mubr.msk.bf16.vlgmr.msra.gmra.mxu0 %vm366_vm4, %v19820_v4  ;;  %17056 = vmatmul.mubr.msk.bf16.vlgmr.msra.gmra.mxu1 %vm366_vm4, %v19820_v4 }
 0xd1b   :  { %11419 = vmatpush1.bf16.msra.mxu0 %v18059_v17  ;;  %11460 = vmatpush1.bf16.msra.mxu1 %v18062_v62  ;;  %v18142_v17 = vld [vmem:[#allocation4 + $0x6cc] ss:$16 sps:$4 sm:$0xff]   ;;  %v9376_v62 = vunpack.c.0.s8 %v9375_v5 }
 0xd1c   :  { %11420 = vmatprep.subr.bf16.mxu0 %v18067_v43  ;;  %11461 = vmatprep.subr.bf16.mxu1 %v18070_v2  ;;  %v18137_v43 = vld [vmem:[#allocation4 + $0x6c0] ss:$16 sps:$4 sm:$0xff]   ;;  %v18140_v2 = vld [vmem:[#allocation4 + $0x6c8] ss:$16 sps:$4 sm:$0xff]  }
 0xd1d   :  { %11442 = vmatprep.mubr.bf16.mxu0 %v19143_v31  ;;  %11483 = vmatprep.mubr.bf16.mxu1 %v19143_v31 }
 0xd1f   :  { %11421 = vmatpush1.bf16.msra.mxu0 %v18065_v7  ;;  %11462 = vmatpush1.bf16.msra.mxu1 %v18068_v9 }
 0xd20   :  { %11422 = vmatprep.subr.bf16.mxu0 %v18073_v15  ;;  %11463 = vmatprep.subr.bf16.mxu1 %v18076_v13  ;;  %v18145_v15 = vld [vmem:[#allocation4 + $0x6a4] ss:$16 sps:$4 sm:$0xff]   ;;  %v18148_v13 = vld [vmem:[#allocation4 + $0x6ac] ss:$16 sps:$4 sm:$0xff]  }
 0xd23   :  { %11423 = vmatpush1.bf16.msra.mxu0 %v18071_v34  ;;  %11464 = vmatpush1.bf16.msra.mxu1 %v18074_v59  ;;  %v19842_v34 = vsub.s32 %v9376_v62, %v19390_v36  ;;  %v18181_v62 = vld [vmem:[#allocation4 + $0x7e4] ss:$16 sps:$4 sm:$0xff]  }
 0xd24   :  { %11424 = vmatprep.subr.bf16.mxu0 %v18079_v26  ;;  %11465 = vmatprep.subr.bf16.mxu1 %v18082_v8 }
 0xd27   :  { %11425 = vmatpush1.bf16.msra.mxu0 %v18077_v50  ;;  %11466 = vmatpush1.bf16.msra.mxu1 %v18080_v24  ;;  %v18143_v24 = vld [vmem:[#allocation4 + $0x6a0] ss:$16 sps:$4 sm:$0xff]  }
 0xd28   :  { %11630 = vmatprep.subr.bf16.mxu0 %v18085_v14  ;;  %11671 = vmatprep.subr.bf16.mxu1 %v18088_v52  ;;  %v18146_v14 = vld [vmem:[#allocation4 + $0x6a8] ss:$16 sps:$4 sm:$0xff]  }
 0xd2a   :  { %17073 = vmatmul.mubr.msk.bf16.vlgmr.msra.gmra.mxu0 %vm366_vm4, %v11326_v27  ;;  %17074 = vmatmul.mubr.msk.bf16.vlgmr.msra.gmra.mxu1 %vm366_vm4, %v11326_v27  ;;  %v18154_v27 = vld [vmem:[#allocation4 + $0x68c] ss:$16 sps:$4 sm:$0xff]  }
 0xd2b   :  { %11631 = vmatpush1.bf16.msra.mxu0 %v18083_v10  ;;  %11672 = vmatpush1.bf16.msra.mxu1 %v18086_v54  ;;  %v18151_v54 = vld [vmem:[#allocation4 + $0x684] ss:$16 sps:$4 sm:$0xff]  }
 0xd2c   :  { %11632 = vmatprep.subr.bf16.mxu0 %v18091_v19  ;;  %11673 = vmatprep.subr.bf16.mxu1 %v18094_v60 }
 0xd2d   :  { %11654 = vmatprep.mubr.bf16.mxu0 %v19143_v31  ;;  %11695 = vmatprep.mubr.bf16.mxu1 %v19143_v31 }
 0xd2f   :  { %11633 = vmatpush1.bf16.msra.mxu0 %v18089_v6  ;;  %11674 = vmatpush1.bf16.msra.mxu1 %v18092_v46 }
 0xd30   :  { %11634 = vmatprep.subr.bf16.mxu0 %v18097_v1  ;;  %11675 = vmatprep.subr.bf16.mxu1 %v18100_v33  ;;  %v18149_v1 = vld [vmem:[#allocation4 + $0x680] ss:$16 sps:$4 sm:$0xff]   ;;  %v18152_v33 = vld [vmem:[#allocation4 + $0x688] ss:$16 sps:$4 sm:$0xff]  }
 0xd33   :  { %11635 = vmatpush1.bf16.msra.mxu0 %v18095_v11  ;;  %11676 = vmatpush1.bf16.msra.mxu1 %v18098_v16  ;;  %v18157_v11 = vld [vmem:[#allocation4 + $0x764] ss:$16 sps:$4 sm:$0xff]   ;;  %v18160_v16 = vld [vmem:[#allocation4 + $0x76c] ss:$16 sps:$4 sm:$0xff]  }
 0xd34   :  { %11636 = vmatprep.subr.bf16.mxu0 %v18103_v53  ;;  %11677 = vmatprep.subr.bf16.mxu1 %v18106_v51  ;;  %v18155_v53 = vld [vmem:[#allocation4 + $0x760] ss:$16 sps:$4 sm:$0xff]   ;;  %v18158_v51 = vld [vmem:[#allocation4 + $0x768] ss:$16 sps:$4 sm:$0xff]  }
 0xd37   :  { %11637 = vmatpush1.bf16.msra.mxu0 %v18101_v21  ;;  %11678 = vmatpush1.bf16.msra.mxu1 %v18104_v18  ;;  %v11962_v21 = vrot.slane %v19820_v4, 2  ;;  %v18163_v18 = vld [vmem:[#allocation4 + $0x744] ss:$16 sps:$4 sm:$0xff]  }
 0xd38   :  { %11842 = vmatprep.subr.bf16.mxu0 %v18109_v12  ;;  %11883 = vmatprep.subr.bf16.mxu1 %v18112_v28  ;;  %v18166_v12 = vld [vmem:[#allocation4 + $0x74c] ss:$16 sps:$4 sm:$0xff]   ;;  %v18161_v28 = vld [vmem:[#allocation4 + $0x740] ss:$16 sps:$4 sm:$0xff]  }
 0xd3a   :  { %17091 = vmatmul.mubr.msk.bf16.vlgmr.msra.gmra.mxu0 %vm366_vm4, %v11538_v0  ;;  %17092 = vmatmul.mubr.msk.bf16.vlgmr.msra.gmra.mxu1 %vm366_vm4, %v11538_v0 }
 0xd3b   :  { %11843 = vmatpush1.bf16.msra.mxu0 %v18107_v22  ;;  %11884 = vmatpush1.bf16.msra.mxu1 %v18110_v49  ;;  %v18164_v22 = vld [vmem:[#allocation4 + $0x748] ss:$16 sps:$4 sm:$0xff]  }
 0xd3c   :  { %11844 = vmatprep.subr.bf16.mxu0 %v18115_v39  ;;  %11885 = vmatprep.subr.bf16.mxu1 %v18118_v32  ;;  %v18169_v39 = vld [vmem:[#allocation4 + $0x724] ss:$16 sps:$4 sm:$0xff]   ;;  %v18172_v32 = vld [vmem:[#allocation4 + $0x72c] ss:$16 sps:$4 sm:$0xff]  }
 0xd3d   :  { %11866 = vmatprep.mubr.bf16.mxu0 %v19143_v31  ;;  %11907 = vmatprep.mubr.bf16.mxu1 %v19143_v31 }
 0xd3f   :  { %11845 = vmatpush1.bf16.msra.mxu0 %v18113_v56  ;;  %11886 = vmatpush1.bf16.msra.mxu1 %v18116_v30 }
 0xd40   :  { %11846 = vmatprep.subr.bf16.mxu0 %v18121_v25  ;;  %11887 = vmatprep.subr.bf16.mxu1 %v18124_v44 }
 0xd43   :  { %11847 = vmatpush1.bf16.msra.mxu0 %v18119_v42  ;;  %11888 = vmatpush1.bf16.msra.mxu1 %v18122_v29  ;;  %v18167_v42 = vld [vmem:[#allocation4 + $0x720] ss:$16 sps:$4 sm:$0xff]   ;;  %v18170_v29 = vld [vmem:[#allocation4 + $0x728] ss:$16 sps:$4 sm:$0xff]  }
 0xd44   :  { %11848 = vmatprep.subr.bf16.mxu0 %v18127_v58  ;;  %11889 = vmatprep.subr.bf16.mxu1 %v18130_v48  ;;  %v9185_v58 = vld [vmem:[#allocation26 + $0x1e] sm:$0xf] }
 0xd47   :  { %11849 = vmatpush1.bf16.msra.mxu0 %v18125_v61  ;;  %11890 = vmatpush1.bf16.msra.mxu1 %v18128_v23  ;;  %v18175_v23 = vld [vmem:[#allocation4 + $0x704] ss:$16 sps:$4 sm:$0xff]  }
 0xd48   :  { %12054 = vmatprep.subr.bf16.mxu0 %v18133_v45  ;;  %12095 = vmatprep.subr.bf16.mxu1 %v18136_v55  ;;  %v18178_v45 = vld [vmem:[#allocation4 + $0x70c] ss:$16 sps:$4 sm:$0xff]  }
 0xd4a   :  { %v9320_v7 = vpop.f32.mrf.mxu0  ;;  %v9361_v9 = vpop.f32.mrf.mxu1  ;;  %17109 = vmatmul.mubr.msk.bf16.vlgmr.msra.gmra.mxu0 %vm366_vm4, %v11750_v35  ;;  %17110 = vmatmul.mubr.msk.bf16.vlgmr.msra.gmra.mxu1 %vm366_vm4, %v11750_v35 }
 0xd4b   :  { %12055 = vmatpush1.bf16.msra.mxu0 %v18131_v3  ;;  %12096 = vmatpush1.bf16.msra.mxu1 %v18134_v63 }
 0xd4c   :  { %v9322_v59 = vpop.f32.mrf.mxu0  ;;  %v9363_v26 = vpop.f32.mrf.mxu1  ;;  %12056 = vmatprep.subr.bf16.mxu0 %v18139_v57  ;;  %12097 = vmatprep.subr.bf16.mxu1 %v18142_v17  ;;  %v18173_v57 = vld [vmem:[#allocation4 + $0x700] ss:$16 sps:$4 sm:$0xff]   ;;  %v18176_v17 = vld [vmem:[#allocation4 + $0x708] ss:$16 sps:$4 sm:$0xff]  }
 0xd4d   :  { %v9372_v8 = vcombine.low %v9320_v7, %v9322_v59  ;;  %v9373_v50 = vcombine.low %v9361_v9, %v9363_v26  ;;  %12078 = vmatprep.mubr.bf16.mxu0 %v19143_v31  ;;  %12119 = vmatprep.mubr.bf16.mxu1 %v19143_v31  ;;  %v12174_v59 = vrot.slane %v19811_v47, 3  ;;  %v18187_v26 = vld [vmem:[#allocation4 + $0x7c4] ss:$16 sps:$4 sm:$0xff]  }
 0xd4e   :  { %v9324_v52 = vpop.f32.mrf.mxu0  ;;  %v9365_v10 = vpop.f32.mrf.mxu1 }
 0xd4f   :  { %v9380_v19 = vrot.slane %v9372_v8, %v19842_v34  ;;  %v9387_v36 = vrot.slane %v9373_v50, %v19842_v34  ;;  %12057 = vmatpush1.bf16.msra.mxu0 %v18137_v43  ;;  %12098 = vmatpush1.bf16.msra.mxu1 %v18140_v2  ;;  %v18184_v43 = vld [vmem:[#allocation4 + $0x7ec] ss:$16 sps:$4 sm:$0xff]   ;;  %v18185_v50 = vld [vmem:[#allocation4 + $0x7c0] ss:$16 sps:$4 sm:$0xff]   ;;  %v18193_v10 = vld [vmem:[#allocation4 + $0x7a4] ss:$16 sps:$4 sm:$0xff]  }
 0xd50   :  { %v9325_v60 = vpop.f32.mrf.mxu0  ;;  %v9366_v6 = vpop.f32.mrf.mxu1  ;;  %12058 = vmatprep.subr.bf16.mxu0 %v18145_v15  ;;  %12099 = vmatprep.subr.bf16.mxu1 %v18148_v13  ;;  %v18179_v15 = vld [vmem:[#allocation4 + $0x7e0] ss:$16 sps:$4 sm:$0xff]   ;;  %v18182_v13 = vld [vmem:[#allocation4 + $0x7e8] ss:$16 sps:$4 sm:$0xff]   ;;  %v18190_v8 = vld [vmem:[#allocation4 + $0x7cc] ss:$16 sps:$4 sm:$0xff]  }
 0xd51   :  { %v9388_v46 = vcombine.low %v9380_v19, %v9387_v36  ;;  %v18191_v60 = vld [vmem:[#allocation4 + $0x7a0] ss:$16 sps:$4 sm:$0xff]   ;;  %v18194_v6 = vld [vmem:[#allocation4 + $0x7a8] ss:$16 sps:$4 sm:$0xff]  }
 0xd53   :  { %12059 = vmatpush1.bf16.msra.mxu0 %v18143_v24  ;;  %12100 = vmatpush1.bf16.msra.mxu1 %v18146_v14  ;;  %v9395_v55 = vrot.slane %v9388_v46, %v19842_v34  ;;  %v18188_v24 = vld [vmem:[#allocation4 + $0x7c8] ss:$16 sps:$4 sm:$0xff]  }
 0xd54   :  { %12060 = vmatprep.subr.bf16.mxu0 %v18151_v54  ;;  %12101 = vmatprep.subr.bf16.mxu1 %v18154_v27  ;;  %v18196_v54 = vld [vmem:[#allocation4 + $0x7ac] ss:$16 sps:$4 sm:$0xff]  }
 0xd55   :  { %v9397_v2 = vadd.f32 %v9395_v55, %v9185_v58 }
 0xd57   :  { %12061 = vmatpush1.bf16.msra.mxu0 %v18149_v1  ;;  %12102 = vmatpush1.bf16.msra.mxu1 %v18152_v33  ;;  %v18199_v33 = vld [vmem:[#allocation4 + $0x784] ss:$16 sps:$4 sm:$0xff]  }
 0xd58   :  { %12266 = vmatprep.subr.bf16.mxu0 %v18157_v11  ;;  %12307 = vmatprep.subr.bf16.mxu1 %v18160_v16  ;;  %v18202_v11 = vld [vmem:[#allocation4 + $0x78c] ss:$16 sps:$4 sm:$0xff]  }
 0xd5a   :  { %v9533_v49 = vpop.f32.mrf.mxu0  ;;  %v9574_v0 = vpop.f32.mrf.mxu1  ;;  %17127 = vmatmul.mubr.msk.bf16.vlgmr.msra.gmra.mxu0 %vm366_vm4, %v11962_v21  ;;  %17128 = vmatmul.mubr.msk.bf16.vlgmr.msra.gmra.mxu1 %vm366_vm4, %v11962_v21 }
 0xd5b   :  { %12267 = vmatpush1.bf16.msra.mxu0 %v18155_v53  ;;  %12308 = vmatpush1.bf16.msra.mxu1 %v18158_v51 }
 0xd5c   :  { %v9535_v56 = vpop.f32.mrf.mxu0  ;;  %v9576_v30 = vpop.f32.mrf.mxu1  ;;  %12268 = vmatprep.subr.bf16.mxu0 %v18163_v18  ;;  %12309 = vmatprep.subr.bf16.mxu1 %v18166_v12  ;;  %v18197_v12 = vld [vmem:[#allocation4 + $0x780] ss:$16 sps:$4 sm:$0xff]  }
 0xd5d   :  { %v9585_v25 = vcombine.low %v9533_v49, %v9535_v56  ;;  %v9586_v44 = vcombine.low %v9574_v0, %v9576_v30  ;;  %12290 = vmatprep.mubr.bf16.mxu0 %v19143_v31  ;;  %12331 = vmatprep.mubr.bf16.mxu1 %v19143_v31  ;;  %v12386_v0 = vrot.slane %v19820_v4, 3 }
 0xd5e   :  { %v9537_v48 = vpop.f32.mrf.mxu0  ;;  %v9578_v61 = vpop.f32.mrf.mxu1 }
 0xd5f   :  { %v9593_v20 = vrot.slane %v9585_v25, %v19842_v34  ;;  %v9600_v5 = vrot.slane %v9586_v44, %v19842_v34  ;;  %12269 = vmatpush1.bf16.msra.mxu0 %v18161_v28  ;;  %12310 = vmatpush1.bf16.msra.mxu1 %v18164_v22  ;;  %v18200_v28 = vld [vmem:[#allocation4 + $0x788] ss:$16 sps:$4 sm:$0xff]  }
 0xd60   :  { %v9538_v3 = vpop.f32.mrf.mxu0  ;;  %v9579_v63 = vpop.f32.mrf.mxu1  ;;  %12270 = vmatprep.subr.bf16.mxu0 %v18169_v39  ;;  %12311 = vmatprep.subr.bf16.mxu1 %v18172_v32 }
 0xd61   :  { %v9601_v35 = vcombine.low %v9593_v20, %v9600_v5  ;;  %v18205_v3 = vld [vmem:[#allocation18 + $0xe4] ss:$16 sps:$4 sm:$0xff]  }
 0xd62   :  { %v18208_v63 = vld [vmem:[#allocation18 + $0x2e4] ss:$16 sps:$4 sm:$0xff]  }
 0xd63   :  { %v9608_v7 = vrot.slane %v9601_v35, %v19842_v34  ;;  %12271 = vmatpush1.bf16.msra.mxu0 %v18167_v42  ;;  %12312 = vmatpush1.bf16.msra.mxu1 %v18170_v29 }
 0xd64   :  { %12272 = vmatprep.subr.bf16.mxu0 %v18175_v23  ;;  %12313 = vmatprep.subr.bf16.mxu1 %v18178_v45 }
 0xd65   :  { %v9610_v9 = vadd.f32 %v9608_v7, %v9397_v2 }
 0xd67   :  { %12273 = vmatpush1.bf16.msra.mxu0 %v18173_v57  ;;  %12314 = vmatpush1.bf16.msra.mxu1 %v18176_v17  ;;  %v18203_v17 = vld [vmem:[#allocation18 + $0xe0] ss:$16 sps:$4 sm:$0xff]  }
 0xd68   :  { %12478 = vmatprep.subr.bf16.mxu0 %v18181_v62  ;;  %12519 = vmatprep.subr.bf16.mxu1 %v18184_v43  ;;  %v18206_v62 = vld [vmem:[#allocation18 + $0x2e0] ss:$16 sps:$4 sm:$0xff]  }
 0xd6a   :  { %v9746_v14 = vpop.f32.mrf.mxu0  ;;  %v9787_v52 = vpop.f32.mrf.mxu1  ;;  %17145 = vmatmul.mubr.msk.bf16.vlgmr.msra.gmra.mxu0 %vm366_vm4, %v12174_v59  ;;  %17146 = vmatmul.mubr.msk.bf16.vlgmr.msra.gmra.mxu1 %vm366_vm4, %v12174_v59  ;;  %v18211_v59 = vld [vmem:[#allocation18 + $0xc4] ss:$16 sps:$4 sm:$0xff]  }
 0xd6b   :  { %12479 = vmatpush1.bf16.msra.mxu0 %v18179_v15  ;;  %12520 = vmatpush1.bf16.msra.mxu1 %v18182_v13 }
 0xd6c   :  { %v9748_v27 = vpop.f32.mrf.mxu0  ;;  %v9789_v47 = vpop.f32.mrf.mxu1  ;;  %12480 = vmatprep.subr.bf16.mxu0 %v18187_v26  ;;  %12521 = vmatprep.subr.bf16.mxu1 %v18190_v8  ;;  %v18214_v26 = vld [vmem:[#allocation18 + $0x2c4] ss:$16 sps:$4 sm:$0xff]  }
 0xd6d   :  { %v9798_v19 = vcombine.low %v9746_v14, %v9748_v27  ;;  %v9799_v36 = vcombine.low %v9787_v52, %v9789_v47  ;;  %12502 = vmatprep.mubr.bf16.mxu0 %v19143_v31  ;;  %12543 = vmatprep.mubr.bf16.mxu1 %v19143_v31  ;;  %v18212_v14 = vld [vmem:[#allocation18 + $0x2c0] ss:$16 sps:$4 sm:$0xff]   ;;  %v18220_v27 = vld [vmem:[#allocation18 + $0x2a4] ss:$16 sps:$4 sm:$0xff]  }
 0xd6e   :  { %v9750_v46 = vpop.f32.mrf.mxu0  ;;  %v9791_v1 = vpop.f32.mrf.mxu1  ;;  %v18215_v47 = vld [vmem:[#allocation18 + $0xa0] ss:$16 sps:$4 sm:$0xff]  }
 0xd6f   :  { %v9806_v16 = vrot.slane %v9798_v19, %v19842_v34  ;;  %v9813_v53 = vrot.slane %v9799_v36, %v19842_v34  ;;  %12481 = vmatpush1.bf16.msra.mxu0 %v18185_v50  ;;  %12522 = vmatpush1.bf16.msra.mxu1 %v18188_v24  ;;  %v18209_v24 = vld [vmem:[#allocation18 + $0xc0] ss:$16 sps:$4 sm:$0xff]   ;;  %v18226_v1 = vld [vmem:[#allocation18 + $0x284] ss:$16 sps:$4 sm:$0xff]  }
 0xd70   :  { %v9751_v51 = vpop.f32.mrf.mxu0  ;;  %v9792_v21 = vpop.f32.mrf.mxu1  ;;  %12482 = vmatprep.subr.bf16.mxu0 %v18193_v10  ;;  %12523 = vmatprep.subr.bf16.mxu1 %v18196_v54  ;;  %v18217_v54 = vld [vmem:[#allocation18 + $0xa4] ss:$16 sps:$4 sm:$0xff]   ;;  %v18218_v19 = vld [vmem:[#allocation18 + $0x2a0] ss:$16 sps:$4 sm:$0xff]  }
 0xd71   :  { %v9814_v18 = vcombine.low %v9806_v16, %v9813_v53  ;;  %v18224_v46 = vld [vmem:[#allocation18 + $0x280] ss:$16 sps:$4 sm:$0xff]   ;;  %v18229_v16 = vld [vmem:[#allocation18 + $0x64] ss:$16 sps:$4 sm:$0xff]  }
 0xd72   :  { %v18232_v53 = vld [vmem:[#allocation18 + $0x264] ss:$16 sps:$4 sm:$0xff]  }
 0xd73   :  { %v9821_v22 = vrot.slane %v9814_v18, %v19842_v34  ;;  %12483 = vmatpush1.bf16.msra.mxu0 %v18191_v60  ;;  %12524 = vmatpush1.bf16.msra.mxu1 %v18194_v6  ;;  %v18221_v60 = vld [vmem:[#allocation18 + $0x80] ss:$16 sps:$4 sm:$0xff]   ;;  %v18223_v6 = vld [vmem:[#allocation18 + $0x84] ss:$16 sps:$4 sm:$0xff]  }
 0xd74   :  { %12484 = vmatprep.subr.bf16.mxu0 %v18199_v33  ;;  %12525 = vmatprep.subr.bf16.mxu1 %v18202_v11  ;;  %v18227_v18 = vld [vmem:[#allocation18 + $0x60] ss:$16 sps:$4 sm:$0xff]  }
 0xd75   :  { %v9823_v49 = vadd.f32 %v9821_v22, %v9610_v9 }
 0xd77   :  { %12485 = vmatpush1.bf16.msra.mxu0 %v18197_v12  ;;  %12526 = vmatpush1.bf16.msra.mxu1 %v18200_v28  ;;  %v18230_v12 = vld [vmem:[#allocation18 + $0x260] ss:$16 sps:$4 sm:$0xff]  }
 0xd78   :  { %13398 = vmatprep.subr.bf16.mxu0 %v18205_v3  ;;  %13439 = vmatprep.subr.bf16.mxu1 %v18208_v63  ;;  %v18248_v3 = vld [vmem:[#allocation18 + $0x200] ss:$16 sps:$4 sm:$0xff]   ;;  %v18250_v63 = vld [vmem:[#allocation18 + $0x204] ss:$16 sps:$4 sm:$0xff]  }
 0xd7a   :  { %v9958_v39 = vpop.f32.mrf.mxu0  ;;  %v9999_v32 = vpop.f32.mrf.mxu1  ;;  %17163 = vmatmul.mubr.msk.bf16.vlgmr.msra.gmra.mxu0 %vm366_vm4, %v12386_v0  ;;  %17164 = vmatmul.mubr.msk.bf16.vlgmr.msra.gmra.mxu1 %vm366_vm4, %v12386_v0 }
 0xd7b   :  { %13399 = vmatpush1.bf16.msra.mxu0 %v18203_v17  ;;  %13440 = vmatpush1.bf16.msra.mxu1 %v18206_v62  ;;  %v18253_v17 = vld [vmem:[#allocation18 + $0x1e4] ss:$16 sps:$4 sm:$0xff]  }
 0xd7c   :  { %v9960_v56 = vpop.f32.mrf.mxu0  ;;  %v10001_v30 = vpop.f32.mrf.mxu1  ;;  %13400 = vmatprep.subr.bf16.mxu0 %v18211_v59  ;;  %13441 = vmatprep.subr.bf16.mxu1 %v18214_v26  ;;  %v18256_v62 = vld [vmem:[#allocation18 + $0x3e4] ss:$16 sps:$4 sm:$0xff]  }
 0xd7d   :  { %v10010_v25 = vcombine.low %v9958_v39, %v9960_v56  ;;  %v10011_v44 = vcombine.low %v9999_v32, %v10001_v30  ;;  %v18235_v56 = vld [vmem:[#allocation18 + $0x44] ss:$16 sps:$4 sm:$0xff]  }
 0xd7e   :  { %v9962_v42 = vpop.f32.mrf.mxu0  ;;  %v10003_v29 = vpop.f32.mrf.mxu1  ;;  %v18238_v30 = vld [vmem:[#allocation18 + $0x244] ss:$16 sps:$4 sm:$0xff]  }
 0xd7f   :  { %v10018_v58 = vrot.slane %v10010_v25, %v19842_v34  ;;  %v10025_v48 = vrot.slane %v10011_v44, %v19842_v34  ;;  %13401 = vmatpush1.bf16.msra.mxu0 %v18209_v24  ;;  %13442 = vmatpush1.bf16.msra.mxu1 %v18212_v14  ;;  %v18233_v42 = vld [vmem:[#allocation18 + $0x40] ss:$16 sps:$4 sm:$0xff]   ;;  %v18259_v24 = vld [vmem:[#allocation18 + $0x1c4] ss:$16 sps:$4 sm:$0xff]  }
 0xd80   :  { %v9963_v61 = vpop.f32.mrf.mxu0  ;;  %v10004_v4 = vpop.f32.mrf.mxu1  ;;  %13402 = vmatprep.subr.bf16.mxu0 %v18217_v54  ;;  %13443 = vmatprep.subr.bf16.mxu1 %v18220_v27  ;;  %v18236_v29 = vld [vmem:[#allocation18 + $0x240] ss:$16 sps:$4 sm:$0xff]   ;;  %v18262_v14 = vld [vmem:[#allocation18 + $0x3c4] ss:$16 sps:$4 sm:$0xff]  }
 0xd81   :  { %v10026_v23 = vcombine.low %v10018_v58, %v10025_v48  ;;  %v18241_v61 = vld [vmem:[#allocation18 + $0x24] ss:$16 sps:$4 sm:$0xff]   ;;  %v18257_v54 = vld [vmem:[#allocation18 + $0x1c0] ss:$16 sps:$4 sm:$0xff]  }
 0xd82   :  { %v18244_v4 = vld [vmem:[#allocation18 + $0x224] ss:$16 sps:$4 sm:$0xff]   ;;  %v18260_v27 = vld [vmem:[#allocation18 + $0x3c0] ss:$16 sps:$4 sm:$0xff]  }
 0xd83   :  { %v10033_v45 = vrot.slane %v10026_v23, %v19842_v34  ;;  %13403 = vmatpush1.bf16.msra.mxu0 %v18215_v47  ;;  %13444 = vmatpush1.bf16.msra.mxu1 %v18218_v19  ;;  %v18239_v23 = vld [vmem:[#allocation18 + $0x20] ss:$16 sps:$4 sm:$0xff]  }
 0xd84   :  { %13404 = vmatprep.subr.bf16.mxu0 %v18223_v6  ;;  %13445 = vmatprep.subr.bf16.mxu1 %v18226_v1  ;;  %v18263_v6 = vld [vmem:[#allocation18 + $0x1a0] ss:$16 sps:$4 sm:$0xff]  }
 0xd85   :  { %v10035_v55 = vadd.f32 %v10033_v45, %v9823_v49  ;;  %v18242_v45 = vld [vmem:[#allocation18 + $0x220] ss:$16 sps:$4 sm:$0xff]  }
 0xd87   :  { %13405 = vmatpush1.bf16.msra.mxu0 %v18221_v60  ;;  %13446 = vmatpush1.bf16.msra.mxu1 %v18224_v46  ;;  %v18268_v60 = vld [vmem:[#allocation18 + $0x3a4] ss:$16 sps:$4 sm:$0xff]   ;;  %v18266_v46 = vld [vmem:[#allocation18 + $0x3a0] ss:$16 sps:$4 sm:$0xff]  }
 0xd88   :  { %13406 = vmatprep.subr.bf16.mxu0 %v18229_v16  ;;  %13447 = vmatprep.subr.bf16.mxu1 %v18232_v53  ;;  %v18272_v16 = vld [vmem:[#allocation18 + $0x380] ss:$16 sps:$4 sm:$0xff]   ;;  %v18274_v53 = vld [vmem:[#allocation18 + $0x384] ss:$16 sps:$4 sm:$0xff]  }
 0xd8a   :  { %v10170_v20 = vpop.f32.mrf.mxu0  ;;  %v10211_v5 = vpop.f32.mrf.mxu1 }
 0xd8b   :  { %13407 = vmatpush1.bf16.msra.mxu0 %v18227_v18  ;;  %13448 = vmatpush1.bf16.msra.mxu1 %v18230_v12  ;;  %v18277_v18 = vld [vmem:[#allocation18 + $0x164] ss:$16 sps:$4 sm:$0xff]  }
 0xd8c   :  { %v10172_v35 = vpop.f32.mrf.mxu0  ;;  %v10213_v57 = vpop.f32.mrf.mxu1  ;;  %13408 = vmatprep.subr.bf16.mxu0 %v18235_v56  ;;  %13449 = vmatprep.subr.bf16.mxu1 %v18238_v30  ;;  %v18280_v12 = vld [vmem:[#allocation18 + $0x364] ss:$16 sps:$4 sm:$0xff]  }
 0xd8d   :  { %v10222_v43 = vcombine.low %v10170_v20, %v10172_v35  ;;  %v10223_v2 = vcombine.low %v10211_v5, %v10213_v57  ;;  %v18245_v20 = vld [vmem:[#allocation18] ss:$16 sps:$4 sm:$0xff]   ;;  %v18247_v5 = vld [vmem:[#allocation18 + $0x4] ss:$16 sps:$4 sm:$0xff]  }
 0xd8e   :  { %v10174_v7 = vpop.f32.mrf.mxu0  ;;  %v10215_v9 = vpop.f32.mrf.mxu1 }
 0xd8f   :  { %v10230_v15 = vrot.slane %v10222_v43, %v19842_v34  ;;  %v10237_v13 = vrot.slane %v10223_v2, %v19842_v34  ;;  %13409 = vmatpush1.bf16.msra.mxu0 %v18233_v42  ;;  %13450 = vmatpush1.bf16.msra.mxu1 %v18236_v29  ;;  %v18251_v7 = vld [vmem:[#allocation18 + $0x1e0] ss:$16 sps:$4 sm:$0xff]   ;;  %v18283_v42 = vld [vmem:[#allocation18 + $0x144] ss:$16 sps:$4 sm:$0xff]  }
 0xd90   :  { %v10175_v8 = vpop.f32.mrf.mxu0  ;;  %v10216_v50 = vpop.f32.mrf.mxu1  ;;  %13410 = vmatprep.subr.bf16.mxu0 %v18241_v61  ;;  %13451 = vmatprep.subr.bf16.mxu1 %v18244_v4  ;;  %v18254_v9 = vld [vmem:[#allocation18 + $0x3e0] ss:$16 sps:$4 sm:$0xff]   ;;  %v18286_v29 = vld [vmem:[#allocation18 + $0x344] ss:$16 sps:$4 sm:$0xff]  }
 0xd91   :  { %v10238_v52 = vcombine.low %v10230_v15, %v10237_v13  ;;  %v18281_v61 = vld [vmem:[#allocation18 + $0x140] ss:$16 sps:$4 sm:$0xff]  }
 0xd92   :  { %v18284_v4 = vld [vmem:[#allocation18 + $0x340] ss:$16 sps:$4 sm:$0xff]  }
 0xd93   :  { %v10245_v10 = vrot.slane %v10238_v52, %v19842_v34  ;;  %13411 = vmatpush1.bf16.msra.mxu0 %v18239_v23  ;;  %13452 = vmatpush1.bf16.msra.mxu1 %v18242_v45 }
 0xd94   :  { %13412 = vmatprep.subr.bf16.mxu0 %v18247_v5  ;;  %13453 = vmatprep.subr.bf16.mxu1 %v18250_v63  ;;  %v18287_v5 = vld [vmem:[#allocation18 + $0x120] ss:$16 sps:$4 sm:$0xff]  }
 0xd95   :  { %v10247_v36 = vadd.f32 %v10245_v10, %v10035_v55 }
 0xd97   :  { %13413 = vmatpush1.bf16.msra.mxu0 %v18245_v20  ;;  %13454 = vmatpush1.bf16.msra.mxu1 %v18248_v3  ;;  %v18292_v20 = vld [vmem:[#allocation18 + $0x324] ss:$16 sps:$4 sm:$0xff]   ;;  %v18290_v3 = vld [vmem:[#allocation18 + $0x320] ss:$16 sps:$4 sm:$0xff]  }
 0xd98   :  { %13414 = vmatprep.subr.bf16.mxu0 %v18253_v17  ;;  %13455 = vmatprep.subr.bf16.mxu1 %v18256_v62  ;;  %v18296_v17 = vld [vmem:[#allocation18 + $0x300] ss:$16 sps:$4 sm:$0xff]   ;;  %v18298_v62 = vld [vmem:[#allocation18 + $0x304] ss:$16 sps:$4 sm:$0xff]  }
 0xd9a   :  { %v10382_v33 = vpop.f32.mrf.mxu0  ;;  %v10423_v11 = vpop.f32.mrf.mxu1 }
 0xd9b   :  { %13415 = vmatpush2.bf16.msra.mxu0 %v18251_v7  ;;  %13456 = vmatpush2.bf16.msra.mxu1 %v18254_v9  ;;  %v18301_v7 = vld [vmem:[#allocation18 + $0xec] ss:$16 sps:$4 sm:$0xff]  }
 0xd9c   :  { %v10384_v51 = vpop.f32.mrf.mxu0  ;;  %v10425_v21 = vpop.f32.mrf.mxu1  ;;  %13416 = vmatprep.subr.bf16.mxu0 %v18259_v24  ;;  %13457 = vmatprep.subr.bf16.mxu1 %v18262_v14  ;;  %v18304_v9 = vld [vmem:[#allocation18 + $0x2ec] ss:$16 sps:$4 sm:$0xff]  }
 0xd9d   :  { %v10434_v28 = vcombine.low %v10382_v33, %v10384_v51  ;;  %v10435_v22 = vcombine.low %v10423_v11, %v10425_v21  ;;  %v18271_v33 = vld [vmem:[#allocation18 + $0x184] ss:$16 sps:$4 sm:$0xff]   ;;  %v18269_v11 = vld [vmem:[#allocation18 + $0x180] ss:$16 sps:$4 sm:$0xff]  }
 0xd9e   :  { %v10386_v49 = vpop.f32.mrf.mxu0  ;;  %v10427_v0 = vpop.f32.mrf.mxu1 }
 0xd9f   :  { %v10442_v39 = vrot.slane %v10434_v28, %v19842_v34  ;;  %v10449_v32 = vrot.slane %v10435_v22, %v19842_v34  ;;  %13417 = vmatpush2.bf16.msra.mxu0 %v18257_v54  ;;  %13458 = vmatpush2.bf16.msra.mxu1 %v18260_v27  ;;  %v18275_v49 = vld [vmem:[#allocation18 + $0x160] ss:$16 sps:$4 sm:$0xff]  }
 0xda0   :  { %v10387_v25 = vpop.f32.mrf.mxu0  ;;  %v10428_v44 = vpop.f32.mrf.mxu1  ;;  %13459 = vmatprep.subr.bf16.mxu1 %v18268_v60  ;;  %v18278_v0 = vld [vmem:[#allocation18 + $0x360] ss:$16 sps:$4 sm:$0xff]  }
 0xda1   :  { %v10450_v58 = vcombine.low %v10442_v39, %v10449_v32 }
 0xda3   :  { %v10457_v48 = vrot.slane %v10450_v58, %v19842_v34  ;;  %13460 = vmatpush2.bf16.msra.mxu1 %v18266_v46 }
 0xda4   :  { %13461 = vmatprep.subr.bf16.mxu1 %v18274_v53 }
 0xda5   :  { %v10459_v55 = vadd.f32 %v10457_v48, %v10247_v36  ;;  %v18265_v36 = vld [vmem:[#allocation18 + $0x1a4] ss:$16 sps:$4 sm:$0xff]  }
 0xda6   :  { %13418 = vmatprep.subr.bf16.mxu0 %v18265_v36 }
 0xda7   :  { %13419 = vmatpush2.bf16.msra.mxu0 %v18263_v6  ;;  %13462 = vmatpush2.bf16.msra.mxu1 %v18272_v16 }
 0xda8   :  { %13420 = vmatprep.subr.bf16.mxu0 %v18271_v33  ;;  %13463 = vmatprep.subr.bf16.mxu1 %v18280_v12 }
 0xdaa   :  { %v10594_v35 = vpop.f32.mrf.mxu0  ;;  %v10635_v57 = vpop.f32.mrf.mxu1 }
 0xdab   :  { %13421 = vmatpush2.bf16.msra.mxu0 %v18269_v11  ;;  %13464 = vmatpush2.bf16.msra.mxu1 %v18278_v0 }
 0xdac   :  { %v10596_v43 = vpop.f32.mrf.mxu0  ;;  %v10637_v2 = vpop.f32.mrf.mxu1  ;;  %13422 = vmatprep.subr.bf16.mxu0 %v18277_v18  ;;  %13465 = vmatprep.subr.bf16.mxu1 %v18286_v29 }
 0xdad   :  { %v10646_v15 = vcombine.low %v10594_v35, %v10596_v43  ;;  %v10647_v13 = vcombine.low %v10635_v57, %v10637_v2  ;;  %v18293_v35 = vld [vmem:[#allocation18 + $0x100] ss:$16 sps:$4 sm:$0xff]   ;;  %v18295_v57 = vld [vmem:[#allocation18 + $0x104] ss:$16 sps:$4 sm:$0xff]  }
 0xdae   :  { %v10598_v59 = vpop.f32.mrf.mxu0  ;;  %v10639_v26 = vpop.f32.mrf.mxu1 }
 0xdaf   :  { %v10654_v8 = vrot.slane %v10646_v15, %v19842_v34  ;;  %v10661_v50 = vrot.slane %v10647_v13, %v19842_v34  ;;  %13423 = vmatpush2.bf16.msra.mxu0 %v18275_v49  ;;  %13466 = vmatpush2.bf16.msra.mxu1 %v18284_v4 }
 0xdb0   :  { %v10599_v52 = vpop.f32.mrf.mxu0  ;;  %v10640_v10 = vpop.f32.mrf.mxu1  ;;  %13424 = vmatprep.subr.bf16.mxu0 %v18283_v42  ;;  %13467 = vmatprep.subr.bf16.mxu1 %v18292_v20 }
 0xdb1   :  { %v10662_v47 = vcombine.low %v10654_v8, %v10661_v50 }
 0xdb3   :  { %v10669_v19 = vrot.slane %v10662_v47, %v19842_v34  ;;  %13425 = vmatpush2.bf16.msra.mxu0 %v18281_v61  ;;  %13468 = vmatpush2.bf16.msra.mxu1 %v18290_v3 }
 0xdb4   :  { %13469 = vmatprep.subr.bf16.mxu1 %v18298_v62 }
 0xdb5   :  { %v10671_v1 = vadd.f32 %v10669_v19, %v10459_v55  ;;  %v18289_v55 = vld [vmem:[#allocation18 + $0x124] ss:$16 sps:$4 sm:$0xff]  }
 0xdb6   :  { %13426 = vmatprep.subr.bf16.mxu0 %v18289_v55 }
 0xdb7   :  { %13427 = vmatpush2.bf16.msra.mxu0 %v18287_v5  ;;  %13470 = vmatpush2.bf16.msra.mxu1 %v18296_v17 }
 0xdb8   :  { %13428 = vmatprep.subr.bf16.mxu0 %v18295_v57  ;;  %13521 = vmatprep.subr.bf16.mxu1 %v18304_v9 }
 0xdba   :  { %v10806_v51 = vpop.f32.mrf.mxu0  ;;  %v10847_v21 = vpop.f32.mrf.mxu1 }
 0xdbb   :  { %13429 = vmatpush2.bf16.msra.mxu0 %v18293_v35 }
 0xdbc   :  { %v10808_v28 = vpop.f32.mrf.mxu0  ;;  %v10849_v22 = vpop.f32.mrf.mxu1  ;;  %13480 = vmatprep.subr.bf16.mxu0 %v18301_v7 }
 0xdbd   :  { %v10858_v39 = vcombine.low %v10806_v51, %v10808_v28  ;;  %v10859_v32 = vcombine.low %v10847_v21, %v10849_v22 }
 0xdbe   :  { %v10810_v56 = vpop.f32.mrf.mxu0  ;;  %v10851_v30 = vpop.f32.mrf.mxu1 }
 0xdbf   :  { %v10866_v25 = vrot.slane %v10858_v39, %v19842_v34  ;;  %v10873_v44 = vrot.slane %v10859_v32, %v19842_v34 }
 0xdc0   :  { %v10811_v58 = vpop.f32.mrf.mxu0  ;;  %v10852_v48 = vpop.f32.mrf.mxu1 }
 0xdc1   :  { %v10874_v23 = vcombine.low %v10866_v25, %v10873_v44 }
 0xdc3   :  { %v10881_v45 = vrot.slane %v10874_v23, %v19842_v34 }
 0xdc5   :  { %v10883_v63 = vadd.f32 %v10881_v45, %v10671_v1 }
 0xdca   :  { %v11018_v43 = vpop.f32.mrf.mxu0  ;;  %v11059_v2 = vpop.f32.mrf.mxu1 }
 0xdcc   :  { %v11020_v15 = vpop.f32.mrf.mxu0  ;;  %v11061_v13 = vpop.f32.mrf.mxu1 }
 0xdcd   :  { %v11070_v59 = vcombine.low %v11018_v43, %v11020_v15  ;;  %v11071_v26 = vcombine.low %v11059_v2, %v11061_v13 }
 0xdce   :  { %v11022_v8 = vpop.f32.mrf.mxu0  ;;  %v11063_v50 = vpop.f32.mrf.mxu1 }
 0xdcf   :  { %v11078_v24 = vrot.slane %v11070_v59, %v19842_v34  ;;  %v11085_v14 = vrot.slane %v11071_v26, %v19842_v34 }
 0xdd0   :  { %v11023_v52 = vpop.f32.mrf.mxu0  ;;  %v11064_v10 = vpop.f32.mrf.mxu1 }
 0xdd1   :  { %v11086_v54 = vcombine.low %v11078_v24, %v11085_v14 }
 0xdd3   :  { %v11093_v27 = vrot.slane %v11086_v54, %v19842_v34 }
 0xdd5   :  { %v11095_v47 = vadd.f32 %v11093_v27, %v10883_v63 }
 0xdda   :  { %v11231_v19 = vpop.f32.mrf.mxu0  ;;  %v11272_v36 = vpop.f32.mrf.mxu1 }
 0xddc   :  { %v11233_v60 = vpop.f32.mrf.mxu0  ;;  %v11274_v6 = vpop.f32.mrf.mxu1 }
 0xddd   :  { %v11283_v46 = vcombine.low %v11231_v19, %v11233_v60  ;;  %v11284_v1 = vcombine.low %v11272_v36, %v11274_v6 }
 0xdde   :  { %v11235_v33 = vpop.f32.mrf.mxu0  ;;  %v11276_v11 = vpop.f32.mrf.mxu1 }
 0xddf   :  { %v11291_v16 = vrot.slane %v11283_v46, %v19842_v34  ;;  %v11298_v53 = vrot.slane %v11284_v1, %v19842_v34 }
 0xde0   :  { %v11236_v51 = vpop.f32.mrf.mxu0  ;;  %v11277_v21 = vpop.f32.mrf.mxu1 }
 0xde1   :  { %v11299_v18 = vcombine.low %v11291_v16, %v11298_v53 }
 0xde3   :  { %v11306_v12 = vrot.slane %v11299_v18, %v19842_v34 }
 0xde5   :  { %v11308_v28 = vadd.f32 %v11306_v12, %v11095_v47 }
 0xdea   :  { %v11444_v22 = vpop.f32.mrf.mxu0  ;;  %v11485_v49 = vpop.f32.mrf.mxu1 }
 0xdec   :  { %v11446_v0 = vpop.f32.mrf.mxu0  ;;  %v11487_v39 = vpop.f32.mrf.mxu1 }
 0xded   :  { %v11496_v32 = vcombine.low %v11444_v22, %v11446_v0  ;;  %v11497_v56 = vcombine.low %v11485_v49, %v11487_v39 }
 0xdee   :  { %v11448_v30 = vpop.f32.mrf.mxu0  ;;  %v11489_v25 = vpop.f32.mrf.mxu1 }
 0xdef   :  { %v11504_v44 = vrot.slane %v11496_v32, %v19842_v34  ;;  %v11511_v42 = vrot.slane %v11497_v56, %v19842_v34 }
 0xdf0   :  { %v11449_v29 = vpop.f32.mrf.mxu0  ;;  %v11490_v58 = vpop.f32.mrf.mxu1 }
 0xdf1   :  { %v11512_v48 = vcombine.low %v11504_v44, %v11511_v42 }
 0xdf3   :  { %v11519_v61 = vrot.slane %v11512_v48, %v19842_v34 }
 0xdf5   :  { %v11521_v4 = vadd.f32 %v11519_v61, %v11308_v28 }
 0xdfa   :  { %v11656_v23 = vpop.f32.mrf.mxu0  ;;  %v11697_v45 = vpop.f32.mrf.mxu1 }
 0xdfc   :  { %v11658_v55 = vpop.f32.mrf.mxu0  ;;  %v11699_v20 = vpop.f32.mrf.mxu1 }
 0xdfd   :  { %v11708_v19 = vcombine.low %v11656_v23, %v11658_v55  ;;  %v11709_v36 = vcombine.low %v11697_v45, %v11699_v20 }
 0xdfe   :  { %v11660_v5 = vpop.f32.mrf.mxu0  ;;  %v11701_v3 = vpop.f32.mrf.mxu1 }
 0xdff   :  { %v11716_v16 = vrot.slane %v11708_v19, %v19842_v34  ;;  %v11723_v53 = vrot.slane %v11709_v36, %v19842_v34  ;;  %v18310_v19 = vld [vmem:[#allocation18 + $0x2cc] ss:$16 sps:$4 sm:$0xff]   ;;  %v18305_v36 = vld [vmem:[#allocation18 + $0xc8] ss:$16 sps:$4 sm:$0xff]  }
 0xe00   :  { %v11661_v63 = vpop.f32.mrf.mxu0  ;;  %v11702_v35 = vpop.f32.mrf.mxu1 }
 0xe01   :  { %v11724_v49 = vcombine.low %v11716_v16, %v11723_v53  ;;  %v18322_v16 = vld [vmem:[#allocation18 + $0x28c] ss:$16 sps:$4 sm:$0xff]   ;;  %v18317_v53 = vld [vmem:[#allocation18 + $0x88] ss:$16 sps:$4 sm:$0xff]  }
 0xe03   :  { %v11731_v25 = vrot.slane %v11724_v49, %v19842_v34  ;;  %v18334_v49 = vld [vmem:[#allocation18 + $0x24c] ss:$16 sps:$4 sm:$0xff]  }
 0xe05   :  { %v11733_v45 = vadd.f32 %v11731_v25, %v11521_v4  ;;  %v18338_v25 = vld [vmem:[#allocation18 + $0x228] ss:$16 sps:$4 sm:$0xff]  }
 0xe0a   :  { %v11868_v57 = vpop.f32.mrf.mxu0  ;;  %v11909_v17 = vpop.f32.mrf.mxu1 }
 0xe0c   :  { %v11870_v62 = vpop.f32.mrf.mxu0  ;;  %v11911_v43 = vpop.f32.mrf.mxu1 }
 0xe0d   :  { %v11920_v46 = vcombine.low %v11868_v57, %v11870_v62  ;;  %v11921_v1 = vcombine.low %v11909_v17, %v11911_v43 }
 0xe0e   :  { %v11872_v2 = vpop.f32.mrf.mxu0  ;;  %v11913_v7 = vpop.f32.mrf.mxu1 }
 0xe0f   :  { %v11928_v18 = vrot.slane %v11920_v46, %v19842_v34  ;;  %v11935_v12 = vrot.slane %v11921_v1, %v19842_v34  ;;  %v18316_v46 = vld [vmem:[#allocation18 + $0x2ac] ss:$16 sps:$4 sm:$0xff]   ;;  %v18311_v1 = vld [vmem:[#allocation18 + $0xa8] ss:$16 sps:$4 sm:$0xff]  }
 0xe10   :  { %v11873_v9 = vpop.f32.mrf.mxu0  ;;  %v11914_v15 = vpop.f32.mrf.mxu1 }
 0xe11   :  { %v11936_v32 = vcombine.low %v11928_v18, %v11935_v12  ;;  %v18328_v18 = vld [vmem:[#allocation18 + $0x26c] ss:$16 sps:$4 sm:$0xff]   ;;  %v18323_v12 = vld [vmem:[#allocation18 + $0x68] ss:$16 sps:$4 sm:$0xff]  }
 0xe13   :  { %v11943_v58 = vrot.slane %v11936_v32, %v19842_v34  ;;  %v18337_v32 = vld [vmem:[#allocation18 + $0x2c] ss:$16 sps:$4 sm:$0xff]  }
 0xe15   :  { %v11945_v35 = vadd.f32 %v11943_v58, %v11733_v45  ;;  %v18344_v58 = vld [vmem:[#allocation18 + $0x208] ss:$16 sps:$4 sm:$0xff]  }
 0xe16   :  { %v18350_v45 = vld [vmem:[#allocation18 + $0x3e8] ss:$16 sps:$4 sm:$0xff]  }
 0xe1a   :  { %v12080_v13 = vpop.f32.mrf.mxu0  ;;  %v12121_v59 = vpop.f32.mrf.mxu1 }
 0xe1c   :  { %v12082_v26 = vpop.f32.mrf.mxu0  ;;  %v12123_v8 = vpop.f32.mrf.mxu1 }
 0xe1d   :  { %v12132_v51 = vcombine.low %v12080_v13, %v12082_v26  ;;  %v12133_v21 = vcombine.low %v12121_v59, %v12123_v8 }
 0xe1e   :  { %v12084_v50 = vpop.f32.mrf.mxu0  ;;  %v12125_v24 = vpop.f32.mrf.mxu1 }
 0xe1f   :  { %v12140_v0 = vrot.slane %v12132_v51, %v19842_v34  ;;  %v12147_v39 = vrot.slane %v12133_v21, %v19842_v34  ;;  %v18320_v51 = vld [vmem:[#allocation18 + $0x288] ss:$16 sps:$4 sm:$0xff]   ;;  %v18325_v21 = vld [vmem:[#allocation18 + $0x6c] ss:$16 sps:$4 sm:$0xff]  }
 0xe20   :  { %v12085_v14 = vpop.f32.mrf.mxu0  ;;  %v12126_v52 = vpop.f32.mrf.mxu1 }
 0xe21   :  { %v12148_v44 = vcombine.low %v12140_v0, %v12147_v39  ;;  %v18329_v0 = vld [vmem:[#allocation18 + $0x48] ss:$16 sps:$4 sm:$0xff]  }
 0xe22   :  { %v18332_v39 = vld [vmem:[#allocation18 + $0x248] ss:$16 sps:$4 sm:$0xff]  }
 0xe23   :  { %v12155_v55 = vrot.slane %v12148_v44, %v19842_v34  ;;  %v18343_v44 = vld [vmem:[#allocation18 + $0xc] ss:$16 sps:$4 sm:$0xff]  }
 0xe25   :  { %v12157_v7 = vadd.f32 %v12155_v55, %v11945_v35  ;;  %v18355_v55 = vld [vmem:[#allocation18 + $0x1cc] ss:$16 sps:$4 sm:$0xff]  }
 0xe26   :  { %v18364_v35 = vld [vmem:[#allocation18 + $0x3ac] ss:$16 sps:$4 sm:$0xff]  }
 0xe2a   :  { %v12292_v10 = vpop.f32.mrf.mxu0  ;;  %v12333_v54 = vpop.f32.mrf.mxu1 }
 0xe2c   :  { %v12294_v27 = vpop.f32.mrf.mxu0  ;;  %v12335_v47 = vpop.f32.mrf.mxu1 }
 0xe2d   :  { %v12344_v28 = vcombine.low %v12292_v10, %v12294_v27  ;;  %v12345_v22 = vcombine.low %v12333_v54, %v12335_v47  ;;  %v18299_v10 = vld [vmem:[#allocation18 + $0xe8] ss:$16 sps:$4 sm:$0xff]  }
 0xe2e   :  { %v12296_v60 = vpop.f32.mrf.mxu0  ;;  %v12337_v6 = vpop.f32.mrf.mxu1  ;;  %v18302_v54 = vld [vmem:[#allocation18 + $0x2e8] ss:$16 sps:$4 sm:$0xff]  }
 0xe2f   :  { %v12352_v56 = vrot.slane %v12344_v28, %v19842_v34  ;;  %v12359_v30 = vrot.slane %v12345_v22, %v19842_v34  ;;  %v18308_v60 = vld [vmem:[#allocation18 + $0x2c8] ss:$16 sps:$4 sm:$0xff]   ;;  %v18313_v6 = vld [vmem:[#allocation18 + $0xac] ss:$16 sps:$4 sm:$0xff]  }
 0xe30   :  { %v12297_v33 = vpop.f32.mrf.mxu0  ;;  %v12338_v11 = vpop.f32.mrf.mxu1  ;;  %v18326_v28 = vld [vmem:[#allocation18 + $0x268] ss:$16 sps:$4 sm:$0xff]   ;;  %v18331_v22 = vld [vmem:[#allocation18 + $0x4c] ss:$16 sps:$4 sm:$0xff]  }
 0xe31   :  { %v12360_v48 = vcombine.low %v12352_v56, %v12359_v30  ;;  %v18314_v33 = vld [vmem:[#allocation18 + $0x2a8] ss:$16 sps:$4 sm:$0xff]   ;;  %v18319_v11 = vld [vmem:[#allocation18 + $0x8c] ss:$16 sps:$4 sm:$0xff]  }
 0xe32   :  { %v18340_v56 = vld [vmem:[#allocation18 + $0x22c] ss:$16 sps:$4 sm:$0xff]   ;;  %v18335_v30 = vld [vmem:[#allocation18 + $0x28] ss:$16 sps:$4 sm:$0xff]  }
 0xe33   :  { %v12367_v57 = vrot.slane %v12360_v48, %v19842_v34  ;;  %v18349_v48 = vld [vmem:[#allocation18 + $0x1ec] ss:$16 sps:$4 sm:$0xff]  }
 0xe35   :  { %v12369_v15 = vadd.f32 %v12367_v57, %v12157_v7  ;;  %v18359_v57 = vld [vmem:[#allocation18 + $0x1a8] ss:$16 sps:$4 sm:$0xff]  }
 0xe36   :  { %v18368_v7 = vld [vmem:[#allocation18 + $0x388] ss:$16 sps:$4 sm:$0xff]  }
 0xe3a   :  { %v12504_v42 = vpop.f32.mrf.mxu0  ;;  %v12545_v29 = vpop.f32.mrf.mxu1 }
 0xe3c   :  { %v12506_v61 = vpop.f32.mrf.mxu0  ;;  %v12547_v23 = vpop.f32.mrf.mxu1 }
 0xe3d   :  { %v12556_v20 = vcombine.low %v12504_v42, %v12506_v61  ;;  %v12557_v5 = vcombine.low %v12545_v29, %v12547_v23  ;;  %v18346_v42 = vld [vmem:[#allocation18 + $0x20c] ss:$16 sps:$4 sm:$0xff]   ;;  %v18341_v29 = vld [vmem:[#allocation18 + $0x8] ss:$16 sps:$4 sm:$0xff]  }
 0xe3e   :  { %v12508_v3 = vpop.f32.mrf.mxu0  ;;  %v12549_v63 = vpop.f32.mrf.mxu1  ;;  %v18352_v61 = vld [vmem:[#allocation18 + $0x3ec] ss:$16 sps:$4 sm:$0xff]   ;;  %v18347_v23 = vld [vmem:[#allocation18 + $0x1e8] ss:$16 sps:$4 sm:$0xff]  }
 0xe3f   :  { %v12564_v17 = vrot.slane %v12556_v20, %v19842_v34  ;;  %v12571_v62 = vrot.slane %v12557_v5, %v19842_v34  ;;  %v18358_v20 = vld [vmem:[#allocation18 + $0x3cc] ss:$16 sps:$4 sm:$0xff]   ;;  %v18353_v5 = vld [vmem:[#allocation18 + $0x1c8] ss:$16 sps:$4 sm:$0xff]  }
 0xe40   :  { %v12509_v43 = vpop.f32.mrf.mxu0  ;;  %v12550_v2 = vpop.f32.mrf.mxu1  ;;  %v18356_v3 = vld [vmem:[#allocation18 + $0x3c8] ss:$16 sps:$4 sm:$0xff]   ;;  %v18361_v63 = vld [vmem:[#allocation18 + $0x1ac] ss:$16 sps:$4 sm:$0xff]  }
 0xe41   :  { %v12572_v9 = vcombine.low %v12564_v17, %v12571_v62  ;;  %v18362_v17 = vld [vmem:[#allocation18 + $0x3a8] ss:$16 sps:$4 sm:$0xff]   ;;  %v18367_v62 = vld [vmem:[#allocation18 + $0x18c] ss:$16 sps:$4 sm:$0xff]  }
 0xe42   :  { %v18370_v43 = vld [vmem:[#allocation18 + $0x38c] ss:$16 sps:$4 sm:$0xff]   ;;  %v18365_v2 = vld [vmem:[#allocation18 + $0x188] ss:$16 sps:$4 sm:$0xff]  }
 0xe43   :  { %v12579_v4 = vrot.slane %v12572_v9, %v19842_v34  ;;  %v18307_v34 = vld [vmem:[#allocation18 + $0xcc] ss:$16 sps:$4 sm:$0xff]  }
 0xe44   :  { %v18373_v9 = vld [vmem:[#allocation18 + $0x16c] ss:$16 sps:$4 sm:$0xff]  }
 0xe45   :  { %v12581_v13 = vadd.f32 %v12579_v4, %v12369_v15  ;;  %v18376_v15 = vld [vmem:[#allocation18 + $0x36c] ss:$16 sps:$4 sm:$0xff]   ;;  %v18371_v4 = vld [vmem:[#allocation18 + $0x168] ss:$16 sps:$4 sm:$0xff]  }
 0xe47   :  { %v12582_v59 = vmax.f32 %v12581_v13, 0.0  ;;  %v18374_v13 = vld [vmem:[#allocation18 + $0x368] ss:$16 sps:$4 sm:$0xff]  }
 0xe49   :  { %v12720_v26 = vrot.slane %v12582_v59, %v19399_v40  ;;  %v12728_v8 = vrot.slane %v12582_v59, %v19402_v41  ;;  %v12716_v50 = vrot.slane %v12582_v59, %v19393_v37  ;;  %v12724_v24 = vrot.slane %v12582_v59, %v19396_v38  ;;  %v18379_v59 = vld [vmem:[#allocation18 + $0x14c] ss:$16 sps:$4 sm:$0xff]  }
 0xe4b   :  { %v12734_v14 = vpack.c.bf16 %v12720_v26, %v12720_v26  ;;  %v12736_v52 = vpack.c.bf16 %v12728_v8, %v12728_v8  ;;  %v19911_v27 = vpack.c.bf16 %v12716_v50, %v12716_v50  ;;  %v19913_v47 = vpack.c.bf16 %v12724_v24, %v12724_v24  ;;  %v18382_v26 = vld [vmem:[#allocation18 + $0x34c] ss:$16 sps:$4 sm:$0xff]   ;;  %v18377_v8 = vld [vmem:[#allocation18 + $0x148] ss:$16 sps:$4 sm:$0xff]  }
 0xe4c   :  { %v18380_v50 = vld [vmem:[#allocation18 + $0x348] ss:$16 sps:$4 sm:$0xff]   ;;  %v18385_v24 = vld [vmem:[#allocation18 + $0x12c] ss:$16 sps:$4 sm:$0xff]  }
 0xe4d   :  { %13430 = vmatprep.mubr.bf16.mxu0 %v12734_v14  ;;  %13471 = vmatprep.mubr.bf16.mxu1 %v12736_v52 }
 0xe4e   :  { %13431 = vmatmul.mubr.bf16.vlgmr.msra.gmra.mxu0 %v19911_v27  ;;  %13472 = vmatmul.mubr.bf16.vlgmr.msra.gmra.mxu1 %v19913_v47 }
 0xe4f   :  { %13481 = vmatpush1.bf16.msra.mxu0 %v18299_v10  ;;  %13522 = vmatpush1.bf16.msra.mxu1 %v18302_v54  ;;  %v18386_v10 = vld [vmem:[#allocation18 + $0x328] ss:$16 sps:$4 sm:$0xff]   ;;  %v18391_v54 = vld [vmem:[#allocation18 + $0x10c] ss:$16 sps:$4 sm:$0xff]  }
 0xe50   :  { %13512 = vmatprep.mubr.bf16.mxu0 %v12734_v14  ;;  %13553 = vmatprep.mubr.bf16.mxu1 %v12736_v52  ;;  %v18388_v14 = vld [vmem:[#allocation18 + $0x32c] ss:$16 sps:$4 sm:$0xff]   ;;  %v18383_v52 = vld [vmem:[#allocation18 + $0x128] ss:$16 sps:$4 sm:$0xff]  }
 0xe51   :  { %13482 = vmatprep.subr.bf16.mxu0 %v18307_v34  ;;  %13523 = vmatprep.subr.bf16.mxu1 %v18310_v19  ;;  %v18394_v34 = vld [vmem:[#allocation18 + $0x30c] ss:$16 sps:$4 sm:$0xff]   ;;  %v18389_v19 = vld [vmem:[#allocation18 + $0x108] ss:$16 sps:$4 sm:$0xff]  }
 0xe53   :  { %13483 = vmatpush1.bf16.msra.mxu0 %v18305_v36  ;;  %13524 = vmatpush1.bf16.msra.mxu1 %v18308_v60  ;;  %v18392_v36 = vld [vmem:[#allocation18 + $0x308] ss:$16 sps:$4 sm:$0xff]   ;;  %v18397_v60 = vld [vmem:[#allocation20 + $0xe4] ss:$16 sps:$4 sm:$0xff]  }
 0xe54   :  { %13484 = vmatprep.subr.bf16.mxu0 %v18313_v6  ;;  %13525 = vmatprep.subr.bf16.mxu1 %v18316_v46  ;;  %v18395_v6 = vld [vmem:[#allocation20 + $0xe0] ss:$16 sps:$4 sm:$0xff]   ;;  %v18400_v46 = vld [vmem:[#allocation20 + $0xc4] ss:$16 sps:$4 sm:$0xff]  }
 0xe57   :  { %13485 = vmatpush1.bf16.msra.mxu0 %v18311_v1  ;;  %13526 = vmatpush1.bf16.msra.mxu1 %v18314_v33  ;;  %v18398_v1 = vld [vmem:[#allocation20 + $0xc0] ss:$16 sps:$4 sm:$0xff]   ;;  %v18403_v33 = vld [vmem:[#allocation20 + $0xa4] ss:$16 sps:$4 sm:$0xff]  }
 0xe58   :  { %13486 = vmatprep.subr.bf16.mxu0 %v18319_v11  ;;  %13527 = vmatprep.subr.bf16.mxu1 %v18322_v16  ;;  %v18401_v11 = vld [vmem:[#allocation20 + $0xa0] ss:$16 sps:$4 sm:$0xff]   ;;  %v18406_v16 = vld [vmem:[#allocation20 + $0x84] ss:$16 sps:$4 sm:$0xff]  }
 0xe5b   :  { %13487 = vmatpush1.bf16.msra.mxu0 %v18317_v53  ;;  %13528 = vmatpush1.bf16.msra.mxu1 %v18320_v51  ;;  %v18404_v53 = vld [vmem:[#allocation20 + $0x80] ss:$16 sps:$4 sm:$0xff]  }
 0xe5c   :  { %13488 = vmatprep.subr.bf16.mxu0 %v18325_v21  ;;  %13529 = vmatprep.subr.bf16.mxu1 %v18328_v18  ;;  %v18443_v51 = vld [vmem:[#allocation20 + $0x2e0] ss:$16 sps:$4 sm:$0xff]   ;;  %v18445_v21 = vld [vmem:[#allocation20 + $0x2e4] ss:$16 sps:$4 sm:$0xff]  }
 0xe5d   :  { %v18409_v18 = vld [vmem:[#allocation20 + $0x64] ss:$16 sps:$4 sm:$0xff]  }
 0xe5f   :  { %13489 = vmatpush1.bf16.msra.mxu0 %v18323_v12  ;;  %13530 = vmatpush1.bf16.msra.mxu1 %v18326_v28  ;;  %v18449_v12 = vld [vmem:[#allocation20 + $0x2c0] ss:$16 sps:$4 sm:$0xff]   ;;  %v18412_v28 = vld [vmem:[#allocation20 + $0x44] ss:$16 sps:$4 sm:$0xff]  }
 0xe60   :  { %13490 = vmatprep.subr.bf16.mxu0 %v18331_v22  ;;  %13531 = vmatprep.subr.bf16.mxu1 %v18334_v49  ;;  %v18410_v22 = vld [vmem:[#allocation20 + $0x40] ss:$16 sps:$4 sm:$0xff]  }
 0xe61   :  { %v18455_v49 = vld [vmem:[#allocation20 + $0x2a0] ss:$16 sps:$4 sm:$0xff]  }
 0xe63   :  { %13491 = vmatpush1.bf16.msra.mxu0 %v18329_v0  ;;  %13532 = vmatpush1.bf16.msra.mxu1 %v18332_v39  ;;  %v18457_v0 = vld [vmem:[#allocation20 + $0x2a4] ss:$16 sps:$4 sm:$0xff]  }
 0xe64   :  { %13492 = vmatprep.subr.bf16.mxu0 %v18337_v32  ;;  %13533 = vmatprep.subr.bf16.mxu1 %v18340_v56  ;;  %v18415_v39 = vld [vmem:[#allocation20 + $0x24] ss:$16 sps:$4 sm:$0xff]   ;;  %v18413_v32 = vld [vmem:[#allocation20 + $0x20] ss:$16 sps:$4 sm:$0xff]  }
 0xe65   :  { %v18461_v56 = vld [vmem:[#allocation20 + $0x280] ss:$16 sps:$4 sm:$0xff]  }
 0xe67   :  { %13493 = vmatpush1.bf16.msra.mxu0 %v18335_v30  ;;  %13534 = vmatpush1.bf16.msra.mxu1 %v18338_v25  ;;  %v18463_v30 = vld [vmem:[#allocation20 + $0x284] ss:$16 sps:$4 sm:$0xff]  }
 0xe68   :  { %13494 = vmatprep.subr.bf16.mxu0 %v18343_v44  ;;  %13535 = vmatprep.subr.bf16.mxu1 %v18346_v42  ;;  %v18418_v25 = vld [vmem:[#allocation20 + $0x4] ss:$16 sps:$4 sm:$0xff]   ;;  %v18416_v44 = vld [vmem:[#allocation20] ss:$16 sps:$4 sm:$0xff]  }
 0xe69   :  { %v18467_v42 = vld [vmem:[#allocation20 + $0x260] ss:$16 sps:$4 sm:$0xff]  }
 0xe6b   :  { %13495 = vmatpush1.bf16.msra.mxu0 %v18341_v29  ;;  %13536 = vmatpush1.bf16.msra.mxu1 %v18344_v58  ;;  %v18469_v29 = vld [vmem:[#allocation20 + $0x264] ss:$16 sps:$4 sm:$0xff]  }
 0xe6c   :  { %13496 = vmatprep.subr.bf16.mxu0 %v18349_v48  ;;  %13537 = vmatprep.subr.bf16.mxu1 %v18352_v61  ;;  %v18421_v58 = vld [vmem:[#allocation20 + $0x1e4] ss:$16 sps:$4 sm:$0xff]   ;;  %v18419_v48 = vld [vmem:[#allocation20 + $0x1e0] ss:$16 sps:$4 sm:$0xff]  }
 0xe6d   :  { %v18473_v61 = vld [vmem:[#allocation20 + $0x240] ss:$16 sps:$4 sm:$0xff]  }
 0xe6f   :  { %13497 = vmatpush2.bf16.msra.mxu0 %v18347_v23  ;;  %13538 = vmatpush2.bf16.msra.mxu1 %v18350_v45  ;;  %v18475_v23 = vld [vmem:[#allocation20 + $0x244] ss:$16 sps:$4 sm:$0xff]  }
 0xe70   :  { %13498 = vmatprep.subr.bf16.mxu0 %v18355_v55  ;;  %13539 = vmatprep.subr.bf16.mxu1 %v18358_v20  ;;  %v18424_v45 = vld [vmem:[#allocation20 + $0x1c4] ss:$16 sps:$4 sm:$0xff]   ;;  %v18422_v55 = vld [vmem:[#allocation20 + $0x1c0] ss:$16 sps:$4 sm:$0xff]  }
 0xe71   :  { %v18479_v20 = vld [vmem:[#allocation20 + $0x220] ss:$16 sps:$4 sm:$0xff]  }
 0xe73   :  { %13499 = vmatpush2.bf16.msra.mxu0 %v18353_v5  ;;  %13540 = vmatpush2.bf16.msra.mxu1 %v18356_v3  ;;  %v18481_v5 = vld [vmem:[#allocation20 + $0x224] ss:$16 sps:$4 sm:$0xff]  }
 0xe74   :  { %13500 = vmatprep.subr.bf16.mxu0 %v18361_v63  ;;  %13541 = vmatprep.subr.bf16.mxu1 %v18364_v35  ;;  %v18427_v3 = vld [vmem:[#allocation20 + $0x1a4] ss:$16 sps:$4 sm:$0xff]   ;;  %v18425_v63 = vld [vmem:[#allocation20 + $0x1a0] ss:$16 sps:$4 sm:$0xff]  }
 0xe75   :  { %v18485_v35 = vld [vmem:[#allocation20 + $0x200] ss:$16 sps:$4 sm:$0xff]  }
 0xe77   :  { %13501 = vmatpush2.bf16.msra.mxu0 %v18359_v57  ;;  %13542 = vmatpush2.bf16.msra.mxu1 %v18362_v17  ;;  %v18487_v57 = vld [vmem:[#allocation20 + $0x204] ss:$16 sps:$4 sm:$0xff]  }
 0xe78   :  { %13502 = vmatprep.subr.bf16.mxu0 %v18367_v62  ;;  %13543 = vmatprep.subr.bf16.mxu1 %v18370_v43  ;;  %v18430_v17 = vld [vmem:[#allocation20 + $0x184] ss:$16 sps:$4 sm:$0xff]   ;;  %v18428_v62 = vld [vmem:[#allocation20 + $0x180] ss:$16 sps:$4 sm:$0xff]  }
 0xe79   :  { %v18491_v43 = vld [vmem:[#allocation20 + $0x3e0] ss:$16 sps:$4 sm:$0xff]  }
 0xe7b   :  { %13503 = vmatpush2.bf16.msra.mxu0 %v18365_v2  ;;  %13544 = vmatpush2.bf16.msra.mxu1 %v18368_v7  ;;  %v18493_v2 = vld [vmem:[#allocation20 + $0x3e4] ss:$16 sps:$4 sm:$0xff]  }
 0xe7c   :  { %13504 = vmatprep.subr.bf16.mxu0 %v18373_v9  ;;  %13545 = vmatprep.subr.bf16.mxu1 %v18376_v15  ;;  %v18433_v7 = vld [vmem:[#allocation20 + $0x164] ss:$16 sps:$4 sm:$0xff]   ;;  %v18431_v9 = vld [vmem:[#allocation20 + $0x160] ss:$16 sps:$4 sm:$0xff]  }
 0xe7d   :  { %v18497_v15 = vld [vmem:[#allocation20 + $0x3c0] ss:$16 sps:$4 sm:$0xff]  }
 0xe7f   :  { %13505 = vmatpush2.bf16.msra.mxu0 %v18371_v4  ;;  %13546 = vmatpush2.bf16.msra.mxu1 %v18374_v13  ;;  %v18499_v4 = vld [vmem:[#allocation20 + $0x3c4] ss:$16 sps:$4 sm:$0xff]  }
 0xe80   :  { %13506 = vmatprep.subr.bf16.mxu0 %v18379_v59  ;;  %13547 = vmatprep.subr.bf16.mxu1 %v18382_v26  ;;  %v18436_v13 = vld [vmem:[#allocation20 + $0x144] ss:$16 sps:$4 sm:$0xff]   ;;  %v18434_v59 = vld [vmem:[#allocation20 + $0x140] ss:$16 sps:$4 sm:$0xff]  }
 0xe81   :  { %v18503_v26 = vld [vmem:[#allocation20 + $0x3a0] ss:$16 sps:$4 sm:$0xff]  }
 0xe83   :  { %13507 = vmatpush2.bf16.msra.mxu0 %v18377_v8  ;;  %13548 = vmatpush2.bf16.msra.mxu1 %v18380_v50  ;;  %v18505_v8 = vld [vmem:[#allocation20 + $0x3a4] ss:$16 sps:$4 sm:$0xff]  }
 0xe84   :  { %13508 = vmatprep.subr.bf16.mxu0 %v18385_v24  ;;  %13549 = vmatprep.subr.bf16.mxu1 %v18388_v14  ;;  %v18439_v50 = vld [vmem:[#allocation20 + $0x124] ss:$16 sps:$4 sm:$0xff]   ;;  %v18437_v24 = vld [vmem:[#allocation20 + $0x120] ss:$16 sps:$4 sm:$0xff]  }
 0xe85   :  { %v18509_v14 = vld [vmem:[#allocation20 + $0x380] ss:$16 sps:$4 sm:$0xff]  }
 0xe87   :  { %13509 = vmatpush2.bf16.msra.mxu0 %v18383_v52  ;;  %13550 = vmatpush2.bf16.msra.mxu1 %v18386_v10  ;;  %v18511_v52 = vld [vmem:[#allocation20 + $0x384] ss:$16 sps:$4 sm:$0xff]  }
 0xe88   :  { %13510 = vmatprep.subr.bf16.mxu0 %v18391_v54  ;;  %13551 = vmatprep.subr.bf16.mxu1 %v18394_v34  ;;  %v18442_v10 = vld [vmem:[#allocation20 + $0x104] ss:$16 sps:$4 sm:$0xff]   ;;  %v18440_v54 = vld [vmem:[#allocation20 + $0x100] ss:$16 sps:$4 sm:$0xff]  }
 0xe89   :  { %v18515_v34 = vld [vmem:[#allocation20 + $0x360] ss:$16 sps:$4 sm:$0xff]  }
 0xe8b   :  { %13511 = vmatpush2.bf16.msra.mxu0 %v18389_v19  ;;  %13552 = vmatpush2.bf16.msra.mxu1 %v18392_v36  ;;  %v18517_v19 = vld [vmem:[#allocation20 + $0x364] ss:$16 sps:$4 sm:$0xff]   ;;  %v18448_v36 = vld [vmem:[#allocation20 + $0xec] ss:$16 sps:$4 sm:$0xff]  }
 0xe8c   :  { %14360 = vmatprep.subr.bf16.mxu0 %v18397_v60  ;;  %14401 = vmatprep.subr.bf16.mxu1 %v18445_v21  ;;  %v18521_v60 = vld [vmem:[#allocation20 + $0x340] ss:$16 sps:$4 sm:$0xff]  }
 0xe8e   :  { %13513 = vmatmul.mubr.bf16.vlgmr.msra.gmra.mxu0 %v19911_v27  ;;  %13554 = vmatmul.mubr.bf16.vlgmr.msra.gmra.mxu1 %v19913_v47  ;;  %v18407_v27 = vld [vmem:[#allocation20 + $0x60] ss:$16 sps:$4 sm:$0xff]   ;;  %v18451_v47 = vld [vmem:[#allocation20 + $0x2c4] ss:$16 sps:$4 sm:$0xff]  }
 0xe8f   :  { %14361 = vmatpush1.bf16.msra.mxu0 %v18395_v6  ;;  %14402 = vmatpush1.bf16.msra.mxu1 %v18443_v51  ;;  %v18523_v6 = vld [vmem:[#allocation20 + $0x344] ss:$16 sps:$4 sm:$0xff]  }
 0xe90   :  { %14362 = vmatprep.subr.bf16.mxu0 %v18400_v46  ;;  %14403 = vmatprep.subr.bf16.mxu1 %v18451_v47  ;;  %v18529_v46 = vld [vmem:[#allocation20 + $0x324] ss:$16 sps:$4 sm:$0xff]  }
 0xe93   :  { %14363 = vmatpush1.bf16.msra.mxu0 %v18398_v1  ;;  %14404 = vmatpush1.bf16.msra.mxu1 %v18449_v12  ;;  %v18527_v1 = vld [vmem:[#allocation20 + $0x320] ss:$16 sps:$4 sm:$0xff]  }
 0xe94   :  { %14364 = vmatprep.subr.bf16.mxu0 %v18403_v33  ;;  %14405 = vmatprep.subr.bf16.mxu1 %v18457_v0  ;;  %v18535_v33 = vld [vmem:[#allocation20 + $0x304] ss:$16 sps:$4 sm:$0xff]  }
 0xe97   :  { %14365 = vmatpush1.bf16.msra.mxu0 %v18401_v11  ;;  %14406 = vmatpush1.bf16.msra.mxu1 %v18455_v49  ;;  %v18533_v11 = vld [vmem:[#allocation20 + $0x300] ss:$16 sps:$4 sm:$0xff]  }
 0xe98   :  { %14366 = vmatprep.subr.bf16.mxu0 %v18406_v16  ;;  %14407 = vmatprep.subr.bf16.mxu1 %v18463_v30  ;;  %v18541_v16 = vld [vmem:[#allocation20 + $0x2ec] ss:$16 sps:$4 sm:$0xff]  }
 0xe9b   :  { %14367 = vmatpush1.bf16.msra.mxu0 %v18404_v53  ;;  %14408 = vmatpush1.bf16.msra.mxu1 %v18461_v56  ;;  %v19919_v53 = vld [vmem:[#allocation26 + $0x22] sm:$0xf] }
 0xe9c   :  { %14368 = vmatprep.subr.bf16.mxu0 %v18409_v18  ;;  %14409 = vmatprep.subr.bf16.mxu1 %v18469_v29  ;;  %v13381_v51 = vrot.slane %v19919_v53, %v19393_v37  ;;  %v13385_v21 = vrot.slane %v19919_v53, %v19399_v40  ;;  %v18446_v29 = vld [vmem:[#allocation20 + $0xe8] ss:$16 sps:$4 sm:$0xff]  }
 0xe9f   :  { %14369 = vmatpush1.bf16.msra.mxu0 %v18407_v27  ;;  %14410 = vmatpush1.bf16.msra.mxu1 %v18467_v42 }
 0xea0   :  { %14370 = vmatprep.subr.bf16.mxu0 %v18412_v28  ;;  %14411 = vmatprep.subr.bf16.mxu1 %v18475_v23  ;;  %v18460_v23 = vld [vmem:[#allocation20 + $0xac] ss:$16 sps:$4 sm:$0xff]  }
 0xea3   :  { %14371 = vmatpush1.bf16.msra.mxu0 %v18410_v22  ;;  %14412 = vmatpush1.bf16.msra.mxu1 %v18473_v61  ;;  %v18452_v61 = vld [vmem:[#allocation20 + $0xc8] ss:$16 sps:$4 sm:$0xff]  }
 0xea4   :  { %14372 = vmatprep.subr.bf16.mxu0 %v18415_v39  ;;  %14413 = vmatprep.subr.bf16.mxu1 %v18481_v5  ;;  %v18472_v5 = vld [vmem:[#allocation20 + $0x6c] ss:$16 sps:$4 sm:$0xff]  }
 0xea7   :  { %14373 = vmatpush1.bf16.msra.mxu0 %v18413_v32  ;;  %14414 = vmatpush1.bf16.msra.mxu1 %v18479_v20  ;;  %v18464_v20 = vld [vmem:[#allocation20 + $0x88] ss:$16 sps:$4 sm:$0xff]  }
 0xea8   :  { %14374 = vmatprep.subr.bf16.mxu0 %v18418_v25  ;;  %14415 = vmatprep.subr.bf16.mxu1 %v18487_v57  ;;  %v18484_v57 = vld [vmem:[#allocation20 + $0x2c] ss:$16 sps:$4 sm:$0xff]  }
 0xeab   :  { %14375 = vmatpush1.bf16.msra.mxu0 %v18416_v44  ;;  %14416 = vmatpush1.bf16.msra.mxu1 %v18485_v35  ;;  %v18476_v35 = vld [vmem:[#allocation20 + $0x48] ss:$16 sps:$4 sm:$0xff]  }
 0xeac   :  { %14376 = vmatprep.subr.bf16.mxu0 %v18421_v58  ;;  %14417 = vmatprep.subr.bf16.mxu1 %v18493_v2  ;;  %v18496_v2 = vld [vmem:[#allocation20 + $0x1ec] ss:$16 sps:$4 sm:$0xff]  }
 0xeaf   :  { %14377 = vmatpush2.bf16.msra.mxu0 %v18419_v48  ;;  %14418 = vmatpush2.bf16.msra.mxu1 %v18491_v43  ;;  %v18454_v48 = vld [vmem:[#allocation20 + $0xcc] ss:$16 sps:$4 sm:$0xff]   ;;  %v18488_v43 = vld [vmem:[#allocation20 + $0x8] ss:$16 sps:$4 sm:$0xff]  }
 0xeb0   :  { %14378 = vmatprep.subr.bf16.mxu0 %v18424_v45  ;;  %14419 = vmatprep.subr.bf16.mxu1 %v18499_v4  ;;  %v18458_v45 = vld [vmem:[#allocation20 + $0xa8] ss:$16 sps:$4 sm:$0xff]   ;;  %v18508_v4 = vld [vmem:[#allocation20 + $0x1ac] ss:$16 sps:$4 sm:$0xff]  }
 0xeb3   :  { %14379 = vmatpush2.bf16.msra.mxu0 %v18422_v55  ;;  %14420 = vmatpush2.bf16.msra.mxu1 %v18497_v15  ;;  %v18466_v55 = vld [vmem:[#allocation20 + $0x8c] ss:$16 sps:$4 sm:$0xff]   ;;  %v18500_v15 = vld [vmem:[#allocation20 + $0x1c8] ss:$16 sps:$4 sm:$0xff]  }
 0xeb4   :  { %14380 = vmatprep.subr.bf16.mxu0 %v18427_v3  ;;  %14421 = vmatprep.subr.bf16.mxu1 %v18505_v8  ;;  %v18470_v3 = vld [vmem:[#allocation20 + $0x68] ss:$16 sps:$4 sm:$0xff]   ;;  %v18520_v8 = vld [vmem:[#allocation20 + $0x16c] ss:$16 sps:$4 sm:$0xff]  }
 0xeb7   :  { %14381 = vmatpush2.bf16.msra.mxu0 %v18425_v63  ;;  %14422 = vmatpush2.bf16.msra.mxu1 %v18503_v26  ;;  %v18478_v63 = vld [vmem:[#allocation20 + $0x4c] ss:$16 sps:$4 sm:$0xff]   ;;  %v18512_v26 = vld [vmem:[#allocation20 + $0x188] ss:$16 sps:$4 sm:$0xff]  }
 0xeb8   :  { %14382 = vmatprep.subr.bf16.mxu0 %v18430_v17  ;;  %14423 = vmatprep.subr.bf16.mxu1 %v18511_v52  ;;  %v18482_v17 = vld [vmem:[#allocation20 + $0x28] ss:$16 sps:$4 sm:$0xff]  }
 0xeb9   :  { %v18524_v52 = vld [vmem:[#allocation20 + $0x148] ss:$16 sps:$4 sm:$0xff]  }
 0xebb   :  { %14383 = vmatpush2.bf16.msra.mxu0 %v18428_v62  ;;  %14424 = vmatpush2.bf16.msra.mxu1 %v18509_v14  ;;  %v18490_v62 = vld [vmem:[#allocation20 + $0xc] ss:$16 sps:$4 sm:$0xff]   ;;  %v13389_v14 = vrot.slane %v19919_v53, %v19396_v38 }
 0xebc   :  { %14384 = vmatprep.subr.bf16.mxu0 %v18433_v7  ;;  %14425 = vmatprep.subr.bf16.mxu1 %v18517_v19  ;;  %v18494_v7 = vld [vmem:[#allocation20 + $0x1e8] ss:$16 sps:$4 sm:$0xff]  }
 0xebf   :  { %14385 = vmatpush2.bf16.msra.mxu0 %v18431_v9  ;;  %14426 = vmatpush2.bf16.msra.mxu1 %v18515_v34  ;;  %v18502_v9 = vld [vmem:[#allocation20 + $0x1cc] ss:$16 sps:$4 sm:$0xff]  }
 0xec0   :  { %14386 = vmatprep.subr.bf16.mxu0 %v18436_v13  ;;  %14427 = vmatprep.subr.bf16.mxu1 %v18523_v6  ;;  %v18506_v13 = vld [vmem:[#allocation20 + $0x1a8] ss:$16 sps:$4 sm:$0xff]  }
 0xec3   :  { %14387 = vmatpush2.bf16.msra.mxu0 %v18434_v59  ;;  %14428 = vmatpush2.bf16.msra.mxu1 %v18521_v60  ;;  %v18514_v59 = vld [vmem:[#allocation20 + $0x18c] ss:$16 sps:$4 sm:$0xff]   ;;  %v18530_v60 = vld [vmem:[#allocation20 + $0x128] ss:$16 sps:$4 sm:$0xff]  }
 0xec4   :  { %14388 = vmatprep.subr.bf16.mxu0 %v18439_v50  ;;  %14429 = vmatprep.subr.bf16.mxu1 %v18529_v46  ;;  %v18518_v50 = vld [vmem:[#allocation20 + $0x168] ss:$16 sps:$4 sm:$0xff]  }
 0xec7   :  { %14389 = vmatpush2.bf16.msra.mxu0 %v18437_v24  ;;  %14430 = vmatpush2.bf16.msra.mxu1 %v18527_v1  ;;  %v18526_v24 = vld [vmem:[#allocation20 + $0x14c] ss:$16 sps:$4 sm:$0xff]  }
 0xec8   :  { %14390 = vmatprep.subr.bf16.mxu0 %v18442_v10  ;;  %14431 = vmatprep.subr.bf16.mxu1 %v18535_v33  ;;  %v18532_v10 = vld [vmem:[#allocation20 + $0x12c] ss:$16 sps:$4 sm:$0xff]  }
 0xec9   :  { %v18538_v1 = vld [vmem:[#allocation20 + $0x10c] ss:$16 sps:$4 sm:$0xff]  }
 0xecb   :  { %14391 = vmatpush2.bf16.msra.mxu0 %v18440_v54  ;;  %14432 = vmatpush2.bf16.msra.mxu1 %v18533_v11  ;;  %v13393_v54 = vrot.slane %v19919_v53, %v19402_v41 }
 0xecc   :  { %14442 = vmatprep.subr.bf16.mxu0 %v18448_v36  ;;  %14483 = vmatprep.subr.bf16.mxu1 %v18541_v16 }
 0xf0e   :  { %v13432_v18 = vpop.f32.mrf.mxu0  ;;  %v13473_v27 = vpop.f32.mrf.mxu1 }
 0xf0f   :  { %v13433_v12 = vadd.f32 %v13432_v18, %v13381_v51  ;;  %v18536_v18 = vld [vmem:[#allocation20 + $0x108] ss:$16 sps:$4 sm:$0xff]  }
 0xf10   :  { %v13434_v47 = vpop.f32.mrf.mxu0  ;;  %v13475_v28 = vpop.f32.mrf.mxu1 }
 0xf11   :  { %v13474_v22 = vadd.f32 %v13473_v27, %v13433_v12  ;;  %v13435_v49 = vadd.f32 %v13434_v47, %v13385_v21 }
 0xf12   :  { %v13436_v0 = vpop.f32.mrf.mxu0  ;;  %v13477_v39 = vpop.f32.mrf.mxu1 }
 0xf13   :  { %v13476_v32 = vadd.f32 %v13475_v28, %v13435_v49  ;;  %v13562_v56 = vmax.f32 %v13474_v22, 0.0  ;;  %v18539_v22 = vld [vmem:[#allocation20 + $0x2e8] ss:$16 sps:$4 sm:$0xff]   ;;  %v18544_v0 = vld [vmem:[#allocation20 + $0x2cc] ss:$16 sps:$4 sm:$0xff]  }
 0xf14   :  { %v13437_v30 = vpop.f32.mrf.mxu0  ;;  %v13478_v25 = vpop.f32.mrf.mxu1  ;;  %v18542_v39 = vld [vmem:[#allocation20 + $0x2c8] ss:$16 sps:$4 sm:$0xff]  }
 0xf15   :  { %v13563_v44 = vmax.f32 %v13476_v32, 0.0  ;;  %v19925_v58 = vpack.c.bf16 %v13562_v56, %v13562_v56  ;;  %v18547_v32 = vld [vmem:[#allocation20 + $0x2ac] ss:$16 sps:$4 sm:$0xff]   ;;  %v18545_v56 = vld [vmem:[#allocation20 + $0x2a8] ss:$16 sps:$4 sm:$0xff]  }
 0xf16   :  { %v18550_v30 = vld [vmem:[#allocation20 + $0x28c] ss:$16 sps:$4 sm:$0xff]   ;;  %v18587_v25 = vld [vmem:[#allocation21 + $0x70] ss:$8 sps:$4 sm:$0xff]  }
 0xf17   :  { %v13696_v42 = vpack.c.bf16 %v13563_v44, %v13563_v44  ;;  %v18589_v44 = vld [vmem:[#allocation21 + $0x74] ss:$8 sps:$4 sm:$0xff]  }
 0xf19   :  { %14392 = vmatprep.mubr.bf16.mxu0 %v13696_v42 }
 0xf1a   :  { %14393 = vmatmul.mubr.bf16.vlgmr.msra.gmra.mxu0 %v19925_v58 }
 0xf1b   :  { %14443 = vmatpush1.bf16.msra.mxu0 %v18446_v29  ;;  %14474 = vmatprep.mubr.bf16.mxu0 %v13696_v42  ;;  %v18592_v42 = vld [vmem:[#allocation21 + $0x64] ss:$8 sps:$4 sm:$0xff]   ;;  %v18548_v29 = vld [vmem:[#allocation20 + $0x288] ss:$16 sps:$4 sm:$0xff]  }
 0xf1c   :  { %14444 = vmatprep.subr.bf16.mxu0 %v18454_v48  ;;  %v18590_v48 = vld [vmem:[#allocation21 + $0x60] ss:$8 sps:$4 sm:$0xff]  }
 0xf1f   :  { %14445 = vmatpush1.bf16.msra.mxu0 %v18452_v61  ;;  %v18553_v61 = vld [vmem:[#allocation20 + $0x26c] ss:$16 sps:$4 sm:$0xff]  }
 0xf20   :  { %14446 = vmatprep.subr.bf16.mxu0 %v18460_v23  ;;  %v18551_v23 = vld [vmem:[#allocation20 + $0x268] ss:$16 sps:$4 sm:$0xff]  }
 0xf23   :  { %14447 = vmatpush1.bf16.msra.mxu0 %v18458_v45  ;;  %v18593_v45 = vld [vmem:[#allocation21 + $0x50] ss:$8 sps:$4 sm:$0xff]  }
 0xf24   :  { %14448 = vmatprep.subr.bf16.mxu0 %v18466_v55  ;;  %v18556_v55 = vld [vmem:[#allocation20 + $0x24c] ss:$16 sps:$4 sm:$0xff]  }
 0xf27   :  { %14449 = vmatpush1.bf16.msra.mxu0 %v18464_v20  ;;  %v18598_v20 = vld [vmem:[#allocation21 + $0x44] ss:$8 sps:$4 sm:$0xff]  }
 0xf28   :  { %14450 = vmatprep.subr.bf16.mxu0 %v18472_v5  ;;  %v18554_v5 = vld [vmem:[#allocation20 + $0x248] ss:$16 sps:$4 sm:$0xff]  }
 0xf2b   :  { %14451 = vmatpush1.bf16.msra.mxu0 %v18470_v3  ;;  %v18596_v3 = vld [vmem:[#allocation21 + $0x40] ss:$8 sps:$4 sm:$0xff]  }
 0xf2c   :  { %14452 = vmatprep.subr.bf16.mxu0 %v18478_v63  ;;  %v18559_v63 = vld [vmem:[#allocation20 + $0x22c] ss:$16 sps:$4 sm:$0xff]  }
 0xf2f   :  { %14453 = vmatpush1.bf16.msra.mxu0 %v18476_v35  ;;  %v18601_v35 = vld [vmem:[#allocation21 + $0x34] ss:$8 sps:$4 sm:$0xff]  }
 0xf30   :  { %14454 = vmatprep.subr.bf16.mxu0 %v18484_v57  ;;  %v18557_v57 = vld [vmem:[#allocation20 + $0x228] ss:$16 sps:$4 sm:$0xff]  }
 0xf33   :  { %14455 = vmatpush1.bf16.msra.mxu0 %v18482_v17  ;;  %v18599_v17 = vld [vmem:[#allocation21 + $0x30] ss:$8 sps:$4 sm:$0xff]  }
 0xf34   :  { %14456 = vmatprep.subr.bf16.mxu0 %v18490_v62  ;;  %v18562_v62 = vld [vmem:[#allocation20 + $0x20c] ss:$16 sps:$4 sm:$0xff]  }
 0xf37   :  { %14457 = vmatpush1.bf16.msra.mxu0 %v18488_v43  ;;  %v18604_v43 = vld [vmem:[#allocation21 + $0x24] ss:$8 sps:$4 sm:$0xff]  }
 0xf38   :  { %14458 = vmatprep.subr.bf16.mxu0 %v18496_v2  ;;  %v18560_v2 = vld [vmem:[#allocation20 + $0x208] ss:$16 sps:$4 sm:$0xff]  }
 0xf3b   :  { %14459 = vmatpush2.bf16.msra.mxu0 %v18494_v7  ;;  %v18602_v7 = vld [vmem:[#allocation21 + $0x20] ss:$8 sps:$4 sm:$0xff]  }
 0xf3c   :  { %14460 = vmatprep.subr.bf16.mxu0 %v18502_v9  ;;  %v18565_v9 = vld [vmem:[#allocation20 + $0x3ec] ss:$16 sps:$4 sm:$0xff]  }
 0xf3f   :  { %14461 = vmatpush2.bf16.msra.mxu0 %v18500_v15  ;;  %v18607_v15 = vld [vmem:[#allocation21 + $0x14] ss:$8 sps:$4 sm:$0xff]  }
 0xf40   :  { %14462 = vmatprep.subr.bf16.mxu0 %v18508_v4  ;;  %v18563_v4 = vld [vmem:[#allocation20 + $0x3e8] ss:$16 sps:$4 sm:$0xff]  }
 0xf43   :  { %14463 = vmatpush2.bf16.msra.mxu0 %v18506_v13  ;;  %v18605_v13 = vld [vmem:[#allocation21 + $0x10] ss:$8 sps:$4 sm:$0xff]  }
 0xf44   :  { %14464 = vmatprep.subr.bf16.mxu0 %v18514_v59  ;;  %v18568_v59 = vld [vmem:[#allocation20 + $0x3cc] ss:$16 sps:$4 sm:$0xff]  }
 0xf47   :  { %14465 = vmatpush2.bf16.msra.mxu0 %v18512_v26  ;;  %v18610_v26 = vld [vmem:[#allocation21 + $0x4] ss:$8 sps:$4 sm:$0xff]  }
 0xf48   :  { %14466 = vmatprep.subr.bf16.mxu0 %v18520_v8  ;;  %v18566_v8 = vld [vmem:[#allocation20 + $0x3c8] ss:$16 sps:$4 sm:$0xff]  }
 0xf4b   :  { %14467 = vmatpush2.bf16.msra.mxu0 %v18518_v50  ;;  %v18608_v50 = vld [vmem:[#allocation21] ss:$8 sps:$4 sm:$0xff]  }
 0xf4c   :  { %14468 = vmatprep.subr.bf16.mxu0 %v18526_v24  ;;  %v18571_v24 = vld [vmem:[#allocation20 + $0x3ac] ss:$16 sps:$4 sm:$0xff]  }
 0xf4e   :  { %v13514_v34 = vpop.f32.mrf.mxu0  ;;  %v13555_v19 = vpop.f32.mrf.mxu1 }
 0xf4f   :  { %v13515_v36 = vadd.f32 %v13514_v34, %v13389_v14  ;;  %14469 = vmatpush2.bf16.msra.mxu0 %v18524_v52  ;;  %v18613_v14 = vld [vmem:[#allocation21 + $0xf4] ss:$8 sps:$4 sm:$0xff]   ;;  %v18569_v52 = vld [vmem:[#allocation20 + $0x3a8] ss:$16 sps:$4 sm:$0xff]   ;;  %v18616_v34 = vld [vmem:[#allocation21 + $0xe4] ss:$8 sps:$4 sm:$0xff]  }
 0xf50   :  { %v13516_v6 = vpop.f32.mrf.mxu0  ;;  %v13557_v46 = vpop.f32.mrf.mxu1  ;;  %14470 = vmatprep.subr.bf16.mxu0 %v18532_v10  ;;  %v18611_v10 = vld [vmem:[#allocation21 + $0xf0] ss:$8 sps:$4 sm:$0xff]  }
 0xf51   :  { %v13556_v33 = vadd.f32 %v13555_v19, %v13515_v36  ;;  %v13517_v11 = vadd.f32 %v13516_v6, %v13393_v54  ;;  %v18574_v54 = vld [vmem:[#allocation20 + $0x38c] ss:$16 sps:$4 sm:$0xff]   ;;  %v18572_v19 = vld [vmem:[#allocation20 + $0x388] ss:$16 sps:$4 sm:$0xff]  }
 0xf52   :  { %v13518_v16 = vpop.f32.mrf.mxu0  ;;  %v13559_v51 = vpop.f32.mrf.mxu1  ;;  %v18614_v36 = vld [vmem:[#allocation21 + $0xe0] ss:$8 sps:$4 sm:$0xff]   ;;  %v18619_v6 = vld [vmem:[#allocation21 + $0xd4] ss:$8 sps:$4 sm:$0xff]  }
 0xf53   :  { %v13558_v21 = vadd.f32 %v13557_v46, %v13517_v11  ;;  %14471 = vmatpush2.bf16.msra.mxu0 %v18530_v60  ;;  %v13564_v27 = vmax.f32 %v13556_v33, 0.0  ;;  %v18577_v60 = vld [vmem:[#allocation20 + $0x36c] ss:$16 sps:$4 sm:$0xff]   ;;  %v18575_v46 = vld [vmem:[#allocation20 + $0x368] ss:$16 sps:$4 sm:$0xff]  }
 0xf54   :  { %v13519_v12 = vpop.f32.mrf.mxu0  ;;  %v13560_v47 = vpop.f32.mrf.mxu1  ;;  %14472 = vmatprep.subr.bf16.mxu0 %v18538_v1  ;;  %v18617_v1 = vld [vmem:[#allocation21 + $0xd0] ss:$8 sps:$4 sm:$0xff]   ;;  %v18580_v33 = vld [vmem:[#allocation20 + $0x34c] ss:$16 sps:$4 sm:$0xff]   ;;  %v18620_v51 = vld [vmem:[#allocation21 + $0xc0] ss:$8 sps:$4 sm:$0xff]  }
 0xf55   :  { %v13565_v53 = vmax.f32 %v13558_v21, 0.0  ;;  %v19932_v49 = vpack.c.bf16 %v13564_v27, %v13564_v27  ;;  %v18622_v11 = vld [vmem:[#allocation21 + $0xc4] ss:$8 sps:$4 sm:$0xff]   ;;  %v18578_v16 = vld [vmem:[#allocation20 + $0x348] ss:$16 sps:$4 sm:$0xff]  }
 0xf56   :  { %v18583_v21 = vld [vmem:[#allocation20 + $0x32c] ss:$16 sps:$4 sm:$0xff]   ;;  %v18581_v27 = vld [vmem:[#allocation20 + $0x328] ss:$16 sps:$4 sm:$0xff]  }
 0xf57   :  { %v13698_v28 = vpack.c.bf16 %v13565_v53, %v13565_v53  ;;  %14473 = vmatpush2.bf16.msra.mxu0 %v18536_v18  ;;  %v18625_v18 = vld [vmem:[#allocation21 + $0xb4] ss:$8 sps:$4 sm:$0xff]   ;;  %v18623_v12 = vld [vmem:[#allocation21 + $0xb0] ss:$8 sps:$4 sm:$0xff]   ;;  %v18628_v53 = vld [vmem:[#allocation21 + $0xa4] ss:$8 sps:$4 sm:$0xff]  }
 0xf58   :  { %14928 = vmatprep.subr.bf16.mxu0 %v18589_v44  ;;  %v18586_v47 = vld [vmem:[#allocation20 + $0x30c] ss:$16 sps:$4 sm:$0xff]  }
 0xf59   :  { %14433 = vmatprep.mubr.bf16.mxu1 %v13698_v28  ;;  %v18640_v44 = vld [vmem:[#allocation21 + $0x164] ss:$8 sps:$4 sm:$0xff]  }
 0xf5a   :  { %14434 = vmatmul.mubr.bf16.vlgmr.msra.gmra.mxu1 %v19932_v49  ;;  %14475 = vmatmul.mubr.bf16.vlgmr.msra.gmra.mxu0 %v19925_v58  ;;  %v18595_v58 = vld [vmem:[#allocation21 + $0x54] ss:$8 sps:$4 sm:$0xff]  }
 0xf5b   :  { %14484 = vmatpush1.bf16.msra.mxu1 %v18539_v22  ;;  %14515 = vmatprep.mubr.bf16.mxu1 %v13698_v28  ;;  %v18584_v28 = vld [vmem:[#allocation20 + $0x308] ss:$16 sps:$4 sm:$0xff]  }
 0xf5c   :  { %14485 = vmatprep.subr.bf16.mxu1 %v18544_v0  ;;  %14929 = vmatpush1.bf16.msra.mxu0 %v18587_v25  ;;  %v18626_v22 = vld [vmem:[#allocation21 + $0xa0] ss:$8 sps:$4 sm:$0xff]   ;;  %v18631_v0 = vld [vmem:[#allocation21 + $0x94] ss:$8 sps:$4 sm:$0xff]   ;;  %v18635_v25 = vld [vmem:[#allocation21 + $0x170] ss:$8 sps:$4 sm:$0xff]  }
 0xf5d   :  { %14930 = vmatprep.subr.bf16.mxu0 %v18592_v42  ;;  %v18638_v42 = vld [vmem:[#allocation21 + $0x160] ss:$8 sps:$4 sm:$0xff]  }
 0xf5f   :  { %14486 = vmatpush1.bf16.msra.mxu1 %v18542_v39  ;;  %v18629_v39 = vld [vmem:[#allocation21 + $0x90] ss:$8 sps:$4 sm:$0xff]  }
 0xf60   :  { %14487 = vmatprep.subr.bf16.mxu1 %v18547_v32  ;;  %14931 = vmatpush1.bf16.msra.mxu0 %v18590_v48  ;;  %v18634_v32 = vld [vmem:[#allocation21 + $0x84] ss:$8 sps:$4 sm:$0xff]   ;;  %v18641_v48 = vld [vmem:[#allocation21 + $0x150] ss:$8 sps:$4 sm:$0xff]  }
 0xf61   :  { %14932 = vmatprep.subr.bf16.mxu0 %v18595_v58  ;;  %v18649_v58 = vld [vmem:[#allocation21 + $0x134] ss:$8 sps:$4 sm:$0xff]  }
 0xf63   :  { %14488 = vmatpush1.bf16.msra.mxu1 %v18545_v56  ;;  %v18632_v56 = vld [vmem:[#allocation21 + $0x80] ss:$8 sps:$4 sm:$0xff]  }
 0xf64   :  { %14489 = vmatprep.subr.bf16.mxu1 %v18550_v30  ;;  %14933 = vmatpush1.bf16.msra.mxu0 %v18593_v45  ;;  %v18637_v30 = vld [vmem:[#allocation21 + $0x174] ss:$8 sps:$4 sm:$0xff]   ;;  %v18652_v45 = vld [vmem:[#allocation21 + $0x124] ss:$8 sps:$4 sm:$0xff]  }
 0xf65   :  { %14934 = vmatprep.subr.bf16.mxu0 %v18598_v20  ;;  %v18655_v20 = vld [vmem:[#allocation21 + $0x114] ss:$8 sps:$4 sm:$0xff]  }
 0xf67   :  { %14490 = vmatpush1.bf16.msra.mxu1 %v18548_v29  ;;  %v18643_v29 = vld [vmem:[#allocation21 + $0x154] ss:$8 sps:$4 sm:$0xff]  }
 0xf68   :  { %14491 = vmatprep.subr.bf16.mxu1 %v18553_v61  ;;  %14935 = vmatpush1.bf16.msra.mxu0 %v18596_v3  ;;  %v18644_v61 = vld [vmem:[#allocation21 + $0x140] ss:$8 sps:$4 sm:$0xff]   ;;  %v18658_v3 = vld [vmem:[#allocation21 + $0x104] ss:$8 sps:$4 sm:$0xff]  }
 0xf69   :  { %14936 = vmatprep.subr.bf16.mxu0 %v18601_v35  ;;  %v18661_v35 = vld [vmem:[#allocation21 + $0x1f4] ss:$8 sps:$4 sm:$0xff]  }
 0xf6b   :  { %14492 = vmatpush1.bf16.msra.mxu1 %v18551_v23  ;;  %v18647_v23 = vld [vmem:[#allocation21 + $0x130] ss:$8 sps:$4 sm:$0xff]  }
 0xf6c   :  { %14493 = vmatprep.subr.bf16.mxu1 %v18556_v55  ;;  %14937 = vmatpush1.bf16.msra.mxu0 %v18599_v17  ;;  %v18650_v55 = vld [vmem:[#allocation21 + $0x120] ss:$8 sps:$4 sm:$0xff]   ;;  %v18664_v17 = vld [vmem:[#allocation21 + $0x1e4] ss:$8 sps:$4 sm:$0xff]  }
 0xf6d   :  { %14938 = vmatprep.subr.bf16.mxu0 %v18604_v43  ;;  %v18667_v43 = vld [vmem:[#allocation21 + $0x1d4] ss:$8 sps:$4 sm:$0xff]  }
 0xf6f   :  { %14494 = vmatpush1.bf16.msra.mxu1 %v18554_v5  ;;  %v18653_v5 = vld [vmem:[#allocation21 + $0x110] ss:$8 sps:$4 sm:$0xff]  }
 0xf70   :  { %14495 = vmatprep.subr.bf16.mxu1 %v18559_v63  ;;  %14939 = vmatpush1.bf16.msra.mxu0 %v18602_v7  ;;  %v18656_v63 = vld [vmem:[#allocation21 + $0x100] ss:$8 sps:$4 sm:$0xff]   ;;  %v18670_v7 = vld [vmem:[#allocation21 + $0x1c4] ss:$8 sps:$4 sm:$0xff]  }
 0xf71   :  { %14940 = vmatprep.subr.bf16.mxu0 %v18607_v15  ;;  %v18673_v15 = vld [vmem:[#allocation21 + $0x1b4] ss:$8 sps:$4 sm:$0xff]  }
 0xf73   :  { %14496 = vmatpush1.bf16.msra.mxu1 %v18557_v57  ;;  %v18659_v57 = vld [vmem:[#allocation21 + $0x1f0] ss:$8 sps:$4 sm:$0xff]  }
 0xf74   :  { %14497 = vmatprep.subr.bf16.mxu1 %v18562_v62  ;;  %14941 = vmatpush1.bf16.msra.mxu0 %v18605_v13  ;;  %v18662_v62 = vld [vmem:[#allocation21 + $0x1e0] ss:$8 sps:$4 sm:$0xff]   ;;  %v18676_v13 = vld [vmem:[#allocation21 + $0x1a4] ss:$8 sps:$4 sm:$0xff]  }
 0xf75   :  { %14942 = vmatprep.subr.bf16.mxu0 %v18610_v26 }
 0xf77   :  { %14498 = vmatpush1.bf16.msra.mxu1 %v18560_v2  ;;  %v18665_v2 = vld [vmem:[#allocation21 + $0x1d0] ss:$8 sps:$4 sm:$0xff]  }
 0xf78   :  { %14499 = vmatprep.subr.bf16.mxu1 %v18565_v9  ;;  %14943 = vmatpush1.bf16.msra.mxu0 %v18608_v50  ;;  %v18668_v9 = vld [vmem:[#allocation21 + $0x1c0] ss:$8 sps:$4 sm:$0xff]   ;;  %v18677_v50 = vld [vmem:[#allocation21 + $0x190] ss:$8 sps:$4 sm:$0xff]  }
 0xf79   :  { %14944 = vmatprep.subr.bf16.mxu0 %v18613_v14 }
 0xf7b   :  { %14500 = vmatpush2.bf16.msra.mxu1 %v18563_v4  ;;  %v18671_v4 = vld [vmem:[#allocation21 + $0x1b0] ss:$8 sps:$4 sm:$0xff]  }
 0xf7c   :  { %14501 = vmatprep.subr.bf16.mxu1 %v18568_v59  ;;  %14945 = vmatpush2.bf16.msra.mxu0 %v18611_v10  ;;  %v18674_v59 = vld [vmem:[#allocation21 + $0x1a0] ss:$8 sps:$4 sm:$0xff]  }
 0xf7d   :  { %14946 = vmatprep.subr.bf16.mxu0 %v18616_v34  ;;  %v18680_v10 = vld [vmem:[#allocation21 + $0x180] ss:$8 sps:$4 sm:$0xff]  }
 0xf7e   :  { %v13694_v34 = vld [vmem:[#allocation26 + $0x26] sm:$0xf] }
 0xf7f   :  { %14502 = vmatpush2.bf16.msra.mxu1 %v18566_v8  ;;  %v18679_v8 = vld [vmem:[#allocation21 + $0x194] ss:$8 sps:$4 sm:$0xff]  }
 0xf80   :  { %14503 = vmatprep.subr.bf16.mxu1 %v18571_v24  ;;  %14947 = vmatpush2.bf16.msra.mxu0 %v18614_v36  ;;  %v14347_v36 = vrot.slane %v13694_v34, %v19399_v40 }
 0xf81   :  { %14948 = vmatprep.subr.bf16.mxu0 %v18619_v6 }
 0xf83   :  { %14504 = vmatpush2.bf16.msra.mxu1 %v18569_v52  ;;  %v18682_v52 = vld [vmem:[#allocation21 + $0x184] ss:$8 sps:$4 sm:$0xff]  }
 0xf84   :  { %14505 = vmatprep.subr.bf16.mxu1 %v18574_v54  ;;  %14949 = vmatpush2.bf16.msra.mxu0 %v18617_v1 }
 0xf85   :  { %14950 = vmatprep.subr.bf16.mxu0 %v18622_v11 }
 0xf87   :  { %14506 = vmatpush2.bf16.msra.mxu1 %v18572_v19  ;;  %v14343_v19 = vrot.slane %v13694_v34, %v19393_v37 }
 0xf88   :  { %14507 = vmatprep.subr.bf16.mxu1 %v18577_v60  ;;  %14951 = vmatpush2.bf16.msra.mxu0 %v18620_v51 }
 0xf89   :  { %14952 = vmatprep.subr.bf16.mxu0 %v18625_v18 }
 0xf8b   :  { %14508 = vmatpush2.bf16.msra.mxu1 %v18575_v46 }
 0xf8c   :  { %14509 = vmatprep.subr.bf16.mxu1 %v18580_v33  ;;  %14953 = vmatpush2.bf16.msra.mxu0 %v18623_v12 }
 0xf8d   :  { %14954 = vmatprep.subr.bf16.mxu0 %v18628_v53 }
 0xf8f   :  { %14510 = vmatpush2.bf16.msra.mxu1 %v18578_v16 }
 0xf90   :  { %14511 = vmatprep.subr.bf16.mxu1 %v18583_v21  ;;  %14955 = vmatpush2.bf16.msra.mxu0 %v18626_v22 }
 0xf91   :  { %14956 = vmatprep.subr.bf16.mxu0 %v18631_v0  ;;  %v14351_v0 = vrot.slane %v13694_v34, %v19396_v38  ;;  %v18686_v38 = vld [vmem:[#allocation23 + $0x60] ss:$8 sps:$4 sm:$0xff]  }
 0xf93   :  { %14512 = vmatpush2.bf16.msra.mxu1 %v18581_v27 }
 0xf94   :  { %14513 = vmatprep.subr.bf16.mxu1 %v18586_v47  ;;  %14957 = vmatpush2.bf16.msra.mxu0 %v18629_v39  ;;  %v14355_v39 = vrot.slane %v13694_v34, %v19402_v41  ;;  %v18691_v41 = vld [vmem:[#allocation23 + $0x54] ss:$8 sps:$4 sm:$0xff]  }
 0xf95   :  { %14958 = vmatprep.subr.bf16.mxu0 %v18634_v32  ;;  %v18727_v34 = vld [vmem:[#allocation23 + $0x94] ss:$8 sps:$4 sm:$0xff]  }
 0xf97   :  { %14514 = vmatpush2.bf16.msra.mxu1 %v18584_v28 }
 0xf98   :  { %14959 = vmatpush2.bf16.msra.mxu0 %v18632_v56  ;;  %14969 = vmatprep.subr.bf16.mxu1 %v18637_v30 }
 0xf9a   :  { %14516 = vmatmul.mubr.bf16.vlgmr.msra.gmra.mxu1 %v19932_v49  ;;  %v18646_v49 = vld [vmem:[#allocation21 + $0x144] ss:$8 sps:$4 sm:$0xff]  }
 0xf9b   :  { %14970 = vmatpush1.bf16.msra.mxu1 %v18635_v25 }
 0xf9c   :  { %14971 = vmatprep.subr.bf16.mxu1 %v18640_v44 }
 0xf9f   :  { %14972 = vmatpush1.bf16.msra.mxu1 %v18638_v42 }
 0xfa0   :  { %14973 = vmatprep.subr.bf16.mxu1 %v18643_v29 }
 0xfa3   :  { %14974 = vmatpush1.bf16.msra.mxu1 %v18641_v48 }
 0xfa4   :  { %14975 = vmatprep.subr.bf16.mxu1 %v18646_v49 }
 0xfa7   :  { %14976 = vmatpush1.bf16.msra.mxu1 %v18644_v61 }
 0xfa8   :  { %14977 = vmatprep.subr.bf16.mxu1 %v18649_v58 }
 0xfab   :  { %14978 = vmatpush1.bf16.msra.mxu1 %v18647_v23 }
 0xfac   :  { %14979 = vmatprep.subr.bf16.mxu1 %v18652_v45  ;;  %v18683_v45 = vld [vmem:[#allocation23 + $0x70] ss:$8 sps:$4 sm:$0xff]  }
 0xfaf   :  { %14980 = vmatpush1.bf16.msra.mxu1 %v18650_v55  ;;  %v18685_v55 = vld [vmem:[#allocation23 + $0x74] ss:$8 sps:$4 sm:$0xff]  }
 0xfb0   :  { %14981 = vmatprep.subr.bf16.mxu1 %v18655_v20  ;;  %v18688_v20 = vld [vmem:[#allocation23 + $0x64] ss:$8 sps:$4 sm:$0xff]   ;;  %15218 = vmatprep.subr.bf16.mxu0 %v18685_v55 }
 0xfb3   :  { %14982 = vmatpush1.bf16.msra.mxu1 %v18653_v5  ;;  %v18689_v5 = vld [vmem:[#allocation23 + $0x50] ss:$8 sps:$4 sm:$0xff]  }
 0xfb4   :  { %14983 = vmatprep.subr.bf16.mxu1 %v18658_v3  ;;  %v18694_v3 = vld [vmem:[#allocation23 + $0x44] ss:$8 sps:$4 sm:$0xff]  }
 0xfb7   :  { %14984 = vmatpush1.bf16.msra.mxu1 %v18656_v63  ;;  %v18692_v63 = vld [vmem:[#allocation23 + $0x40] ss:$8 sps:$4 sm:$0xff]  }
 0xfb8   :  { %14985 = vmatprep.subr.bf16.mxu1 %v18661_v35  ;;  %v18697_v35 = vld [vmem:[#allocation23 + $0x34] ss:$8 sps:$4 sm:$0xff]  }
 0xfbb   :  { %14986 = vmatpush2.bf16.msra.mxu1 %v18659_v57  ;;  %v18695_v57 = vld [vmem:[#allocation23 + $0x30] ss:$8 sps:$4 sm:$0xff]  }
 0xfbc   :  { %14987 = vmatprep.subr.bf16.mxu1 %v18664_v17  ;;  %v18700_v17 = vld [vmem:[#allocation23 + $0x24] ss:$8 sps:$4 sm:$0xff]  }
 0xfbf   :  { %14988 = vmatpush2.bf16.msra.mxu1 %v18662_v62  ;;  %v18698_v62 = vld [vmem:[#allocation23 + $0x20] ss:$8 sps:$4 sm:$0xff]  }
 0xfc0   :  { %14989 = vmatprep.subr.bf16.mxu1 %v18667_v43  ;;  %v18703_v43 = vld [vmem:[#allocation23 + $0x14] ss:$8 sps:$4 sm:$0xff]  }
 0xfc3   :  { %14990 = vmatpush2.bf16.msra.mxu1 %v18665_v2  ;;  %v18701_v2 = vld [vmem:[#allocation23 + $0x10] ss:$8 sps:$4 sm:$0xff]  }
 0xfc4   :  { %14991 = vmatprep.subr.bf16.mxu1 %v18670_v7  ;;  %v18706_v7 = vld [vmem:[#allocation23 + $0x4] ss:$8 sps:$4 sm:$0xff]  }
 0xfc7   :  { %14992 = vmatpush2.bf16.msra.mxu1 %v18668_v9  ;;  %v18704_v9 = vld [vmem:[#allocation23] ss:$8 sps:$4 sm:$0xff]  }
 0xfc8   :  { %14993 = vmatprep.subr.bf16.mxu1 %v18673_v15  ;;  %v18709_v15 = vld [vmem:[#allocation23 + $0xf4] ss:$8 sps:$4 sm:$0xff]  }
 0xfcb   :  { %14994 = vmatpush2.bf16.msra.mxu1 %v18671_v4  ;;  %v18707_v4 = vld [vmem:[#allocation23 + $0xf0] ss:$8 sps:$4 sm:$0xff]  }
 0xfcc   :  { %14995 = vmatprep.subr.bf16.mxu1 %v18676_v13  ;;  %v18712_v13 = vld [vmem:[#allocation23 + $0xe4] ss:$8 sps:$4 sm:$0xff]  }
 0xfcf   :  { %14996 = vmatpush2.bf16.msra.mxu1 %v18674_v59  ;;  %v18710_v59 = vld [vmem:[#allocation23 + $0xe0] ss:$8 sps:$4 sm:$0xff]  }
 0xfd0   :  { %14997 = vmatprep.subr.bf16.mxu1 %v18679_v8  ;;  %v18713_v8 = vld [vmem:[#allocation23 + $0xd0] ss:$8 sps:$4 sm:$0xff]  }
 0xfd3   :  { %14998 = vmatpush2.bf16.msra.mxu1 %v18677_v50  ;;  %v18718_v50 = vld [vmem:[#allocation23 + $0xc4] ss:$8 sps:$4 sm:$0xff]  }
 0xfd4   :  { %14999 = vmatprep.subr.bf16.mxu1 %v18682_v52  ;;  %v18719_v52 = vld [vmem:[#allocation23 + $0xb0] ss:$8 sps:$4 sm:$0xff]  }
 0xfd7   :  { %15000 = vmatpush2.bf16.msra.mxu1 %v18680_v10  ;;  %v18724_v10 = vld [vmem:[#allocation23 + $0xa4] ss:$8 sps:$4 sm:$0xff]  }
 0xfda   :  { %v14394_v26 = vpop.f32.mrf.mxu0 }
 0xfdb   :  { %v14395_v60 = vadd.f32 %v14394_v26, %v14343_v19  ;;  %v18715_v26 = vld [vmem:[#allocation23 + $0xd4] ss:$8 sps:$4 sm:$0xff]   ;;  %v18725_v19 = vld [vmem:[#allocation23 + $0x90] ss:$8 sps:$4 sm:$0xff]  }
 0xfdc   :  { %v14396_v24 = vpop.f32.mrf.mxu0 }
 0xfdd   :  { %v14397_v1 = vadd.f32 %v14396_v24, %v14347_v36  ;;  %v18716_v24 = vld [vmem:[#allocation23 + $0xc0] ss:$8 sps:$4 sm:$0xff]   ;;  %v18730_v36 = vld [vmem:[#allocation23 + $0x84] ss:$8 sps:$4 sm:$0xff]  }
 0xfde   :  { %v14398_v14 = vpop.f32.mrf.mxu0 }
 0xfdf   :  { %v18721_v14 = vld [vmem:[#allocation23 + $0xb4] ss:$8 sps:$4 sm:$0xff]  }
 0xfe0   :  { %v14399_v54 = vpop.f32.mrf.mxu0 }
 0xfe1   :  { %v18722_v54 = vld [vmem:[#allocation23 + $0xa0] ss:$8 sps:$4 sm:$0xff]  }
0x101a   :  { %v14435_v6 = vpop.f32.mrf.mxu1  ;;  %v14476_v46 = vpop.f32.mrf.mxu0 }
0x101b   :  { %v14436_v33 = vadd.f32 %v14435_v6, %v14395_v60  ;;  %v14477_v32 = vadd.f32 %v14476_v46, %v14351_v0  ;;  %v18728_v60 = vld [vmem:[#allocation23 + $0x80] ss:$8 sps:$4 sm:$0xff]   ;;  %v18731_v6 = vld [vmem:[#allocation24 + $0x70] ss:$8 sps:$4 sm:$0xff]   ;;  %v18733_v46 = vld [vmem:[#allocation24 + $0x74] ss:$8 sps:$4 sm:$0xff]  }
0x101c   :  { %v14437_v11 = vpop.f32.mrf.mxu1  ;;  %v14478_v16 = vpop.f32.mrf.mxu0  ;;  %15467 = vmatprep.subr.bf16.mxu1 %v18733_v46  ;;  %v18752_v0 = vld [vmem:[#allocation24] ss:$8 sps:$4 sm:$0xff]  }
0x101d   :  { %v14438_v51 = vadd.f32 %v14437_v11, %v14397_v1  ;;  %v14524_v21 = vmax.f32 %v14436_v33, 0.0  ;;  %v14479_v30 = vadd.f32 %v14478_v16, %v14355_v39  ;;  %v18736_v1 = vld [vmem:[#allocation24 + $0x64] ss:$8 sps:$4 sm:$0xff]   ;;  %v18734_v33 = vld [vmem:[#allocation24 + $0x60] ss:$8 sps:$4 sm:$0xff]  }
0x101e   :  { %v14439_v18 = vpop.f32.mrf.mxu1  ;;  %v14480_v27 = vpop.f32.mrf.mxu0  ;;  %v18739_v11 = vld [vmem:[#allocation24 + $0x54] ss:$8 sps:$4 sm:$0xff]   ;;  %v18737_v16 = vld [vmem:[#allocation24 + $0x50] ss:$8 sps:$4 sm:$0xff]  }
0x101f   :  { %v14525_v12 = vmax.f32 %v14438_v51, 0.0  ;;  %v14593_v22 = vpack.c.bf16 %v14524_v21, %v14524_v21  ;;  %v18742_v51 = vld [vmem:[#allocation24 + $0x44] ss:$8 sps:$4 sm:$0xff]   ;;  %v18740_v21 = vld [vmem:[#allocation24 + $0x40] ss:$8 sps:$4 sm:$0xff]  }
0x1020   :  { %v14440_v47 = vpop.f32.mrf.mxu1  ;;  %v14481_v53 = vpop.f32.mrf.mxu0  ;;  %v18745_v18 = vld [vmem:[#allocation24 + $0x34] ss:$8 sps:$4 sm:$0xff]   ;;  %v18743_v27 = vld [vmem:[#allocation24 + $0x30] ss:$8 sps:$4 sm:$0xff]  }
0x1021   :  { %v14594_v28 = vpack.c.bf16 %v14525_v12, %v14525_v12  ;;  %v18748_v12 = vld [vmem:[#allocation24 + $0x24] ss:$8 sps:$4 sm:$0xff]   ;;  %v18746_v47 = vld [vmem:[#allocation24 + $0x20] ss:$8 sps:$4 sm:$0xff]   ;;  %v18751_v53 = vld [vmem:[#allocation24 + $0x14] ss:$8 sps:$4 sm:$0xff]  }
0x1022   :  { %v18757_v39 = vld [vmem:[#allocation24 + $0xf4] ss:$8 sps:$4 sm:$0xff]   ;;  %v15520_v46 = vld [vmem:[%s20071_s13 + $0x50] sm:$0xff] }
0x1023   :  { %14960 = vmatprep.mubr.bf16.mxu0 %v14594_v28  ;;  %v18749_v28 = vld [vmem:[#allocation24 + $0x10] ss:$8 sps:$4 sm:$0xff]  }
0x1024   :  { %14961 = vmatmul.mubr.bf16.vlgmr.msra.gmra.mxu0 %v14593_v22  ;;  %v18754_v22 = vld [vmem:[#allocation24 + $0x4] ss:$8 sps:$4 sm:$0xff]  }
0x1025   :  { %15219 = vmatpush1.bf16.msra.mxu0 %v18683_v45 }
0x1026   :  { %15220 = vmatprep.subr.bf16.mxu0 %v18688_v20 }
0x1029   :  { %15221 = vmatpush1.bf16.msra.mxu0 %v18686_v38  ;;  %v14592_v38 = vld [vmem:[#allocation26 + $0x2a] sm:$0x3] }
0x102a   :  { %15222 = vmatprep.subr.bf16.mxu0 %v18691_v41  ;;  %v14921_v41 = vrot.slane %v14592_v38, %v19393_v37 }
0x102d   :  { %15223 = vmatpush1.bf16.msra.mxu0 %v18689_v5  ;;  %v14925_v5 = vrot.slane %v14592_v38, %v19399_v40  ;;  %v15511_v38 = vld [vmem:[%s20071_s13 + $0x8] sm:$0xff] }
0x102e   :  { %15224 = vmatprep.subr.bf16.mxu0 %v18694_v3 }
0x1031   :  { %15225 = vmatpush1.bf16.msra.mxu0 %v18692_v63 }
0x1032   :  { %15226 = vmatprep.subr.bf16.mxu0 %v18697_v35 }
0x1035   :  { %15227 = vmatpush1.bf16.msra.mxu0 %v18695_v57 }
0x1036   :  { %15228 = vmatprep.subr.bf16.mxu0 %v18700_v17 }
0x1039   :  { %15229 = vmatpush1.bf16.msra.mxu0 %v18698_v62 }
0x103a   :  { %15230 = vmatprep.subr.bf16.mxu0 %v18703_v43 }
0x103d   :  { %15231 = vmatpush1.bf16.msra.mxu0 %v18701_v2 }
0x103e   :  { %15232 = vmatprep.subr.bf16.mxu0 %v18706_v7 }
0x1041   :  { %15233 = vmatpush1.bf16.msra.mxu0 %v18704_v9 }
0x1042   :  { %15234 = vmatprep.subr.bf16.mxu0 %v18709_v15 }
0x1045   :  { %15235 = vmatpush2.bf16.msra.mxu0 %v18707_v4 }
0x1046   :  { %15236 = vmatprep.subr.bf16.mxu0 %v18712_v13  ;;  %v18775_v13 = vld [vmem:[#allocation24 + $0x94] ss:$8 sps:$4 sm:$0xff]  }
0x1049   :  { %15237 = vmatpush2.bf16.msra.mxu0 %v18710_v59  ;;  %v18773_v59 = vld [vmem:[#allocation24 + $0x90] ss:$8 sps:$4 sm:$0xff]  }
0x104a   :  { %15238 = vmatprep.subr.bf16.mxu0 %v18715_v26  ;;  %v18778_v26 = vld [vmem:[#allocation24 + $0x84] ss:$8 sps:$4 sm:$0xff]  }
0x104d   :  { %15239 = vmatpush2.bf16.msra.mxu0 %v18713_v8  ;;  %v18776_v8 = vld [vmem:[#allocation24 + $0x80] ss:$8 sps:$4 sm:$0xff]  }
0x104e   :  { %15240 = vmatprep.subr.bf16.mxu0 %v18718_v50  ;;  %v15541_v50 = vld [vmem:[%s20071_s13 + $0xf8] sm:$0xff] }
0x1051   :  { %15241 = vmatpush2.bf16.msra.mxu0 %v18716_v24  ;;  %v15525_v24 = vld [vmem:[%s20071_s13 + $0x78] sm:$0xff] }
0x1052   :  { %15242 = vmatprep.subr.bf16.mxu0 %v18721_v14  ;;  %v15540_v14 = vld [vmem:[%s20071_s13 + $0xf0] sm:$0xff] }
0x1055   :  { %15243 = vmatpush2.bf16.msra.mxu0 %v18719_v52  ;;  %v15524_v52 = vld [vmem:[%s20071_s13 + $0x70] sm:$0xff] }
0x1056   :  { %15244 = vmatprep.subr.bf16.mxu0 %v18724_v10  ;;  %v15539_v10 = vld [vmem:[%s20071_s13 + $0xe8] sm:$0xff] }
0x1059   :  { %15245 = vmatpush2.bf16.msra.mxu0 %v18722_v54  ;;  %v15523_v54 = vld [vmem:[%s20071_s13 + $0x68] sm:$0xff] }
0x105a   :  { %v14517_v56 = vpop.f32.mrf.mxu1  ;;  %15246 = vmatprep.subr.bf16.mxu0 %v18727_v34  ;;  %v15538_v34 = vld [vmem:[%s20071_s13 + $0xe0] sm:$0xff] }
0x105b   :  { %v14518_v25 = vadd.f32 %v14517_v56, %v14477_v32  ;;  %v18755_v32 = vld [vmem:[#allocation24 + $0xf0] ss:$8 sps:$4 sm:$0xff]   ;;  %v18760_v56 = vld [vmem:[#allocation24 + $0xe4] ss:$8 sps:$4 sm:$0xff]  }
0x105c   :  { %v14519_v44 = vpop.f32.mrf.mxu1 }
0x105d   :  { %v14520_v42 = vadd.f32 %v14519_v44, %v14479_v30  ;;  %v14526_v29 = vmax.f32 %v14518_v25, 0.0  ;;  %15247 = vmatpush2.bf16.msra.mxu0 %v18725_v19  ;;  %v18758_v30 = vld [vmem:[#allocation24 + $0xe0] ss:$8 sps:$4 sm:$0xff]   ;;  %v18763_v25 = vld [vmem:[#allocation24 + $0xd4] ss:$8 sps:$4 sm:$0xff]  }
0x105e   :  { %v14521_v48 = vpop.f32.mrf.mxu1  ;;  %15248 = vmatprep.subr.bf16.mxu0 %v18730_v36  ;;  %v18761_v44 = vld [vmem:[#allocation24 + $0xd0] ss:$8 sps:$4 sm:$0xff]  }
0x105f   :  { %v14527_v49 = vmax.f32 %v14520_v42, 0.0  ;;  %v14595_v23 = vpack.c.bf16 %v14526_v29, %v14526_v29  ;;  %v18766_v42 = vld [vmem:[#allocation24 + $0xc4] ss:$8 sps:$4 sm:$0xff]   ;;  %v18764_v29 = vld [vmem:[#allocation24 + $0xc0] ss:$8 sps:$4 sm:$0xff]   ;;  %v15537_v36 = vld [vmem:[%s20071_s13 + $0xd8] sm:$0xff] }
0x1060   :  { %v14522_v61 = vpop.f32.mrf.mxu1  ;;  %v18769_v48 = vld [vmem:[#allocation24 + $0xb4] ss:$8 sps:$4 sm:$0xff]  }
0x1061   :  { %v14596_v58 = vpack.c.bf16 %v14527_v49, %v14527_v49  ;;  %15249 = vmatpush2.bf16.msra.mxu0 %v18728_v60  ;;  %v18767_v49 = vld [vmem:[#allocation24 + $0xb0] ss:$8 sps:$4 sm:$0xff]   ;;  %v18772_v61 = vld [vmem:[#allocation24 + $0xa4] ss:$8 sps:$4 sm:$0xff]  }
0x1062   :  { %17588 = vmatprep.subr.mxu0 %v15541_v50  ;;  %v15522_v19 = vld [vmem:[%s20071_s13 + $0x60] sm:$0xff]  ;;  %v15521_v60 = vld [vmem:[%s20071_s13 + $0x58] sm:$0xff] }
0x1063   :  { %15001 = vmatprep.mubr.bf16.mxu1 %v14596_v58  ;;  %v18770_v58 = vld [vmem:[#allocation24 + $0xa0] ss:$8 sps:$4 sm:$0xff]  }
0x1064   :  { %15002 = vmatmul.mubr.bf16.vlgmr.msra.gmra.mxu1 %v14595_v23 }
0x1065   :  { %15468 = vmatpush1.bf16.msra.mxu1 %v18731_v6  ;;  %v15536_v6 = vld [vmem:[%s20071_s13 + $0xd0] sm:$0xff] }
0x1066   :  { %15469 = vmatprep.subr.bf16.mxu1 %v18736_v1  ;;  %v15535_v1 = vld [vmem:[%s20071_s13 + $0xc8] sm:$0xff] }
0x1069   :  { %15470 = vmatpush1.bf16.msra.mxu1 %v18734_v33  ;;  %v15519_v33 = vld [vmem:[%s20071_s13 + $0x48] sm:$0xff] }
0x106a   :  { %15471 = vmatprep.subr.bf16.mxu1 %v18739_v11  ;;  %v15534_v11 = vld [vmem:[%s20071_s13 + $0xc0] sm:$0xff] }
0x106d   :  { %15472 = vmatpush1.bf16.msra.mxu1 %v18737_v16  ;;  %v15518_v16 = vld [vmem:[%s20071_s13 + $0x40] sm:$0xff] }
0x106e   :  { %15473 = vmatprep.subr.bf16.mxu1 %v18742_v51  ;;  %v15533_v51 = vld [vmem:[%s20071_s13 + $0xb8] sm:$0xff] }
0x1071   :  { %15474 = vmatpush1.bf16.msra.mxu1 %v18740_v21  ;;  %v15517_v21 = vld [vmem:[%s20071_s13 + $0x38] sm:$0xff] }
0x1072   :  { %15475 = vmatprep.subr.bf16.mxu1 %v18745_v18  ;;  %v15532_v18 = vld [vmem:[%s20071_s13 + $0xb0] sm:$0xff] }
0x1075   :  { %15476 = vmatpush1.bf16.msra.mxu1 %v18743_v27  ;;  %v15516_v27 = vld [vmem:[%s20071_s13 + $0x30] sm:$0xff] }
0x1076   :  { %15477 = vmatprep.subr.bf16.mxu1 %v18748_v12  ;;  %v15531_v12 = vld [vmem:[%s20071_s13 + $0xa8] sm:$0xff] }
0x1079   :  { %15478 = vmatpush1.bf16.msra.mxu1 %v18746_v47  ;;  %v15515_v47 = vld [vmem:[%s20071_s13 + $0x28] sm:$0xff] }
0x107a   :  { %15479 = vmatprep.subr.bf16.mxu1 %v18751_v53  ;;  %v15530_v53 = vld [vmem:[%s20071_s13 + $0xa0] sm:$0xff] }
0x107d   :  { %15480 = vmatpush1.bf16.msra.mxu1 %v18749_v28  ;;  %v15514_v28 = vld [vmem:[%s20071_s13 + $0x20] sm:$0xff] }
0x107e   :  { %15481 = vmatprep.subr.bf16.mxu1 %v18754_v22  ;;  %v15044_v22 = vld [vmem:[#allocation26 + $0x2c] sm:$0x3] }
0x1081   :  { %15482 = vmatpush1.bf16.msra.mxu1 %v18752_v0  ;;  %v15211_v0 = vrot.slane %v15044_v22, %v19393_v37 }
0x1082   :  { %15483 = vmatprep.subr.bf16.mxu1 %v18757_v39  ;;  %v15215_v39 = vrot.slane %v15044_v22, %v19399_v40 }
0x1085   :  { %15484 = vmatpush2.bf16.msra.mxu1 %v18755_v32 }
0x1086   :  { %15485 = vmatprep.subr.bf16.mxu1 %v18760_v56 }
0x1089   :  { %15486 = vmatpush2.bf16.msra.mxu1 %v18758_v30 }
0x108a   :  { %15487 = vmatprep.subr.bf16.mxu1 %v18763_v25 }
0x108d   :  { %15488 = vmatpush2.bf16.msra.mxu1 %v18761_v44 }
0x108e   :  { %15489 = vmatprep.subr.bf16.mxu1 %v18766_v42 }
0x1091   :  { %15490 = vmatpush2.bf16.msra.mxu1 %v18764_v29 }
0x1092   :  { %15491 = vmatprep.subr.bf16.mxu1 %v18769_v48 }
0x1095   :  { %15492 = vmatpush2.bf16.msra.mxu1 %v18767_v49 }
0x1096   :  { %15493 = vmatprep.subr.bf16.mxu1 %v18772_v61 }
0x1099   :  { %15494 = vmatpush2.bf16.msra.mxu1 %v18770_v58  ;;  %v15529_v58 = vld [vmem:[%s20071_s13 + $0x98] sm:$0xff] }
0x109a   :  { %15495 = vmatprep.subr.bf16.mxu1 %v18775_v13 }
0x109d   :  { %15496 = vmatpush2.bf16.msra.mxu1 %v18773_v59 }
0x109e   :  { %15497 = vmatprep.subr.bf16.mxu1 %v18778_v26 }
0x10a1   :  { %15498 = vmatpush2.bf16.msra.mxu1 %v18776_v8 }
0x10e4   :  { %v14962_v23 = vpop.f32.mrf.mxu0 }
0x10e5   :  { %v14963_v3 = vadd.f32 %v14962_v23, %v14921_v41  ;;  %v15513_v23 = vld [vmem:[%s20071_s13 + $0x18] sm:$0xff]  ;;  %v15526_v41 = vld [vmem:[%s20071_s13 + $0x80] sm:$0xff] }
0x10e6   :  { %v14964_v45 = vpop.f32.mrf.mxu0 }
0x10e7   :  { %v14965_v35 = vadd.f32 %v14964_v45, %v14925_v5  ;;  %v15528_v45 = vld [vmem:[%s20071_s13 + $0x90] sm:$0xff]  ;;  %v15510_v5 = vld [vmem:[%s20071_s13] sm:$0xff] }
0x10e8   :  { %v14966_v55 = vpop.f32.mrf.mxu0 }
0x10e9   :  { %v15512_v55 = vld [vmem:[%s20071_s13 + $0x10] sm:$0xff] }
0x10ea   :  { %v14967_v20 = vpop.f32.mrf.mxu0 }
0x10eb   :  { %v15527_v20 = vld [vmem:[%s20071_s13 + $0x88] sm:$0xff]  ;;  %s19152_s13 = smov 123  }
0x1124   :  { %v15003_v63 = vpop.f32.mrf.mxu1 }
0x1125   :  { %v15004_v57 = vadd.f32 %v15003_v63, %v14963_v3  ;;  %v15615_v3 = vld [vmem:[%s20083_s25] sm:$0xff]  ;;  %v19148_v63 = vmov 2  }
0x1126   :  { %v15005_v17 = vpop.f32.mrf.mxu1  ;;  %17813 = vset.pattern.permute.xlu1 %v19148_v63 }
0x1127   :  { %v15006_v62 = vadd.f32 %v15005_v17, %v14965_v35  ;;  %v15010_v43 = vmax.f32 %v15004_v57, 0.0  ;;  %v19149_v35 = vmov 1   ;;  %15659 = vperm.xlu1 %17813, %v15615_v3   ;;  %v15616_v57 = vld [vmem:[%s20083_s25 + $0x8] sm:$0xff]  ;;  %v19150_v17 = vmov 3   ;;  %s19153_s25 = smov 118  }
0x1128   :  { %v15007_v2 = vpop.f32.mrf.mxu1  ;;  %17812 = vset.pattern.permute.xlu0 %v19149_v35 }
0x1129   :  { %v15011_v7 = vmax.f32 %v15006_v62, 0.0  ;;  %v15045_v4 = vpack.c.bf16 %v15010_v43, %v15010_v43  ;;  %15639 = vperm.xlu0 %17812, %v15615_v3   ;;  %v19151_v62 = vmov 4   ;;  %v15293_v43 = vld [vmem:[#allocation26 + $0x2e] sm:$0x3] }
0x112a   :  { %v15008_v9 = vpop.f32.mrf.mxu1  ;;  %v15460_v2 = vrot.slane %v15293_v43, %v19393_v37 }
0x112b   :  { %v15046_v15 = vpack.c.bf16 %v15011_v7, %v15011_v7  ;;  %15663 = vperm.xlu1 %17813, %v15616_v57   ;;  %v15464_v7 = vrot.slane %v15293_v43, %v19399_v40 }
0x112d   :  { %15250 = vmatprep.mubr.bf16.mxu0 %v15046_v15  ;;  %15643 = vperm.xlu0 %17812, %v15616_v57  }
0x112e   :  { %15251 = vmatmul.mubr.bf16.vlgmr.msra.gmra.mxu0 %v15045_v4 }
0x112f   :  { %17589 = vmatpush3.msra.mxu0 %v15525_v24  ;;  %17815 = vset.pattern.permute.xlu1 %v19150_v17 }
0x1130   :  { %17590 = vmatprep.subr.mxu0 %v15540_v14  ;;  %15683 = vperm.xlu1 %17815, %v15616_v57   ;;  %v15542_v14 = vld [vmem:[#allocation26 + $0x30] sm:$0x1] }
0x1131   :  { %17591 = vmatpush3.msra.mxu0 %v15524_v52  ;;  %17814 = vset.pattern.permute.xlu0 %v19150_v17 }
0x1132   :  { %17592 = vmatprep.subr.mxu0 %v15539_v10  ;;  %15679 = vperm.xlu0 %17814, %v15615_v3  }
0x1133   :  { %17593 = vmatpush3.msra.mxu0 %v15523_v54 }
0x1134   :  { %17594 = vmatprep.subr.mxu0 %v15538_v34  ;;  %17816 = vset.pattern.permute.xlu1 %v19151_v62 }
0x1135   :  { %17595 = vmatpush3.msra.mxu0 %v15522_v19  ;;  %15699 = vperm.xlu1 %17816, %v15615_v3  }
0x1136   :  { %17596 = vmatprep.subr.mxu0 %v15537_v36  ;;  %17817 = vset.pattern.permute.xlu0 %v19151_v62 }
0x1137   :  { %17597 = vmatpush3.msra.mxu0 %v15521_v60  ;;  %15703 = vperm.xlu0 %17817, %v15616_v57  }
0x1138   :  { %17598 = vmatprep.subr.mxu0 %v15536_v6 }
0x1139   :  { %17599 = vmatpush3.msra.mxu0 %v15520_v46  ;;  %17818 = vset.pattern.permute.xlu1 %v19143_v31 }
0x113a   :  { %17600 = vmatprep.subr.mxu0 %v15535_v1  ;;  %15620 = vperm.xlu1 %17818, %v15615_v3  }
0x113b   :  { %17601 = vmatpush3.msra.mxu0 %v15519_v33 }
0x113c   :  { %17602 = vmatprep.subr.mxu0 %v15534_v11 }
0x113d   :  { %17603 = vmatpush3.msra.mxu0 %v15518_v16 }
0x113e   :  { %17604 = vmatprep.subr.mxu0 %v15533_v51  ;;  %15625 = vperm.xlu1 %17818, %v15616_v57  }
0x113f   :  { %17605 = vmatpush3.msra.mxu0 %v15517_v21 }
0x1140   :  { %17606 = vmatprep.subr.mxu0 %v15532_v18 }
0x1141   :  { %17607 = vmatpush3.msra.mxu0 %v15516_v27 }
0x1142   :  { %17608 = vmatprep.subr.mxu0 %v15531_v12 }
0x1143   :  { %17609 = vmatpush3.msra.mxu0 %v15515_v47 }
0x1144   :  { %17610 = vmatprep.subr.mxu0 %v15530_v53 }
0x1145   :  { %17611 = vmatpush3.msra.mxu0 %v15514_v28 }
0x1146   :  { %17612 = vmatprep.subr.mxu0 %v15529_v58 }
0x1147   :  { %17613 = vmatpush3.msra.mxu0 %v15513_v23 }
0x1148   :  { %17614 = vmatprep.subr.mxu0 %v15528_v45 }
0x1149   :  { %17615 = vmatpush3.msra.mxu0 %v15512_v55 }
0x114a   :  { %17616 = vmatprep.subr.mxu0 %v15527_v20 }
0x114b   :  { %17617 = vmatpush3.msra.mxu0 %v15511_v38 }
0x114c   :  { %17618 = vmatprep.subr.mxu0 %v15526_v41 }
0x114d   :  { %17619 = vmatpush3.msra.mxu0 %v15510_v5 }
0x11a2   :  { %v15660_v37 = vpop.permute.xlu1 %15659 }
0x11a4   :  { %v15640_v54 = vpop.permute.xlu0 %15639 }
0x11a6   :  { %v15664_v19 = vpop.permute.xlu1 %15663 }
0x11a8   :  { %v15644_v40 = vpop.permute.xlu0 %15643 }
0x11ab   :  { %v15684_v33 = vpop.permute.xlu1 %15683 }
0x11ad   :  { %v15680_v6 = vpop.permute.xlu0 %15679 }
0x11b0   :  { %v15700_v21 = vpop.permute.xlu1 %15699 }
0x11b2   :  { %v15704_v51 = vpop.permute.xlu0 %15703 }
0x11b5   :  { %v15621_v12 = vpop.permute.xlu1 %15620 }
0x11b9   :  { %v15626_v47 = vpop.permute.xlu1 %15625 }
0x11ee   :  { %v15252_v32 = vpop.f32.mrf.mxu0 }
0x11ef   :  { %v15253_v56 = vadd.f32 %v15252_v32, %v15211_v0 }
0x11f0   :  { %v15254_v30 = vpop.f32.mrf.mxu0 }
0x11f1   :  { %v15255_v25 = vadd.f32 %v15254_v30, %v15215_v39  ;;  %v15259_v44 = vmax.f32 %v15253_v56, 0.0 }
0x11f2   :  { %v15256_v42 = vpop.f32.mrf.mxu0 }
0x11f3   :  { %v15260_v29 = vmax.f32 %v15255_v25, 0.0  ;;  %v15294_v61 = vpack.c.bf16 %v15259_v44, %v15259_v44 }
0x11f4   :  { %v15257_v48 = vpop.f32.mrf.mxu0 }
0x11f5   :  { %v15295_v49 = vpack.c.bf16 %v15260_v29, %v15260_v29 }
0x11f7   :  { %15499 = vmatprep.mubr.bf16.mxu1 %v15295_v49 }
0x11f8   :  { %15500 = vmatmul.mubr.bf16.vlgmr.msra.gmra.mxu1 %v15294_v61 }
0x12b8   :  { %v15501_v9 = vpop.f32.mrf.mxu1 }
0x12b9   :  { %v15502_v15 = vadd.f32 %v15501_v9, %v15460_v2 }
0x12ba   :  { %v15503_v4 = vpop.f32.mrf.mxu1 }
0x12bb   :  { %v15504_v13 = vadd.f32 %v15503_v4, %v15464_v7  ;;  %v15508_v8 = vmax.f32 %v15502_v15, 0.0 }
0x12bc   :  { %v15505_v59 = vpop.f32.mrf.mxu1 }
0x12bd   :  { %v15509_v26 = vmax.f32 %v15504_v13, 0.0 }
0x12be   :  { %v15506_v50 = vpop.f32.mrf.mxu1 }
0x12bf   :  { %15607 = vmatprep.mubr.f32.mxu0 %v15509_v26 }
0x12c0   :  { %15608 = vmatmul.mubr.f32.vlgmr.msra.gmra.mxu0 %v15508_v8 }
0x1380   :  { %v17620_v24 = vpop.f32.mrf.mxu0 }
0x1382   :  { %v17621_v31 = vpop.f32.mrf.mxu0 }
0x1383   :  { %v17622_v52 = vadd.f32 %v17621_v31, %v17620_v24 }
0x1385   :  { %v15610_v10 = vadd.f32 %v17622_v52, %v15542_v14 }
0x1387   :  { %15614 = vst.msk [vmem:[#allocation5] sm:$0x1] %vm15613_vm5, %v15610_v10 }
0x138e   :  { %v17549_v34 = vld [vmem:[#allocation5] ss:$0 sm:$0xff] }
0x138f   :  { %v15647_v36 = vmul.f32 %v17549_v34, %v15644_v40  ;;  %v15646_v60 = vmul.f32 %v17549_v34, %v15640_v54  ;;  %v15667_v46 = vmul.f32 %v17549_v34, %v15664_v19  ;;  %v15666_v1 = vmul.f32 %v17549_v34, %v15660_v37 }
0x1390   :  { %v15687_v11 = vmul.f32 %v17549_v34, %v15684_v33  ;;  %v15686_v16 = vmul.f32 %v17549_v34, %v15680_v6  ;;  %v15707_v18 = vmul.f32 %v17549_v34, %v15704_v51  ;;  %v15706_v27 = vmul.f32 %v17549_v34, %v15700_v21 }
0x1391   :  { %15652 = vrot.lane.b32.xlu1 %v15647_v36, %s19152_s13  ;;  %15650 = vrot.lane.b32.xlu0 %v15646_v60, %s19152_s13  ;;  %v15635_v0 = vmul.f32 %v17549_v34, %v15626_v47  ;;  %v15634_v32 = vmul.f32 %v17549_v34, %v15621_v12 }
0x1395   :  { %15672 = vrot.lane.b32.xlu1 %v15667_v46, %s19153_s25  ;;  %15670 = vrot.lane.b32.xlu0 %v15666_v1, %s19153_s25 }
0x1399   :  { %15692 = vrot.lane.b32.xlu1 %v15687_v11, %s19154_s23  ;;  %15690 = vrot.lane.b32.xlu0 %v15686_v16, %s19154_s23 }
0x139d   :  { %15712 = vrot.lane.b32.xlu1 %v15707_v18, %s19155_s3  ;;  %15710 = vrot.lane.b32.xlu0 %v15706_v27, %s19155_s3 }
0x1403   :  { %v15653_v53 = vpop.permute.xlu1 %15652  ;;  %v15651_v28 = vpop.permute.xlu0 %15650 }
0x1404   :  { %v15657_v56 = vadd.f32 %v15653_v53, %v15635_v0  ;;  %v15656_v30 = vadd.f32 %v15651_v28, %v15634_v32 }
0x1407   :  { %v15673_v22 = vpop.permute.xlu1 %15672  ;;  %v15671_v39 = vpop.permute.xlu0 %15670 }
0x1408   :  { %v15677_v44 = vadd.f32 %v15673_v22, %v15657_v56  ;;  %v15676_v29 = vadd.f32 %v15671_v39, %v15656_v30 }
0x140b   :  { %v15693_v25 = vpop.permute.xlu1 %15692  ;;  %v15691_v42 = vpop.permute.xlu0 %15690 }
0x140c   :  { %v15697_v48 = vadd.f32 %v15693_v25, %v15677_v44  ;;  %v15696_v49 = vadd.f32 %v15691_v42, %v15676_v29 }
0x140f   :  { %v15713_v61 = vpop.permute.xlu1 %15712  ;;  %v15711_v23 = vpop.permute.xlu0 %15710 }
0x1410   :  { %v15717_v58 = vadd.f32 %v15713_v61, %v15697_v48  ;;  %v15716_v45 = vadd.f32 %v15711_v23, %v15696_v49 }
0x1412   :  { %15719 = vst.msk [vmem:[%s20076_s18 + $0x8] sm:$0xff] %vm272_vm3, %v15717_v58  ;;  %15718 = vst.msk [vmem:[%s20076_s18] sm:$0xff] %vm272_vm3, %v15716_v45 }
0x1413   :  { %15724 = vsyncpa [#allocation8], 1 }
0x1414   :  { %15725 = vsyncpa [#allocation10], 1 }
0x1415   :  { %15726 = vsyncpa [#allocation13], 1 }
0x1416   :  { %15727 = vsyncpa [#allocation16], 1 }
0x1417   :  { %15728 = vsyncpa [#allocation19], 1 }
0x1418   :  { %15729 = vsyncpa [#allocation22], 1 }
0x1419   :  { %15730 = vsyncpa [#allocation25], 1 }
0x141a   :  { %15731 = vsyncmov [#allocation6] }
0x141d   :  { %s15732_s20 = vpop.sfrf %15731 }
0x141e   :  { %p17550_p10 = scmp.ne.s32.totalorder %s15732_s20, 0 }
0x1420   :  { %15736 = shalt.err (%p17550_p10)  }
0x1421   :  { %15738 = vsyncmov [#allocation6 + $0x1] }
0x1424   :  { %s15739_s12 = vpop.sfrf %15738 }
0x1425   :  { %p17551_p11 = scmp.ne.s32.totalorder %s15739_s12, 0 }
0x1427   :  { %15743 = shalt.err (%p17551_p11)  }
0x1428   :  { %15745 = vsyncmov [#allocation6 + $0x2] }
0x142b   :  { %s15746_s5 = vpop.sfrf %15745 }
0x142c   :  { %p17552_p12 = scmp.ne.s32.totalorder %s15746_s5, 0 }
0x142e   :  { %15750 = shalt.err (%p17552_p12)  }

</bundles_post_ra>
